<compile_context>
chip_gen: v7x
topology: tpu7x:2x2x1
jax: 0.10.0
libtpu: 0.0.40
codegen_flags: <defaults>
</compile_context>

<pallas_src>
import math
from functools import partial, lru_cache

import jax
import jax.numpy as jnp
from jax.experimental import pallas as pl
from jax.experimental.pallas import tpu as pltpu


_PALLAS_MIN_M = 64           # below this, XLA dot / fused elementwise is cheaper
_FULL_M_STATS_LIMIT = 512    # single row-block (fused BN stats) up to this M
LANE = 128
EXPANSION = 4
STEM_OUT = 64
STEM_PAD = 128


def _ceil_to(x, m):
    return ((x + m - 1) // m) * m


# ----------------------------------------------------------------------------
# Pallas kernels
# ----------------------------------------------------------------------------

def _matmul_kernel(a_ref, b_ref, o_ref):
    # Full-K single-pass matmul: bf16 operands, f32 accumulation on the MXU.
    o_ref[...] = jnp.dot(a_ref[...], b_ref[...],
                         preferred_element_type=jnp.float32)


def _matmul_stats_kernel(a_ref, b_ref, o_ref, s_ref, q_ref):
    # Matmul + fused BN partial statistics (row-sum and row-sum-of-squares).
    o = jnp.dot(a_ref[...], b_ref[...], preferred_element_type=jnp.float32)
    o_ref[...] = o
    s_ref[...] = jnp.sum(o, axis=0, keepdims=True)
    q_ref[...] = jnp.sum(o * o, axis=0, keepdims=True)


@lru_cache(maxsize=None)
def _get_matmul(M, K, N, TM, TN, with_stats):
    grid = (M // TM, N // TN)
    a_spec = pl.BlockSpec((TM, K), lambda i, j: (i, 0))
    b_spec = pl.BlockSpec((K, TN), lambda i, j: (0, j))
    o_spec = pl.BlockSpec((TM, TN), lambda i, j: (i, j))
    gm = M // TM
    if with_stats:
        kernel = _matmul_stats_kernel
        out_shape = (jax.ShapeDtypeStruct((M, N), jnp.float32),
                     jax.ShapeDtypeStruct((gm, N), jnp.float32),
                     jax.ShapeDtypeStruct((gm, N), jnp.float32))
        out_specs = (o_spec,
                     pl.BlockSpec((1, TN), lambda i, j: (i, j)),
                     pl.BlockSpec((1, TN), lambda i, j: (i, j)))
        extra = 2 * gm * N * 4
    else:
        kernel = _matmul_kernel
        out_shape = jax.ShapeDtypeStruct((M, N), jnp.float32)
        out_specs = o_spec
        extra = 0
    return pl.pallas_call(
        kernel,
        out_shape=out_shape,
        grid_spec=pltpu.PrefetchScalarGridSpec(
            num_scalar_prefetch=0,
            grid=grid,
            in_specs=[a_spec, b_spec],
            out_specs=out_specs),
        compiler_params=pltpu.CompilerParams(
            dimension_semantics=("parallel", "parallel")),
        cost_estimate=pl.CostEstimate(
            flops=2 * M * N * K,
            transcendentals=0,
            bytes_accessed=M * K * 2 + K * N * 2 + M * N * 4 + extra),
    )


def _jnp_stats(xf):
    mean = jnp.mean(xf, axis=0)
    var = jnp.mean(jnp.square(xf - mean), axis=0)
    return mean, var


def _pick_tn(K, N):
    # Prefer fat lane-dense column tiles (fewer grid steps); keep the
    # double-buffered B block small enough for every generation's scoped VMEM.
    for tn in (512, 256, 128):
        if N % tn == 0 and 2 * K * tn * 2 <= (8 << 20):
            return tn
    return N


def pallas_matmul(a, b, want_stats=False):
    """a:[M,K], b:[K,N] -> f32 [M,N]; optionally also (mean, var) over rows."""
    M, K = a.shape
    Kb, N = b.shape
    assert K == Kb
    a = a.astype(jnp.bfloat16)
    b = b.astype(jnp.bfloat16)

    if M < _PALLAS_MIN_M:
        # Tiny-M: MXU row fill <1% and pallas_call launch cost exceeds the
        # arithmetic -> plain XLA dot inside the jit.
        out = jnp.dot(a, b, preferred_element_type=jnp.float32)
        return (out, _jnp_stats(out)) if want_stats else out

    fuse_stats = want_stats and M <= _FULL_M_STATS_LIMIT
    if M <= _FULL_M_STATS_LIMIT:
        TM = M                      # single fat row block (fewest grid steps)
    elif M % 256 == 0:
        TM = 256
    elif M % 128 == 0:
        TM = 128
    else:
        TM = M
    TN = _pick_tn(K, N)

    outs = _get_matmul(M, K, N, TM, TN, fuse_stats)(a, b)
    if fuse_stats:
        out, psum, psumsq = outs
        mean = jnp.sum(psum, axis=0) / M
        ex2 = jnp.sum(psumsq, axis=0) / M
        var = jnp.maximum(ex2 - mean * mean, 0.0)
        return out, (mean, var)
    out = outs
    if want_stats:
        return out, _jnp_stats(out)
    return out


def _scale_bias_kernel(x_ref, s_ref, b_ref, o_ref, *, relu):
    y = x_ref[...].astype(jnp.float32) * s_ref[...] + b_ref[...]
    if relu:
        y = jnp.maximum(y, 0.0)
    o_ref[...] = y.astype(o_ref.dtype)


@lru_cache(maxsize=None)
def _get_scale_bias(M, C, TM, relu, out_dtype):
    vec = pl.BlockSpec((1, C), lambda i: (0, 0))
    mat = pl.BlockSpec((TM, C), lambda i: (i, 0))
    return pl.pallas_call(
        partial(_scale_bias_kernel, relu=relu),
        out_shape=jax.ShapeDtypeStruct((M, C), out_dtype),
        grid_spec=pltpu.PrefetchScalarGridSpec(
            num_scalar_prefetch=0,
            grid=(M // TM,),
            in_specs=[mat, vec, vec],
            out_specs=mat),
        compiler_params=pltpu.CompilerParams(
            dimension_semantics=("parallel",)),
    )


def _fused_out_kernel(x_ref, sx_ref, bx_ref, r_ref, sr_ref, br_ref, o_ref):
    # Fused bottleneck epilogue: BN(out) + BN(residual) + add + ReLU.
    y = (x_ref[...].astype(jnp.float32) * sx_ref[...] + bx_ref[...]
         + r_ref[...].astype(jnp.float32) * sr_ref[...] + br_ref[...])
    o_ref[...] = jnp.maximum(y, 0.0).astype(o_ref.dtype)


@lru_cache(maxsize=None)
def _get_fused_out(M, C, TM, out_dtype):
    vec = pl.BlockSpec((1, C), lambda i: (0, 0))
    mat = pl.BlockSpec((TM, C), lambda i: (i, 0))
    return pl.pallas_call(
        _fused_out_kernel,
        out_shape=jax.ShapeDtypeStruct((M, C), out_dtype),
        grid_spec=pltpu.PrefetchScalarGridSpec(
            num_scalar_prefetch=0,
            grid=(M // TM,),
            in_specs=[mat, vec, vec, mat, vec, vec],
            out_specs=mat),
        compiler_params=pltpu.CompilerParams(
            dimension_semantics=("parallel",)),
    )


def _pick_row_tile(M, C):
    # Memory streamers: use full-M blocks while the f32 tile stays small.
    if M * C * 4 <= (4 << 20):
        return M
    for t in (512, 256, 128, 64, 32, 16, 8):
        if M % t == 0:
            return t
    return M


# ----------------------------------------------------------------------------
# NN building blocks (glue stays in jnp inside the single jit; hot paths Pallas)
# ----------------------------------------------------------------------------

def conv2d(x, w_mat, kh, kw, stride, padding, want_stats=False):
    """x: [N,H,W,Cin] NHWC, w_mat: [kh*kw*Cin, Cout] bf16.  No bias."""
    N, H, W, Cin = x.shape
    Cout = w_mat.shape[1]
    if padding:
        x = jnp.pad(x, ((0, 0), (padding, padding), (padding, padding), (0, 0)))
    Hp, Wp = H + 2 * padding, W + 2 * padding
    Ho = (Hp - kh) // stride + 1
    Wo = (Wp - kw) // stride + 1
    if kh == 1 and kw == 1:
        patches = x[:, 0:stride * Ho:stride, 0:stride * Wo:stride, :]
        patches = patches.reshape(N * Ho * Wo, Cin)
    else:
        # TODO(synk): fold kh*kw into a K-reduction grid axis instead of
        # materializing the im2col patch tensor (fused inside the jit today).
        cols = []
        for i in range(kh):
            for j in range(kw):
                cols.append(x[:, i:i + stride * Ho:stride,
                              j:j + stride * Wo:stride, :])
        patches = jnp.concatenate(cols, axis=-1).reshape(
            N * Ho * Wo, kh * kw * Cin)
    res = pallas_matmul(patches, w_mat, want_stats=want_stats)
    if want_stats:
        out, stats = res
        return out.reshape(N, Ho, Wo, Cout), stats
    return res.reshape(N, Ho, Wo, Cout)


def bn_apply(x, mean, var, gamma, beta, relu, eps=1e-5):
    """y = gamma*(x-mean)*rsqrt(var+eps)+beta (+ReLU); stored bf16."""
    shape = x.shape
    C = shape[-1]
    scale = gamma * jax.lax.rsqrt(var + eps)
    bias = beta - mean * scale
    xf = x.reshape(-1, C)
    M = xf.shape[0]
    if M < _PALLAS_MIN_M:
        y = xf.astype(jnp.float32) * scale + bias
        if relu:
            y = jnp.maximum(y, 0.0)
        return y.astype(jnp.bfloat16).reshape(shape)
    TM = _pick_row_tile(M, C)
    y = _get_scale_bias(M, C, TM, bool(relu), jnp.bfloat16)(
        xf, scale.reshape(1, C), bias.reshape(1, C))
    return y.reshape(shape)


def fused_bn_add_relu(out, sx, bx, res, sr, br):
    shape = out.shape
    C = shape[-1]
    of = out.reshape(-1, C)
    rf = res.reshape(-1, C)
    M = of.shape[0]
    if M < _PALLAS_MIN_M:
        y = (of.astype(jnp.float32) * sx + bx
             + rf.astype(jnp.float32) * sr + br)
        return jnp.maximum(y, 0.0).astype(jnp.bfloat16).reshape(shape)
    TM = _pick_row_tile(M, C)
    y = _get_fused_out(M, C, TM, jnp.bfloat16)(
        of, sx.reshape(1, C), bx.reshape(1, C),
        rf, sr.reshape(1, C), br.reshape(1, C))
    return y.reshape(shape)


def maxpool2d_3x3_s2(x):
    # TODO(synk): window pooling kept in jitted jnp glue (shifted-slice max).
    N, H, W, C = x.shape
    xp = jnp.pad(x, ((0, 0), (1, 1), (1, 1), (0, 0)),
                 constant_values=-jnp.inf)
    Ho = (H + 2 - 3) // 2 + 1
    Wo = (W + 2 - 3) // 2 + 1
    out = xp[:, 0:2 * Ho:2, 0:2 * Wo:2, :]
    for i in range(3):
        for j in range(3):
            if i == 0 and j == 0:
                continue
            out = jnp.maximum(out, xp[:, i:i + 2 * Ho:2, j:j + 2 * Wo:2, :])
    return out


def avgpool2d_3x3(x, stride):
    # nn.AvgPool2d(3, stride, padding=1), count_include_pad=True (divide by 9).
    N, H, W, C = x.shape
    xp = jnp.pad(x, ((0, 0), (1, 1), (1, 1), (0, 0)))
    Ho = (H + 2 - 3) // stride + 1
    Wo = (W + 2 - 3) // stride + 1
    acc = jnp.zeros((N, Ho, Wo, C), jnp.float32)
    for i in range(3):
        for j in range(3):
            acc = acc + xp[:, i:i + stride * Ho:stride,
                           j:j + stride * Wo:stride, :].astype(jnp.float32)
    return (acc / 9.0).astype(x.dtype)


# ----------------------------------------------------------------------------
# Parameter / config init (deterministic; lane-padded channel groups)
# ----------------------------------------------------------------------------

def _conv_w(key, out_c, in_c, kh, kw, *,
            out_group=None, out_pad=None, in_group=None, in_pad=None):
    """Kaiming-normal (fan_out) conv weight stored as a (kh*kw*Cin_pad, Cout_pad)
    bf16 matmul operand.  Channel padding is applied PER GROUP so Res2Net split
    boundaries fall on padded-group multiples; padded rows/cols are zero."""
    fan_out = out_c * kh * kw
    std = math.sqrt(2.0 / fan_out)
    w = jax.random.normal(key, (out_c, in_c, kh, kw), jnp.float32) * std
    w = jnp.transpose(w, (2, 3, 1, 0))                     # (kh, kw, Cin, Cout)
    if in_pad is not None and in_pad != (in_group if in_group else in_c):
        g = in_group if in_group is not None else in_c
        ng = in_c // g
        w = w.reshape(kh, kw, ng, g, out_c)
        w = jnp.pad(w, ((0, 0), (0, 0), (0, 0), (0, in_pad - g), (0, 0)))
        w = w.reshape(kh, kw, ng * in_pad, out_c)
    cin_p = w.shape[2]
    if out_pad is not None and out_pad != (out_group if out_group else out_c):
        g = out_group if out_group is not None else out_c
        ng = out_c // g
        w = w.reshape(kh, kw, cin_p, ng, g)
        w = jnp.pad(w, ((0, 0), (0, 0), (0, 0), (0, 0), (0, out_pad - g)))
        w = w.reshape(kh, kw, cin_p, ng * out_pad)
    kh_, kw_, cin_p, cout_p = w.shape
    return w.reshape(kh_ * kw_ * cin_p, cout_p).astype(jnp.bfloat16)


def _bn_params(c):
    return (jnp.ones((c,), jnp.float32), jnp.zeros((c,), jnp.float32))


def _linear(key, out_f, in_f):
    k1, k2 = jax.random.split(key)
    bound = 1.0 / math.sqrt(in_f)
    w = jax.random.uniform(k1, (out_f, in_f), jnp.float32, -bound, bound)
    b = jax.random.uniform(k2, (out_f,), jnp.float32, -bound, bound)
    return jnp.transpose(w).astype(jnp.bfloat16), b        # stored (in, out) bf16


def init_model(key, layers=(3, 4, 6, 3), baseWidth=26, scale=4, num_classes=11):
    kc = [0]

    def nk():
        kc[0] += 1
        return jax.random.fold_in(key, kc[0])

    params = {}
    cfg = {'scale': scale, 'layers': []}
    # Stem: 3 -> 64 (7x7 s2), output lane-padded to 128.
    params['conv1_w'] = _conv_w(nk(), STEM_OUT, 3, 7, 7, out_pad=STEM_PAD)
    params['bn1'] = _bn_params(STEM_PAD)

    inplanes, inplanes_pad = STEM_OUT, STEM_PAD
    all_layers = []
    for planes, nblocks, layer_stride in zip((64, 128, 256, 512), layers,
                                             (1, 2, 2, 2)):
        blocks_p, blocks_c = [], []
        for bi in range(nblocks):
            stride = layer_stride if bi == 0 else 1
            stype = 'stage' if bi == 0 else 'normal'
            width = int(math.floor(planes * (baseWidth / 64.0)))
            pw = _ceil_to(width, LANE)                      # lane-padded width
            nums = 1 if scale == 1 else scale - 1
            outc = planes * EXPANSION                       # 256..2048: lane-dense
            has_ds = bi == 0 and (stride != 1 or inplanes != outc)
            bp = {
                'conv1_w': _conv_w(nk(), width * scale, inplanes, 1, 1,
                                   out_group=width, out_pad=pw,
                                   in_group=inplanes, in_pad=inplanes_pad),
                'bn1': _bn_params(pw * scale),
                'convs_w': [_conv_w(nk(), width, width, 3, 3,
                                    out_pad=pw, in_pad=pw)
                            for _ in range(nums)],
                'bns': [_bn_params(pw) for _ in range(nums)],
                'conv3_w': _conv_w(nk(), outc, width * scale, 1, 1,
                                   in_group=width, in_pad=pw),
                'bn3': _bn_params(outc),
            }
            if has_ds:
                bp['ds_w'] = _conv_w(nk(), outc, inplanes, 1, 1,
                                     in_group=inplanes, in_pad=inplanes_pad)
                bp['ds_bn'] = _bn_params(outc)
            blocks_p.append(bp)
            blocks_c.append({'stride': stride, 'stype': stype,
                             'width': pw, 'has_ds': has_ds})
            inplanes, inplanes_pad = outc, outc
        all_layers.append(blocks_p)
        cfg['layers'].append(blocks_c)
    params['layers'] = all_layers
    params['fc_w'], params['fc_b'] = _linear(nk(), 1000, 512 * EXPANSION)
    params['fc2_w'], params['fc2_b'] = _linear(nk(), num_classes, 1000)
    return params, cfg


# ----------------------------------------------------------------------------
# Forward pass
# ----------------------------------------------------------------------------

def bottleneck_forward(bcfg, bp, x, scale):
    stride, stype = bcfg['stride'], bcfg['stype']
    width = bcfg['width']                                   # padded group width

    out, st1 = conv2d(x, bp['conv1_w'], 1, 1, 1, 0, want_stats=True)
    out = bn_apply(out, st1[0], st1[1], *bp['bn1'], relu=True)

    spx = [out[..., i * width:(i + 1) * width] for i in range(scale)]
    nums = 1 if scale == 1 else scale - 1

    # TODO(synk): the independent 'stage'-branch 3x3 convs could be batched into
    # one pallas_call along a leading grid axis; kept as separate calls.
    outs = []
    sp = None
    for i in range(nums):
        if i == 0 or stype == 'stage':
            sp = spx[i]
        else:
            sp = sp + spx[i]
        sp, sti = conv2d(sp, bp['convs_w'][i], 3, 3, stride, 1, want_stats=True)
        sp = bn_apply(sp, sti[0], sti[1], *bp['bns'][i], relu=True)
        outs.append(sp)
    if scale != 1 and stype == 'normal':
        outs.append(spx[nums])
    elif scale != 1 and stype == 'stage':
        outs.append(avgpool2d_3x3(spx[nums], stride))
    out = jnp.concatenate(outs, axis=-1)

    out, st3 = conv2d(out, bp['conv3_w'], 1, 1, 1, 0, want_stats=True)
    C = out.shape[-1]
    g3, b3 = bp['bn3']
    sx = g3 * jax.lax.rsqrt(st3[1] + 1e-5)
    bx = b3 - st3[0] * sx
    if bcfg['has_ds']:
        res, std_ = conv2d(x, bp['ds_w'], 1, 1, stride, 0, want_stats=True)
        gd, bd = bp['ds_bn']
        sr = gd * jax.lax.rsqrt(std_[1] + 1e-5)
        br = bd - std_[0] * sr
    else:
        res = x
        sr = jnp.ones((C,), jnp.float32)
        br = jnp.zeros((C,), jnp.float32)
    # Fused epilogue: BN3-apply + (optionally BN-applied) residual + add + ReLU.
    return fused_bn_add_relu(out, sx, bx, res, sr, br)


def model_forward(cfg, params, x_nchw):
    scale = cfg['scale']
    x = jnp.transpose(x_nchw.astype(jnp.float32), (0, 2, 3, 1))   # NCHW -> NHWC
    x, st = conv2d(x, params['conv1_w'], 7, 7, 2, 3, want_stats=True)
    x = bn_apply(x, st[0], st[1], *params['bn1'], relu=True)
    x = maxpool2d_3x3_s2(x)
    for lcfg, lparams in zip(cfg['layers'], params['layers']):
        for bcfg, bp in zip(lcfg, lparams):
            x = bottleneck_forward(bcfg, bp, x, scale)
    x = jnp.mean(x.astype(jnp.float32), axis=(1, 2))        # AdaptiveAvgPool2d(1)
    # FC layers: M = batch = 2 -> pallas_matmul dispatches to XLA dot.
    x = pallas_matmul(x, params['fc_w']) + params['fc_b']
    x = pallas_matmul(x, params['fc2_w']) + params['fc2_b']
    return x


# ----------------------------------------------------------------------------
# Main
# ----------------------------------------------------------------------------

if __name__ == "__main__":
    key = jax.random.PRNGKey(0)
    pkey, xkey = jax.random.split(key)
    params, cfg = init_model(pkey)

    # Entire forward pass under a single jit; cfg (static structure) is closed
    # over so only array pytrees are traced.
    fwd = jax.jit(partial(model_forward, cfg))

    # Small input consistent with the module: NCHW, 3 input channels.
    x = jax.random.normal(xkey, (2, 3, 32, 32), jnp.float32)
    logits = fwd(params, x)
    logits = jax.block_until_ready(logits)
    assert logits.shape == (2, 11), logits.shape
    assert bool(jnp.all(jnp.isfinite(logits)))
    print("KERNEL_OK")
</pallas_src>

<mosaic_0001>
module attributes {stable_mosaic.version = 11 : i64} {
  func.func @_matmul_stats_kernel(%arg0: i32, %arg1: i32, %arg2: memref<512x147xbf16, #tpu.memory_space<vmem>>, %arg3: memref<147x128xbf16, #tpu.memory_space<vmem>>, %arg4: memref<512x128xf32, #tpu.memory_space<vmem>>, %arg5: memref<1x128xf32, #tpu.memory_space<vmem>>, %arg6: memref<1x128xf32, #tpu.memory_space<vmem>>) attributes {dimension_semantics = [#tpu.dimension_semantics<parallel>, #tpu.dimension_semantics<parallel>], iteration_bounds = array<i64: 1, 1>, scalar_prefetch = 0 : i64, scratch_operands = 0 : i64, tpu.core_type = #tpu.core_type<tc>, window_params = [{transform_indices = @transform_0, window_bounds = array<i64: 512, 147>}, {transform_indices = @transform_1, window_bounds = array<i64: 147, 128>}, {transform_indices = @transform_2, window_bounds = array<i64: 512, 128>}, {transform_indices = @transform_3, window_bounds = array<i64: 1, 128>}, {transform_indices = @transform_4, window_bounds = array<i64: 1, 128>}]} {
    %c0 = arith.constant 0 : index
    %c0_0 = arith.constant 0 : index
    %0 = vector.load %arg2[%c0, %c0_0] : memref<512x147xbf16, #tpu.memory_space<vmem>>, vector<512x147xbf16>
    %c0_1 = arith.constant 0 : index
    %c0_2 = arith.constant 0 : index
    %1 = vector.load %arg3[%c0_1, %c0_2] : memref<147x128xbf16, #tpu.memory_space<vmem>>, vector<147x128xbf16>
    %cst = arith.constant dense<0.000000e+00> : vector<512x128xf32>
    %2 = tpu.matmul %0, %1, %cst {dimension_numbers = #tpu.dot_dimension_numbers<[1], [0], [0], [1], [0, 0, 1, 1], [], []>} : vector<512x147xbf16>, vector<147x128xbf16>, vector<512x128xf32> -> vector<512x128xf32>
    %c0_3 = arith.constant 0 : index
    %c0_4 = arith.constant 0 : index
    %3 = vector.load %arg4[%c0_3, %c0_4] : memref<512x128xf32, #tpu.memory_space<vmem>>, vector<512x128xf32>
    tpu.vector_store %arg4[%c0_3, %c0_4], %2 {strides = array<i32>} : memref<512x128xf32, #tpu.memory_space<vmem>>, vector<512x128xf32>,
    %cst_5 = arith.constant dense<0.000000e+00> : vector<128xf32>
    %4 = vector.multi_reduction <add>, %2, %cst_5 [0] : vector<512x128xf32> to vector<128xf32>
    %5 = vector.shape_cast %4 : vector<128xf32> to vector<1x128xf32>
    %c0_6 = arith.constant 0 : index
    %c0_7 = arith.constant 0 : index
    %6 = vector.load %arg5[%c0_6, %c0_7] : memref<1x128xf32, #tpu.memory_space<vmem>>, vector<1x128xf32>
    tpu.vector_store %arg5[%c0_6, %c0_7], %5 {strides = array<i32>} : memref<1x128xf32, #tpu.memory_space<vmem>>, vector<1x128xf32>,
    %7 = arith.mulf %2, %2 : vector<512x128xf32>
    %cst_8 = arith.constant dense<0.000000e+00> : vector<128xf32>
    %8 = vector.multi_reduction <add>, %7, %cst_8 [0] : vector<512x128xf32> to vector<128xf32>
    %9 = vector.shape_cast %8 : vector<128xf32> to vector<1x128xf32>
    %c0_9 = arith.constant 0 : index
    %c0_10 = arith.constant 0 : index
    %10 = vector.load %arg6[%c0_9, %c0_10] : memref<1x128xf32, #tpu.memory_space<vmem>>, vector<1x128xf32>
    tpu.vector_store %arg6[%c0_9, %c0_10], %9 {strides = array<i32>} : memref<1x128xf32, #tpu.memory_space<vmem>>, vector<1x128xf32>,
    return
  }
  func.func @transform_0(%arg0: i32, %arg1: i32) -> (i32, i32) {
    %c0_i32 = arith.constant 0 : i32
    %c0_i32_0 = arith.constant 0 : i32
    return %arg0, %c0_i32 : i32, i32
  }
  func.func @transform_1(%arg0: i32, %arg1: i32) -> (i32, i32) {
    %c0_i32 = arith.constant 0 : i32
    %c0_i32_0 = arith.constant 0 : i32
    return %c0_i32, %arg1 : i32, i32
  }
  func.func @transform_2(%arg0: i32, %arg1: i32) -> (i32, i32) {
    %c0_i32 = arith.constant 0 : i32
    return %arg0, %arg1 : i32, i32
  }
  func.func @transform_3(%arg0: i32, %arg1: i32) -> (i32, i32) {
    %c0_i32 = arith.constant 0 : i32
    return %arg0, %arg1 : i32, i32
  }
  func.func @transform_4(%arg0: i32, %arg1: i32) -> (i32, i32) {
    %c0_i32 = arith.constant 0 : i32
    return %arg0, %arg1 : i32, i32
  }
}

module attributes {stable_mosaic.version = 11 : i64} {
  func.func @_scale_bias_kernel(%arg0: i32, %arg1: memref<512x128xf32, #tpu.memory_space<vmem>>, %arg2: memref<1x128xf32, #tpu.memory_space<vmem>>, %arg3: memref<1x128xf32, #tpu.memory_space<vmem>>, %arg4: memref<512x128xbf16, #tpu.memory_space<vmem>>) attributes {dimension_semantics = [#tpu.dimension_semantics<parallel>], iteration_bounds = array<i64: 1>, scalar_prefetch = 0 : i64, scratch_operands = 0 : i64, tpu.core_type = #tpu.core_type<tc>, window_params = [{transform_indices = @transform_0, window_bounds = array<i64: 512, 128>}, {pipeline_mode = #tpu.pipeline_mode<synchronous>, transform_indices = @transform_1, window_bounds = array<i64: 1, 128>}, {pipeline_mode = #tpu.pipeline_mode<synchronous>, transform_indices = @transform_2, window_bounds = array<i64: 1, 128>}, {transform_indices = @transform_3, window_bounds = array<i64: 512, 128>}]} {
    %c0 = arith.constant 0 : index
    %c0_0 = arith.constant 0 : index
    %0 = vector.load %arg1[%c0, %c0_0] : memref<512x128xf32, #tpu.memory_space<vmem>>, vector<512x128xf32>
    %c0_1 = arith.constant 0 : index
    %c0_2 = arith.constant 0 : index
    %1 = vector.load %arg2[%c0_1, %c0_2] : memref<1x128xf32, #tpu.memory_space<vmem>>, vector<1x128xf32>
    %2 = vector.broadcast %1 : vector<1x128xf32> to vector<512x128xf32>
    %3 = arith.mulf %0, %2 : vector<512x128xf32>
    %c0_3 = arith.constant 0 : index
    %c0_4 = arith.constant 0 : index
    %4 = vector.load %arg3[%c0_3, %c0_4] : memref<1x128xf32, #tpu.memory_space<vmem>>, vector<1x128xf32>
    %5 = vector.broadcast %4 : vector<1x128xf32> to vector<512x128xf32>
    %6 = arith.addf %3, %5 : vector<512x128xf32>
    %cst = arith.constant 0.000000e+00 : f32
    %7 = vector.broadcast %cst : f32 to vector<512x128xf32>
    %8 = arith.maximumf %6, %7 : vector<512x128xf32>
    %9 = arith.truncf %8 : vector<512x128xf32> to vector<512x128xbf16>
    %c0_5 = arith.constant 0 : index
    %c0_6 = arith.constant 0 : index
    %10 = vector.load %arg4[%c0_5, %c0_6] : memref<512x128xbf16, #tpu.memory_space<vmem>>, vector<512x128xbf16>
    tpu.vector_store %arg4[%c0_5, %c0_6], %9 {strides = array<i32>} : memref<512x128xbf16, #tpu.memory_space<vmem>>, vector<512x128xbf16>,
    return
  }
  func.func @transform_0(%arg0: i32) -> (i32, i32) {
    %c0_i32 = arith.constant 0 : i32
    %c0_i32_0 = arith.constant 0 : i32
    return %arg0, %c0_i32 : i32, i32
  }
  func.func @transform_1(%arg0: i32) -> (i32, i32) {
    %c0_i32 = arith.constant 0 : i32
    %c0_i32_0 = arith.constant 0 : i32
    %c0_i32_1 = arith.constant 0 : i32
    return %c0_i32, %c0_i32_0 : i32, i32
  }
  func.func @transform_2(%arg0: i32) -> (i32, i32) {
    %c0_i32 = arith.constant 0 : i32
    %c0_i32_0 = arith.constant 0 : i32
    %c0_i32_1 = arith.constant 0 : i32
    return %c0_i32, %c0_i32_0 : i32, i32
  }
  func.func @transform_3(%arg0: i32) -> (i32, i32) {
    %c0_i32 = arith.constant 0 : i32
    %c0_i32_0 = arith.constant 0 : i32
    return %arg0, %c0_i32 : i32, i32
  }
}

module attributes {stable_mosaic.version = 11 : i64} {
  func.func @_matmul_stats_kernel(%arg0: i32, %arg1: i32, %arg2: memref<128x128xbf16, #tpu.memory_space<vmem>>, %arg3: memref<128x256xbf16, #tpu.memory_space<vmem>>, %arg4: memref<128x256xf32, #tpu.memory_space<vmem>>, %arg5: memref<1x256xf32, #tpu.memory_space<vmem>>, %arg6: memref<1x256xf32, #tpu.memory_space<vmem>>) attributes {dimension_semantics = [#tpu.dimension_semantics<parallel>, #tpu.dimension_semantics<parallel>], iteration_bounds = array<i64: 1, 1>, scalar_prefetch = 0 : i64, scratch_operands = 0 : i64, tpu.core_type = #tpu.core_type<tc>, window_params = [{transform_indices = @transform_0, window_bounds = array<i64: 128, 128>}, {transform_indices = @transform_1, window_bounds = array<i64: 128, 256>}, {transform_indices = @transform_2, window_bounds = array<i64: 128, 256>}, {transform_indices = @transform_3, window_bounds = array<i64: 1, 256>}, {transform_indices = @transform_4, window_bounds = array<i64: 1, 256>}]} {
    %c0 = arith.constant 0 : index
    %c0_0 = arith.constant 0 : index
    %0 = vector.load %arg2[%c0, %c0_0] : memref<128x128xbf16, #tpu.memory_space<vmem>>, vector<128x128xbf16>
    %c0_1 = arith.constant 0 : index
    %c0_2 = arith.constant 0 : index
    %1 = vector.load %arg3[%c0_1, %c0_2] : memref<128x256xbf16, #tpu.memory_space<vmem>>, vector<128x256xbf16>
    %cst = arith.constant dense<0.000000e+00> : vector<128x256xf32>
    %2 = tpu.matmul %0, %1, %cst {dimension_numbers = #tpu.dot_dimension_numbers<[1], [0], [0], [1], [0, 0, 1, 1], [], []>} : vector<128x128xbf16>, vector<128x256xbf16>, vector<128x256xf32> -> vector<128x256xf32>
    %c0_3 = arith.constant 0 : index
    %c0_4 = arith.constant 0 : index
    %3 = vector.load %arg4[%c0_3, %c0_4] : memref<128x256xf32, #tpu.memory_space<vmem>>, vector<128x256xf32>
    tpu.vector_store %arg4[%c0_3, %c0_4], %2 {strides = array<i32>} : memref<128x256xf32, #tpu.memory_space<vmem>>, vector<128x256xf32>,
    %cst_5 = arith.constant dense<0.000000e+00> : vector<256xf32>
    %4 = vector.multi_reduction <add>, %2, %cst_5 [0] : vector<128x256xf32> to vector<256xf32>
    %5 = vector.shape_cast %4 : vector<256xf32> to vector<1x256xf32>
    %c0_6 = arith.constant 0 : index
    %c0_7 = arith.constant 0 : index
    %6 = vector.load %arg5[%c0_6, %c0_7] : memref<1x256xf32, #tpu.memory_space<vmem>>, vector<1x256xf32>
    tpu.vector_store %arg5[%c0_6, %c0_7], %5 {strides = array<i32>} : memref<1x256xf32, #tpu.memory_space<vmem>>, vector<1x256xf32>,
    %7 = arith.mulf %2, %2 : vector<128x256xf32>
    %cst_8 = arith.constant dense<0.000000e+00> : vector<256xf32>
    %8 = vector.multi_reduction <add>, %7, %cst_8 [0] : vector<128x256xf32> to vector<256xf32>
    %9 = vector.shape_cast %8 : vector<256xf32> to vector<1x256xf32>
    %c0_9 = arith.constant 0 : index
    %c0_10 = arith.constant 0 : index
    %10 = vector.load %arg6[%c0_9, %c0_10] : memref<1x256xf32, #tpu.memory_space<vmem>>, vector<1x256xf32>
    tpu.vector_store %arg6[%c0_9, %c0_10], %9 {strides = array<i32>} : memref<1x256xf32, #tpu.memory_space<vmem>>, vector<1x256xf32>,
    return
  }
  func.func @transform_0(%arg0: i32, %arg1: i32) -> (i32, i32) {
    %c0_i32 = arith.constant 0 : i32
    %c0_i32_0 = arith.constant 0 : i32
    return %arg0, %c0_i32 : i32, i32
  }
  func.func @transform_1(%arg0: i32, %arg1: i32) -> (i32, i32) {
    %c0_i32 = arith.constant 0 : i32
    %c0_i32_0 = arith.constant 0 : i32
    return %c0_i32, %arg1 : i32, i32
  }
  func.func @transform_2(%arg0: i32, %arg1: i32) -> (i32, i32) {
    %c0_i32 = arith.constant 0 : i32
    return %arg0, %arg1 : i32, i32
  }
  func.func @transform_3(%arg0: i32, %arg1: i32) -> (i32, i32) {
    %c0_i32 = arith.constant 0 : i32
    return %arg0, %arg1 : i32, i32
  }
  func.func @transform_4(%arg0: i32, %arg1: i32) -> (i32, i32) {
    %c0_i32 = arith.constant 0 : i32
    return %arg0, %arg1 : i32, i32
  }
}

module attributes {stable_mosaic.version = 11 : i64} {
  func.func @_matmul_stats_kernel(%arg0: i32, %arg1: i32, %arg2: memref<128x128xbf16, #tpu.memory_space<vmem>>, %arg3: memref<128x512xbf16, #tpu.memory_space<vmem>>, %arg4: memref<128x512xf32, #tpu.memory_space<vmem>>, %arg5: memref<1x512xf32, #tpu.memory_space<vmem>>, %arg6: memref<1x512xf32, #tpu.memory_space<vmem>>) attributes {dimension_semantics = [#tpu.dimension_semantics<parallel>, #tpu.dimension_semantics<parallel>], iteration_bounds = array<i64: 1, 1>, scalar_prefetch = 0 : i64, scratch_operands = 0 : i64, tpu.core_type = #tpu.core_type<tc>, window_params = [{transform_indices = @transform_0, window_bounds = array<i64: 128, 128>}, {transform_indices = @transform_1, window_bounds = array<i64: 128, 512>}, {transform_indices = @transform_2, window_bounds = array<i64: 128, 512>}, {transform_indices = @transform_3, window_bounds = array<i64: 1, 512>}, {transform_indices = @transform_4, window_bounds = array<i64: 1, 512>}]} {
    %c0 = arith.constant 0 : index
    %c0_0 = arith.constant 0 : index
    %0 = vector.load %arg2[%c0, %c0_0] : memref<128x128xbf16, #tpu.memory_space<vmem>>, vector<128x128xbf16>
    %c0_1 = arith.constant 0 : index
    %c0_2 = arith.constant 0 : index
    %1 = vector.load %arg3[%c0_1, %c0_2] : memref<128x512xbf16, #tpu.memory_space<vmem>>, vector<128x512xbf16>
    %cst = arith.constant dense<0.000000e+00> : vector<128x512xf32>
    %2 = tpu.matmul %0, %1, %cst {dimension_numbers = #tpu.dot_dimension_numbers<[1], [0], [0], [1], [0, 0, 1, 1], [], []>} : vector<128x128xbf16>, vector<128x512xbf16>, vector<128x512xf32> -> vector<128x512xf32>
    %c0_3 = arith.constant 0 : index
    %c0_4 = arith.constant 0 : index
    %3 = vector.load %arg4[%c0_3, %c0_4] : memref<128x512xf32, #tpu.memory_space<vmem>>, vector<128x512xf32>
    tpu.vector_store %arg4[%c0_3, %c0_4], %2 {strides = array<i32>} : memref<128x512xf32, #tpu.memory_space<vmem>>, vector<128x512xf32>,
    %cst_5 = arith.constant dense<0.000000e+00> : vector<512xf32>
    %4 = vector.multi_reduction <add>, %2, %cst_5 [0] : vector<128x512xf32> to vector<512xf32>
    %5 = vector.shape_cast %4 : vector<512xf32> to vector<1x512xf32>
    %c0_6 = arith.constant 0 : index
    %c0_7 = arith.constant 0 : index
    %6 = vector.load %arg5[%c0_6, %c0_7] : memref<1x512xf32, #tpu.memory_space<vmem>>, vector<1x512xf32>
    tpu.vector_store %arg5[%c0_6, %c0_7], %5 {strides = array<i32>} : memref<1x512xf32, #tpu.memory_space<vmem>>, vector<1x512xf32>,
    %7 = arith.mulf %2, %2 : vector<128x512xf32>
    %cst_8 = arith.constant dense<0.000000e+00> : vector<512xf32>
    %8 = vector.multi_reduction <add>, %7, %cst_8 [0] : vector<128x512xf32> to vector<512xf32>
    %9 = vector.shape_cast %8 : vector<512xf32> to vector<1x512xf32>
    %c0_9 = arith.constant 0 : index
    %c0_10 = arith.constant 0 : index
    %10 = vector.load %arg6[%c0_9, %c0_10] : memref<1x512xf32, #tpu.memory_space<vmem>>, vector<1x512xf32>
    tpu.vector_store %arg6[%c0_9, %c0_10], %9 {strides = array<i32>} : memref<1x512xf32, #tpu.memory_space<vmem>>, vector<1x512xf32>,
    return
  }
  func.func @transform_0(%arg0: i32, %arg1: i32) -> (i32, i32) {
    %c0_i32 = arith.constant 0 : i32
    %c0_i32_0 = arith.constant 0 : i32
    return %arg0, %c0_i32 : i32, i32
  }
  func.func @transform_1(%arg0: i32, %arg1: i32) -> (i32, i32) {
    %c0_i32 = arith.constant 0 : i32
    %c0_i32_0 = arith.constant 0 : i32
    return %c0_i32, %arg1 : i32, i32
  }
  func.func @transform_2(%arg0: i32, %arg1: i32) -> (i32, i32) {
    %c0_i32 = arith.constant 0 : i32
    return %arg0, %arg1 : i32, i32
  }
  func.func @transform_3(%arg0: i32, %arg1: i32) -> (i32, i32) {
    %c0_i32 = arith.constant 0 : i32
    return %arg0, %arg1 : i32, i32
  }
  func.func @transform_4(%arg0: i32, %arg1: i32) -> (i32, i32) {
    %c0_i32 = arith.constant 0 : i32
    return %arg0, %arg1 : i32, i32
  }
}

module attributes {stable_mosaic.version = 11 : i64} {
  func.func @_scale_bias_kernel(%arg0: i32, %arg1: memref<128x512xf32, #tpu.memory_space<vmem>>, %arg2: memref<1x512xf32, #tpu.memory_space<vmem>>, %arg3: memref<1x512xf32, #tpu.memory_space<vmem>>, %arg4: memref<128x512xbf16, #tpu.memory_space<vmem>>) attributes {dimension_semantics = [#tpu.dimension_semantics<parallel>], iteration_bounds = array<i64: 1>, scalar_prefetch = 0 : i64, scratch_operands = 0 : i64, tpu.core_type = #tpu.core_type<tc>, window_params = [{transform_indices = @transform_0, window_bounds = array<i64: 128, 512>}, {pipeline_mode = #tpu.pipeline_mode<synchronous>, transform_indices = @transform_1, window_bounds = array<i64: 1, 512>}, {pipeline_mode = #tpu.pipeline_mode<synchronous>, transform_indices = @transform_2, window_bounds = array<i64: 1, 512>}, {transform_indices = @transform_3, window_bounds = array<i64: 128, 512>}]} {
    %c0 = arith.constant 0 : index
    %c0_0 = arith.constant 0 : index
    %0 = vector.load %arg1[%c0, %c0_0] : memref<128x512xf32, #tpu.memory_space<vmem>>, vector<128x512xf32>
    %c0_1 = arith.constant 0 : index
    %c0_2 = arith.constant 0 : index
    %1 = vector.load %arg2[%c0_1, %c0_2] : memref<1x512xf32, #tpu.memory_space<vmem>>, vector<1x512xf32>
    %2 = vector.broadcast %1 : vector<1x512xf32> to vector<128x512xf32>
    %3 = arith.mulf %0, %2 : vector<128x512xf32>
    %c0_3 = arith.constant 0 : index
    %c0_4 = arith.constant 0 : index
    %4 = vector.load %arg3[%c0_3, %c0_4] : memref<1x512xf32, #tpu.memory_space<vmem>>, vector<1x512xf32>
    %5 = vector.broadcast %4 : vector<1x512xf32> to vector<128x512xf32>
    %6 = arith.addf %3, %5 : vector<128x512xf32>
    %cst = arith.constant 0.000000e+00 : f32
    %7 = vector.broadcast %cst : f32 to vector<128x512xf32>
    %8 = arith.maximumf %6, %7 : vector<128x512xf32>
    %9 = arith.truncf %8 : vector<128x512xf32> to vector<128x512xbf16>
    %c0_5 = arith.constant 0 : index
    %c0_6 = arith.constant 0 : index
    %10 = vector.load %arg4[%c0_5, %c0_6] : memref<128x512xbf16, #tpu.memory_space<vmem>>, vector<128x512xbf16>
    tpu.vector_store %arg4[%c0_5, %c0_6], %9 {strides = array<i32>} : memref<128x512xbf16, #tpu.memory_space<vmem>>, vector<128x512xbf16>,
    return
  }
  func.func @transform_0(%arg0: i32) -> (i32, i32) {
    %c0_i32 = arith.constant 0 : i32
    %c0_i32_0 = arith.constant 0 : i32
    return %arg0, %c0_i32 : i32, i32
  }
  func.func @transform_1(%arg0: i32) -> (i32, i32) {
    %c0_i32 = arith.constant 0 : i32
    %c0_i32_0 = arith.constant 0 : i32
    %c0_i32_1 = arith.constant 0 : i32
    return %c0_i32, %c0_i32_0 : i32, i32
  }
  func.func @transform_2(%arg0: i32) -> (i32, i32) {
    %c0_i32 = arith.constant 0 : i32
    %c0_i32_0 = arith.constant 0 : i32
    %c0_i32_1 = arith.constant 0 : i32
    return %c0_i32, %c0_i32_0 : i32, i32
  }
  func.func @transform_3(%arg0: i32) -> (i32, i32) {
    %c0_i32 = arith.constant 0 : i32
    %c0_i32_0 = arith.constant 0 : i32
    return %arg0, %c0_i32 : i32, i32
  }
}

module attributes {stable_mosaic.version = 11 : i64} {
  func.func @_matmul_stats_kernel(%arg0: i32, %arg1: i32, %arg2: memref<128x1152xbf16, #tpu.memory_space<vmem>>, %arg3: memref<1152x128xbf16, #tpu.memory_space<vmem>>, %arg4: memref<128x128xf32, #tpu.memory_space<vmem>>, %arg5: memref<1x128xf32, #tpu.memory_space<vmem>>, %arg6: memref<1x128xf32, #tpu.memory_space<vmem>>) attributes {dimension_semantics = [#tpu.dimension_semantics<parallel>, #tpu.dimension_semantics<parallel>], iteration_bounds = array<i64: 1, 1>, scalar_prefetch = 0 : i64, scratch_operands = 0 : i64, tpu.core_type = #tpu.core_type<tc>, window_params = [{transform_indices = @transform_0, window_bounds = array<i64: 128, 1152>}, {transform_indices = @transform_1, window_bounds = array<i64: 1152, 128>}, {transform_indices = @transform_2, window_bounds = array<i64: 128, 128>}, {transform_indices = @transform_3, window_bounds = array<i64: 1, 128>}, {transform_indices = @transform_4, window_bounds = array<i64: 1, 128>}]} {
    %c0 = arith.constant 0 : index
    %c0_0 = arith.constant 0 : index
    %0 = vector.load %arg2[%c0, %c0_0] : memref<128x1152xbf16, #tpu.memory_space<vmem>>, vector<128x1152xbf16>
    %c0_1 = arith.constant 0 : index
    %c0_2 = arith.constant 0 : index
    %1 = vector.load %arg3[%c0_1, %c0_2] : memref<1152x128xbf16, #tpu.memory_space<vmem>>, vector<1152x128xbf16>
    %cst = arith.constant dense<0.000000e+00> : vector<128x128xf32>
    %2 = tpu.matmul %0, %1, %cst {dimension_numbers = #tpu.dot_dimension_numbers<[1], [0], [0], [1], [0, 0, 1, 1], [], []>} : vector<128x1152xbf16>, vector<1152x128xbf16>, vector<128x128xf32> -> vector<128x128xf32>
    %c0_3 = arith.constant 0 : index
    %c0_4 = arith.constant 0 : index
    %3 = vector.load %arg4[%c0_3, %c0_4] : memref<128x128xf32, #tpu.memory_space<vmem>>, vector<128x128xf32>
    tpu.vector_store %arg4[%c0_3, %c0_4], %2 {strides = array<i32>} : memref<128x128xf32, #tpu.memory_space<vmem>>, vector<128x128xf32>,
    %cst_5 = arith.constant dense<0.000000e+00> : vector<128xf32>
    %4 = vector.multi_reduction <add>, %2, %cst_5 [0] : vector<128x128xf32> to vector<128xf32>
    %5 = vector.shape_cast %4 : vector<128xf32> to vector<1x128xf32>
    %c0_6 = arith.constant 0 : index
    %c0_7 = arith.constant 0 : index
    %6 = vector.load %arg5[%c0_6, %c0_7] : memref<1x128xf32, #tpu.memory_space<vmem>>, vector<1x128xf32>
    tpu.vector_store %arg5[%c0_6, %c0_7], %5 {strides = array<i32>} : memref<1x128xf32, #tpu.memory_space<vmem>>, vector<1x128xf32>,
    %7 = arith.mulf %2, %2 : vector<128x128xf32>
    %cst_8 = arith.constant dense<0.000000e+00> : vector<128xf32>
    %8 = vector.multi_reduction <add>, %7, %cst_8 [0] : vector<128x128xf32> to vector<128xf32>
    %9 = vector.shape_cast %8 : vector<128xf32> to vector<1x128xf32>
    %c0_9 = arith.constant 0 : index
    %c0_10 = arith.constant 0 : index
    %10 = vector.load %arg6[%c0_9, %c0_10] : memref<1x128xf32, #tpu.memory_space<vmem>>, vector<1x128xf32>
    tpu.vector_store %arg6[%c0_9, %c0_10], %9 {strides = array<i32>} : memref<1x128xf32, #tpu.memory_space<vmem>>, vector<1x128xf32>,
    return
  }
  func.func @transform_0(%arg0: i32, %arg1: i32) -> (i32, i32) {
    %c0_i32 = arith.constant 0 : i32
    %c0_i32_0 = arith.constant 0 : i32
    return %arg0, %c0_i32 : i32, i32
  }
  func.func @transform_1(%arg0: i32, %arg1: i32) -> (i32, i32) {
    %c0_i32 = arith.constant 0 : i32
    %c0_i32_0 = arith.constant 0 : i32
    return %c0_i32, %arg1 : i32, i32
  }
  func.func @transform_2(%arg0: i32, %arg1: i32) -> (i32, i32) {
    %c0_i32 = arith.constant 0 : i32
    return %arg0, %arg1 : i32, i32
  }
  func.func @transform_3(%arg0: i32, %arg1: i32) -> (i32, i32) {
    %c0_i32 = arith.constant 0 : i32
    return %arg0, %arg1 : i32, i32
  }
  func.func @transform_4(%arg0: i32, %arg1: i32) -> (i32, i32) {
    %c0_i32 = arith.constant 0 : i32
    return %arg0, %arg1 : i32, i32
  }
}

module attributes {stable_mosaic.version = 11 : i64} {
  func.func @_scale_bias_kernel(%arg0: i32, %arg1: memref<128x128xf32, #tpu.memory_space<vmem>>, %arg2: memref<1x128xf32, #tpu.memory_space<vmem>>, %arg3: memref<1x128xf32, #tpu.memory_space<vmem>>, %arg4: memref<128x128xbf16, #tpu.memory_space<vmem>>) attributes {dimension_semantics = [#tpu.dimension_semantics<parallel>], iteration_bounds = array<i64: 1>, scalar_prefetch = 0 : i64, scratch_operands = 0 : i64, tpu.core_type = #tpu.core_type<tc>, window_params = [{transform_indices = @transform_0, window_bounds = array<i64: 128, 128>}, {pipeline_mode = #tpu.pipeline_mode<synchronous>, transform_indices = @transform_1, window_bounds = array<i64: 1, 128>}, {pipeline_mode = #tpu.pipeline_mode<synchronous>, transform_indices = @transform_2, window_bounds = array<i64: 1, 128>}, {transform_indices = @transform_3, window_bounds = array<i64: 128, 128>}]} {
    %c0 = arith.constant 0 : index
    %c0_0 = arith.constant 0 : index
    %0 = vector.load %arg1[%c0, %c0_0] : memref<128x128xf32, #tpu.memory_space<vmem>>, vector<128x128xf32>
    %c0_1 = arith.constant 0 : index
    %c0_2 = arith.constant 0 : index
    %1 = vector.load %arg2[%c0_1, %c0_2] : memref<1x128xf32, #tpu.memory_space<vmem>>, vector<1x128xf32>
    %2 = vector.broadcast %1 : vector<1x128xf32> to vector<128x128xf32>
    %3 = arith.mulf %0, %2 : vector<128x128xf32>
    %c0_3 = arith.constant 0 : index
    %c0_4 = arith.constant 0 : index
    %4 = vector.load %arg3[%c0_3, %c0_4] : memref<1x128xf32, #tpu.memory_space<vmem>>, vector<1x128xf32>
    %5 = vector.broadcast %4 : vector<1x128xf32> to vector<128x128xf32>
    %6 = arith.addf %3, %5 : vector<128x128xf32>
    %cst = arith.constant 0.000000e+00 : f32
    %7 = vector.broadcast %cst : f32 to vector<128x128xf32>
    %8 = arith.maximumf %6, %7 : vector<128x128xf32>
    %9 = arith.truncf %8 : vector<128x128xf32> to vector<128x128xbf16>
    %c0_5 = arith.constant 0 : index
    %c0_6 = arith.constant 0 : index
    %10 = vector.load %arg4[%c0_5, %c0_6] : memref<128x128xbf16, #tpu.memory_space<vmem>>, vector<128x128xbf16>
    tpu.vector_store %arg4[%c0_5, %c0_6], %9 {strides = array<i32>} : memref<128x128xbf16, #tpu.memory_space<vmem>>, vector<128x128xbf16>,
    return
  }
  func.func @transform_0(%arg0: i32) -> (i32, i32) {
    %c0_i32 = arith.constant 0 : i32
    %c0_i32_0 = arith.constant 0 : i32
    return %arg0, %c0_i32 : i32, i32
  }
  func.func @transform_1(%arg0: i32) -> (i32, i32) {
    %c0_i32 = arith.constant 0 : i32
    %c0_i32_0 = arith.constant 0 : i32
    %c0_i32_1 = arith.constant 0 : i32
    return %c0_i32, %c0_i32_0 : i32, i32
  }
  func.func @transform_2(%arg0: i32) -> (i32, i32) {
    %c0_i32 = arith.constant 0 : i32
    %c0_i32_0 = arith.constant 0 : i32
    %c0_i32_1 = arith.constant 0 : i32
    return %c0_i32, %c0_i32_0 : i32, i32
  }
  func.func @transform_3(%arg0: i32) -> (i32, i32) {
    %c0_i32 = arith.constant 0 : i32
    %c0_i32_0 = arith.constant 0 : i32
    return %arg0, %c0_i32 : i32, i32
  }
}

module attributes {stable_mosaic.version = 11 : i64} {
  func.func @_matmul_stats_kernel(%arg0: i32, %arg1: i32, %arg2: memref<128x512xbf16, #tpu.memory_space<vmem>>, %arg3: memref<512x256xbf16, #tpu.memory_space<vmem>>, %arg4: memref<128x256xf32, #tpu.memory_space<vmem>>, %arg5: memref<1x256xf32, #tpu.memory_space<vmem>>, %arg6: memref<1x256xf32, #tpu.memory_space<vmem>>) attributes {dimension_semantics = [#tpu.dimension_semantics<parallel>, #tpu.dimension_semantics<parallel>], iteration_bounds = array<i64: 1, 1>, scalar_prefetch = 0 : i64, scratch_operands = 0 : i64, tpu.core_type = #tpu.core_type<tc>, window_params = [{transform_indices = @transform_0, window_bounds = array<i64: 128, 512>}, {transform_indices = @transform_1, window_bounds = array<i64: 512, 256>}, {transform_indices = @transform_2, window_bounds = array<i64: 128, 256>}, {transform_indices = @transform_3, window_bounds = array<i64: 1, 256>}, {transform_indices = @transform_4, window_bounds = array<i64: 1, 256>}]} {
    %c0 = arith.constant 0 : index
    %c0_0 = arith.constant 0 : index
    %0 = vector.load %arg2[%c0, %c0_0] : memref<128x512xbf16, #tpu.memory_space<vmem>>, vector<128x512xbf16>
    %c0_1 = arith.constant 0 : index
    %c0_2 = arith.constant 0 : index
    %1 = vector.load %arg3[%c0_1, %c0_2] : memref<512x256xbf16, #tpu.memory_space<vmem>>, vector<512x256xbf16>
    %cst = arith.constant dense<0.000000e+00> : vector<128x256xf32>
    %2 = tpu.matmul %0, %1, %cst {dimension_numbers = #tpu.dot_dimension_numbers<[1], [0], [0], [1], [0, 0, 1, 1], [], []>} : vector<128x512xbf16>, vector<512x256xbf16>, vector<128x256xf32> -> vector<128x256xf32>
    %c0_3 = arith.constant 0 : index
    %c0_4 = arith.constant 0 : index
    %3 = vector.load %arg4[%c0_3, %c0_4] : memref<128x256xf32, #tpu.memory_space<vmem>>, vector<128x256xf32>
    tpu.vector_store %arg4[%c0_3, %c0_4], %2 {strides = array<i32>} : memref<128x256xf32, #tpu.memory_space<vmem>>, vector<128x256xf32>,
    %cst_5 = arith.constant dense<0.000000e+00> : vector<256xf32>
    %4 = vector.multi_reduction <add>, %2, %cst_5 [0] : vector<128x256xf32> to vector<256xf32>
    %5 = vector.shape_cast %4 : vector<256xf32> to vector<1x256xf32>
    %c0_6 = arith.constant 0 : index
    %c0_7 = arith.constant 0 : index
    %6 = vector.load %arg5[%c0_6, %c0_7] : memref<1x256xf32, #tpu.memory_space<vmem>>, vector<1x256xf32>
    tpu.vector_store %arg5[%c0_6, %c0_7], %5 {strides = array<i32>} : memref<1x256xf32, #tpu.memory_space<vmem>>, vector<1x256xf32>,
    %7 = arith.mulf %2, %2 : vector<128x256xf32>
    %cst_8 = arith.constant dense<0.000000e+00> : vector<256xf32>
    %8 = vector.multi_reduction <add>, %7, %cst_8 [0] : vector<128x256xf32> to vector<256xf32>
    %9 = vector.shape_cast %8 : vector<256xf32> to vector<1x256xf32>
    %c0_9 = arith.constant 0 : index
    %c0_10 = arith.constant 0 : index
    %10 = vector.load %arg6[%c0_9, %c0_10] : memref<1x256xf32, #tpu.memory_space<vmem>>, vector<1x256xf32>
    tpu.vector_store %arg6[%c0_9, %c0_10], %9 {strides = array<i32>} : memref<1x256xf32, #tpu.memory_space<vmem>>, vector<1x256xf32>,
    return
  }
  func.func @transform_0(%arg0: i32, %arg1: i32) -> (i32, i32) {
    %c0_i32 = arith.constant 0 : i32
    %c0_i32_0 = arith.constant 0 : i32
    return %arg0, %c0_i32 : i32, i32
  }
  func.func @transform_1(%arg0: i32, %arg1: i32) -> (i32, i32) {
    %c0_i32 = arith.constant 0 : i32
    %c0_i32_0 = arith.constant 0 : i32
    return %c0_i32, %arg1 : i32, i32
  }
  func.func @transform_2(%arg0: i32, %arg1: i32) -> (i32, i32) {
    %c0_i32 = arith.constant 0 : i32
    return %arg0, %arg1 : i32, i32
  }
  func.func @transform_3(%arg0: i32, %arg1: i32) -> (i32, i32) {
    %c0_i32 = arith.constant 0 : i32
    return %arg0, %arg1 : i32, i32
  }
  func.func @transform_4(%arg0: i32, %arg1: i32) -> (i32, i32) {
    %c0_i32 = arith.constant 0 : i32
    return %arg0, %arg1 : i32, i32
  }
}

module attributes {stable_mosaic.version = 11 : i64} {
  func.func @_fused_out_kernel(%arg0: i32, %arg1: memref<128x256xf32, #tpu.memory_space<vmem>>, %arg2: memref<1x256xf32, #tpu.memory_space<vmem>>, %arg3: memref<1x256xf32, #tpu.memory_space<vmem>>, %arg4: memref<128x256xf32, #tpu.memory_space<vmem>>, %arg5: memref<1x256xf32, #tpu.memory_space<vmem>>, %arg6: memref<1x256xf32, #tpu.memory_space<vmem>>, %arg7: memref<128x256xbf16, #tpu.memory_space<vmem>>) attributes {dimension_semantics = [#tpu.dimension_semantics<parallel>], iteration_bounds = array<i64: 1>, scalar_prefetch = 0 : i64, scratch_operands = 0 : i64, tpu.core_type = #tpu.core_type<tc>, window_params = [{transform_indices = @transform_0, window_bounds = array<i64: 128, 256>}, {pipeline_mode = #tpu.pipeline_mode<synchronous>, transform_indices = @transform_1, window_bounds = array<i64: 1, 256>}, {pipeline_mode = #tpu.pipeline_mode<synchronous>, transform_indices = @transform_2, window_bounds = array<i64: 1, 256>}, {transform_indices = @transform_3, window_bounds = array<i64: 128, 256>}, {pipeline_mode = #tpu.pipeline_mode<synchronous>, transform_indices = @transform_4, window_bounds = array<i64: 1, 256>}, {pipeline_mode = #tpu.pipeline_mode<synchronous>, transform_indices = @transform_5, window_bounds = array<i64: 1, 256>}, {transform_indices = @transform_6, window_bounds = array<i64: 128, 256>}]} {
    %c0 = arith.constant 0 : index
    %c0_0 = arith.constant 0 : index
    %0 = vector.load %arg1[%c0, %c0_0] : memref<128x256xf32, #tpu.memory_space<vmem>>, vector<128x256xf32>
    %c0_1 = arith.constant 0 : index
    %c0_2 = arith.constant 0 : index
    %1 = vector.load %arg2[%c0_1, %c0_2] : memref<1x256xf32, #tpu.memory_space<vmem>>, vector<1x256xf32>
    %2 = vector.broadcast %1 : vector<1x256xf32> to vector<128x256xf32>
    %3 = arith.mulf %0, %2 : vector<128x256xf32>
    %c0_3 = arith.constant 0 : index
    %c0_4 = arith.constant 0 : index
    %4 = vector.load %arg3[%c0_3, %c0_4] : memref<1x256xf32, #tpu.memory_space<vmem>>, vector<1x256xf32>
    %5 = vector.broadcast %4 : vector<1x256xf32> to vector<128x256xf32>
    %6 = arith.addf %3, %5 : vector<128x256xf32>
    %c0_5 = arith.constant 0 : index
    %c0_6 = arith.constant 0 : index
    %7 = vector.load %arg4[%c0_5, %c0_6] : memref<128x256xf32, #tpu.memory_space<vmem>>, vector<128x256xf32>
    %c0_7 = arith.constant 0 : index
    %c0_8 = arith.constant 0 : index
    %8 = vector.load %arg5[%c0_7, %c0_8] : memref<1x256xf32, #tpu.memory_space<vmem>>, vector<1x256xf32>
    %9 = vector.broadcast %8 : vector<1x256xf32> to vector<128x256xf32>
    %10 = arith.mulf %7, %9 : vector<128x256xf32>
    %11 = arith.addf %6, %10 : vector<128x256xf32>
    %c0_9 = arith.constant 0 : index
    %c0_10 = arith.constant 0 : index
    %12 = vector.load %arg6[%c0_9, %c0_10] : memref<1x256xf32, #tpu.memory_space<vmem>>, vector<1x256xf32>
    %13 = vector.broadcast %12 : vector<1x256xf32> to vector<128x256xf32>
    %14 = arith.addf %11, %13 : vector<128x256xf32>
    %cst = arith.constant 0.000000e+00 : f32
    %15 = vector.broadcast %cst : f32 to vector<128x256xf32>
    %16 = arith.maximumf %14, %15 : vector<128x256xf32>
    %17 = arith.truncf %16 : vector<128x256xf32> to vector<128x256xbf16>
    %c0_11 = arith.constant 0 : index
    %c0_12 = arith.constant 0 : index
    %18 = vector.load %arg7[%c0_11, %c0_12] : memref<128x256xbf16, #tpu.memory_space<vmem>>, vector<128x256xbf16>
    tpu.vector_store %arg7[%c0_11, %c0_12], %17 {strides = array<i32>} : memref<128x256xbf16, #tpu.memory_space<vmem>>, vector<128x256xbf16>,
    return
  }
  func.func @transform_0(%arg0: i32) -> (i32, i32) {
    %c0_i32 = arith.constant 0 : i32
    %c0_i32_0 = arith.constant 0 : i32
    return %arg0, %c0_i32 : i32, i32
  }
  func.func @transform_1(%arg0: i32) -> (i32, i32) {
    %c0_i32 = arith.constant 0 : i32
    %c0_i32_0 = arith.constant 0 : i32
    %c0_i32_1 = arith.constant 0 : i32
    return %c0_i32, %c0_i32_0 : i32, i32
  }
  func.func @transform_2(%arg0: i32) -> (i32, i32) {
    %c0_i32 = arith.constant 0 : i32
    %c0_i32_0 = arith.constant 0 : i32
    %c0_i32_1 = arith.constant 0 : i32
    return %c0_i32, %c0_i32_0 : i32, i32
  }
  func.func @transform_3(%arg0: i32) -> (i32, i32) {
    %c0_i32 = arith.constant 0 : i32
    %c0_i32_0 = arith.constant 0 : i32
    return %arg0, %c0_i32 : i32, i32
  }
  func.func @transform_4(%arg0: i32) -> (i32, i32) {
    %c0_i32 = arith.constant 0 : i32
    %c0_i32_0 = arith.constant 0 : i32
    %c0_i32_1 = arith.constant 0 : i32
    return %c0_i32, %c0_i32_0 : i32, i32
  }
  func.func @transform_5(%arg0: i32) -> (i32, i32) {
    %c0_i32 = arith.constant 0 : i32
    %c0_i32_0 = arith.constant 0 : i32
    %c0_i32_1 = arith.constant 0 : i32
    return %c0_i32, %c0_i32_0 : i32, i32
  }
  func.func @transform_6(%arg0: i32) -> (i32, i32) {
    %c0_i32 = arith.constant 0 : i32
    %c0_i32_0 = arith.constant 0 : i32
    return %arg0, %c0_i32 : i32, i32
  }
}

module attributes {stable_mosaic.version = 11 : i64} {
  func.func @_matmul_stats_kernel(%arg0: i32, %arg1: i32, %arg2: memref<128x256xbf16, #tpu.memory_space<vmem>>, %arg3: memref<256x512xbf16, #tpu.memory_space<vmem>>, %arg4: memref<128x512xf32, #tpu.memory_space<vmem>>, %arg5: memref<1x512xf32, #tpu.memory_space<vmem>>, %arg6: memref<1x512xf32, #tpu.memory_space<vmem>>) attributes {dimension_semantics = [#tpu.dimension_semantics<parallel>, #tpu.dimension_semantics<parallel>], iteration_bounds = array<i64: 1, 1>, scalar_prefetch = 0 : i64, scratch_operands = 0 : i64, tpu.core_type = #tpu.core_type<tc>, window_params = [{transform_indices = @transform_0, window_bounds = array<i64: 128, 256>}, {transform_indices = @transform_1, window_bounds = array<i64: 256, 512>}, {transform_indices = @transform_2, window_bounds = array<i64: 128, 512>}, {transform_indices = @transform_3, window_bounds = array<i64: 1, 512>}, {transform_indices = @transform_4, window_bounds = array<i64: 1, 512>}]} {
    %c0 = arith.constant 0 : index
    %c0_0 = arith.constant 0 : index
    %0 = vector.load %arg2[%c0, %c0_0] : memref<128x256xbf16, #tpu.memory_space<vmem>>, vector<128x256xbf16>
    %c0_1 = arith.constant 0 : index
    %c0_2 = arith.constant 0 : index
    %1 = vector.load %arg3[%c0_1, %c0_2] : memref<256x512xbf16, #tpu.memory_space<vmem>>, vector<256x512xbf16>
    %cst = arith.constant dense<0.000000e+00> : vector<128x512xf32>
    %2 = tpu.matmul %0, %1, %cst {dimension_numbers = #tpu.dot_dimension_numbers<[1], [0], [0], [1], [0, 0, 1, 1], [], []>} : vector<128x256xbf16>, vector<256x512xbf16>, vector<128x512xf32> -> vector<128x512xf32>
    %c0_3 = arith.constant 0 : index
    %c0_4 = arith.constant 0 : index
    %3 = vector.load %arg4[%c0_3, %c0_4] : memref<128x512xf32, #tpu.memory_space<vmem>>, vector<128x512xf32>
    tpu.vector_store %arg4[%c0_3, %c0_4], %2 {strides = array<i32>} : memref<128x512xf32, #tpu.memory_space<vmem>>, vector<128x512xf32>,
    %cst_5 = arith.constant dense<0.000000e+00> : vector<512xf32>
    %4 = vector.multi_reduction <add>, %2, %cst_5 [0] : vector<128x512xf32> to vector<512xf32>
    %5 = vector.shape_cast %4 : vector<512xf32> to vector<1x512xf32>
    %c0_6 = arith.constant 0 : index
    %c0_7 = arith.constant 0 : index
    %6 = vector.load %arg5[%c0_6, %c0_7] : memref<1x512xf32, #tpu.memory_space<vmem>>, vector<1x512xf32>
    tpu.vector_store %arg5[%c0_6, %c0_7], %5 {strides = array<i32>} : memref<1x512xf32, #tpu.memory_space<vmem>>, vector<1x512xf32>,
    %7 = arith.mulf %2, %2 : vector<128x512xf32>
    %cst_8 = arith.constant dense<0.000000e+00> : vector<512xf32>
    %8 = vector.multi_reduction <add>, %7, %cst_8 [0] : vector<128x512xf32> to vector<512xf32>
    %9 = vector.shape_cast %8 : vector<512xf32> to vector<1x512xf32>
    %c0_9 = arith.constant 0 : index
    %c0_10 = arith.constant 0 : index
    %10 = vector.load %arg6[%c0_9, %c0_10] : memref<1x512xf32, #tpu.memory_space<vmem>>, vector<1x512xf32>
    tpu.vector_store %arg6[%c0_9, %c0_10], %9 {strides = array<i32>} : memref<1x512xf32, #tpu.memory_space<vmem>>, vector<1x512xf32>,
    return
  }
  func.func @transform_0(%arg0: i32, %arg1: i32) -> (i32, i32) {
    %c0_i32 = arith.constant 0 : i32
    %c0_i32_0 = arith.constant 0 : i32
    return %arg0, %c0_i32 : i32, i32
  }
  func.func @transform_1(%arg0: i32, %arg1: i32) -> (i32, i32) {
    %c0_i32 = arith.constant 0 : i32
    %c0_i32_0 = arith.constant 0 : i32
    return %c0_i32, %arg1 : i32, i32
  }
  func.func @transform_2(%arg0: i32, %arg1: i32) -> (i32, i32) {
    %c0_i32 = arith.constant 0 : i32
    return %arg0, %arg1 : i32, i32
  }
  func.func @transform_3(%arg0: i32, %arg1: i32) -> (i32, i32) {
    %c0_i32 = arith.constant 0 : i32
    return %arg0, %arg1 : i32, i32
  }
  func.func @transform_4(%arg0: i32, %arg1: i32) -> (i32, i32) {
    %c0_i32 = arith.constant 0 : i32
    return %arg0, %arg1 : i32, i32
  }
}

module attributes {stable_mosaic.version = 11 : i64} {
  func.func @_fused_out_kernel(%arg0: i32, %arg1: memref<128x256xf32, #tpu.memory_space<vmem>>, %arg2: memref<1x256xf32, #tpu.memory_space<vmem>>, %arg3: memref<1x256xf32, #tpu.memory_space<vmem>>, %arg4: memref<128x256xbf16, #tpu.memory_space<vmem>>, %arg5: memref<1x256xf32, #tpu.memory_space<vmem>>, %arg6: memref<1x256xf32, #tpu.memory_space<vmem>>, %arg7: memref<128x256xbf16, #tpu.memory_space<vmem>>) attributes {dimension_semantics = [#tpu.dimension_semantics<parallel>], iteration_bounds = array<i64: 1>, scalar_prefetch = 0 : i64, scratch_operands = 0 : i64, tpu.core_type = #tpu.core_type<tc>, window_params = [{transform_indices = @transform_0, window_bounds = array<i64: 128, 256>}, {pipeline_mode = #tpu.pipeline_mode<synchronous>, transform_indices = @transform_1, window_bounds = array<i64: 1, 256>}, {pipeline_mode = #tpu.pipeline_mode<synchronous>, transform_indices = @transform_2, window_bounds = array<i64: 1, 256>}, {transform_indices = @transform_3, window_bounds = array<i64: 128, 256>}, {pipeline_mode = #tpu.pipeline_mode<synchronous>, transform_indices = @transform_4, window_bounds = array<i64: 1, 256>}, {pipeline_mode = #tpu.pipeline_mode<synchronous>, transform_indices = @transform_5, window_bounds = array<i64: 1, 256>}, {transform_indices = @transform_6, window_bounds = array<i64: 128, 256>}]} {
    %c0 = arith.constant 0 : index
    %c0_0 = arith.constant 0 : index
    %0 = vector.load %arg1[%c0, %c0_0] : memref<128x256xf32, #tpu.memory_space<vmem>>, vector<128x256xf32>
    %c0_1 = arith.constant 0 : index
    %c0_2 = arith.constant 0 : index
    %1 = vector.load %arg2[%c0_1, %c0_2] : memref<1x256xf32, #tpu.memory_space<vmem>>, vector<1x256xf32>
    %2 = vector.broadcast %1 : vector<1x256xf32> to vector<128x256xf32>
    %3 = arith.mulf %0, %2 : vector<128x256xf32>
    %c0_3 = arith.constant 0 : index
    %c0_4 = arith.constant 0 : index
    %4 = vector.load %arg3[%c0_3, %c0_4] : memref<1x256xf32, #tpu.memory_space<vmem>>, vector<1x256xf32>
    %5 = vector.broadcast %4 : vector<1x256xf32> to vector<128x256xf32>
    %6 = arith.addf %3, %5 : vector<128x256xf32>
    %c0_5 = arith.constant 0 : index
    %c0_6 = arith.constant 0 : index
    %7 = vector.load %arg4[%c0_5, %c0_6] : memref<128x256xbf16, #tpu.memory_space<vmem>>, vector<128x256xbf16>
    %8 = arith.extf %7 : vector<128x256xbf16> to vector<128x256xf32>
    %c0_7 = arith.constant 0 : index
    %c0_8 = arith.constant 0 : index
    %9 = vector.load %arg5[%c0_7, %c0_8] : memref<1x256xf32, #tpu.memory_space<vmem>>, vector<1x256xf32>
    %10 = vector.broadcast %9 : vector<1x256xf32> to vector<128x256xf32>
    %11 = arith.mulf %8, %10 : vector<128x256xf32>
    %12 = arith.addf %6, %11 : vector<128x256xf32>
    %c0_9 = arith.constant 0 : index
    %c0_10 = arith.constant 0 : index
    %13 = vector.load %arg6[%c0_9, %c0_10] : memref<1x256xf32, #tpu.memory_space<vmem>>, vector<1x256xf32>
    %14 = vector.broadcast %13 : vector<1x256xf32> to vector<128x256xf32>
    %15 = arith.addf %12, %14 : vector<128x256xf32>
    %cst = arith.constant 0.000000e+00 : f32
    %16 = vector.broadcast %cst : f32 to vector<128x256xf32>
    %17 = arith.maximumf %15, %16 : vector<128x256xf32>
    %18 = arith.truncf %17 : vector<128x256xf32> to vector<128x256xbf16>
    %c0_11 = arith.constant 0 : index
    %c0_12 = arith.constant 0 : index
    %19 = vector.load %arg7[%c0_11, %c0_12] : memref<128x256xbf16, #tpu.memory_space<vmem>>, vector<128x256xbf16>
    tpu.vector_store %arg7[%c0_11, %c0_12], %18 {strides = array<i32>} : memref<128x256xbf16, #tpu.memory_space<vmem>>, vector<128x256xbf16>,
    return
  }
  func.func @transform_0(%arg0: i32) -> (i32, i32) {
    %c0_i32 = arith.constant 0 : i32
    %c0_i32_0 = arith.constant 0 : i32
    return %arg0, %c0_i32 : i32, i32
  }
  func.func @transform_1(%arg0: i32) -> (i32, i32) {
    %c0_i32 = arith.constant 0 : i32
    %c0_i32_0 = arith.constant 0 : i32
    %c0_i32_1 = arith.constant 0 : i32
    return %c0_i32, %c0_i32_0 : i32, i32
  }
  func.func @transform_2(%arg0: i32) -> (i32, i32) {
    %c0_i32 = arith.constant 0 : i32
    %c0_i32_0 = arith.constant 0 : i32
    %c0_i32_1 = arith.constant 0 : i32
    return %c0_i32, %c0_i32_0 : i32, i32
  }
  func.func @transform_3(%arg0: i32) -> (i32, i32) {
    %c0_i32 = arith.constant 0 : i32
    %c0_i32_0 = arith.constant 0 : i32
    return %arg0, %c0_i32 : i32, i32
  }
  func.func @transform_4(%arg0: i32) -> (i32, i32) {
    %c0_i32 = arith.constant 0 : i32
    %c0_i32_0 = arith.constant 0 : i32
    %c0_i32_1 = arith.constant 0 : i32
    return %c0_i32, %c0_i32_0 : i32, i32
  }
  func.func @transform_5(%arg0: i32) -> (i32, i32) {
    %c0_i32 = arith.constant 0 : i32
    %c0_i32_0 = arith.constant 0 : i32
    %c0_i32_1 = arith.constant 0 : i32
    return %c0_i32, %c0_i32_0 : i32, i32
  }
  func.func @transform_6(%arg0: i32) -> (i32, i32) {
    %c0_i32 = arith.constant 0 : i32
    %c0_i32_0 = arith.constant 0 : i32
    return %arg0, %c0_i32 : i32, i32
  }
}

</mosaic_0001>

<bundles_post_ra>
// kernel: model_forward.36
= control target key start
LH: loop header
LB: loop body
LE: loop exit
PB: predicated region body
PF: predicated region fallthrough
CT: control target
= control target key end

     0   :  { %s1375_s0 = inlined_call_operand.vmem [shape: f32[512,128], index: 0, kind: input, shape index: {}]   ;;  %s1376_s1 = inlined_call_operand.vmem [shape: f32[1,128], index: 1, kind: input, shape index: {}]   ;;  %s1377_s2 = inlined_call_operand.vmem [shape: f32[1,128], index: 2, kind: input, shape index: {}]   ;;  %s1378_s3 = inlined_call_operand.vmem [shape: bf16[512,128], index: 3, kind: output, shape index: {}]  }
   0x1   :  { %v14_v0 = vld [vmem:[%s1375_s0] sm:$0xff]  ;;  %v15_v1 = vld [vmem:[%s1375_s0 + $0x8] sm:$0xff]  ;;  %v16_v6 = vld [vmem:[%s1375_s0 + $0x10] sm:$0xff] }
   0x2   :  { %v958_v2 = vld [vmem:[%s1376_s1] ss:$0 sm:$0xff]  ;;  %v17_v7 = vld [vmem:[%s1375_s0 + $0x18] sm:$0xff]  ;;  %v19_v11 = vld [vmem:[%s1375_s0 + $0x28] sm:$0xff] }
   0x3   :  { %v85_v3 = vmul.f32 %v958_v2, %v14_v0  ;;  %v86_v4 = vmul.f32 %v958_v2, %v15_v1  ;;  %v965_v5 = vld [vmem:[%s1377_s2] ss:$0 sm:$0xff]  ;;  %v87_v8 = vmul.f32 %v958_v2, %v16_v6  ;;  %v88_v9 = vmul.f32 %v958_v2, %v17_v7  ;;  %v20_v12 = vld [vmem:[%s1375_s0 + $0x30] sm:$0xff]  ;;  %v21_v17 = vld [vmem:[%s1375_s0 + $0x38] sm:$0xff] }
   0x4   :  { %v18_v10 = vld [vmem:[%s1375_s0 + $0x20] sm:$0xff]  ;;  %v90_v16 = vmul.f32 %v958_v2, %v19_v11  ;;  %v91_v20 = vmul.f32 %v958_v2, %v20_v12  ;;  %v92_v21 = vmul.f32 %v958_v2, %v21_v17  ;;  %v23_v27 = vld [vmem:[%s1375_s0 + $0x48] sm:$0xff]  ;;  %v24_v32 = vld [vmem:[%s1375_s0 + $0x50] sm:$0xff] }
   0x5   :  { %v156_v13 = vadd.f32 %v965_v5, %v85_v3  ;;  %v157_v14 = vadd.f32 %v965_v5, %v86_v4  ;;  %v89_v15 = vmul.f32 %v958_v2, %v18_v10  ;;  %v158_v18 = vadd.f32 %v965_v5, %v87_v8  ;;  %v22_v22 = vld [vmem:[%s1375_s0 + $0x40] sm:$0xff]  ;;  %v25_v33 = vld [vmem:[%s1375_s0 + $0x58] sm:$0xff]  ;;  %v27_v39 = vld [vmem:[%s1375_s0 + $0x68] sm:$0xff] }
   0x6   :  { %v159_v19 = vadd.f32 %v965_v5, %v88_v9  ;;  %v161_v26 = vadd.f32 %v965_v5, %v90_v16  ;;  %v162_v30 = vadd.f32 %v965_v5, %v91_v20  ;;  %v163_v31 = vadd.f32 %v965_v5, %v92_v21  ;;  %v26_v38 = vld [vmem:[%s1375_s0 + $0x60] sm:$0xff]  ;;  %v28_v44 = vld [vmem:[%s1375_s0 + $0x70] sm:$0xff]  ;;  %v29_v49 = vld [vmem:[%s1375_s0 + $0x78] sm:$0xff] }
   0x7   :  { %v220_v23 = vmax.f32 %v156_v13, 0.0  ;;  %v221_v24 = vmax.f32 %v157_v14, 0.0  ;;  %v160_v25 = vadd.f32 %v965_v5, %v89_v15  ;;  %v222_v28 = vmax.f32 %v158_v18, 0.0  ;;  %v30_v54 = vld [vmem:[%s1375_s0 + $0x80] sm:$0xff]  ;;  %v31_v63 = vld [vmem:[%s1375_s0 + $0x88] sm:$0xff]  ;;  %v32_v6 = vld [vmem:[%s1375_s0 + $0x90] sm:$0xff] }
   0x8   :  { %v223_v29 = vmax.f32 %v159_v19, 0.0  ;;  %v225_v36 = vmax.f32 %v161_v26, 0.0  ;;  %v93_v37 = vmul.f32 %v958_v2, %v22_v22  ;;  %v226_v41 = vmax.f32 %v162_v30, 0.0  ;;  %v33_v7 = vld [vmem:[%s1375_s0 + $0x98] sm:$0xff]  ;;  %v34_v12 = vld [vmem:[%s1375_s0 + $0xa0] sm:$0xff]  ;;  %v35_v13 = vld [vmem:[%s1375_s0 + $0xa8] sm:$0xff] }
   0x9   :  { %v741_v34 = vpack.c.bf16 %v221_v24, %v220_v23  ;;  %v224_v35 = vmax.f32 %v160_v25, 0.0  ;;  %v227_v42 = vmax.f32 %v163_v31, 0.0  ;;  %v94_v43 = vmul.f32 %v958_v2, %v23_v27  ;;  %v36_v18 = vld [vmem:[%s1375_s0 + $0xb0] sm:$0xff]  ;;  %v37_v23 = vld [vmem:[%s1375_s0 + $0xb8] sm:$0xff] }
   0xa   :  { %v746_v40 = vpack.c.bf16 %v223_v29, %v222_v28  ;;  %v164_v46 = vadd.f32 %v965_v5, %v93_v37  ;;  %v95_v47 = vmul.f32 %v958_v2, %v24_v32  ;;  %v96_v48 = vmul.f32 %v958_v2, %v25_v33  ;;  %v38_v28 = vld [vmem:[%s1375_s0 + $0xc0] sm:$0xff]  ;;  %v39_v37 = vld [vmem:[%s1375_s0 + $0xc8] sm:$0xff] }
   0xb   :  { %742 = vst [vmem:[%s1378_s3] sm:$0xff] %v741_v34   ;;  %v751_v45 = vpack.c.bf16 %v225_v36, %v224_v35  ;;  %v756_v50 = vpack.c.bf16 %v227_v42, %v226_v41  ;;  %v165_v51 = vadd.f32 %v965_v5, %v94_v43  ;;  %v97_v52 = vmul.f32 %v958_v2, %v26_v38  ;;  %v40_v42 = vld [vmem:[%s1375_s0 + $0xd0] sm:$0xff]  ;;  %v41_v43 = vld [vmem:[%s1375_s0 + $0xd8] sm:$0xff] }
   0xc   :  { %898 = vst [vmem:[%s1378_s3 + $0x8] sm:$0xff] %v746_v40   ;;  %v98_v53 = vmul.f32 %v958_v2, %v27_v39  ;;  %v228_v55 = vmax.f32 %v164_v46, 0.0  ;;  %v166_v56 = vadd.f32 %v965_v5, %v95_v47  ;;  %v167_v57 = vadd.f32 %v965_v5, %v96_v48  ;;  %v42_v48 = vld [vmem:[%s1375_s0 + $0xe0] sm:$0xff] }
   0xd   :  { %899 = vst [vmem:[%s1378_s3 + $0x10] sm:$0xff] %v751_v45   ;;  %v99_v58 = vmul.f32 %v958_v2, %v28_v44  ;;  %900 = vst [vmem:[%s1378_s3 + $0x18] sm:$0xff] %v756_v50   ;;  %v229_v59 = vmax.f32 %v165_v51, 0.0  ;;  %v168_v60 = vadd.f32 %v965_v5, %v97_v52  ;;  %v100_v62 = vmul.f32 %v958_v2, %v29_v49  ;;  %v43_v49 = vld [vmem:[%s1375_s0 + $0xe8] sm:$0xff] }
   0xe   :  { %v169_v61 = vadd.f32 %v965_v5, %v98_v53  ;;  %v230_v0 = vmax.f32 %v166_v56, 0.0  ;;  %v231_v1 = vmax.f32 %v167_v57, 0.0  ;;  %v101_v4 = vmul.f32 %v958_v2, %v30_v54  ;;  %v44_v54 = vld [vmem:[%s1375_s0 + $0xf0] sm:$0xff] }
   0xf   :  { %v170_v3 = vadd.f32 %v965_v5, %v99_v58  ;;  %v761_v8 = vpack.c.bf16 %v229_v59, %v228_v55  ;;  %v232_v9 = vmax.f32 %v168_v60, 0.0  ;;  %v171_v11 = vadd.f32 %v965_v5, %v100_v62  ;;  %v45_v59 = vld [vmem:[%s1375_s0 + $0xf8] sm:$0xff] }
  0x10   :  { %v233_v10 = vmax.f32 %v169_v61, 0.0  ;;  %v766_v14 = vpack.c.bf16 %v231_v1, %v230_v0  ;;  %v102_v16 = vmul.f32 %v958_v2, %v31_v63  ;;  %v172_v17 = vadd.f32 %v965_v5, %v101_v4  ;;  %v46_v0 = vld [vmem:[%s1375_s0 + $0x100] sm:$0xff] }
  0x11   :  { %v234_v15 = vmax.f32 %v170_v3, 0.0  ;;  %901 = vst [vmem:[%s1378_s3 + $0x20] sm:$0xff] %v761_v8   ;;  %v235_v20 = vmax.f32 %v171_v11, 0.0  ;;  %v103_v21 = vmul.f32 %v958_v2, %v32_v6  ;;  %v104_v22 = vmul.f32 %v958_v2, %v33_v7  ;;  %v47_v11 = vld [vmem:[%s1375_s0 + $0x108] sm:$0xff] }
  0x12   :  { %v771_v19 = vpack.c.bf16 %v233_v10, %v232_v9  ;;  %902 = vst [vmem:[%s1378_s3 + $0x28] sm:$0xff] %v766_v14   ;;  %v173_v24 = vadd.f32 %v965_v5, %v102_v16  ;;  %v236_v25 = vmax.f32 %v172_v17, 0.0  ;;  %v105_v26 = vmul.f32 %v958_v2, %v34_v12  ;;  %v48_v16 = vld [vmem:[%s1375_s0 + $0x110] sm:$0xff]  ;;  %v49_v17 = vld [vmem:[%s1375_s0 + $0x118] sm:$0xff] }
  0x13   :  { %v106_v27 = vmul.f32 %v958_v2, %v35_v13  ;;  %v776_v29 = vpack.c.bf16 %v235_v20, %v234_v15  ;;  %v174_v30 = vadd.f32 %v965_v5, %v103_v21  ;;  %v175_v31 = vadd.f32 %v965_v5, %v104_v22  ;;  %v50_v22 = vld [vmem:[%s1375_s0 + $0x120] sm:$0xff] }
  0x14   :  { %903 = vst [vmem:[%s1378_s3 + $0x30] sm:$0xff] %v771_v19   ;;  %v107_v32 = vmul.f32 %v958_v2, %v36_v18  ;;  %v237_v33 = vmax.f32 %v173_v24, 0.0  ;;  %v176_v34 = vadd.f32 %v965_v5, %v105_v26  ;;  %v108_v36 = vmul.f32 %v958_v2, %v37_v23  ;;  %v51_v23 = vld [vmem:[%s1375_s0 + $0x128] sm:$0xff] }
  0x15   :  { %v177_v35 = vadd.f32 %v965_v5, %v106_v27  ;;  %904 = vst [vmem:[%s1378_s3 + $0x38] sm:$0xff] %v776_v29   ;;  %v238_v38 = vmax.f32 %v174_v30, 0.0  ;;  %v239_v39 = vmax.f32 %v175_v31, 0.0  ;;  %v109_v41 = vmul.f32 %v958_v2, %v38_v28  ;;  %v52_v28 = vld [vmem:[%s1375_s0 + $0x130] sm:$0xff] }
  0x16   :  { %v178_v40 = vadd.f32 %v965_v5, %v107_v32  ;;  %v781_v44 = vpack.c.bf16 %v237_v33, %v236_v25  ;;  %v240_v45 = vmax.f32 %v176_v34, 0.0  ;;  %v179_v47 = vadd.f32 %v965_v5, %v108_v36  ;;  %v53_v33 = vld [vmem:[%s1375_s0 + $0x138] sm:$0xff] }
  0x17   :  { %v241_v46 = vmax.f32 %v177_v35, 0.0  ;;  %v786_v50 = vpack.c.bf16 %v239_v39, %v238_v38  ;;  %v110_v52 = vmul.f32 %v958_v2, %v39_v37  ;;  %v180_v53 = vadd.f32 %v965_v5, %v109_v41  ;;  %v54_v38 = vld [vmem:[%s1375_s0 + $0x140] sm:$0xff] }
  0x18   :  { %v242_v51 = vmax.f32 %v178_v40, 0.0  ;;  %905 = vst [vmem:[%s1378_s3 + $0x40] sm:$0xff] %v781_v44   ;;  %v243_v56 = vmax.f32 %v179_v47, 0.0  ;;  %v111_v57 = vmul.f32 %v958_v2, %v40_v42  ;;  %v112_v58 = vmul.f32 %v958_v2, %v41_v43  ;;  %v55_v47 = vld [vmem:[%s1375_s0 + $0x148] sm:$0xff] }
  0x19   :  { %v791_v55 = vpack.c.bf16 %v241_v46, %v240_v45  ;;  %906 = vst [vmem:[%s1378_s3 + $0x48] sm:$0xff] %v786_v50   ;;  %v181_v60 = vadd.f32 %v965_v5, %v110_v52  ;;  %v244_v61 = vmax.f32 %v180_v53, 0.0  ;;  %v113_v62 = vmul.f32 %v958_v2, %v42_v48  ;;  %v56_v52 = vld [vmem:[%s1375_s0 + $0x150] sm:$0xff]  ;;  %v57_v53 = vld [vmem:[%s1375_s0 + $0x158] sm:$0xff] }
  0x1a   :  { %v114_v63 = vmul.f32 %v958_v2, %v43_v49  ;;  %v796_v1 = vpack.c.bf16 %v243_v56, %v242_v51  ;;  %v182_v3 = vadd.f32 %v965_v5, %v111_v57  ;;  %v183_v4 = vadd.f32 %v965_v5, %v112_v58  ;;  %v58_v58 = vld [vmem:[%s1375_s0 + $0x160] sm:$0xff] }
  0x1b   :  { %907 = vst [vmem:[%s1378_s3 + $0x50] sm:$0xff] %v791_v55   ;;  %v115_v6 = vmul.f32 %v958_v2, %v44_v54  ;;  %v245_v7 = vmax.f32 %v181_v60, 0.0  ;;  %v184_v8 = vadd.f32 %v965_v5, %v113_v62  ;;  %v116_v10 = vmul.f32 %v958_v2, %v45_v59  ;;  %v59_v59 = vld [vmem:[%s1375_s0 + $0x168] sm:$0xff] }
  0x1c   :  { %v185_v9 = vadd.f32 %v965_v5, %v114_v63  ;;  %908 = vst [vmem:[%s1378_s3 + $0x58] sm:$0xff] %v796_v1   ;;  %v246_v12 = vmax.f32 %v182_v3, 0.0  ;;  %v247_v13 = vmax.f32 %v183_v4, 0.0  ;;  %v117_v15 = vmul.f32 %v958_v2, %v46_v0  ;;  %v60_v0 = vld [vmem:[%s1375_s0 + $0x170] sm:$0xff] }
  0x1d   :  { %v186_v14 = vadd.f32 %v965_v5, %v115_v6  ;;  %v801_v18 = vpack.c.bf16 %v245_v7, %v244_v61  ;;  %v248_v19 = vmax.f32 %v184_v8, 0.0  ;;  %v187_v21 = vadd.f32 %v965_v5, %v116_v10  ;;  %v61_v7 = vld [vmem:[%s1375_s0 + $0x178] sm:$0xff] }
  0x1e   :  { %v249_v20 = vmax.f32 %v185_v9, 0.0  ;;  %v806_v24 = vpack.c.bf16 %v247_v13, %v246_v12  ;;  %v118_v26 = vmul.f32 %v958_v2, %v47_v11  ;;  %v188_v27 = vadd.f32 %v965_v5, %v117_v15  ;;  %v62_v12 = vld [vmem:[%s1375_s0 + $0x180] sm:$0xff] }
  0x1f   :  { %v250_v25 = vmax.f32 %v186_v14, 0.0  ;;  %909 = vst [vmem:[%s1378_s3 + $0x60] sm:$0xff] %v801_v18   ;;  %v251_v30 = vmax.f32 %v187_v21, 0.0  ;;  %v119_v31 = vmul.f32 %v958_v2, %v48_v16  ;;  %v120_v32 = vmul.f32 %v958_v2, %v49_v17  ;;  %v63_v21 = vld [vmem:[%s1375_s0 + $0x188] sm:$0xff] }
  0x20   :  { %v811_v29 = vpack.c.bf16 %v249_v20, %v248_v19  ;;  %910 = vst [vmem:[%s1378_s3 + $0x68] sm:$0xff] %v806_v24   ;;  %v189_v34 = vadd.f32 %v965_v5, %v118_v26  ;;  %v252_v35 = vmax.f32 %v188_v27, 0.0  ;;  %v121_v36 = vmul.f32 %v958_v2, %v50_v22  ;;  %v64_v26 = vld [vmem:[%s1375_s0 + $0x190] sm:$0xff]  ;;  %v65_v27 = vld [vmem:[%s1375_s0 + $0x198] sm:$0xff] }
  0x21   :  { %v122_v37 = vmul.f32 %v958_v2, %v51_v23  ;;  %v816_v39 = vpack.c.bf16 %v251_v30, %v250_v25  ;;  %v190_v40 = vadd.f32 %v965_v5, %v119_v31  ;;  %v191_v41 = vadd.f32 %v965_v5, %v120_v32  ;;  %v66_v32 = vld [vmem:[%s1375_s0 + $0x1a0] sm:$0xff] }
  0x22   :  { %911 = vst [vmem:[%s1378_s3 + $0x70] sm:$0xff] %v811_v29   ;;  %v123_v42 = vmul.f32 %v958_v2, %v52_v28  ;;  %v253_v43 = vmax.f32 %v189_v34, 0.0  ;;  %v192_v44 = vadd.f32 %v965_v5, %v121_v36  ;;  %v124_v46 = vmul.f32 %v958_v2, %v53_v33  ;;  %v67_v33 = vld [vmem:[%s1375_s0 + $0x1a8] sm:$0xff] }
  0x23   :  { %v193_v45 = vadd.f32 %v965_v5, %v122_v37  ;;  %912 = vst [vmem:[%s1378_s3 + $0x78] sm:$0xff] %v816_v39   ;;  %v254_v48 = vmax.f32 %v190_v40, 0.0  ;;  %v255_v49 = vmax.f32 %v191_v41, 0.0  ;;  %v125_v51 = vmul.f32 %v958_v2, %v54_v38  ;;  %v68_v38 = vld [vmem:[%s1375_s0 + $0x1b0] sm:$0xff] }
  0x24   :  { %v194_v50 = vadd.f32 %v965_v5, %v123_v42  ;;  %v821_v54 = vpack.c.bf16 %v253_v43, %v252_v35  ;;  %v256_v55 = vmax.f32 %v192_v44, 0.0  ;;  %v195_v57 = vadd.f32 %v965_v5, %v124_v46  ;;  %v69_v43 = vld [vmem:[%s1375_s0 + $0x1b8] sm:$0xff] }
  0x25   :  { %v257_v56 = vmax.f32 %v193_v45, 0.0  ;;  %v826_v60 = vpack.c.bf16 %v255_v49, %v254_v48  ;;  %v126_v62 = vmul.f32 %v958_v2, %v55_v47  ;;  %v196_v63 = vadd.f32 %v965_v5, %v125_v51  ;;  %v70_v48 = vld [vmem:[%s1375_s0 + $0x1c0] sm:$0xff] }
  0x26   :  { %v258_v61 = vmax.f32 %v194_v50, 0.0  ;;  %913 = vst [vmem:[%s1378_s3 + $0x80] sm:$0xff] %v821_v54   ;;  %v259_v3 = vmax.f32 %v195_v57, 0.0  ;;  %v127_v4 = vmul.f32 %v958_v2, %v56_v52  ;;  %v128_v6 = vmul.f32 %v958_v2, %v57_v53  ;;  %v71_v57 = vld [vmem:[%s1375_s0 + $0x1c8] sm:$0xff] }
  0x27   :  { %v831_v1 = vpack.c.bf16 %v257_v56, %v256_v55  ;;  %914 = vst [vmem:[%s1378_s3 + $0x88] sm:$0xff] %v826_v60   ;;  %v197_v8 = vadd.f32 %v965_v5, %v126_v62  ;;  %v260_v9 = vmax.f32 %v196_v63, 0.0  ;;  %v129_v10 = vmul.f32 %v958_v2, %v58_v58  ;;  %v72_v62 = vld [vmem:[%s1375_s0 + $0x1d0] sm:$0xff]  ;;  %v73_v63 = vld [vmem:[%s1375_s0 + $0x1d8] sm:$0xff] }
  0x28   :  { %v130_v11 = vmul.f32 %v958_v2, %v59_v59  ;;  %v836_v13 = vpack.c.bf16 %v259_v3, %v258_v61  ;;  %v198_v14 = vadd.f32 %v965_v5, %v127_v4  ;;  %v199_v15 = vadd.f32 %v965_v5, %v128_v6  ;;  %v74_v6 = vld [vmem:[%s1375_s0 + $0x1e0] sm:$0xff] }
  0x29   :  { %915 = vst [vmem:[%s1378_s3 + $0x90] sm:$0xff] %v831_v1   ;;  %v131_v16 = vmul.f32 %v958_v2, %v60_v0  ;;  %v261_v17 = vmax.f32 %v197_v8, 0.0  ;;  %v200_v18 = vadd.f32 %v965_v5, %v129_v10  ;;  %v132_v20 = vmul.f32 %v958_v2, %v61_v7  ;;  %v75_v7 = vld [vmem:[%s1375_s0 + $0x1e8] sm:$0xff] }
  0x2a   :  { %v201_v19 = vadd.f32 %v965_v5, %v130_v11  ;;  %916 = vst [vmem:[%s1378_s3 + $0x98] sm:$0xff] %v836_v13   ;;  %v262_v22 = vmax.f32 %v198_v14, 0.0  ;;  %v263_v23 = vmax.f32 %v199_v15, 0.0  ;;  %v133_v25 = vmul.f32 %v958_v2, %v62_v12  ;;  %v76_v12 = vld [vmem:[%s1375_s0 + $0x1f0] sm:$0xff] }
  0x2b   :  { %v202_v24 = vadd.f32 %v965_v5, %v131_v16  ;;  %v841_v28 = vpack.c.bf16 %v261_v17, %v260_v9  ;;  %v264_v29 = vmax.f32 %v200_v18, 0.0  ;;  %v203_v31 = vadd.f32 %v965_v5, %v132_v20  ;;  %v77_v17 = vld [vmem:[%s1375_s0 + $0x1f8] sm:$0xff] }
  0x2c   :  { %v265_v30 = vmax.f32 %v201_v19, 0.0  ;;  %v846_v34 = vpack.c.bf16 %v263_v23, %v262_v22  ;;  %v134_v36 = vmul.f32 %v958_v2, %v63_v21  ;;  %v204_v37 = vadd.f32 %v965_v5, %v133_v25 }
  0x2d   :  { %v266_v35 = vmax.f32 %v202_v24, 0.0  ;;  %917 = vst [vmem:[%s1378_s3 + $0xa0] sm:$0xff] %v841_v28   ;;  %v267_v40 = vmax.f32 %v203_v31, 0.0  ;;  %v135_v41 = vmul.f32 %v958_v2, %v64_v26  ;;  %v136_v42 = vmul.f32 %v958_v2, %v65_v27 }
  0x2e   :  { %v851_v39 = vpack.c.bf16 %v265_v30, %v264_v29  ;;  %918 = vst [vmem:[%s1378_s3 + $0xa8] sm:$0xff] %v846_v34   ;;  %v205_v44 = vadd.f32 %v965_v5, %v134_v36  ;;  %v268_v45 = vmax.f32 %v204_v37, 0.0  ;;  %v137_v46 = vmul.f32 %v958_v2, %v66_v32 }
  0x2f   :  { %v138_v47 = vmul.f32 %v958_v2, %v67_v33  ;;  %v856_v49 = vpack.c.bf16 %v267_v40, %v266_v35  ;;  %v206_v50 = vadd.f32 %v965_v5, %v135_v41  ;;  %v207_v51 = vadd.f32 %v965_v5, %v136_v42 }
  0x30   :  { %919 = vst [vmem:[%s1378_s3 + $0xb0] sm:$0xff] %v851_v39   ;;  %v139_v52 = vmul.f32 %v958_v2, %v68_v38  ;;  %v269_v53 = vmax.f32 %v205_v44, 0.0  ;;  %v208_v54 = vadd.f32 %v965_v5, %v137_v46  ;;  %v140_v56 = vmul.f32 %v958_v2, %v69_v43 }
  0x31   :  { %v209_v55 = vadd.f32 %v965_v5, %v138_v47  ;;  %920 = vst [vmem:[%s1378_s3 + $0xb8] sm:$0xff] %v856_v49   ;;  %v270_v58 = vmax.f32 %v206_v50, 0.0  ;;  %v271_v59 = vmax.f32 %v207_v51, 0.0  ;;  %v141_v61 = vmul.f32 %v958_v2, %v70_v48 }
  0x32   :  { %v210_v60 = vadd.f32 %v965_v5, %v139_v52  ;;  %v861_v0 = vpack.c.bf16 %v269_v53, %v268_v45  ;;  %v272_v1 = vmax.f32 %v208_v54, 0.0  ;;  %v211_v4 = vadd.f32 %v965_v5, %v140_v56 }
  0x33   :  { %v273_v3 = vmax.f32 %v209_v55, 0.0  ;;  %v866_v8 = vpack.c.bf16 %v271_v59, %v270_v58  ;;  %v142_v10 = vmul.f32 %v958_v2, %v71_v57  ;;  %v212_v11 = vadd.f32 %v965_v5, %v141_v61 }
  0x34   :  { %v274_v9 = vmax.f32 %v210_v60, 0.0  ;;  %921 = vst [vmem:[%s1378_s3 + $0xc0] sm:$0xff] %v861_v0   ;;  %v275_v14 = vmax.f32 %v211_v4, 0.0  ;;  %v143_v15 = vmul.f32 %v958_v2, %v72_v62  ;;  %v144_v16 = vmul.f32 %v958_v2, %v73_v63 }
  0x35   :  { %v871_v13 = vpack.c.bf16 %v273_v3, %v272_v1  ;;  %922 = vst [vmem:[%s1378_s3 + $0xc8] sm:$0xff] %v866_v8   ;;  %v213_v18 = vadd.f32 %v965_v5, %v142_v10  ;;  %v276_v19 = vmax.f32 %v212_v11, 0.0  ;;  %v145_v20 = vmul.f32 %v958_v2, %v74_v6 }
  0x36   :  { %v146_v21 = vmul.f32 %v958_v2, %v75_v7  ;;  %v876_v22 = vpack.c.bf16 %v275_v14, %v274_v9  ;;  %v214_v23 = vadd.f32 %v965_v5, %v143_v15  ;;  %v215_v24 = vadd.f32 %v965_v5, %v144_v16 }
  0x37   :  { %923 = vst [vmem:[%s1378_s3 + $0xd0] sm:$0xff] %v871_v13   ;;  %v147_v25 = vmul.f32 %v958_v2, %v76_v12  ;;  %v277_v26 = vmax.f32 %v213_v18, 0.0  ;;  %v216_v27 = vadd.f32 %v965_v5, %v145_v20  ;;  %v148_v29 = vmul.f32 %v958_v2, %v77_v17 }
  0x38   :  { %v217_v28 = vadd.f32 %v965_v5, %v146_v21  ;;  %924 = vst [vmem:[%s1378_s3 + $0xd8] sm:$0xff] %v876_v22   ;;  %v278_v30 = vmax.f32 %v214_v23, 0.0  ;;  %v279_v31 = vmax.f32 %v215_v24, 0.0 }
  0x39   :  { %v218_v32 = vadd.f32 %v965_v5, %v147_v25  ;;  %v881_v33 = vpack.c.bf16 %v277_v26, %v276_v19  ;;  %v280_v34 = vmax.f32 %v216_v27, 0.0  ;;  %v219_v36 = vadd.f32 %v965_v5, %v148_v29 }
  0x3a   :  { %v281_v35 = vmax.f32 %v217_v28, 0.0  ;;  %v886_v37 = vpack.c.bf16 %v279_v31, %v278_v30 }
  0x3b   :  { %v282_v38 = vmax.f32 %v218_v32, 0.0  ;;  %925 = vst [vmem:[%s1378_s3 + $0xe0] sm:$0xff] %v881_v33   ;;  %v283_v39 = vmax.f32 %v219_v36, 0.0 }
  0x3c   :  { %v891_v2 = vpack.c.bf16 %v281_v35, %v280_v34  ;;  %926 = vst [vmem:[%s1378_s3 + $0xe8] sm:$0xff] %v886_v37  }
  0x3d   :  { %v896_v40 = vpack.c.bf16 %v283_v39, %v282_v38 }
  0x3e   :  { %927 = vst [vmem:[%s1378_s3 + $0xf0] sm:$0xff] %v891_v2  }
  0x3f   :  { %928 = vst [vmem:[%s1378_s3 + $0xf8] sm:$0xff] %v896_v40  }

// kernel: model_forward.46
= control target key start
LH: loop header
LB: loop body
LE: loop exit
PB: predicated region body
PF: predicated region fallthrough
CT: control target
= control target key end

     0   :  { %v564_v1 = vmov 0   ;;  %s851_s1 = inlined_call_operand.vmem [shape: bf16[128,256], index: 1, kind: input, shape index: {}]   ;;  %s852_s0 = inlined_call_operand.vmem [shape: bf16[128,128], index: 0, kind: input, shape index: {}]   ;;  %s853_s2 = inlined_call_operand.vmem [shape: f32[128,256], index: 2, kind: output, shape index: {0}]   ;;  %s854_s3 = inlined_call_operand.vmem [shape: f32[1,256], index: 3, kind: output, shape index: {1}]   ;;  %s855_s4 = inlined_call_operand.vmem [shape: f32[1,256], index: 4, kind: output, shape index: {2}]  }
   0x1   :  { %v532_v0 = vld [vmem:[%s851_s1 + $0x4] ss:$8 sps:$4 sm:$0xff]   ;;  %207 = vmatprep.mubr.bf16.mxu0 %v564_v1  ;;  %247 = vmatprep.mubr.bf16.mxu1 %v564_v1  ;;  %v534_v2 = vld [vmem:[%s851_s1] ss:$8 sps:$4 sm:$0xff]   ;;  %v535_v3 = vld [vmem:[%s851_s1 + $0x14] ss:$8 sps:$4 sm:$0xff]  }
   0x2   :  { %175 = vmatprep.subr.bf16.mxu0 %v532_v0  ;;  %514 = vmatprep.subr.bf16.mxu1 %v532_v0  ;;  %v537_v4 = vld [vmem:[%s851_s1 + $0x10] ss:$8 sps:$4 sm:$0xff]   ;;  %v538_v5 = vld [vmem:[%s851_s1 + $0x24] ss:$8 sps:$4 sm:$0xff]   ;;  %v540_v6 = vld [vmem:[%s851_s1 + $0x20] ss:$8 sps:$4 sm:$0xff]  }
   0x3   :  { %176 = vmatpush1.bf16.msra.mxu0 %v534_v2  ;;  %522 = vmatpush1.bf16.msra.mxu1 %v534_v2  ;;  %v541_v7 = vld [vmem:[%s851_s1 + $0x34] ss:$8 sps:$4 sm:$0xff]   ;;  %v543_v8 = vld [vmem:[%s851_s1 + $0x30] ss:$8 sps:$4 sm:$0xff]   ;;  %v544_v9 = vld [vmem:[%s851_s1 + $0x44] ss:$8 sps:$4 sm:$0xff]  }
   0x4   :  { %177 = vmatprep.subr.bf16.mxu0 %v535_v3  ;;  %515 = vmatprep.subr.bf16.mxu1 %v535_v3  ;;  %v546_v10 = vld [vmem:[%s851_s1 + $0x40] ss:$8 sps:$4 sm:$0xff]   ;;  %v547_v11 = vld [vmem:[%s851_s1 + $0x54] ss:$8 sps:$4 sm:$0xff]   ;;  %v549_v12 = vld [vmem:[%s851_s1 + $0x50] ss:$8 sps:$4 sm:$0xff]  }
   0x5   :  { %v550_v13 = vld [vmem:[%s851_s1 + $0x64] ss:$8 sps:$4 sm:$0xff]   ;;  %v552_v14 = vld [vmem:[%s851_s1 + $0x60] ss:$8 sps:$4 sm:$0xff]   ;;  %v553_v15 = vld [vmem:[%s851_s1 + $0x74] ss:$8 sps:$4 sm:$0xff]  }
   0x6   :  { %v555_v16 = vld [vmem:[%s851_s1 + $0x70] ss:$8 sps:$4 sm:$0xff]   ;;  %v556_v17 = vld [vmem:[%s852_s0] sm:$0xff]   ;;  %v557_v19 = vld [vmem:[%s852_s0 + $0x8] sm:$0xff]  }
   0x7   :  { %178 = vmatpush1.bf16.msra.mxu0 %v537_v4  ;;  %523 = vmatpush1.bf16.msra.mxu1 %v537_v4  ;;  %v558_v18 = vld [vmem:[%s852_s0 + $0x20] sm:$0xff]   ;;  %v560_v20 = vld [vmem:[%s852_s0 + $0x28] sm:$0xff]   ;;  %v559_v21 = vld [vmem:[%s852_s0 + $0x10] sm:$0xff]  }
   0x8   :  { %179 = vmatprep.subr.bf16.mxu0 %v538_v5  ;;  %516 = vmatprep.subr.bf16.mxu1 %v538_v5  ;;  %v562_v22 = vld [vmem:[%s852_s0 + $0x30] sm:$0xff]   ;;  %v561_v23 = vld [vmem:[%s852_s0 + $0x18] sm:$0xff]  }
   0x9   :  { %v563_v24 = vld [vmem:[%s852_s0 + $0x38] sm:$0xff]  }
   0xb   :  { %180 = vmatpush1.bf16.msra.mxu0 %v540_v6  ;;  %524 = vmatpush1.bf16.msra.mxu1 %v540_v6 }
   0xc   :  { %181 = vmatprep.subr.bf16.mxu0 %v541_v7  ;;  %517 = vmatprep.subr.bf16.mxu1 %v541_v7 }
   0xf   :  { %182 = vmatpush1.bf16.msra.mxu0 %v543_v8  ;;  %525 = vmatpush1.bf16.msra.mxu1 %v543_v8 }
  0x10   :  { %183 = vmatprep.subr.bf16.mxu0 %v544_v9  ;;  %518 = vmatprep.subr.bf16.mxu1 %v544_v9 }
  0x13   :  { %184 = vmatpush1.bf16.msra.mxu0 %v546_v10  ;;  %526 = vmatpush1.bf16.msra.mxu1 %v546_v10 }
  0x14   :  { %185 = vmatprep.subr.bf16.mxu0 %v547_v11  ;;  %519 = vmatprep.subr.bf16.mxu1 %v547_v11 }
  0x17   :  { %186 = vmatpush1.bf16.msra.mxu0 %v549_v12  ;;  %527 = vmatpush1.bf16.msra.mxu1 %v549_v12 }
  0x18   :  { %187 = vmatprep.subr.bf16.mxu0 %v550_v13  ;;  %520 = vmatprep.subr.bf16.mxu1 %v550_v13 }
  0x1b   :  { %188 = vmatpush1.bf16.msra.mxu0 %v552_v14  ;;  %528 = vmatpush1.bf16.msra.mxu1 %v552_v14 }
  0x1c   :  { %189 = vmatprep.subr.bf16.mxu0 %v553_v15  ;;  %521 = vmatprep.subr.bf16.mxu1 %v553_v15 }
  0x1f   :  { %190 = vmatpush1.bf16.msra.mxu0 %v555_v16  ;;  %529 = vmatpush1.bf16.msra.mxu1 %v555_v16 }
  0x22   :  { %208 = vmatmul.mubr.bf16.vlgmr.msra.gmra.mrb[0].mxu0 %v556_v17  ;;  %248 = vmatmul.mubr.bf16.vlgmr.msra.gmra.mrb[0].mxu1 %v558_v18 }
  0x23   :  { %217 = vmatprep.mubr.bf16.mxu0 %v564_v1  ;;  %257 = vmatprep.mubr.bf16.mxu1 %v564_v1 }
  0x2a   :  { %218 = vmatmul.mubr.bf16.gmra.mrb[4].mxu0 %v557_v19  ;;  %258 = vmatmul.mubr.bf16.gmra.mrb[4].mxu1 %v560_v20 }
  0x2b   :  { %227 = vmatprep.mubr.bf16.mxu0 %v564_v1  ;;  %267 = vmatprep.mubr.bf16.mxu1 %v564_v1 }
  0x32   :  { %228 = vmatmul.mubr.bf16.gmra.mrb[8].mxu0 %v559_v21  ;;  %268 = vmatmul.mubr.bf16.gmra.mrb[8].mxu1 %v562_v22 }
  0x33   :  { %237 = vmatprep.mubr.bf16.mxu0 %v564_v1  ;;  %277 = vmatprep.mubr.bf16.mxu1 %v564_v1 }
  0x3a   :  { %238 = vmatmul.mubr.bf16.gmra.mrb[12].mxu0 %v561_v23  ;;  %278 = vmatmul.mubr.bf16.gmra.mrb[12].mxu1 %v563_v24 }
  0xf5   :  { %v209_v25 = vpop.f32.mrb[0].mxu0  ;;  %v671_v26 = vpop.f32.mrb[0].mxu1 }
  0xf6   :  { %288 = vst [vmem:[%s853_s2] sm:$0xff] %v209_v25  ;;  %v211_v27 = vpop.f32.mrb[1].mxu0  ;;  %304 = vst [vmem:[%s853_s2 + $0x80] sm:$0xff] %v671_v26  ;;  %v680_v28 = vpop.f32.mrb[1].mxu1  ;;  %v385_v31 = vmul.f32 %v209_v25, %v209_v25 }
  0xf7   :  { %289 = vst [vmem:[%s853_s2 + $0x8] sm:$0xff] %v211_v27  ;;  %v213_v29 = vpop.f32.mrb[2].mxu0  ;;  %305 = vst [vmem:[%s853_s2 + $0x88] sm:$0xff] %v680_v28  ;;  %v689_v30 = vpop.f32.mrb[2].mxu1  ;;  %v386_v36 = vmul.f32 %v211_v27, %v211_v27 }
  0xf8   :  { %290 = vst [vmem:[%s853_s2 + $0x10] sm:$0xff] %v213_v29  ;;  %v320_v32 = vadd.f32 %v213_v29, %v209_v25  ;;  %v387_v33 = vmul.f32 %v213_v29, %v213_v29  ;;  %v215_v34 = vpop.f32.mrb[3].mxu0  ;;  %306 = vst [vmem:[%s853_s2 + $0x90] sm:$0xff] %v689_v30  ;;  %v698_v35 = vpop.f32.mrb[3].mxu1 }
  0xf9   :  { %291 = vst [vmem:[%s853_s2 + $0x18] sm:$0xff] %v215_v34  ;;  %v341_v37 = vadd.f32 %v215_v34, %v211_v27  ;;  %v388_v38 = vmul.f32 %v215_v34, %v215_v34  ;;  %307 = vst [vmem:[%s853_s2 + $0x98] sm:$0xff] %v698_v35 }
  0xfa   :  { %v417_v39 = vadd.f32 %v387_v33, %v385_v31 }
  0xfb   :  { %v438_v40 = vadd.f32 %v388_v38, %v386_v36 }
  0xfd   :  { %v219_v41 = vpop.f32.mrb[4].mxu0  ;;  %v707_v42 = vpop.f32.mrb[4].mxu1 }
  0xfe   :  { %292 = vst [vmem:[%s853_s2 + $0x20] sm:$0xff] %v219_v41  ;;  %v321_v43 = vadd.f32 %v320_v32, %v219_v41  ;;  %v389_v44 = vmul.f32 %v219_v41, %v219_v41  ;;  %v221_v45 = vpop.f32.mrb[5].mxu0  ;;  %308 = vst [vmem:[%s853_s2 + $0xa0] sm:$0xff] %v707_v42  ;;  %v716_v46 = vpop.f32.mrb[5].mxu1 }
  0xff   :  { %293 = vst [vmem:[%s853_s2 + $0x28] sm:$0xff] %v221_v45  ;;  %v342_v47 = vadd.f32 %v341_v37, %v221_v45  ;;  %v390_v48 = vmul.f32 %v221_v45, %v221_v45  ;;  %v223_v49 = vpop.f32.mrb[6].mxu0  ;;  %309 = vst [vmem:[%s853_s2 + $0xa8] sm:$0xff] %v716_v46  ;;  %v725_v50 = vpop.f32.mrb[6].mxu1 }
 0x100   :  { %v418_v51 = vadd.f32 %v417_v39, %v389_v44  ;;  %294 = vst [vmem:[%s853_s2 + $0x30] sm:$0xff] %v223_v49  ;;  %v322_v52 = vadd.f32 %v321_v43, %v223_v49  ;;  %v391_v53 = vmul.f32 %v223_v49, %v223_v49  ;;  %v225_v54 = vpop.f32.mrb[7].mxu0  ;;  %310 = vst [vmem:[%s853_s2 + $0xb0] sm:$0xff] %v725_v50  ;;  %v734_v55 = vpop.f32.mrb[7].mxu1 }
 0x101   :  { %v439_v56 = vadd.f32 %v438_v40, %v390_v48  ;;  %295 = vst [vmem:[%s853_s2 + $0x38] sm:$0xff] %v225_v54  ;;  %v343_v57 = vadd.f32 %v342_v47, %v225_v54  ;;  %v392_v58 = vmul.f32 %v225_v54, %v225_v54  ;;  %311 = vst [vmem:[%s853_s2 + $0xb8] sm:$0xff] %v734_v55 }
 0x102   :  { %v419_v59 = vadd.f32 %v418_v51, %v391_v53  ;;  %v401_v39 = vmul.f32 %v671_v26, %v671_v26  ;;  %v402_v43 = vmul.f32 %v680_v28, %v680_v28  ;;  %v403_v47 = vmul.f32 %v689_v30, %v689_v30 }
 0x103   :  { %v440_v60 = vadd.f32 %v439_v56, %v392_v58  ;;  %v404_v51 = vmul.f32 %v698_v35, %v698_v35 }
 0x105   :  { %v229_v61 = vpop.f32.mrb[8].mxu0  ;;  %v743_v62 = vpop.f32.mrb[8].mxu1 }
 0x106   :  { %296 = vst [vmem:[%s853_s2 + $0x40] sm:$0xff] %v229_v61  ;;  %v323_v63 = vadd.f32 %v322_v52, %v229_v61  ;;  %v393_v0 = vmul.f32 %v229_v61, %v229_v61  ;;  %v231_v1 = vpop.f32.mrb[9].mxu0  ;;  %312 = vst [vmem:[%s853_s2 + $0xc0] sm:$0xff] %v743_v62  ;;  %v752_v2 = vpop.f32.mrb[9].mxu1 }
 0x107   :  { %297 = vst [vmem:[%s853_s2 + $0x48] sm:$0xff] %v231_v1  ;;  %v344_v3 = vadd.f32 %v343_v57, %v231_v1  ;;  %v394_v4 = vmul.f32 %v231_v1, %v231_v1  ;;  %v233_v5 = vpop.f32.mrb[10].mxu0  ;;  %313 = vst [vmem:[%s853_s2 + $0xc8] sm:$0xff] %v752_v2  ;;  %v761_v6 = vpop.f32.mrb[10].mxu1 }
 0x108   :  { %v420_v7 = vadd.f32 %v419_v59, %v393_v0  ;;  %298 = vst [vmem:[%s853_s2 + $0x50] sm:$0xff] %v233_v5  ;;  %v324_v8 = vadd.f32 %v323_v63, %v233_v5  ;;  %v395_v9 = vmul.f32 %v233_v5, %v233_v5  ;;  %v235_v10 = vpop.f32.mrb[11].mxu0  ;;  %314 = vst [vmem:[%s853_s2 + $0xd0] sm:$0xff] %v761_v6  ;;  %v770_v11 = vpop.f32.mrb[11].mxu1 }
 0x109   :  { %v441_v12 = vadd.f32 %v440_v60, %v394_v4  ;;  %299 = vst [vmem:[%s853_s2 + $0x58] sm:$0xff] %v235_v10  ;;  %v345_v13 = vadd.f32 %v344_v3, %v235_v10  ;;  %v396_v14 = vmul.f32 %v235_v10, %v235_v10  ;;  %315 = vst [vmem:[%s853_s2 + $0xd8] sm:$0xff] %v770_v11 }
 0x10a   :  { %v421_v15 = vadd.f32 %v420_v7, %v395_v9  ;;  %v409_v0 = vmul.f32 %v743_v62, %v743_v62  ;;  %v410_v3 = vmul.f32 %v752_v2, %v752_v2  ;;  %v411_v7 = vmul.f32 %v761_v6, %v761_v6 }
 0x10b   :  { %v442_v16 = vadd.f32 %v441_v12, %v396_v14 }
 0x10d   :  { %v239_v17 = vpop.f32.mrb[12].mxu0  ;;  %v779_v18 = vpop.f32.mrb[12].mxu1 }
 0x10e   :  { %300 = vst [vmem:[%s853_s2 + $0x60] sm:$0xff] %v239_v17  ;;  %v325_v19 = vadd.f32 %v324_v8, %v239_v17  ;;  %v397_v20 = vmul.f32 %v239_v17, %v239_v17  ;;  %v241_v21 = vpop.f32.mrb[13].mxu0  ;;  %316 = vst [vmem:[%s853_s2 + $0xe0] sm:$0xff] %v779_v18  ;;  %v281_v22 = vpop.f32.mrb[13].mxu1 }
 0x10f   :  { %301 = vst [vmem:[%s853_s2 + $0x68] sm:$0xff] %v241_v21  ;;  %v346_v23 = vadd.f32 %v345_v13, %v241_v21  ;;  %v398_v24 = vmul.f32 %v241_v21, %v241_v21  ;;  %v243_v25 = vpop.f32.mrb[14].mxu0  ;;  %317 = vst [vmem:[%s853_s2 + $0xe8] sm:$0xff] %v281_v22  ;;  %v283_v27 = vpop.f32.mrb[14].mxu1  ;;  %v414_v10 = vmul.f32 %v281_v22, %v281_v22 }
 0x110   :  { %v422_v29 = vadd.f32 %v421_v15, %v397_v20  ;;  %302 = vst [vmem:[%s853_s2 + $0x70] sm:$0xff] %v243_v25  ;;  %v326_v31 = vadd.f32 %v325_v19, %v243_v25  ;;  %v399_v32 = vmul.f32 %v243_v25, %v243_v25  ;;  %v245_v33 = vpop.f32.mrb[15].mxu0  ;;  %318 = vst [vmem:[%s853_s2 + $0xf0] sm:$0xff] %v283_v27  ;;  %v285_v34 = vpop.f32.mrb[15].mxu1 }
 0x111   :  { %v443_v36 = vadd.f32 %v442_v16, %v398_v24  ;;  %303 = vst [vmem:[%s853_s2 + $0x78] sm:$0xff] %v245_v33  ;;  %v347_v37 = vadd.f32 %v346_v23, %v245_v33  ;;  %v400_v38 = vmul.f32 %v245_v33, %v245_v33  ;;  %319 = vst [vmem:[%s853_s2 + $0xf8] sm:$0xff] %v285_v34 }
 0x112   :  { %v327_v40 = vadd.f32 %v326_v31, %v671_v26  ;;  %v423_v41 = vadd.f32 %v422_v29, %v399_v32  ;;  %v405_v26 = vmul.f32 %v707_v42, %v707_v42  ;;  %v415_v17 = vmul.f32 %v283_v27, %v283_v27 }
 0x113   :  { %v348_v44 = vadd.f32 %v347_v37, %v680_v28  ;;  %v444_v45 = vadd.f32 %v443_v36, %v400_v38  ;;  %v406_v28 = vmul.f32 %v716_v46, %v716_v46  ;;  %v416_v20 = vmul.f32 %v285_v34, %v285_v34 }
 0x114   :  { %v328_v48 = vadd.f32 %v327_v40, %v689_v30  ;;  %v424_v49 = vadd.f32 %v423_v41, %v401_v39  ;;  %v407_v30 = vmul.f32 %v725_v50, %v725_v50  ;;  %v368_v36 = vlaneseq }
 0x115   :  { %v349_v52 = vadd.f32 %v348_v44, %v698_v35  ;;  %v445_v53 = vadd.f32 %v444_v45, %v402_v43  ;;  %v408_v35 = vmul.f32 %v734_v55, %v734_v55 }
 0x116   :  { %v425_v54 = vadd.f32 %v424_v49, %v403_v47  ;;  %v329_v56 = vadd.f32 %v328_v48, %v707_v42  ;;  %vm382_vm0 = vcmp.lt.s32.totalorder %v368_v36, 256 }
 0x117   :  { %v446_v57 = vadd.f32 %v445_v53, %v404_v51  ;;  %v350_v58 = vadd.f32 %v349_v52, %v716_v46 }
 0x118   :  { %v330_v59 = vadd.f32 %v329_v56, %v725_v50  ;;  %v426_v60 = vadd.f32 %v425_v54, %v405_v26 }
 0x119   :  { %v351_v61 = vadd.f32 %v350_v58, %v734_v55  ;;  %v447_v63 = vadd.f32 %v446_v57, %v406_v28  ;;  %v413_v55 = vmul.f32 %v779_v18, %v779_v18 }
 0x11a   :  { %v331_v42 = vadd.f32 %v330_v59, %v743_v62  ;;  %v427_v1 = vadd.f32 %v426_v60, %v407_v30  ;;  %v412_v62 = vmul.f32 %v770_v11, %v770_v11 }
 0x11b   :  { %v352_v46 = vadd.f32 %v351_v61, %v752_v2  ;;  %v448_v4 = vadd.f32 %v447_v63, %v408_v35 }
 0x11c   :  { %v428_v50 = vadd.f32 %v427_v1, %v409_v0  ;;  %v332_v5 = vadd.f32 %v331_v42, %v761_v6 }
 0x11d   :  { %v449_v8 = vadd.f32 %v448_v4, %v410_v3  ;;  %v353_v9 = vadd.f32 %v352_v46, %v770_v11  ;;  %v565_v11 = vmov 1966171168  }
 0x11e   :  { %v429_v12 = vadd.f32 %v428_v50, %v411_v7  ;;  %v333_v2 = vadd.f32 %v332_v5, %v779_v18  ;;  %v366_v33 = vunpack.c.l.s4 %v565_v11 }
 0x11f   :  { %v450_v13 = vadd.f32 %v449_v8, %v412_v62  ;;  %v354_v14 = vadd.f32 %v353_v9, %v281_v22 }
 0x120   :  { %v430_v15 = vadd.f32 %v429_v12, %v413_v55  ;;  %v334_v16 = vadd.f32 %v333_v2, %v283_v27  ;;  %v367_v43 = vunpack.c.0.s8 %v366_v33 }
 0x121   :  { %v451_v19 = vadd.f32 %v450_v13, %v414_v10  ;;  %v355_v6 = vadd.f32 %v354_v14, %v285_v34  ;;  %v369_v34 = vshrl.u32 %v368_v36, 7 }
 0x122   :  { %v335_v21 = vrot.slane %v334_v16, 4  ;;  %v431_v23 = vadd.f32 %v430_v15, %v415_v17 }
 0x123   :  { %v356_v24 = vrot.slane %v355_v6, 4  ;;  %v452_v25 = vadd.f32 %v451_v19, %v416_v20  ;;  %v370_v26 = vsub.s32 %v367_v43, %v369_v34 }
 0x124   :  { %v336_v29 = vadd.f32 %v335_v21, %v334_v16  ;;  %v432_v31 = vrot.slane %v431_v23, 4 }
 0x125   :  { %v357_v32 = vadd.f32 %v356_v24, %v355_v6  ;;  %v453_v37 = vrot.slane %v452_v25, 4 }
 0x126   :  { %v337_v18 = vrot.slane %v336_v29, 2  ;;  %v433_v38 = vadd.f32 %v432_v31, %v431_v23 }
 0x127   :  { %v358_v22 = vrot.slane %v357_v32, 2  ;;  %v454_v39 = vadd.f32 %v453_v37, %v452_v25 }
 0x128   :  { %v338_v40 = vadd.f32 %v337_v18, %v336_v29  ;;  %v434_v27 = vrot.slane %v433_v38, 2 }
 0x129   :  { %v359_v41 = vadd.f32 %v358_v22, %v357_v32  ;;  %v455_v44 = vrot.slane %v454_v39, 2 }
 0x12a   :  { %v339_v45 = vrot.slane %v338_v40, 1  ;;  %v435_v47 = vadd.f32 %v434_v27, %v433_v38 }
 0x12b   :  { %v360_v48 = vrot.slane %v359_v41, 1  ;;  %v456_v49 = vadd.f32 %v455_v44, %v454_v39 }
 0x12c   :  { %v340_v51 = vadd.f32 %v339_v45, %v338_v40  ;;  %v436_v52 = vrot.slane %v435_v47, 1 }
 0x12d   :  { %v361_v53 = vadd.f32 %v360_v48, %v359_v41  ;;  %v457_v54 = vrot.slane %v456_v49, 1 }
 0x12e   :  { %v437_v56 = vadd.f32 %v436_v52, %v435_v47 }
 0x12f   :  { %v364_v28 = vcombine.low %v340_v51, %v361_v53  ;;  %v458_v57 = vadd.f32 %v457_v54, %v456_v49 }
 0x131   :  { %v371_v58 = vrot.slane %v364_v28, %v370_v26  ;;  %v461_v30 = vcombine.low %v437_v56, %v458_v57 }
 0x133   :  { %v378_v59 = vrot.slane %v371_v58, %v370_v26  ;;  %v468_v60 = vrot.slane %v461_v30, %v370_v26 }
 0x135   :  { %384 = vst.msk [vmem:[%s854_s3] sm:$0x3] %vm382_vm0, %v378_v59  ;;  %v475_v35 = vrot.slane %v468_v60, %v370_v26 }
 0x137   :  { %477 = vst.msk [vmem:[%s855_s4] sm:$0x3] %vm382_vm0, %v475_v35 }

// kernel: model_forward.35
= control target key start
LH: loop header
LB: loop body
LE: loop exit
PB: predicated region body
PF: predicated region fallthrough
CT: control target
= control target key end

     0   :  { %v1350_v0 = vmov 0   ;;  %vm443_vm0 = vcmask 154624   ;;  %vm540_vm1 = vcmask 1040384   ;;  %vm541_vm2 = vcmask 1041408   ;;  %s2021_s1 = inlined_call_operand.vmem [shape: bf16[147,128], index: 1, kind: input, shape index: {}]   ;;  %s2022_s0 = inlined_call_operand.vmem [shape: bf16[512,147], index: 0, kind: input, shape index: {}]   ;;  %s2023_s2 = inlined_call_operand.vmem [shape: f32[512,128], index: 2, kind: output, shape index: {0}]   ;;  %s2024_s3 = inlined_call_operand.vmem [shape: f32[1,128], index: 3, kind: output, shape index: {1}]   ;;  %s2025_s4 = inlined_call_operand.vmem [shape: f32[1,128], index: 4, kind: output, shape index: {2}]  }
   0x1   :  { %547 = vmatprep.subr.bf16.mxu0 %v1350_v0  ;;  %v1244_v1 = vld [vmem:[%s2021_s1] sm:$0xff]   ;;  %1222 = vmatprep.subr.bf16.mxu1 %v1350_v0  ;;  %v1245_v2 = vld [vmem:[%s2021_s1 + $0x8] sm:$0xff]   ;;  %v1246_v3 = vld [vmem:[%s2021_s1 + $0x10] sm:$0xff]   ;;  %v1351_v11 = vmov 65535  }
   0x2   :  { %548 = vmatpush1.bf16.msra.mxu0 %v1244_v1  ;;  %1232 = vmatpush1.bf16.msra.mxu1 %v1244_v1  ;;  %v1247_v4 = vld [vmem:[%s2021_s1 + $0x18] sm:$0xff]   ;;  %v1256_v5 = vld [vmem:[%s2022_s0 + $0x4] ss:$8 sps:$4 sm:$0xff]   ;;  %v1250_v9 = vld [vmem:[%s2021_s1 + $0x30] sm:$0xff]   ;;  %v542_v12 = vsel %vm540_vm1, 4294967295, %v1351_v11 }
   0x3   :  { %549 = vmatprep.subr.bf16.mxu0 %v1350_v0  ;;  %1223 = vmatprep.subr.bf16.mxu1 %v1350_v0  ;;  %v1248_v6 = vld [vmem:[%s2021_s1 + $0x20] sm:$0xff]   ;;  %v1249_v7 = vld [vmem:[%s2021_s1 + $0x28] sm:$0xff]   ;;  %v1251_v10 = vld [vmem:[%s2021_s1 + $0x38] sm:$0xff]   ;;  %v543_v15 = vsel %vm541_vm2, %v542_v12, 0 }
   0x4   :  { %1190 = vmatprep.mubr.msk.bf16.mxu0 %vm443_vm0, %v1256_v5  ;;  %v1280_v8 = vld [vmem:[%s2022_s0 + $0x104] ss:$8 sps:$4 sm:$0xff]   ;;  %v1253_v14 = vld [vmem:[%s2021_s1 + $0x48] ss:$0 sps:$4 sm:$0x33]  }
   0x5   :  { %1206 = vmatprep.mubr.msk.bf16.mxu1 %vm443_vm0, %v1280_v8  ;;  %v1252_v13 = vld [vmem:[%s2021_s1 + $0x40] sm:$0xff]   ;;  %v545_v16 = vand.u32 %v1253_v14, %v543_v15  ;;  %v1257_v19 = vld [vmem:[%s2022_s0 + $0x14] ss:$8 sps:$4 sm:$0xff]   ;;  %v1259_v21 = vld [vmem:[%s2022_s0 + $0x10] ss:$8 sps:$4 sm:$0xff]  }
   0x6   :  { %550 = vmatpush1.bf16.msra.mxu0 %v1245_v2  ;;  %1233 = vmatpush1.bf16.msra.mxu1 %v1245_v2  ;;  %v1254_v17 = vld [vmem:[%s2022_s0] ss:$8 sps:$4 sm:$0xff]   ;;  %v1284_v20 = vld [vmem:[%s2022_s0 + $0x114] ss:$8 sps:$4 sm:$0xff]   ;;  %v1286_v22 = vld [vmem:[%s2022_s0 + $0x110] ss:$8 sps:$4 sm:$0xff]  }
   0x7   :  { %551 = vmatprep.subr.bf16.mxu0 %v1350_v0  ;;  %1224 = vmatprep.subr.bf16.mxu1 %v1350_v0  ;;  %v1278_v18 = vld [vmem:[%s2022_s0 + $0x100] ss:$8 sps:$4 sm:$0xff]   ;;  %v1260_v23 = vld [vmem:[%s2022_s0 + $0x24] ss:$8 sps:$4 sm:$0xff]   ;;  %v1263_v27 = vld [vmem:[%s2022_s0 + $0x34] ss:$8 sps:$4 sm:$0xff]  }
   0x8   :  { %v1290_v24 = vld [vmem:[%s2022_s0 + $0x124] ss:$8 sps:$4 sm:$0xff]   ;;  %v1262_v25 = vld [vmem:[%s2022_s0 + $0x20] ss:$8 sps:$4 sm:$0xff]   ;;  %v1296_v28 = vld [vmem:[%s2022_s0 + $0x134] ss:$8 sps:$4 sm:$0xff]  }
   0x9   :  { %v1292_v26 = vld [vmem:[%s2022_s0 + $0x120] ss:$8 sps:$4 sm:$0xff]   ;;  %v1265_v29 = vld [vmem:[%s2022_s0 + $0x30] ss:$8 sps:$4 sm:$0xff]   ;;  %v1266_v31 = vld [vmem:[%s2022_s0 + $0x44] ss:$8 sps:$4 sm:$0xff]  }
   0xa   :  { %552 = vmatpush1.bf16.msra.mxu0 %v1246_v3  ;;  %1234 = vmatpush1.bf16.msra.mxu1 %v1246_v3  ;;  %v1298_v30 = vld [vmem:[%s2022_s0 + $0x130] ss:$8 sps:$4 sm:$0xff]   ;;  %v1302_v32 = vld [vmem:[%s2022_s0 + $0x144] ss:$8 sps:$4 sm:$0xff]   ;;  %v1268_v33 = vld [vmem:[%s2022_s0 + $0x40] ss:$8 sps:$4 sm:$0xff]  }
   0xb   :  { %553 = vmatprep.subr.bf16.mxu0 %v1350_v0  ;;  %1225 = vmatprep.subr.bf16.mxu1 %v1350_v0  ;;  %v1304_v34 = vld [vmem:[%s2022_s0 + $0x140] ss:$8 sps:$4 sm:$0xff]   ;;  %v1269_v35 = vld [vmem:[%s2022_s0 + $0x54] ss:$8 sps:$4 sm:$0xff]   ;;  %v1271_v37 = vld [vmem:[%s2022_s0 + $0x50] ss:$8 sps:$4 sm:$0xff]  }
   0xc   :  { %v1308_v36 = vld [vmem:[%s2022_s0 + $0x154] ss:$8 sps:$4 sm:$0xff]   ;;  %v1310_v38 = vld [vmem:[%s2022_s0 + $0x150] ss:$8 sps:$4 sm:$0xff]   ;;  %v1272_v39 = vld [vmem:[%s2022_s0 + $0x64] ss:$8 sps:$4 sm:$0xff]  }
   0xd   :  { %v1314_v40 = vld [vmem:[%s2022_s0 + $0x164] ss:$8 sps:$4 sm:$0xff]   ;;  %v1274_v41 = vld [vmem:[%s2022_s0 + $0x60] ss:$8 sps:$4 sm:$0xff]   ;;  %v1275_v43 = vld [vmem:[%s2022_s0 + $0x74] ss:$8 sps:$4 sm:$0xff]  }
   0xe   :  { %554 = vmatpush1.bf16.msra.mxu0 %v1247_v4  ;;  %1235 = vmatpush1.bf16.msra.mxu1 %v1247_v4  ;;  %v1316_v42 = vld [vmem:[%s2022_s0 + $0x160] ss:$8 sps:$4 sm:$0xff]   ;;  %v1320_v44 = vld [vmem:[%s2022_s0 + $0x174] ss:$8 sps:$4 sm:$0xff]   ;;  %v1277_v45 = vld [vmem:[%s2022_s0 + $0x70] ss:$8 sps:$4 sm:$0xff]  }
   0xf   :  { %555 = vmatprep.subr.bf16.mxu0 %v1350_v0  ;;  %1226 = vmatprep.subr.bf16.mxu1 %v1350_v0  ;;  %v1322_v46 = vld [vmem:[%s2022_s0 + $0x170] ss:$8 sps:$4 sm:$0xff]   ;;  %v1281_v47 = vld [vmem:[%s2022_s0 + $0x84] ss:$8 sps:$4 sm:$0xff]   ;;  %v1283_v49 = vld [vmem:[%s2022_s0 + $0x80] ss:$8 sps:$4 sm:$0xff]  }
  0x10   :  { %v1326_v48 = vld [vmem:[%s2022_s0 + $0x184] ss:$8 sps:$4 sm:$0xff]   ;;  %v1328_v50 = vld [vmem:[%s2022_s0 + $0x180] ss:$8 sps:$4 sm:$0xff]   ;;  %v1287_v51 = vld [vmem:[%s2022_s0 + $0x94] ss:$8 sps:$4 sm:$0xff]  }
  0x11   :  { %v1329_v52 = vld [vmem:[%s2022_s0 + $0x194] ss:$8 sps:$4 sm:$0xff]   ;;  %v1289_v53 = vld [vmem:[%s2022_s0 + $0x90] ss:$8 sps:$4 sm:$0xff]   ;;  %v1293_v55 = vld [vmem:[%s2022_s0 + $0xa4] ss:$8 sps:$4 sm:$0xff]  }
  0x12   :  { %556 = vmatpush1.bf16.msra.mxu0 %v1248_v6  ;;  %1236 = vmatpush1.bf16.msra.mxu1 %v1248_v6  ;;  %v1331_v54 = vld [vmem:[%s2022_s0 + $0x190] ss:$8 sps:$4 sm:$0xff]   ;;  %v1332_v56 = vld [vmem:[%s2022_s0 + $0x1a4] ss:$8 sps:$4 sm:$0xff]   ;;  %v1295_v57 = vld [vmem:[%s2022_s0 + $0xa0] ss:$8 sps:$4 sm:$0xff]  }
  0x13   :  { %557 = vmatprep.subr.bf16.mxu0 %v1350_v0  ;;  %1227 = vmatprep.subr.bf16.mxu1 %v1350_v0  ;;  %v1334_v58 = vld [vmem:[%s2022_s0 + $0x1a0] ss:$8 sps:$4 sm:$0xff]   ;;  %v1299_v59 = vld [vmem:[%s2022_s0 + $0xb4] ss:$8 sps:$4 sm:$0xff]   ;;  %v1301_v61 = vld [vmem:[%s2022_s0 + $0xb0] ss:$8 sps:$4 sm:$0xff]  }
  0x14   :  { %v1335_v60 = vld [vmem:[%s2022_s0 + $0x1b4] ss:$8 sps:$4 sm:$0xff]   ;;  %v1337_v62 = vld [vmem:[%s2022_s0 + $0x1b0] ss:$8 sps:$4 sm:$0xff]   ;;  %v1305_v63 = vld [vmem:[%s2022_s0 + $0xc4] ss:$8 sps:$4 sm:$0xff]  }
  0x15   :  { %v1307_v1 = vld [vmem:[%s2022_s0 + $0xc0] ss:$8 sps:$4 sm:$0xff]   ;;  %v1311_v3 = vld [vmem:[%s2022_s0 + $0xd4] ss:$8 sps:$4 sm:$0xff]   ;;  %v1313_v5 = vld [vmem:[%s2022_s0 + $0xd0] ss:$8 sps:$4 sm:$0xff]  }
  0x16   :  { %558 = vmatpush1.bf16.msra.mxu0 %v1249_v7  ;;  %1237 = vmatpush1.bf16.msra.mxu1 %v1249_v7  ;;  %v1340_v2 = vld [vmem:[%s2022_s0 + $0x1c0] ss:$8 sps:$4 sm:$0xff]   ;;  %v1341_v4 = vld [vmem:[%s2022_s0 + $0x1d4] ss:$8 sps:$4 sm:$0xff]   ;;  %v1343_v6 = vld [vmem:[%s2022_s0 + $0x1d0] ss:$8 sps:$4 sm:$0xff]  }
  0x17   :  { %559 = vmatprep.subr.bf16.mxu0 %v1350_v0  ;;  %1228 = vmatprep.subr.bf16.mxu1 %v1350_v0  ;;  %v1317_v7 = vld [vmem:[%s2022_s0 + $0xe4] ss:$8 sps:$4 sm:$0xff]   ;;  %v1323_v11 = vld [vmem:[%s2022_s0 + $0xf4] ss:$8 sps:$4 sm:$0xff]   ;;  %v1349_v14 = vld [vmem:[%s2022_s0 + $0x1f0] ss:$8 sps:$4 sm:$0xff]  }
  0x18   :  { %v1344_v8 = vld [vmem:[%s2022_s0 + $0x1e4] ss:$8 sps:$4 sm:$0xff]   ;;  %v1347_v12 = vld [vmem:[%s2022_s0 + $0x1f4] ss:$8 sps:$4 sm:$0xff]  }
  0x1a   :  { %560 = vmatpush1.bf16.msra.mxu0 %v1250_v9  ;;  %1238 = vmatpush1.bf16.msra.mxu1 %v1250_v9  ;;  %v1319_v9 = vld [vmem:[%s2022_s0 + $0xe0] ss:$8 sps:$4 sm:$0xff]  }
  0x1b   :  { %561 = vmatprep.subr.bf16.mxu0 %v1350_v0  ;;  %1229 = vmatprep.subr.bf16.mxu1 %v1350_v0 }
  0x1e   :  { %562 = vmatpush1.bf16.msra.mxu0 %v1251_v10  ;;  %1239 = vmatpush1.bf16.msra.mxu1 %v1251_v10  ;;  %v1346_v10 = vld [vmem:[%s2022_s0 + $0x1e0] ss:$8 sps:$4 sm:$0xff]  }
  0x1f   :  { %563 = vmatprep.subr.bf16.mxu0 %v1350_v0  ;;  %1230 = vmatprep.subr.bf16.mxu1 %v1350_v0 }
  0x22   :  { %564 = vmatpush1.bf16.msra.mxu0 %v1252_v13  ;;  %1240 = vmatpush1.bf16.msra.mxu1 %v1252_v13  ;;  %v1325_v13 = vld [vmem:[%s2022_s0 + $0xf0] ss:$8 sps:$4 sm:$0xff]  }
  0x23   :  { %565 = vmatprep.subr.bf16.mxu0 %v1350_v0  ;;  %1231 = vmatprep.subr.bf16.mxu1 %v1350_v0  ;;  %v1338_v0 = vld [vmem:[%s2022_s0 + $0x1c4] ss:$8 sps:$4 sm:$0xff]  }
  0x26   :  { %566 = vmatpush1.bf16.msra.mxu0 %v545_v16  ;;  %1241 = vmatpush1.bf16.msra.mxu1 %v545_v16 }
  0x29   :  { %580 = vmatmul.mubr.bf16.vlgmr.msra.gmra.mrb[0].mxu0 %v1254_v17  ;;  %708 = vmatmul.mubr.bf16.vlgmr.msra.gmra.mrb[0].mxu1 %v1278_v18 }
  0x2a   :  { %1191 = vmatprep.mubr.msk.bf16.mxu0 %vm443_vm0, %v1257_v19  ;;  %1207 = vmatprep.mubr.msk.bf16.mxu1 %vm443_vm0, %v1284_v20 }
  0x31   :  { %588 = vmatmul.mubr.bf16.gmra.mrb[4].mxu0 %v1259_v21  ;;  %716 = vmatmul.mubr.bf16.gmra.mrb[4].mxu1 %v1286_v22 }
  0x32   :  { %1192 = vmatprep.mubr.msk.bf16.mxu0 %vm443_vm0, %v1260_v23  ;;  %1208 = vmatprep.mubr.msk.bf16.mxu1 %vm443_vm0, %v1290_v24 }
  0x39   :  { %596 = vmatmul.mubr.bf16.gmra.mrb[8].mxu0 %v1262_v25  ;;  %724 = vmatmul.mubr.bf16.gmra.mrb[8].mxu1 %v1292_v26 }
  0x3a   :  { %1193 = vmatprep.mubr.msk.bf16.mxu0 %vm443_vm0, %v1263_v27  ;;  %1209 = vmatprep.mubr.msk.bf16.mxu1 %vm443_vm0, %v1296_v28 }
  0x41   :  { %604 = vmatmul.mubr.bf16.gmra.mrb[12].mxu0 %v1265_v29  ;;  %732 = vmatmul.mubr.bf16.gmra.mrb[12].mxu1 %v1298_v30 }
  0x42   :  { %1194 = vmatprep.mubr.msk.bf16.mxu0 %vm443_vm0, %v1266_v31  ;;  %1210 = vmatprep.mubr.msk.bf16.mxu1 %vm443_vm0, %v1302_v32 }
  0x49   :  { %612 = vmatmul.mubr.bf16.gmra.mrb[16].mxu0 %v1268_v33  ;;  %740 = vmatmul.mubr.bf16.gmra.mrb[16].mxu1 %v1304_v34 }
  0x4a   :  { %1195 = vmatprep.mubr.msk.bf16.mxu0 %vm443_vm0, %v1269_v35  ;;  %1211 = vmatprep.mubr.msk.bf16.mxu1 %vm443_vm0, %v1308_v36 }
  0x51   :  { %620 = vmatmul.mubr.bf16.gmra.mrb[20].mxu0 %v1271_v37  ;;  %748 = vmatmul.mubr.bf16.gmra.mrb[20].mxu1 %v1310_v38 }
  0x52   :  { %1196 = vmatprep.mubr.msk.bf16.mxu0 %vm443_vm0, %v1272_v39  ;;  %1212 = vmatprep.mubr.msk.bf16.mxu1 %vm443_vm0, %v1314_v40 }
  0x59   :  { %628 = vmatmul.mubr.bf16.gmra.mrb[24].mxu0 %v1274_v41  ;;  %756 = vmatmul.mubr.bf16.gmra.mrb[24].mxu1 %v1316_v42 }
  0x5a   :  { %1197 = vmatprep.mubr.msk.bf16.mxu0 %vm443_vm0, %v1275_v43  ;;  %1213 = vmatprep.mubr.msk.bf16.mxu1 %vm443_vm0, %v1320_v44 }
  0x61   :  { %636 = vmatmul.mubr.bf16.gmra.mrb[28].mxu0 %v1277_v45  ;;  %764 = vmatmul.mubr.bf16.gmra.mrb[28].mxu1 %v1322_v46 }
  0x62   :  { %1198 = vmatprep.mubr.msk.bf16.mxu0 %vm443_vm0, %v1281_v47  ;;  %1214 = vmatprep.mubr.msk.bf16.mxu1 %vm443_vm0, %v1326_v48 }
  0x69   :  { %644 = vmatmul.mubr.bf16.gmra.mrb[32].mxu0 %v1283_v49  ;;  %772 = vmatmul.mubr.bf16.gmra.mrb[32].mxu1 %v1328_v50 }
  0x6a   :  { %1199 = vmatprep.mubr.msk.bf16.mxu0 %vm443_vm0, %v1287_v51  ;;  %1215 = vmatprep.mubr.msk.bf16.mxu1 %vm443_vm0, %v1329_v52 }
  0x71   :  { %652 = vmatmul.mubr.bf16.gmra.mrb[36].mxu0 %v1289_v53  ;;  %780 = vmatmul.mubr.bf16.gmra.mrb[36].mxu1 %v1331_v54 }
  0x72   :  { %1200 = vmatprep.mubr.msk.bf16.mxu0 %vm443_vm0, %v1293_v55  ;;  %1216 = vmatprep.mubr.msk.bf16.mxu1 %vm443_vm0, %v1332_v56 }
  0x79   :  { %660 = vmatmul.mubr.bf16.gmra.mrb[40].mxu0 %v1295_v57  ;;  %788 = vmatmul.mubr.bf16.gmra.mrb[40].mxu1 %v1334_v58 }
  0x7a   :  { %1201 = vmatprep.mubr.msk.bf16.mxu0 %vm443_vm0, %v1299_v59  ;;  %1217 = vmatprep.mubr.msk.bf16.mxu1 %vm443_vm0, %v1335_v60 }
  0x81   :  { %668 = vmatmul.mubr.bf16.gmra.mrb[44].mxu0 %v1301_v61  ;;  %796 = vmatmul.mubr.bf16.gmra.mrb[44].mxu1 %v1337_v62 }
  0x82   :  { %1202 = vmatprep.mubr.msk.bf16.mxu0 %vm443_vm0, %v1305_v63  ;;  %1218 = vmatprep.mubr.msk.bf16.mxu1 %vm443_vm0, %v1338_v0 }
  0x89   :  { %676 = vmatmul.mubr.bf16.gmra.mrb[48].mxu0 %v1307_v1  ;;  %804 = vmatmul.mubr.bf16.gmra.mrb[48].mxu1 %v1340_v2 }
  0x8a   :  { %1203 = vmatprep.mubr.msk.bf16.mxu0 %vm443_vm0, %v1311_v3  ;;  %1219 = vmatprep.mubr.msk.bf16.mxu1 %vm443_vm0, %v1341_v4 }
  0x91   :  { %684 = vmatmul.mubr.bf16.gmra.mrb[52].mxu0 %v1313_v5  ;;  %812 = vmatmul.mubr.bf16.gmra.mrb[52].mxu1 %v1343_v6 }
  0x92   :  { %1204 = vmatprep.mubr.msk.bf16.mxu0 %vm443_vm0, %v1317_v7  ;;  %1220 = vmatprep.mubr.msk.bf16.mxu1 %vm443_vm0, %v1344_v8 }
  0x99   :  { %692 = vmatmul.mubr.bf16.gmra.mrb[56].mxu0 %v1319_v9  ;;  %820 = vmatmul.mubr.bf16.gmra.mrb[56].mxu1 %v1346_v10 }
  0x9a   :  { %1205 = vmatprep.mubr.msk.bf16.mxu0 %vm443_vm0, %v1323_v11  ;;  %1221 = vmatprep.mubr.msk.bf16.mxu1 %vm443_vm0, %v1347_v12 }
  0xa1   :  { %700 = vmatmul.mubr.bf16.gmra.mrb[60].mxu0 %v1325_v13  ;;  %828 = vmatmul.mubr.bf16.gmra.mrb[60].mxu1 %v1349_v14 }
  0xfc   :  { %v581_v15 = vpop.f32.mrb[0].mxu0  ;;  %v1631_v16 = vpop.f32.mrb[0].mxu1 }
  0xfd   :  { %836 = vst [vmem:[%s2023_s2] sm:$0xff] %v581_v15  ;;  %v583_v17 = vpop.f32.mrb[1].mxu0  ;;  %868 = vst [vmem:[%s2023_s2 + $0x100] sm:$0xff] %v1631_v16  ;;  %v711_v18 = vpop.f32.mrb[1].mxu1  ;;  %v970_v21 = vmul.f32 %v581_v15, %v581_v15 }
  0xfe   :  { %v584_v19 = vpop.f32.mrb[2].mxu0  ;;  %v1640_v20 = vpop.f32.mrb[2].mxu1 }
  0xff   :  { %837 = vst [vmem:[%s2023_s2 + $0x8] sm:$0xff] %v584_v19  ;;  %v900_v22 = vadd.f32 %v584_v19, %v581_v15  ;;  %v971_v23 = vmul.f32 %v584_v19, %v584_v19  ;;  %v586_v24 = vpop.f32.mrb[3].mxu0  ;;  %869 = vst [vmem:[%s2023_s2 + $0x108] sm:$0xff] %v1640_v20  ;;  %v714_v25 = vpop.f32.mrb[3].mxu1 }
 0x101   :  { %v1034_v26 = vadd.f32 %v971_v23, %v970_v21 }
 0x104   :  { %v589_v27 = vpop.f32.mrb[4].mxu0  ;;  %v1649_v28 = vpop.f32.mrb[4].mxu1 }
 0x105   :  { %838 = vst [vmem:[%s2023_s2 + $0x10] sm:$0xff] %v589_v27  ;;  %v901_v29 = vadd.f32 %v900_v22, %v589_v27  ;;  %v972_v30 = vmul.f32 %v589_v27, %v589_v27  ;;  %v591_v31 = vpop.f32.mrb[5].mxu0  ;;  %870 = vst [vmem:[%s2023_s2 + $0x110] sm:$0xff] %v1649_v28  ;;  %v719_v32 = vpop.f32.mrb[5].mxu1 }
 0x106   :  { %v592_v33 = vpop.f32.mrb[6].mxu0  ;;  %v1658_v34 = vpop.f32.mrb[6].mxu1 }
 0x107   :  { %v1035_v35 = vadd.f32 %v1034_v26, %v972_v30  ;;  %839 = vst [vmem:[%s2023_s2 + $0x18] sm:$0xff] %v592_v33  ;;  %v902_v36 = vadd.f32 %v901_v29, %v592_v33  ;;  %v973_v37 = vmul.f32 %v592_v33, %v592_v33  ;;  %v594_v38 = vpop.f32.mrb[7].mxu0  ;;  %871 = vst [vmem:[%s2023_s2 + $0x118] sm:$0xff] %v1658_v34  ;;  %v722_v39 = vpop.f32.mrb[7].mxu1 }
 0x109   :  { %v1036_v40 = vadd.f32 %v1035_v35, %v973_v37 }
 0x10c   :  { %v597_v41 = vpop.f32.mrb[8].mxu0  ;;  %v1667_v42 = vpop.f32.mrb[8].mxu1 }
 0x10d   :  { %840 = vst [vmem:[%s2023_s2 + $0x20] sm:$0xff] %v597_v41  ;;  %v903_v43 = vadd.f32 %v902_v36, %v597_v41  ;;  %v974_v44 = vmul.f32 %v597_v41, %v597_v41  ;;  %v599_v45 = vpop.f32.mrb[9].mxu0  ;;  %872 = vst [vmem:[%s2023_s2 + $0x120] sm:$0xff] %v1667_v42  ;;  %v727_v46 = vpop.f32.mrb[9].mxu1 }
 0x10e   :  { %v600_v47 = vpop.f32.mrb[10].mxu0  ;;  %v1676_v48 = vpop.f32.mrb[10].mxu1 }
 0x10f   :  { %v1037_v49 = vadd.f32 %v1036_v40, %v974_v44  ;;  %841 = vst [vmem:[%s2023_s2 + $0x28] sm:$0xff] %v600_v47  ;;  %v904_v50 = vadd.f32 %v903_v43, %v600_v47  ;;  %v975_v51 = vmul.f32 %v600_v47, %v600_v47  ;;  %v602_v52 = vpop.f32.mrb[11].mxu0  ;;  %873 = vst [vmem:[%s2023_s2 + $0x128] sm:$0xff] %v1676_v48  ;;  %v730_v53 = vpop.f32.mrb[11].mxu1 }
 0x111   :  { %v1038_v54 = vadd.f32 %v1037_v49, %v975_v51 }
 0x114   :  { %v605_v55 = vpop.f32.mrb[12].mxu0  ;;  %v1685_v56 = vpop.f32.mrb[12].mxu1 }
 0x115   :  { %842 = vst [vmem:[%s2023_s2 + $0x30] sm:$0xff] %v605_v55  ;;  %v905_v57 = vadd.f32 %v904_v50, %v605_v55  ;;  %v976_v58 = vmul.f32 %v605_v55, %v605_v55  ;;  %v607_v59 = vpop.f32.mrb[13].mxu0  ;;  %874 = vst [vmem:[%s2023_s2 + $0x130] sm:$0xff] %v1685_v56  ;;  %v735_v60 = vpop.f32.mrb[13].mxu1 }
 0x116   :  { %v608_v61 = vpop.f32.mrb[14].mxu0  ;;  %v1694_v62 = vpop.f32.mrb[14].mxu1 }
 0x117   :  { %v1039_v63 = vadd.f32 %v1038_v54, %v976_v58  ;;  %843 = vst [vmem:[%s2023_s2 + $0x38] sm:$0xff] %v608_v61  ;;  %v906_v0 = vadd.f32 %v905_v57, %v608_v61  ;;  %v977_v1 = vmul.f32 %v608_v61, %v608_v61  ;;  %v610_v2 = vpop.f32.mrb[15].mxu0  ;;  %875 = vst [vmem:[%s2023_s2 + $0x138] sm:$0xff] %v1694_v62  ;;  %v738_v3 = vpop.f32.mrb[15].mxu1 }
 0x119   :  { %v1040_v4 = vadd.f32 %v1039_v63, %v977_v1 }
 0x11c   :  { %v613_v5 = vpop.f32.mrb[16].mxu0  ;;  %v1703_v6 = vpop.f32.mrb[16].mxu1 }
 0x11d   :  { %844 = vst [vmem:[%s2023_s2 + $0x40] sm:$0xff] %v613_v5  ;;  %v907_v7 = vadd.f32 %v906_v0, %v613_v5  ;;  %v978_v8 = vmul.f32 %v613_v5, %v613_v5  ;;  %v615_v9 = vpop.f32.mrb[17].mxu0  ;;  %876 = vst [vmem:[%s2023_s2 + $0x140] sm:$0xff] %v1703_v6  ;;  %v743_v10 = vpop.f32.mrb[17].mxu1 }
 0x11e   :  { %v616_v11 = vpop.f32.mrb[18].mxu0  ;;  %v1712_v12 = vpop.f32.mrb[18].mxu1 }
 0x11f   :  { %v1041_v13 = vadd.f32 %v1040_v4, %v978_v8  ;;  %845 = vst [vmem:[%s2023_s2 + $0x48] sm:$0xff] %v616_v11  ;;  %v908_v14 = vadd.f32 %v907_v7, %v616_v11  ;;  %v979_v15 = vmul.f32 %v616_v11, %v616_v11  ;;  %v618_v17 = vpop.f32.mrb[19].mxu0  ;;  %877 = vst [vmem:[%s2023_s2 + $0x148] sm:$0xff] %v1712_v12  ;;  %v746_v18 = vpop.f32.mrb[19].mxu1 }
 0x121   :  { %v1042_v19 = vadd.f32 %v1041_v13, %v979_v15 }
 0x124   :  { %v621_v21 = vpop.f32.mrb[20].mxu0  ;;  %v1721_v22 = vpop.f32.mrb[20].mxu1 }
 0x125   :  { %846 = vst [vmem:[%s2023_s2 + $0x50] sm:$0xff] %v621_v21  ;;  %v909_v23 = vadd.f32 %v908_v14, %v621_v21  ;;  %v980_v24 = vmul.f32 %v621_v21, %v621_v21  ;;  %v623_v25 = vpop.f32.mrb[21].mxu0  ;;  %878 = vst [vmem:[%s2023_s2 + $0x150] sm:$0xff] %v1721_v22  ;;  %v751_v26 = vpop.f32.mrb[21].mxu1 }
 0x126   :  { %v624_v27 = vpop.f32.mrb[22].mxu0  ;;  %v1730_v29 = vpop.f32.mrb[22].mxu1 }
 0x127   :  { %v1043_v30 = vadd.f32 %v1042_v19, %v980_v24  ;;  %847 = vst [vmem:[%s2023_s2 + $0x58] sm:$0xff] %v624_v27  ;;  %v910_v31 = vadd.f32 %v909_v23, %v624_v27  ;;  %v981_v32 = vmul.f32 %v624_v27, %v624_v27  ;;  %v626_v33 = vpop.f32.mrb[23].mxu0  ;;  %879 = vst [vmem:[%s2023_s2 + $0x158] sm:$0xff] %v1730_v29  ;;  %v754_v35 = vpop.f32.mrb[23].mxu1 }
 0x129   :  { %v1044_v36 = vadd.f32 %v1043_v30, %v981_v32 }
 0x12c   :  { %v629_v37 = vpop.f32.mrb[24].mxu0  ;;  %v1739_v38 = vpop.f32.mrb[24].mxu1 }
 0x12d   :  { %848 = vst [vmem:[%s2023_s2 + $0x60] sm:$0xff] %v629_v37  ;;  %v911_v39 = vadd.f32 %v910_v31, %v629_v37  ;;  %v982_v40 = vmul.f32 %v629_v37, %v629_v37  ;;  %v631_v41 = vpop.f32.mrb[25].mxu0  ;;  %880 = vst [vmem:[%s2023_s2 + $0x160] sm:$0xff] %v1739_v38  ;;  %v759_v43 = vpop.f32.mrb[25].mxu1 }
 0x12e   :  { %v632_v44 = vpop.f32.mrb[26].mxu0  ;;  %v1748_v45 = vpop.f32.mrb[26].mxu1 }
 0x12f   :  { %v1045_v46 = vadd.f32 %v1044_v36, %v982_v40  ;;  %849 = vst [vmem:[%s2023_s2 + $0x68] sm:$0xff] %v632_v44  ;;  %v912_v47 = vadd.f32 %v911_v39, %v632_v44  ;;  %v983_v49 = vmul.f32 %v632_v44, %v632_v44  ;;  %v634_v50 = vpop.f32.mrb[27].mxu0  ;;  %881 = vst [vmem:[%s2023_s2 + $0x168] sm:$0xff] %v1748_v45  ;;  %v762_v51 = vpop.f32.mrb[27].mxu1 }
 0x131   :  { %v1046_v52 = vadd.f32 %v1045_v46, %v983_v49 }
 0x134   :  { %v637_v53 = vpop.f32.mrb[28].mxu0  ;;  %v1757_v54 = vpop.f32.mrb[28].mxu1 }
 0x135   :  { %850 = vst [vmem:[%s2023_s2 + $0x70] sm:$0xff] %v637_v53  ;;  %v913_v55 = vadd.f32 %v912_v47, %v637_v53  ;;  %v984_v57 = vmul.f32 %v637_v53, %v637_v53  ;;  %v639_v58 = vpop.f32.mrb[29].mxu0  ;;  %882 = vst [vmem:[%s2023_s2 + $0x170] sm:$0xff] %v1757_v54  ;;  %v767_v59 = vpop.f32.mrb[29].mxu1 }
 0x136   :  { %v640_v60 = vpop.f32.mrb[30].mxu0  ;;  %v1766_v61 = vpop.f32.mrb[30].mxu1 }
 0x137   :  { %v1047_v63 = vadd.f32 %v1046_v52, %v984_v57  ;;  %851 = vst [vmem:[%s2023_s2 + $0x78] sm:$0xff] %v640_v60  ;;  %v914_v0 = vadd.f32 %v913_v55, %v640_v60  ;;  %v985_v1 = vmul.f32 %v640_v60, %v640_v60  ;;  %v642_v2 = vpop.f32.mrb[31].mxu0  ;;  %883 = vst [vmem:[%s2023_s2 + $0x178] sm:$0xff] %v1766_v61  ;;  %v770_v3 = vpop.f32.mrb[31].mxu1 }
 0x139   :  { %v1048_v4 = vadd.f32 %v1047_v63, %v985_v1 }
 0x13c   :  { %v645_v5 = vpop.f32.mrb[32].mxu0  ;;  %v1775_v7 = vpop.f32.mrb[32].mxu1 }
 0x13d   :  { %852 = vst [vmem:[%s2023_s2 + $0x80] sm:$0xff] %v645_v5  ;;  %v915_v8 = vadd.f32 %v914_v0, %v645_v5  ;;  %v986_v9 = vmul.f32 %v645_v5, %v645_v5  ;;  %v647_v10 = vpop.f32.mrb[33].mxu0  ;;  %884 = vst [vmem:[%s2023_s2 + $0x180] sm:$0xff] %v1775_v7  ;;  %v775_v11 = vpop.f32.mrb[33].mxu1 }
 0x13e   :  { %v648_v13 = vpop.f32.mrb[34].mxu0  ;;  %v1784_v14 = vpop.f32.mrb[34].mxu1 }
 0x13f   :  { %v1049_v15 = vadd.f32 %v1048_v4, %v986_v9  ;;  %853 = vst [vmem:[%s2023_s2 + $0x88] sm:$0xff] %v648_v13  ;;  %v916_v17 = vadd.f32 %v915_v8, %v648_v13  ;;  %v987_v18 = vmul.f32 %v648_v13, %v648_v13  ;;  %v650_v19 = vpop.f32.mrb[35].mxu0  ;;  %885 = vst [vmem:[%s2023_s2 + $0x188] sm:$0xff] %v1784_v14  ;;  %v778_v21 = vpop.f32.mrb[35].mxu1 }
 0x141   :  { %v1050_v23 = vadd.f32 %v1049_v15, %v987_v18 }
 0x144   :  { %v653_v24 = vpop.f32.mrb[36].mxu0  ;;  %v1793_v25 = vpop.f32.mrb[36].mxu1 }
 0x145   :  { %854 = vst [vmem:[%s2023_s2 + $0x90] sm:$0xff] %v653_v24  ;;  %v917_v26 = vadd.f32 %v916_v17, %v653_v24  ;;  %v988_v27 = vmul.f32 %v653_v24, %v653_v24  ;;  %v655_v30 = vpop.f32.mrb[37].mxu0  ;;  %886 = vst [vmem:[%s2023_s2 + $0x190] sm:$0xff] %v1793_v25  ;;  %v783_v31 = vpop.f32.mrb[37].mxu1 }
 0x146   :  { %v656_v32 = vpop.f32.mrb[38].mxu0  ;;  %v1802_v33 = vpop.f32.mrb[38].mxu1 }
 0x147   :  { %v1051_v35 = vadd.f32 %v1050_v23, %v988_v27  ;;  %855 = vst [vmem:[%s2023_s2 + $0x98] sm:$0xff] %v656_v32  ;;  %v918_v36 = vadd.f32 %v917_v26, %v656_v32  ;;  %v989_v37 = vmul.f32 %v656_v32, %v656_v32  ;;  %v658_v39 = vpop.f32.mrb[39].mxu0  ;;  %887 = vst [vmem:[%s2023_s2 + $0x198] sm:$0xff] %v1802_v33  ;;  %v786_v40 = vpop.f32.mrb[39].mxu1 }
 0x149   :  { %v1052_v41 = vadd.f32 %v1051_v35, %v989_v37 }
 0x14c   :  { %v661_v43 = vpop.f32.mrb[40].mxu0  ;;  %v1811_v44 = vpop.f32.mrb[40].mxu1 }
 0x14d   :  { %856 = vst [vmem:[%s2023_s2 + $0xa0] sm:$0xff] %v661_v43  ;;  %v919_v46 = vadd.f32 %v918_v36, %v661_v43  ;;  %v990_v47 = vmul.f32 %v661_v43, %v661_v43  ;;  %v663_v49 = vpop.f32.mrb[41].mxu0  ;;  %888 = vst [vmem:[%s2023_s2 + $0x1a0] sm:$0xff] %v1811_v44  ;;  %v791_v50 = vpop.f32.mrb[41].mxu1 }
 0x14e   :  { %v664_v51 = vpop.f32.mrb[42].mxu0  ;;  %v1820_v52 = vpop.f32.mrb[42].mxu1 }
 0x14f   :  { %v1053_v53 = vadd.f32 %v1052_v41, %v990_v47  ;;  %857 = vst [vmem:[%s2023_s2 + $0xa8] sm:$0xff] %v664_v51  ;;  %v920_v55 = vadd.f32 %v919_v46, %v664_v51  ;;  %v991_v57 = vmul.f32 %v664_v51, %v664_v51  ;;  %v666_v58 = vpop.f32.mrb[43].mxu0  ;;  %889 = vst [vmem:[%s2023_s2 + $0x1a8] sm:$0xff] %v1820_v52  ;;  %v794_v59 = vpop.f32.mrb[43].mxu1 }
 0x151   :  { %v1054_v60 = vadd.f32 %v1053_v53, %v991_v57 }
 0x154   :  { %v669_v63 = vpop.f32.mrb[44].mxu0  ;;  %v1829_v0 = vpop.f32.mrb[44].mxu1 }
 0x155   :  { %858 = vst [vmem:[%s2023_s2 + $0xb0] sm:$0xff] %v669_v63  ;;  %v921_v1 = vadd.f32 %v920_v55, %v669_v63  ;;  %v992_v2 = vmul.f32 %v669_v63, %v669_v63  ;;  %v671_v3 = vpop.f32.mrb[45].mxu0  ;;  %890 = vst [vmem:[%s2023_s2 + $0x1b0] sm:$0xff] %v1829_v0  ;;  %v799_v4 = vpop.f32.mrb[45].mxu1 }
 0x156   :  { %v672_v5 = vpop.f32.mrb[46].mxu0  ;;  %v1838_v8 = vpop.f32.mrb[46].mxu1 }
 0x157   :  { %v1055_v9 = vadd.f32 %v1054_v60, %v992_v2  ;;  %859 = vst [vmem:[%s2023_s2 + $0xb8] sm:$0xff] %v672_v5  ;;  %v922_v10 = vadd.f32 %v921_v1, %v672_v5  ;;  %v993_v11 = vmul.f32 %v672_v5, %v672_v5  ;;  %v674_v13 = vpop.f32.mrb[47].mxu0  ;;  %891 = vst [vmem:[%s2023_s2 + $0x1b8] sm:$0xff] %v1838_v8  ;;  %v802_v15 = vpop.f32.mrb[47].mxu1 }
 0x159   :  { %v1056_v17 = vadd.f32 %v1055_v9, %v993_v11 }
 0x15c   :  { %v677_v18 = vpop.f32.mrb[48].mxu0  ;;  %v1847_v19 = vpop.f32.mrb[48].mxu1 }
 0x15d   :  { %860 = vst [vmem:[%s2023_s2 + $0xc0] sm:$0xff] %v677_v18  ;;  %v923_v21 = vadd.f32 %v922_v10, %v677_v18  ;;  %v994_v23 = vmul.f32 %v677_v18, %v677_v18  ;;  %v679_v24 = vpop.f32.mrb[49].mxu0  ;;  %892 = vst [vmem:[%s2023_s2 + $0x1c0] sm:$0xff] %v1847_v19  ;;  %v807_v26 = vpop.f32.mrb[49].mxu1 }
 0x15e   :  { %v680_v27 = vpop.f32.mrb[50].mxu0  ;;  %v1856_v30 = vpop.f32.mrb[50].mxu1 }
 0x15f   :  { %v1057_v31 = vadd.f32 %v1056_v17, %v994_v23  ;;  %861 = vst [vmem:[%s2023_s2 + $0xc8] sm:$0xff] %v680_v27  ;;  %v924_v32 = vadd.f32 %v923_v21, %v680_v27  ;;  %v995_v35 = vmul.f32 %v680_v27, %v680_v27  ;;  %v682_v36 = vpop.f32.mrb[51].mxu0  ;;  %893 = vst [vmem:[%s2023_s2 + $0x1c8] sm:$0xff] %v1856_v30  ;;  %v810_v37 = vpop.f32.mrb[51].mxu1 }
 0x161   :  { %v1058_v39 = vadd.f32 %v1057_v31, %v995_v35 }
 0x164   :  { %v685_v40 = vpop.f32.mrb[52].mxu0  ;;  %v1865_v41 = vpop.f32.mrb[52].mxu1 }
 0x165   :  { %862 = vst [vmem:[%s2023_s2 + $0xd0] sm:$0xff] %v685_v40  ;;  %v925_v43 = vadd.f32 %v924_v32, %v685_v40  ;;  %v996_v46 = vmul.f32 %v685_v40, %v685_v40  ;;  %v687_v47 = vpop.f32.mrb[53].mxu0  ;;  %894 = vst [vmem:[%s2023_s2 + $0x1d0] sm:$0xff] %v1865_v41  ;;  %v815_v49 = vpop.f32.mrb[53].mxu1 }
 0x166   :  { %v688_v50 = vpop.f32.mrb[54].mxu0  ;;  %v1874_v51 = vpop.f32.mrb[54].mxu1  ;;  %v1002_v47 = vmul.f32 %v1631_v16, %v1631_v16 }
 0x167   :  { %v1059_v53 = vadd.f32 %v1058_v39, %v996_v46  ;;  %863 = vst [vmem:[%s2023_s2 + $0xd8] sm:$0xff] %v688_v50  ;;  %v926_v55 = vadd.f32 %v925_v43, %v688_v50  ;;  %v997_v57 = vmul.f32 %v688_v50, %v688_v50  ;;  %v690_v58 = vpop.f32.mrb[55].mxu0  ;;  %895 = vst [vmem:[%s2023_s2 + $0x1d8] sm:$0xff] %v1874_v51  ;;  %v818_v59 = vpop.f32.mrb[55].mxu1 }
 0x168   :  { %v1004_v58 = vmul.f32 %v1649_v28, %v1649_v28 }
 0x169   :  { %v1060_v60 = vadd.f32 %v1059_v53, %v997_v57  ;;  %v1003_v53 = vmul.f32 %v1640_v20, %v1640_v20 }
 0x16c   :  { %v693_v63 = vpop.f32.mrb[56].mxu0  ;;  %v1883_v1 = vpop.f32.mrb[56].mxu1 }
 0x16d   :  { %864 = vst [vmem:[%s2023_s2 + $0xe0] sm:$0xff] %v693_v63  ;;  %v927_v2 = vadd.f32 %v926_v55, %v693_v63  ;;  %v998_v3 = vmul.f32 %v693_v63, %v693_v63  ;;  %v695_v4 = vpop.f32.mrb[57].mxu0  ;;  %896 = vst [vmem:[%s2023_s2 + $0x1e0] sm:$0xff] %v1883_v1  ;;  %v823_v5 = vpop.f32.mrb[57].mxu1  ;;  %v1005_v63 = vmul.f32 %v1658_v34, %v1658_v34 }
 0x16e   :  { %v696_v9 = vpop.f32.mrb[58].mxu0  ;;  %v1892_v10 = vpop.f32.mrb[58].mxu1 }
 0x16f   :  { %v1061_v11 = vadd.f32 %v1060_v60, %v998_v3  ;;  %865 = vst [vmem:[%s2023_s2 + $0xe8] sm:$0xff] %v696_v9  ;;  %v928_v13 = vadd.f32 %v927_v2, %v696_v9  ;;  %v999_v15 = vmul.f32 %v696_v9, %v696_v9  ;;  %v698_v17 = vpop.f32.mrb[59].mxu0  ;;  %897 = vst [vmem:[%s2023_s2 + $0x1e8] sm:$0xff] %v1892_v10  ;;  %v826_v18 = vpop.f32.mrb[59].mxu1 }
 0x171   :  { %v1062_v21 = vadd.f32 %v1061_v11, %v999_v15 }
 0x174   :  { %v701_v23 = vpop.f32.mrb[60].mxu0  ;;  %v1901_v24 = vpop.f32.mrb[60].mxu1 }
 0x175   :  { %866 = vst [vmem:[%s2023_s2 + $0xf0] sm:$0xff] %v701_v23  ;;  %v929_v26 = vadd.f32 %v928_v13, %v701_v23  ;;  %v1000_v27 = vmul.f32 %v701_v23, %v701_v23  ;;  %v703_v31 = vpop.f32.mrb[61].mxu0  ;;  %898 = vst [vmem:[%s2023_s2 + $0x1f0] sm:$0xff] %v1901_v24  ;;  %v831_v32 = vpop.f32.mrb[61].mxu1 }
 0x176   :  { %v704_v35 = vpop.f32.mrb[62].mxu0  ;;  %v1910_v36 = vpop.f32.mrb[62].mxu1 }
 0x177   :  { %v1063_v37 = vadd.f32 %v1062_v21, %v1000_v27  ;;  %867 = vst [vmem:[%s2023_s2 + $0xf8] sm:$0xff] %v704_v35  ;;  %v930_v39 = vadd.f32 %v929_v26, %v704_v35  ;;  %v1001_v40 = vmul.f32 %v704_v35, %v704_v35  ;;  %v706_v43 = vpop.f32.mrb[63].mxu0  ;;  %899 = vst [vmem:[%s2023_s2 + $0x1f8] sm:$0xff] %v1910_v36  ;;  %v834_v46 = vpop.f32.mrb[63].mxu1 }
 0x179   :  { %v931_v49 = vadd.f32 %v930_v39, %v1631_v16  ;;  %v1064_v50 = vadd.f32 %v1063_v37, %v1001_v40  ;;  %v1006_v16 = vmul.f32 %v1667_v42, %v1667_v42 }
 0x17b   :  { %v932_v55 = vadd.f32 %v931_v49, %v1640_v20  ;;  %v1065_v57 = vadd.f32 %v1064_v50, %v1002_v47  ;;  %v1007_v20 = vmul.f32 %v1676_v48, %v1676_v48 }
 0x17d   :  { %v933_v59 = vadd.f32 %v932_v55, %v1649_v28  ;;  %v1066_v60 = vadd.f32 %v1065_v57, %v1003_v53  ;;  %v1008_v28 = vmul.f32 %v1685_v56, %v1685_v56  ;;  %v1018_v55 = vmul.f32 %v1775_v7, %v1775_v7 }
 0x17f   :  { %v934_v2 = vadd.f32 %v933_v59, %v1658_v34  ;;  %v1067_v3 = vadd.f32 %v1066_v60, %v1004_v58  ;;  %v1009_v34 = vmul.f32 %v1694_v62, %v1694_v62  ;;  %v1019_v59 = vmul.f32 %v1784_v14, %v1784_v14 }
 0x181   :  { %v935_v4 = vadd.f32 %v934_v2, %v1667_v42  ;;  %v1068_v5 = vadd.f32 %v1067_v3, %v1005_v63  ;;  %v1010_v42 = vmul.f32 %v1703_v6, %v1703_v6  ;;  %v1020_v63 = vmul.f32 %v1793_v25, %v1793_v25 }
 0x182   :  { %v1021_v3 = vmul.f32 %v1802_v33, %v1802_v33 }
 0x183   :  { %v936_v9 = vadd.f32 %v935_v4, %v1676_v48  ;;  %v1069_v11 = vadd.f32 %v1068_v5, %v1006_v16  ;;  %v1011_v48 = vmul.f32 %v1712_v12, %v1712_v12  ;;  %v1022_v4 = vmul.f32 %v1811_v44, %v1811_v44 }
 0x185   :  { %v937_v13 = vadd.f32 %v936_v9, %v1685_v56  ;;  %v1070_v15 = vadd.f32 %v1069_v11, %v1007_v20  ;;  %v1012_v56 = vmul.f32 %v1721_v22, %v1721_v22  ;;  %v1023_v20 = vmul.f32 %v1820_v52, %v1820_v52 }
 0x186   :  { %v1024_v11 = vmul.f32 %v1829_v0, %v1829_v0 }
 0x187   :  { %v938_v17 = vadd.f32 %v937_v13, %v1694_v62  ;;  %v1071_v18 = vadd.f32 %v1070_v15, %v1008_v28  ;;  %v1013_v62 = vmul.f32 %v1730_v29, %v1730_v29  ;;  %v1025_v13 = vmul.f32 %v1838_v8, %v1838_v8 }
 0x189   :  { %v1072_v21 = vadd.f32 %v1071_v18, %v1009_v34  ;;  %v939_v23 = vadd.f32 %v938_v17, %v1703_v6  ;;  %v1014_v6 = vmul.f32 %v1739_v38, %v1739_v38  ;;  %v1026_v34 = vmul.f32 %v1847_v19, %v1847_v19 }
 0x18a   :  { %v1027_v18 = vmul.f32 %v1856_v30, %v1856_v30 }
 0x18b   :  { %v940_v26 = vadd.f32 %v939_v23, %v1712_v12  ;;  %v1073_v27 = vadd.f32 %v1072_v21, %v1010_v42  ;;  %v1015_v12 = vmul.f32 %v1748_v45, %v1748_v45  ;;  %v1028_v21 = vmul.f32 %v1865_v41, %v1865_v41 }
 0x18d   :  { %v941_v31 = vadd.f32 %v940_v26, %v1721_v22  ;;  %v1074_v32 = vadd.f32 %v1073_v27, %v1011_v48  ;;  %v1016_v22 = vmul.f32 %v1757_v54, %v1757_v54  ;;  %v1029_v48 = vmul.f32 %v1874_v51, %v1874_v51 }
 0x18e   :  { %v1030_v27 = vmul.f32 %v1883_v1, %v1883_v1 }
 0x18f   :  { %v942_v35 = vadd.f32 %v941_v31, %v1730_v29  ;;  %v1075_v37 = vadd.f32 %v1074_v32, %v1012_v56  ;;  %v1017_v29 = vmul.f32 %v1766_v61, %v1766_v61  ;;  %v1031_v31 = vmul.f32 %v1892_v10, %v1892_v10 }
 0x191   :  { %v943_v39 = vadd.f32 %v942_v35, %v1739_v38  ;;  %v1076_v40 = vadd.f32 %v1075_v37, %v1013_v62  ;;  %v1033_v37 = vmul.f32 %v1910_v36, %v1910_v36 }
 0x193   :  { %v944_v43 = vadd.f32 %v943_v39, %v1748_v45  ;;  %v1077_v46 = vadd.f32 %v1076_v40, %v1014_v6 }
 0x195   :  { %v945_v47 = vadd.f32 %v944_v43, %v1757_v54  ;;  %v1078_v49 = vadd.f32 %v1077_v46, %v1015_v12 }
 0x197   :  { %v946_v50 = vadd.f32 %v945_v47, %v1766_v61  ;;  %v1079_v53 = vadd.f32 %v1078_v49, %v1016_v22 }
 0x199   :  { %v947_v38 = vadd.f32 %v946_v50, %v1775_v7  ;;  %v1080_v57 = vadd.f32 %v1079_v53, %v1017_v29 }
 0x19b   :  { %v1081_v45 = vadd.f32 %v1080_v57, %v1018_v55  ;;  %v948_v58 = vadd.f32 %v947_v38, %v1784_v14 }
 0x19d   :  { %v1082_v54 = vadd.f32 %v1081_v45, %v1019_v59  ;;  %v949_v60 = vadd.f32 %v948_v58, %v1793_v25 }
 0x19f   :  { %v1083_v61 = vadd.f32 %v1082_v54, %v1020_v63  ;;  %v950_v2 = vadd.f32 %v949_v60, %v1802_v33 }
 0x1a1   :  { %v1084_v7 = vadd.f32 %v1083_v61, %v1021_v3  ;;  %v951_v16 = vadd.f32 %v950_v2, %v1811_v44 }
 0x1a3   :  { %v1085_v5 = vadd.f32 %v1084_v7, %v1022_v4  ;;  %v952_v14 = vadd.f32 %v951_v16, %v1820_v52 }
 0x1a5   :  { %v1086_v9 = vadd.f32 %v1085_v5, %v1023_v20  ;;  %v953_v25 = vadd.f32 %v952_v14, %v1829_v0 }
 0x1a7   :  { %v1087_v28 = vadd.f32 %v1086_v9, %v1024_v11  ;;  %v954_v33 = vadd.f32 %v953_v25, %v1838_v8 }
 0x1a9   :  { %v1088_v15 = vadd.f32 %v1087_v28, %v1025_v13  ;;  %v955_v44 = vadd.f32 %v954_v33, %v1847_v19 }
 0x1ab   :  { %v1089_v17 = vadd.f32 %v1088_v15, %v1026_v34  ;;  %v956_v52 = vadd.f32 %v955_v44, %v1856_v30 }
 0x1ad   :  { %v1090_v42 = vadd.f32 %v1089_v17, %v1027_v18  ;;  %v957_v0 = vadd.f32 %v956_v52, %v1865_v41  ;;  %v1032_v41 = vmul.f32 %v1901_v24, %v1901_v24 }
 0x1af   :  { %v1091_v23 = vadd.f32 %v1090_v42, %v1028_v21  ;;  %v958_v8 = vadd.f32 %v957_v0, %v1874_v51 }
 0x1b1   :  { %v1092_v26 = vadd.f32 %v1091_v23, %v1029_v48  ;;  %v959_v19 = vadd.f32 %v958_v8, %v1883_v1 }
 0x1b3   :  { %v1093_v56 = vadd.f32 %v1092_v26, %v1030_v27  ;;  %v960_v30 = vadd.f32 %v959_v19, %v1892_v10 }
 0x1b5   :  { %v1094_v32 = vadd.f32 %v1093_v56, %v1031_v31  ;;  %v961_v62 = vadd.f32 %v960_v30, %v1901_v24 }
 0x1b7   :  { %v1095_v35 = vadd.f32 %v1094_v32, %v1032_v41  ;;  %v962_v51 = vadd.f32 %v961_v62, %v1910_v36 }
 0x1b9   :  { %v963_v6 = vrot.slane %v962_v51, 4  ;;  %v1096_v1 = vadd.f32 %v1095_v35, %v1033_v37 }
 0x1bb   :  { %v964_v39 = vadd.f32 %v963_v6, %v962_v51  ;;  %v1097_v40 = vrot.slane %v1096_v1, 4 }
 0x1bd   :  { %v965_v12 = vrot.slane %v964_v39, 2  ;;  %v1098_v43 = vadd.f32 %v1097_v40, %v1096_v1 }
 0x1bf   :  { %v966_v46 = vadd.f32 %v965_v12, %v964_v39  ;;  %v1099_v10 = vrot.slane %v1098_v43, 2 }
 0x1c1   :  { %v967_v22 = vrot.slane %v966_v46, 1  ;;  %v1100_v47 = vadd.f32 %v1099_v10, %v1098_v43 }
 0x1c3   :  { %v968_v49 = vadd.f32 %v967_v22, %v966_v46  ;;  %v1101_v29 = vrot.slane %v1100_v47, 1 }
 0x1c5   :  { %969 = vst [vmem:[%s2024_s3] sm:$0x1] %v968_v49  ;;  %v1102_v24 = vadd.f32 %v1101_v29, %v1100_v47 }
 0x1c7   :  { %1103 = vst [vmem:[%s2025_s4] sm:$0x1] %v1102_v24 }

// kernel: model_forward.37
= control target key start
LH: loop header
LB: loop body
LE: loop exit
PB: predicated region body
PF: predicated region fallthrough
CT: control target
= control target key end

     0   :  { %v967_v1 = vmov 0   ;;  %s1338_s1 = inlined_call_operand.vmem [shape: bf16[128,512], index: 1, kind: input, shape index: {}]   ;;  %s1339_s0 = inlined_call_operand.vmem [shape: bf16[128,128], index: 0, kind: input, shape index: {}]   ;;  %s1340_s2 = inlined_call_operand.vmem [shape: f32[128,512], index: 2, kind: output, shape index: {0}]   ;;  %s1341_s3 = inlined_call_operand.vmem [shape: f32[1,512], index: 3, kind: output, shape index: {1}]   ;;  %s1342_s4 = inlined_call_operand.vmem [shape: f32[1,512], index: 4, kind: output, shape index: {2}]  }
   0x1   :  { %v911_v0 = vld [vmem:[%s1338_s1 + $0x4] ss:$16 sps:$4 sm:$0xff]   ;;  %303 = vmatprep.mubr.bf16.mxu0 %v967_v1  ;;  %416 = vmatprep.mubr.bf16.mxu1 %v967_v1  ;;  %v913_v2 = vld [vmem:[%s1338_s1 + $0xc] ss:$16 sps:$4 sm:$0xff]   ;;  %v915_v3 = vld [vmem:[%s1338_s1] ss:$16 sps:$4 sm:$0xff]  }
   0x2   :  { %271 = vmatprep.subr.bf16.mxu0 %v911_v0  ;;  %v916_v4 = vld [vmem:[%s1338_s1 + $0x8] ss:$16 sps:$4 sm:$0xff]   ;;  %384 = vmatprep.subr.bf16.mxu1 %v913_v2  ;;  %v917_v5 = vld [vmem:[%s1338_s1 + $0x24] ss:$16 sps:$4 sm:$0xff]   ;;  %v919_v6 = vld [vmem:[%s1338_s1 + $0x2c] ss:$16 sps:$4 sm:$0xff]  }
   0x3   :  { %272 = vmatpush1.bf16.msra.mxu0 %v915_v3  ;;  %385 = vmatpush1.bf16.msra.mxu1 %v916_v4  ;;  %v921_v7 = vld [vmem:[%s1338_s1 + $0x20] ss:$16 sps:$4 sm:$0xff]   ;;  %v922_v8 = vld [vmem:[%s1338_s1 + $0x28] ss:$16 sps:$4 sm:$0xff]   ;;  %v923_v9 = vld [vmem:[%s1338_s1 + $0x44] ss:$16 sps:$4 sm:$0xff]  }
   0x4   :  { %273 = vmatprep.subr.bf16.mxu0 %v917_v5  ;;  %386 = vmatprep.subr.bf16.mxu1 %v919_v6  ;;  %v925_v10 = vld [vmem:[%s1338_s1 + $0x4c] ss:$16 sps:$4 sm:$0xff]   ;;  %v927_v11 = vld [vmem:[%s1338_s1 + $0x40] ss:$16 sps:$4 sm:$0xff]   ;;  %v928_v12 = vld [vmem:[%s1338_s1 + $0x48] ss:$16 sps:$4 sm:$0xff]  }
   0x5   :  { %v929_v13 = vld [vmem:[%s1338_s1 + $0x64] ss:$16 sps:$4 sm:$0xff]   ;;  %v931_v14 = vld [vmem:[%s1338_s1 + $0x6c] ss:$16 sps:$4 sm:$0xff]   ;;  %v933_v15 = vld [vmem:[%s1338_s1 + $0x60] ss:$16 sps:$4 sm:$0xff]  }
   0x6   :  { %v934_v16 = vld [vmem:[%s1338_s1 + $0x68] ss:$16 sps:$4 sm:$0xff]   ;;  %v935_v17 = vld [vmem:[%s1338_s1 + $0x84] ss:$16 sps:$4 sm:$0xff]   ;;  %v937_v18 = vld [vmem:[%s1338_s1 + $0x8c] ss:$16 sps:$4 sm:$0xff]  }
   0x7   :  { %274 = vmatpush1.bf16.msra.mxu0 %v921_v7  ;;  %387 = vmatpush1.bf16.msra.mxu1 %v922_v8  ;;  %v939_v19 = vld [vmem:[%s1338_s1 + $0x80] ss:$16 sps:$4 sm:$0xff]   ;;  %v940_v20 = vld [vmem:[%s1338_s1 + $0x88] ss:$16 sps:$4 sm:$0xff]   ;;  %v941_v21 = vld [vmem:[%s1338_s1 + $0xa4] ss:$16 sps:$4 sm:$0xff]  }
   0x8   :  { %275 = vmatprep.subr.bf16.mxu0 %v923_v9  ;;  %388 = vmatprep.subr.bf16.mxu1 %v925_v10  ;;  %v943_v22 = vld [vmem:[%s1338_s1 + $0xac] ss:$16 sps:$4 sm:$0xff]   ;;  %v945_v23 = vld [vmem:[%s1338_s1 + $0xa0] ss:$16 sps:$4 sm:$0xff]   ;;  %v946_v24 = vld [vmem:[%s1338_s1 + $0xa8] ss:$16 sps:$4 sm:$0xff]  }
   0x9   :  { %v947_v25 = vld [vmem:[%s1338_s1 + $0xc4] ss:$16 sps:$4 sm:$0xff]   ;;  %v949_v26 = vld [vmem:[%s1338_s1 + $0xcc] ss:$16 sps:$4 sm:$0xff]   ;;  %v951_v27 = vld [vmem:[%s1338_s1 + $0xc0] ss:$16 sps:$4 sm:$0xff]  }
   0xa   :  { %v952_v28 = vld [vmem:[%s1338_s1 + $0xc8] ss:$16 sps:$4 sm:$0xff]   ;;  %v953_v29 = vld [vmem:[%s1338_s1 + $0xe4] ss:$16 sps:$4 sm:$0xff]   ;;  %v955_v30 = vld [vmem:[%s1338_s1 + $0xec] ss:$16 sps:$4 sm:$0xff]  }
   0xb   :  { %276 = vmatpush1.bf16.msra.mxu0 %v927_v11  ;;  %389 = vmatpush1.bf16.msra.mxu1 %v928_v12  ;;  %v957_v31 = vld [vmem:[%s1338_s1 + $0xe0] ss:$16 sps:$4 sm:$0xff]   ;;  %v958_v32 = vld [vmem:[%s1338_s1 + $0xe8] ss:$16 sps:$4 sm:$0xff]  }
   0xc   :  { %277 = vmatprep.subr.bf16.mxu0 %v929_v13  ;;  %390 = vmatprep.subr.bf16.mxu1 %v931_v14  ;;  %v959_v33 = vld [vmem:[%s1339_s0] sm:$0xff]   ;;  %v960_v34 = vld [vmem:[%s1339_s0 + $0x8] sm:$0xff]   ;;  %v961_v35 = vld [vmem:[%s1339_s0 + $0x10] sm:$0xff]  }
   0xd   :  { %v962_v36 = vld [vmem:[%s1339_s0 + $0x18] sm:$0xff]   ;;  %v963_v37 = vld [vmem:[%s1339_s0 + $0x20] sm:$0xff]   ;;  %v964_v38 = vld [vmem:[%s1339_s0 + $0x28] sm:$0xff]  }
   0xe   :  { %v965_v39 = vld [vmem:[%s1339_s0 + $0x30] sm:$0xff]   ;;  %v966_v40 = vld [vmem:[%s1339_s0 + $0x38] sm:$0xff]  }
   0xf   :  { %278 = vmatpush1.bf16.msra.mxu0 %v933_v15  ;;  %391 = vmatpush1.bf16.msra.mxu1 %v934_v16 }
  0x10   :  { %279 = vmatprep.subr.bf16.mxu0 %v935_v17  ;;  %392 = vmatprep.subr.bf16.mxu1 %v937_v18 }
  0x13   :  { %280 = vmatpush1.bf16.msra.mxu0 %v939_v19  ;;  %393 = vmatpush1.bf16.msra.mxu1 %v940_v20 }
  0x14   :  { %281 = vmatprep.subr.bf16.mxu0 %v941_v21  ;;  %394 = vmatprep.subr.bf16.mxu1 %v943_v22 }
  0x17   :  { %282 = vmatpush1.bf16.msra.mxu0 %v945_v23  ;;  %395 = vmatpush1.bf16.msra.mxu1 %v946_v24 }
  0x18   :  { %283 = vmatprep.subr.bf16.mxu0 %v947_v25  ;;  %396 = vmatprep.subr.bf16.mxu1 %v949_v26 }
  0x1b   :  { %284 = vmatpush1.bf16.msra.mxu0 %v951_v27  ;;  %397 = vmatpush1.bf16.msra.mxu1 %v952_v28 }
  0x1c   :  { %285 = vmatprep.subr.bf16.mxu0 %v953_v29  ;;  %398 = vmatprep.subr.bf16.mxu1 %v955_v30 }
  0x1f   :  { %286 = vmatpush1.bf16.msra.mxu0 %v957_v31  ;;  %399 = vmatpush1.bf16.msra.mxu1 %v958_v32 }
  0x22   :  { %304 = vmatmul.mubr.bf16.vlgmr.msra.gmra.mrb[0].mxu0 %v959_v33  ;;  %417 = vmatmul.mubr.bf16.vlgmr.msra.gmra.mrb[0].mxu1 %v959_v33 }
  0x23   :  { %313 = vmatprep.mubr.bf16.mxu0 %v967_v1  ;;  %426 = vmatprep.mubr.bf16.mxu1 %v967_v1 }
  0x2a   :  { %314 = vmatmul.mubr.bf16.gmra.mrb[4].mxu0 %v960_v34  ;;  %427 = vmatmul.mubr.bf16.gmra.mrb[4].mxu1 %v960_v34 }
  0x2b   :  { %323 = vmatprep.mubr.bf16.mxu0 %v967_v1  ;;  %436 = vmatprep.mubr.bf16.mxu1 %v967_v1 }
  0x32   :  { %324 = vmatmul.mubr.bf16.gmra.mrb[8].mxu0 %v961_v35  ;;  %437 = vmatmul.mubr.bf16.gmra.mrb[8].mxu1 %v961_v35 }
  0x33   :  { %333 = vmatprep.mubr.bf16.mxu0 %v967_v1  ;;  %446 = vmatprep.mubr.bf16.mxu1 %v967_v1 }
  0x3a   :  { %334 = vmatmul.mubr.bf16.gmra.mrb[12].mxu0 %v962_v36  ;;  %447 = vmatmul.mubr.bf16.gmra.mrb[12].mxu1 %v962_v36 }
  0x3b   :  { %343 = vmatprep.mubr.bf16.mxu0 %v967_v1  ;;  %456 = vmatprep.mubr.bf16.mxu1 %v967_v1 }
  0x42   :  { %344 = vmatmul.mubr.bf16.gmra.mrb[16].mxu0 %v963_v37  ;;  %457 = vmatmul.mubr.bf16.gmra.mrb[16].mxu1 %v963_v37 }
  0x43   :  { %353 = vmatprep.mubr.bf16.mxu0 %v967_v1  ;;  %466 = vmatprep.mubr.bf16.mxu1 %v967_v1 }
  0x4a   :  { %354 = vmatmul.mubr.bf16.gmra.mrb[20].mxu0 %v964_v38  ;;  %467 = vmatmul.mubr.bf16.gmra.mrb[20].mxu1 %v964_v38 }
  0x4b   :  { %363 = vmatprep.mubr.bf16.mxu0 %v967_v1  ;;  %476 = vmatprep.mubr.bf16.mxu1 %v967_v1 }
  0x52   :  { %364 = vmatmul.mubr.bf16.gmra.mrb[24].mxu0 %v965_v39  ;;  %477 = vmatmul.mubr.bf16.gmra.mrb[24].mxu1 %v965_v39 }
  0x53   :  { %373 = vmatprep.mubr.bf16.mxu0 %v967_v1  ;;  %486 = vmatprep.mubr.bf16.mxu1 %v967_v1 }
  0x5a   :  { %374 = vmatmul.mubr.bf16.gmra.mrb[28].mxu0 %v966_v40  ;;  %487 = vmatmul.mubr.bf16.gmra.mrb[28].mxu1 %v966_v40 }
  0xf5   :  { %v305_v41 = vpop.f32.mrb[0].mxu0  ;;  %v418_v42 = vpop.f32.mrb[0].mxu1 }
  0xf6   :  { %497 = vst [vmem:[%s1340_s2] sm:$0xff] %v305_v41  ;;  %499 = vst [vmem:[%s1340_s2 + $0x10] sm:$0xff] %v418_v42  ;;  %v307_v43 = vpop.f32.mrb[1].mxu0  ;;  %v420_v44 = vpop.f32.mrb[1].mxu1  ;;  %v679_v45 = vmul.f32 %v305_v41, %v305_v41  ;;  %v681_v46 = vmul.f32 %v418_v42, %v418_v42 }
  0xf7   :  { %498 = vst [vmem:[%s1340_s2 + $0x8] sm:$0xff] %v307_v43  ;;  %v680_v47 = vmul.f32 %v307_v43, %v307_v43  ;;  %500 = vst [vmem:[%s1340_s2 + $0x18] sm:$0xff] %v420_v44  ;;  %v682_v48 = vmul.f32 %v420_v44, %v420_v44  ;;  %v309_v49 = vpop.f32.mrb[2].mxu0  ;;  %v422_v50 = vpop.f32.mrb[2].mxu1 }
  0xf8   :  { %501 = vst [vmem:[%s1340_s2 + $0x20] sm:$0xff] %v309_v49  ;;  %v561_v51 = vadd.f32 %v309_v49, %v305_v41  ;;  %v683_v52 = vmul.f32 %v309_v49, %v309_v49  ;;  %503 = vst [vmem:[%s1340_s2 + $0x30] sm:$0xff] %v422_v50  ;;  %v603_v53 = vadd.f32 %v422_v50, %v418_v42  ;;  %v311_v55 = vpop.f32.mrb[3].mxu0  ;;  %v424_v56 = vpop.f32.mrb[3].mxu1 }
  0xf9   :  { %v685_v54 = vmul.f32 %v422_v50, %v422_v50  ;;  %502 = vst [vmem:[%s1340_s2 + $0x28] sm:$0xff] %v311_v55  ;;  %v582_v57 = vadd.f32 %v311_v55, %v307_v43  ;;  %v684_v58 = vmul.f32 %v311_v55, %v311_v55  ;;  %504 = vst [vmem:[%s1340_s2 + $0x38] sm:$0xff] %v424_v56 }
  0xfa   :  { %v624_v59 = vadd.f32 %v424_v56, %v420_v44  ;;  %v686_v60 = vmul.f32 %v424_v56, %v424_v56  ;;  %v743_v61 = vadd.f32 %v683_v52, %v679_v45 }
  0xfb   :  { %v785_v62 = vadd.f32 %v685_v54, %v681_v46  ;;  %v764_v63 = vadd.f32 %v684_v58, %v680_v47 }
  0xfc   :  { %v806_v0 = vadd.f32 %v686_v60, %v682_v48 }
  0xfd   :  { %v315_v1 = vpop.f32.mrb[4].mxu0  ;;  %v428_v2 = vpop.f32.mrb[4].mxu1 }
  0xfe   :  { %505 = vst [vmem:[%s1340_s2 + $0x40] sm:$0xff] %v315_v1  ;;  %v562_v3 = vadd.f32 %v561_v51, %v315_v1  ;;  %v687_v4 = vmul.f32 %v315_v1, %v315_v1  ;;  %507 = vst [vmem:[%s1340_s2 + $0x50] sm:$0xff] %v428_v2  ;;  %v604_v5 = vadd.f32 %v603_v53, %v428_v2  ;;  %v317_v7 = vpop.f32.mrb[5].mxu0  ;;  %v430_v8 = vpop.f32.mrb[5].mxu1 }
  0xff   :  { %v689_v6 = vmul.f32 %v428_v2, %v428_v2  ;;  %506 = vst [vmem:[%s1340_s2 + $0x48] sm:$0xff] %v317_v7  ;;  %v583_v9 = vadd.f32 %v582_v57, %v317_v7  ;;  %v688_v10 = vmul.f32 %v317_v7, %v317_v7  ;;  %508 = vst [vmem:[%s1340_s2 + $0x58] sm:$0xff] %v430_v8  ;;  %v319_v13 = vpop.f32.mrb[6].mxu0  ;;  %v432_v14 = vpop.f32.mrb[6].mxu1 }
 0x100   :  { %v625_v11 = vadd.f32 %v624_v59, %v430_v8  ;;  %v690_v12 = vmul.f32 %v430_v8, %v430_v8  ;;  %v744_v15 = vadd.f32 %v743_v61, %v687_v4  ;;  %509 = vst [vmem:[%s1340_s2 + $0x60] sm:$0xff] %v319_v13  ;;  %v563_v17 = vadd.f32 %v562_v3, %v319_v13  ;;  %v321_v19 = vpop.f32.mrb[7].mxu0  ;;  %v434_v20 = vpop.f32.mrb[7].mxu1 }
 0x101   :  { %v786_v16 = vadd.f32 %v785_v62, %v689_v6  ;;  %v691_v18 = vmul.f32 %v319_v13, %v319_v13  ;;  %511 = vst [vmem:[%s1340_s2 + $0x70] sm:$0xff] %v432_v14  ;;  %v765_v21 = vadd.f32 %v764_v63, %v688_v10  ;;  %v605_v23 = vadd.f32 %v604_v5, %v432_v14 }
 0x102   :  { %v807_v22 = vadd.f32 %v806_v0, %v690_v12  ;;  %v693_v24 = vmul.f32 %v432_v14, %v432_v14  ;;  %510 = vst [vmem:[%s1340_s2 + $0x68] sm:$0xff] %v321_v19  ;;  %512 = vst [vmem:[%s1340_s2 + $0x78] sm:$0xff] %v434_v20  ;;  %v584_v26 = vadd.f32 %v583_v9, %v321_v19 }
 0x103   :  { %v745_v25 = vadd.f32 %v744_v15, %v691_v18  ;;  %v692_v27 = vmul.f32 %v321_v19, %v321_v19  ;;  %v626_v28 = vadd.f32 %v625_v11, %v434_v20  ;;  %v694_v30 = vmul.f32 %v434_v20, %v434_v20 }
 0x104   :  { %v787_v29 = vadd.f32 %v786_v16, %v693_v24 }
 0x105   :  { %v766_v31 = vadd.f32 %v765_v21, %v692_v27  ;;  %v808_v32 = vadd.f32 %v807_v22, %v694_v30  ;;  %v325_v33 = vpop.f32.mrb[8].mxu0  ;;  %v438_v34 = vpop.f32.mrb[8].mxu1 }
 0x106   :  { %513 = vst [vmem:[%s1340_s2 + $0x80] sm:$0xff] %v325_v33  ;;  %v564_v35 = vadd.f32 %v563_v17, %v325_v33  ;;  %v695_v36 = vmul.f32 %v325_v33, %v325_v33  ;;  %515 = vst [vmem:[%s1340_s2 + $0x90] sm:$0xff] %v438_v34  ;;  %v606_v37 = vadd.f32 %v605_v23, %v438_v34  ;;  %v327_v39 = vpop.f32.mrb[9].mxu0  ;;  %v440_v40 = vpop.f32.mrb[9].mxu1 }
 0x107   :  { %v697_v38 = vmul.f32 %v438_v34, %v438_v34  ;;  %514 = vst [vmem:[%s1340_s2 + $0x88] sm:$0xff] %v327_v39  ;;  %v585_v41 = vadd.f32 %v584_v26, %v327_v39  ;;  %v696_v42 = vmul.f32 %v327_v39, %v327_v39  ;;  %516 = vst [vmem:[%s1340_s2 + $0x98] sm:$0xff] %v440_v40  ;;  %v329_v45 = vpop.f32.mrb[10].mxu0  ;;  %v442_v46 = vpop.f32.mrb[10].mxu1 }
 0x108   :  { %v627_v43 = vadd.f32 %v626_v28, %v440_v40  ;;  %v698_v44 = vmul.f32 %v440_v40, %v440_v40  ;;  %v746_v47 = vadd.f32 %v745_v25, %v695_v36  ;;  %517 = vst [vmem:[%s1340_s2 + $0xa0] sm:$0xff] %v329_v45  ;;  %v565_v49 = vadd.f32 %v564_v35, %v329_v45  ;;  %v331_v51 = vpop.f32.mrb[11].mxu0  ;;  %v444_v52 = vpop.f32.mrb[11].mxu1 }
 0x109   :  { %v788_v48 = vadd.f32 %v787_v29, %v697_v38  ;;  %v699_v50 = vmul.f32 %v329_v45, %v329_v45  ;;  %519 = vst [vmem:[%s1340_s2 + $0xb0] sm:$0xff] %v442_v46  ;;  %v767_v53 = vadd.f32 %v766_v31, %v696_v42  ;;  %v607_v55 = vadd.f32 %v606_v37, %v442_v46 }
 0x10a   :  { %v809_v54 = vadd.f32 %v808_v32, %v698_v44  ;;  %v701_v56 = vmul.f32 %v442_v46, %v442_v46  ;;  %518 = vst [vmem:[%s1340_s2 + $0xa8] sm:$0xff] %v331_v51  ;;  %520 = vst [vmem:[%s1340_s2 + $0xb8] sm:$0xff] %v444_v52  ;;  %v586_v58 = vadd.f32 %v585_v41, %v331_v51 }
 0x10b   :  { %v747_v57 = vadd.f32 %v746_v47, %v699_v50  ;;  %v700_v59 = vmul.f32 %v331_v51, %v331_v51  ;;  %v628_v60 = vadd.f32 %v627_v43, %v444_v52  ;;  %v702_v62 = vmul.f32 %v444_v52, %v444_v52 }
 0x10c   :  { %v789_v61 = vadd.f32 %v788_v48, %v701_v56 }
 0x10d   :  { %v768_v63 = vadd.f32 %v767_v53, %v700_v59  ;;  %v810_v0 = vadd.f32 %v809_v54, %v702_v62  ;;  %v335_v1 = vpop.f32.mrb[12].mxu0  ;;  %v448_v2 = vpop.f32.mrb[12].mxu1 }
 0x10e   :  { %521 = vst [vmem:[%s1340_s2 + $0xc0] sm:$0xff] %v335_v1  ;;  %v566_v3 = vadd.f32 %v565_v49, %v335_v1  ;;  %v703_v4 = vmul.f32 %v335_v1, %v335_v1  ;;  %523 = vst [vmem:[%s1340_s2 + $0xd0] sm:$0xff] %v448_v2  ;;  %v608_v5 = vadd.f32 %v607_v55, %v448_v2  ;;  %v337_v7 = vpop.f32.mrb[13].mxu0  ;;  %v450_v8 = vpop.f32.mrb[13].mxu1 }
 0x10f   :  { %v705_v6 = vmul.f32 %v448_v2, %v448_v2  ;;  %522 = vst [vmem:[%s1340_s2 + $0xc8] sm:$0xff] %v337_v7  ;;  %v587_v9 = vadd.f32 %v586_v58, %v337_v7  ;;  %v704_v10 = vmul.f32 %v337_v7, %v337_v7  ;;  %524 = vst [vmem:[%s1340_s2 + $0xd8] sm:$0xff] %v450_v8  ;;  %v339_v13 = vpop.f32.mrb[14].mxu0  ;;  %v452_v14 = vpop.f32.mrb[14].mxu1 }
 0x110   :  { %v629_v11 = vadd.f32 %v628_v60, %v450_v8  ;;  %v706_v12 = vmul.f32 %v450_v8, %v450_v8  ;;  %v748_v15 = vadd.f32 %v747_v57, %v703_v4  ;;  %525 = vst [vmem:[%s1340_s2 + $0xe0] sm:$0xff] %v339_v13  ;;  %v567_v17 = vadd.f32 %v566_v3, %v339_v13  ;;  %v341_v19 = vpop.f32.mrb[15].mxu0  ;;  %v454_v20 = vpop.f32.mrb[15].mxu1 }
 0x111   :  { %v790_v16 = vadd.f32 %v789_v61, %v705_v6  ;;  %v707_v18 = vmul.f32 %v339_v13, %v339_v13  ;;  %527 = vst [vmem:[%s1340_s2 + $0xf0] sm:$0xff] %v452_v14  ;;  %v769_v21 = vadd.f32 %v768_v63, %v704_v10  ;;  %v609_v23 = vadd.f32 %v608_v5, %v452_v14 }
 0x112   :  { %v811_v22 = vadd.f32 %v810_v0, %v706_v12  ;;  %v709_v24 = vmul.f32 %v452_v14, %v452_v14  ;;  %526 = vst [vmem:[%s1340_s2 + $0xe8] sm:$0xff] %v341_v19  ;;  %528 = vst [vmem:[%s1340_s2 + $0xf8] sm:$0xff] %v454_v20  ;;  %v588_v26 = vadd.f32 %v587_v9, %v341_v19 }
 0x113   :  { %v749_v25 = vadd.f32 %v748_v15, %v707_v18  ;;  %v708_v27 = vmul.f32 %v341_v19, %v341_v19  ;;  %v630_v28 = vadd.f32 %v629_v11, %v454_v20  ;;  %v710_v30 = vmul.f32 %v454_v20, %v454_v20 }
 0x114   :  { %v791_v29 = vadd.f32 %v790_v16, %v709_v24 }
 0x115   :  { %v770_v31 = vadd.f32 %v769_v21, %v708_v27  ;;  %v812_v32 = vadd.f32 %v811_v22, %v710_v30  ;;  %v345_v33 = vpop.f32.mrb[16].mxu0  ;;  %v458_v34 = vpop.f32.mrb[16].mxu1 }
 0x116   :  { %529 = vst [vmem:[%s1340_s2 + $0x100] sm:$0xff] %v345_v33  ;;  %v568_v35 = vadd.f32 %v567_v17, %v345_v33  ;;  %v711_v36 = vmul.f32 %v345_v33, %v345_v33  ;;  %531 = vst [vmem:[%s1340_s2 + $0x110] sm:$0xff] %v458_v34  ;;  %v610_v37 = vadd.f32 %v609_v23, %v458_v34  ;;  %v347_v39 = vpop.f32.mrb[17].mxu0  ;;  %v460_v40 = vpop.f32.mrb[17].mxu1 }
 0x117   :  { %v713_v38 = vmul.f32 %v458_v34, %v458_v34  ;;  %530 = vst [vmem:[%s1340_s2 + $0x108] sm:$0xff] %v347_v39  ;;  %v589_v41 = vadd.f32 %v588_v26, %v347_v39  ;;  %v712_v42 = vmul.f32 %v347_v39, %v347_v39  ;;  %532 = vst [vmem:[%s1340_s2 + $0x118] sm:$0xff] %v460_v40  ;;  %v349_v45 = vpop.f32.mrb[18].mxu0  ;;  %v462_v46 = vpop.f32.mrb[18].mxu1 }
 0x118   :  { %v631_v43 = vadd.f32 %v630_v28, %v460_v40  ;;  %v714_v44 = vmul.f32 %v460_v40, %v460_v40  ;;  %v750_v47 = vadd.f32 %v749_v25, %v711_v36  ;;  %533 = vst [vmem:[%s1340_s2 + $0x120] sm:$0xff] %v349_v45  ;;  %v569_v49 = vadd.f32 %v568_v35, %v349_v45  ;;  %v351_v51 = vpop.f32.mrb[19].mxu0  ;;  %v464_v52 = vpop.f32.mrb[19].mxu1 }
 0x119   :  { %v792_v48 = vadd.f32 %v791_v29, %v713_v38  ;;  %v715_v50 = vmul.f32 %v349_v45, %v349_v45  ;;  %535 = vst [vmem:[%s1340_s2 + $0x130] sm:$0xff] %v462_v46  ;;  %v771_v53 = vadd.f32 %v770_v31, %v712_v42  ;;  %v611_v55 = vadd.f32 %v610_v37, %v462_v46 }
 0x11a   :  { %v813_v54 = vadd.f32 %v812_v32, %v714_v44  ;;  %v717_v56 = vmul.f32 %v462_v46, %v462_v46  ;;  %534 = vst [vmem:[%s1340_s2 + $0x128] sm:$0xff] %v351_v51  ;;  %536 = vst [vmem:[%s1340_s2 + $0x138] sm:$0xff] %v464_v52  ;;  %v590_v58 = vadd.f32 %v589_v41, %v351_v51  ;;  %v968_v35 = vmov 1966171168  }
 0x11b   :  { %v751_v57 = vadd.f32 %v750_v47, %v715_v50  ;;  %v716_v59 = vmul.f32 %v351_v51, %v351_v51  ;;  %v632_v60 = vadd.f32 %v631_v43, %v464_v52  ;;  %v718_v62 = vmul.f32 %v464_v52, %v464_v52 }
 0x11c   :  { %v793_v61 = vadd.f32 %v792_v48, %v717_v56  ;;  %v1274_v36 = vunpack.c.l.s4 %v968_v35  ;;  %v654_v37 = vlaneseq }
 0x11d   :  { %v772_v63 = vadd.f32 %v771_v53, %v716_v59  ;;  %v814_v0 = vadd.f32 %v813_v54, %v718_v62  ;;  %v355_v1 = vpop.f32.mrb[20].mxu0  ;;  %v468_v2 = vpop.f32.mrb[20].mxu1 }
 0x11e   :  { %537 = vst [vmem:[%s1340_s2 + $0x140] sm:$0xff] %v355_v1  ;;  %v570_v3 = vadd.f32 %v569_v49, %v355_v1  ;;  %v719_v4 = vmul.f32 %v355_v1, %v355_v1  ;;  %539 = vst [vmem:[%s1340_s2 + $0x150] sm:$0xff] %v468_v2  ;;  %v612_v5 = vadd.f32 %v611_v55, %v468_v2  ;;  %v357_v7 = vpop.f32.mrb[21].mxu0  ;;  %v470_v8 = vpop.f32.mrb[21].mxu1  ;;  %vm676_vm0 = vcmp.lt.s32.totalorder %v654_v37, 512 }
 0x11f   :  { %v721_v6 = vmul.f32 %v468_v2, %v468_v2  ;;  %538 = vst [vmem:[%s1340_s2 + $0x148] sm:$0xff] %v357_v7  ;;  %v591_v9 = vadd.f32 %v590_v58, %v357_v7  ;;  %v720_v10 = vmul.f32 %v357_v7, %v357_v7  ;;  %540 = vst [vmem:[%s1340_s2 + $0x158] sm:$0xff] %v470_v8  ;;  %v359_v13 = vpop.f32.mrb[22].mxu0  ;;  %v472_v14 = vpop.f32.mrb[22].mxu1  ;;  %v1302_v7 = vshrl.u32 %v654_v37, 7 }
 0x120   :  { %v633_v11 = vadd.f32 %v632_v60, %v470_v8  ;;  %v722_v12 = vmul.f32 %v470_v8, %v470_v8  ;;  %v752_v15 = vadd.f32 %v751_v57, %v719_v4  ;;  %541 = vst [vmem:[%s1340_s2 + $0x160] sm:$0xff] %v359_v13  ;;  %v571_v17 = vadd.f32 %v570_v3, %v359_v13  ;;  %v361_v19 = vpop.f32.mrb[23].mxu0  ;;  %v474_v20 = vpop.f32.mrb[23].mxu1 }
 0x121   :  { %v794_v16 = vadd.f32 %v793_v61, %v721_v6  ;;  %v723_v18 = vmul.f32 %v359_v13, %v359_v13  ;;  %543 = vst [vmem:[%s1340_s2 + $0x170] sm:$0xff] %v472_v14  ;;  %v773_v21 = vadd.f32 %v772_v63, %v720_v10  ;;  %v613_v23 = vadd.f32 %v612_v5, %v472_v14 }
 0x122   :  { %v815_v22 = vadd.f32 %v814_v0, %v722_v12  ;;  %v725_v24 = vmul.f32 %v472_v14, %v472_v14  ;;  %542 = vst [vmem:[%s1340_s2 + $0x168] sm:$0xff] %v361_v19  ;;  %544 = vst [vmem:[%s1340_s2 + $0x178] sm:$0xff] %v474_v20  ;;  %v592_v26 = vadd.f32 %v591_v9, %v361_v19  ;;  %v653_v6 = vunpack.c.0.s8 %v1274_v36 }
 0x123   :  { %v753_v25 = vadd.f32 %v752_v15, %v723_v18  ;;  %v724_v27 = vmul.f32 %v361_v19, %v361_v19  ;;  %v634_v28 = vadd.f32 %v633_v11, %v474_v20  ;;  %v726_v30 = vmul.f32 %v474_v20, %v474_v20 }
 0x124   :  { %v795_v29 = vadd.f32 %v794_v16, %v725_v24 }
 0x125   :  { %v774_v31 = vadd.f32 %v773_v21, %v724_v27  ;;  %v816_v32 = vadd.f32 %v815_v22, %v726_v30  ;;  %v365_v33 = vpop.f32.mrb[24].mxu0  ;;  %v478_v34 = vpop.f32.mrb[24].mxu1 }
 0x126   :  { %545 = vst [vmem:[%s1340_s2 + $0x180] sm:$0xff] %v365_v33  ;;  %v572_v38 = vadd.f32 %v571_v17, %v365_v33  ;;  %v727_v39 = vmul.f32 %v365_v33, %v365_v33  ;;  %547 = vst [vmem:[%s1340_s2 + $0x190] sm:$0xff] %v478_v34  ;;  %v614_v40 = vadd.f32 %v613_v23, %v478_v34  ;;  %v367_v42 = vpop.f32.mrb[25].mxu0  ;;  %v480_v43 = vpop.f32.mrb[25].mxu1 }
 0x127   :  { %v729_v41 = vmul.f32 %v478_v34, %v478_v34  ;;  %546 = vst [vmem:[%s1340_s2 + $0x188] sm:$0xff] %v367_v42  ;;  %v593_v44 = vadd.f32 %v592_v26, %v367_v42  ;;  %v728_v45 = vmul.f32 %v367_v42, %v367_v42  ;;  %548 = vst [vmem:[%s1340_s2 + $0x198] sm:$0xff] %v480_v43  ;;  %v369_v48 = vpop.f32.mrb[26].mxu0  ;;  %v482_v49 = vpop.f32.mrb[26].mxu1 }
 0x128   :  { %v635_v46 = vadd.f32 %v634_v28, %v480_v43  ;;  %v730_v47 = vmul.f32 %v480_v43, %v480_v43  ;;  %v754_v50 = vadd.f32 %v753_v25, %v727_v39  ;;  %549 = vst [vmem:[%s1340_s2 + $0x1a0] sm:$0xff] %v369_v48  ;;  %v573_v52 = vadd.f32 %v572_v38, %v369_v48  ;;  %v371_v54 = vpop.f32.mrb[27].mxu0  ;;  %v484_v55 = vpop.f32.mrb[27].mxu1 }
 0x129   :  { %v796_v51 = vadd.f32 %v795_v29, %v729_v41  ;;  %v731_v53 = vmul.f32 %v369_v48, %v369_v48  ;;  %551 = vst [vmem:[%s1340_s2 + $0x1b0] sm:$0xff] %v482_v49  ;;  %v775_v56 = vadd.f32 %v774_v31, %v728_v45  ;;  %v615_v58 = vadd.f32 %v614_v40, %v482_v49 }
 0x12a   :  { %v817_v57 = vadd.f32 %v816_v32, %v730_v47  ;;  %v733_v59 = vmul.f32 %v482_v49, %v482_v49  ;;  %550 = vst [vmem:[%s1340_s2 + $0x1a8] sm:$0xff] %v371_v54  ;;  %552 = vst [vmem:[%s1340_s2 + $0x1b8] sm:$0xff] %v484_v55  ;;  %v594_v61 = vadd.f32 %v593_v44, %v371_v54 }
 0x12b   :  { %v755_v60 = vadd.f32 %v754_v50, %v731_v53  ;;  %v732_v62 = vmul.f32 %v371_v54, %v371_v54  ;;  %v636_v63 = vadd.f32 %v635_v46, %v484_v55  ;;  %v734_v1 = vmul.f32 %v484_v55, %v484_v55 }
 0x12c   :  { %v797_v0 = vadd.f32 %v796_v51, %v733_v59 }
 0x12d   :  { %v776_v2 = vadd.f32 %v775_v56, %v732_v62  ;;  %v818_v3 = vadd.f32 %v817_v57, %v734_v1  ;;  %v375_v4 = vpop.f32.mrb[28].mxu0  ;;  %v488_v5 = vpop.f32.mrb[28].mxu1 }
 0x12e   :  { %553 = vst [vmem:[%s1340_s2 + $0x1c0] sm:$0xff] %v375_v4  ;;  %v574_v8 = vadd.f32 %v573_v52, %v375_v4  ;;  %v735_v9 = vmul.f32 %v375_v4, %v375_v4  ;;  %555 = vst [vmem:[%s1340_s2 + $0x1d0] sm:$0xff] %v488_v5  ;;  %v616_v10 = vadd.f32 %v615_v58, %v488_v5  ;;  %v377_v12 = vpop.f32.mrb[29].mxu0  ;;  %v490_v13 = vpop.f32.mrb[29].mxu1 }
 0x12f   :  { %v737_v11 = vmul.f32 %v488_v5, %v488_v5  ;;  %554 = vst [vmem:[%s1340_s2 + $0x1c8] sm:$0xff] %v377_v12  ;;  %v595_v14 = vadd.f32 %v594_v61, %v377_v12  ;;  %v736_v15 = vmul.f32 %v377_v12, %v377_v12  ;;  %556 = vst [vmem:[%s1340_s2 + $0x1d8] sm:$0xff] %v490_v13  ;;  %v379_v18 = vpop.f32.mrb[30].mxu0  ;;  %v492_v19 = vpop.f32.mrb[30].mxu1 }
 0x130   :  { %v637_v16 = vadd.f32 %v636_v63, %v490_v13  ;;  %v738_v17 = vmul.f32 %v490_v13, %v490_v13  ;;  %v756_v20 = vadd.f32 %v755_v60, %v735_v9  ;;  %557 = vst [vmem:[%s1340_s2 + $0x1e0] sm:$0xff] %v379_v18  ;;  %v575_v22 = vadd.f32 %v574_v8, %v379_v18  ;;  %v381_v24 = vpop.f32.mrb[31].mxu0  ;;  %v494_v25 = vpop.f32.mrb[31].mxu1 }
 0x131   :  { %v798_v21 = vadd.f32 %v797_v0, %v737_v11  ;;  %v739_v23 = vmul.f32 %v379_v18, %v379_v18  ;;  %559 = vst [vmem:[%s1340_s2 + $0x1f0] sm:$0xff] %v492_v19  ;;  %v777_v26 = vadd.f32 %v776_v2, %v736_v15  ;;  %v617_v28 = vadd.f32 %v616_v10, %v492_v19 }
 0x132   :  { %v819_v27 = vadd.f32 %v818_v3, %v738_v17  ;;  %v741_v29 = vmul.f32 %v492_v19, %v492_v19  ;;  %558 = vst [vmem:[%s1340_s2 + $0x1e8] sm:$0xff] %v381_v24  ;;  %560 = vst [vmem:[%s1340_s2 + $0x1f8] sm:$0xff] %v494_v25  ;;  %v576_v30 = vrot.slane %v575_v22, 4  ;;  %v596_v32 = vadd.f32 %v595_v14, %v381_v24 }
 0x133   :  { %v757_v31 = vadd.f32 %v756_v20, %v739_v23  ;;  %v740_v33 = vmul.f32 %v381_v24, %v381_v24  ;;  %v618_v34 = vrot.slane %v617_v28, 4  ;;  %v638_v38 = vadd.f32 %v637_v16, %v494_v25 }
 0x134   :  { %v799_v35 = vadd.f32 %v798_v21, %v741_v29  ;;  %v742_v39 = vmul.f32 %v494_v25, %v494_v25  ;;  %v577_v40 = vadd.f32 %v576_v30, %v575_v22  ;;  %v597_v42 = vrot.slane %v596_v32, 4 }
 0x135   :  { %v758_v41 = vrot.slane %v757_v31, 4  ;;  %v778_v43 = vadd.f32 %v777_v26, %v740_v33  ;;  %v619_v44 = vadd.f32 %v618_v34, %v617_v28  ;;  %v639_v46 = vrot.slane %v638_v38, 4 }
 0x136   :  { %v800_v45 = vrot.slane %v799_v35, 4  ;;  %v820_v47 = vadd.f32 %v819_v27, %v742_v39  ;;  %v578_v48 = vrot.slane %v577_v40, 2  ;;  %v598_v50 = vadd.f32 %v597_v42, %v596_v32 }
 0x137   :  { %v759_v49 = vadd.f32 %v758_v41, %v757_v31  ;;  %v779_v51 = vrot.slane %v778_v43, 4  ;;  %v620_v52 = vrot.slane %v619_v44, 2  ;;  %v640_v54 = vadd.f32 %v639_v46, %v638_v38 }
 0x138   :  { %v801_v53 = vadd.f32 %v800_v45, %v799_v35  ;;  %v821_v55 = vrot.slane %v820_v47, 4  ;;  %v579_v56 = vadd.f32 %v578_v48, %v577_v40  ;;  %v599_v58 = vrot.slane %v598_v50, 2 }
 0x139   :  { %v760_v57 = vrot.slane %v759_v49, 2  ;;  %v780_v59 = vadd.f32 %v779_v51, %v778_v43  ;;  %v621_v60 = vadd.f32 %v620_v52, %v619_v44  ;;  %v641_v62 = vrot.slane %v640_v54, 2 }
 0x13a   :  { %v802_v61 = vrot.slane %v801_v53, 2  ;;  %v822_v63 = vadd.f32 %v821_v55, %v820_v47  ;;  %v580_v0 = vrot.slane %v579_v56, 1  ;;  %v600_v2 = vadd.f32 %v599_v58, %v598_v50 }
 0x13b   :  { %v761_v1 = vadd.f32 %v760_v57, %v759_v49  ;;  %v781_v3 = vrot.slane %v780_v59, 2  ;;  %v622_v4 = vrot.slane %v621_v60, 1  ;;  %v642_v8 = vadd.f32 %v641_v62, %v640_v54 }
 0x13c   :  { %v803_v5 = vadd.f32 %v802_v61, %v801_v53  ;;  %v823_v9 = vrot.slane %v822_v63, 2  ;;  %v581_v10 = vadd.f32 %v580_v0, %v579_v56  ;;  %v601_v12 = vrot.slane %v600_v2, 1 }
 0x13d   :  { %v762_v11 = vrot.slane %v761_v1, 1  ;;  %v782_v13 = vadd.f32 %v781_v3, %v780_v59  ;;  %v623_v14 = vadd.f32 %v622_v4, %v621_v60  ;;  %v643_v16 = vrot.slane %v642_v8, 1 }
 0x13e   :  { %v804_v15 = vrot.slane %v803_v5, 1  ;;  %v824_v17 = vadd.f32 %v823_v9, %v822_v63  ;;  %v602_v19 = vadd.f32 %v601_v12, %v600_v2  ;;  %v656_v20 = vsub.s32 %v653_v6, %v1302_v7 }
 0x13f   :  { %v763_v18 = vadd.f32 %v762_v11, %v761_v1  ;;  %v783_v21 = vrot.slane %v782_v13, 1  ;;  %v644_v23 = vadd.f32 %v643_v16, %v642_v8 }
 0x140   :  { %v805_v22 = vadd.f32 %v804_v15, %v803_v5  ;;  %v825_v24 = vrot.slane %v824_v17, 1  ;;  %v649_v25 = vcombine.low %v581_v10, %v602_v19 }
 0x141   :  { %v784_v26 = vadd.f32 %v783_v21, %v782_v13  ;;  %v650_v27 = vcombine.low %v623_v14, %v644_v23 }
 0x142   :  { %v826_v28 = vadd.f32 %v825_v24, %v824_v17  ;;  %v657_v29 = vrot.slane %v649_v25, %v656_v20 }
 0x143   :  { %v831_v30 = vcombine.low %v763_v18, %v784_v26  ;;  %v664_v31 = vrot.slane %v650_v27, %v656_v20 }
 0x144   :  { %v832_v32 = vcombine.low %v805_v22, %v826_v28 }
 0x145   :  { %v839_v33 = vrot.slane %v831_v30, %v656_v20  ;;  %v665_v34 = vcombine.low %v657_v29, %v664_v31 }
 0x146   :  { %v846_v35 = vrot.slane %v832_v32, %v656_v20 }
 0x147   :  { %v672_v38 = vrot.slane %v665_v34, %v656_v20 }
 0x148   :  { %v847_v36 = vcombine.low %v839_v33, %v846_v35 }
 0x149   :  { %678 = vst.msk [vmem:[%s1341_s3] sm:$0xf] %vm676_vm0, %v672_v38 }
 0x14a   :  { %v854_v6 = vrot.slane %v847_v36, %v656_v20 }
 0x14c   :  { %856 = vst.msk [vmem:[%s1342_s4] sm:$0xf] %vm676_vm0, %v854_v6 }

// kernel: model_forward.38
= control target key start
LH: loop header
LB: loop body
LE: loop exit
PB: predicated region body
PF: predicated region fallthrough
CT: control target
= control target key end

     0   :  { %v80_v0 = vlaneseq  ;;  %s1064_s1 = inlined_call_operand.vmem [shape: f32[1,512], index: 1, kind: input, shape index: {}]   ;;  %s1065_s2 = inlined_call_operand.vmem [shape: f32[1,512], index: 2, kind: input, shape index: {}]   ;;  %s1066_s0 = inlined_call_operand.vmem [shape: f32[128,512], index: 0, kind: input, shape index: {}]   ;;  %s1067_s3 = inlined_call_operand.vmem [shape: bf16[128,512], index: 3, kind: output, shape index: {}]  }
   0x1   :  { %v78_v2 = vld [vmem:[%s1064_s1] sm:$0xf]  ;;  %v15_v5 = vld [vmem:[%s1066_s0 + $0x8] sm:$0xff]  ;;  %v16_v10 = vld [vmem:[%s1066_s0 + $0x10] sm:$0xff] }
   0x2   :  { %v81_v1 = vshrl.u32 %v80_v0, 7  ;;  %v164_v3 = vld [vmem:[%s1065_s2] sm:$0xf]  ;;  %v19_v12 = vld [vmem:[%s1066_s0 + $0x28] sm:$0xff]  ;;  %v17_v17 = vld [vmem:[%s1066_s0 + $0x18] sm:$0xff] }
   0x3   :  { %v14_v4 = vld [vmem:[%s1066_s0] sm:$0xff]  ;;  %v20_v18 = vld [vmem:[%s1066_s0 + $0x30] sm:$0xff]  ;;  %v21_v19 = vld [vmem:[%s1066_s0 + $0x38] sm:$0xff] }
   0x4   :  { %v82_v6 = vsub.s32 0, %v81_v1  ;;  %v86_v7 = vsub.s32 1, %v81_v1  ;;  %v90_v8 = vsub.s32 2, %v81_v1  ;;  %v94_v9 = vsub.s32 3, %v81_v1  ;;  %v18_v11 = vld [vmem:[%s1066_s0 + $0x20] sm:$0xff]  ;;  %v23_v41 = vld [vmem:[%s1066_s0 + $0x48] sm:$0xff] }
   0x5   :  { %v22_v40 = vld [vmem:[%s1066_s0 + $0x40] sm:$0xff]  ;;  %v24_v46 = vld [vmem:[%s1066_s0 + $0x50] sm:$0xff]  ;;  %v25_v47 = vld [vmem:[%s1066_s0 + $0x58] sm:$0xff] }
   0x6   :  { %v647_v13 = vrot.slane %v78_v2, %v82_v6  ;;  %v649_v14 = vrot.slane %v78_v2, %v86_v7  ;;  %v651_v15 = vrot.slane %v164_v3, %v82_v6  ;;  %v653_v16 = vrot.slane %v164_v3, %v86_v7  ;;  %v26_v52 = vld [vmem:[%s1066_s0 + $0x60] sm:$0xff]  ;;  %v27_v53 = vld [vmem:[%s1066_s0 + $0x68] sm:$0xff]  ;;  %v28_v58 = vld [vmem:[%s1066_s0 + $0x70] sm:$0xff] }
   0x7   :  { %v664_v20 = vrot.slane %v78_v2, %v90_v8  ;;  %v666_v21 = vrot.slane %v78_v2, %v94_v9  ;;  %v668_v22 = vrot.slane %v164_v3, %v90_v8  ;;  %v670_v23 = vrot.slane %v164_v3, %v94_v9  ;;  %v29_v59 = vld [vmem:[%s1066_s0 + $0x78] sm:$0xff]  ;;  %v30_v8 = vld [vmem:[%s1066_s0 + $0x80] sm:$0xff] }
   0x8   :  { %v100_v24 = vmul.f32 %v647_v13, %v14_v4  ;;  %v101_v25 = vmul.f32 %v649_v14, %v15_v5  ;;  %v104_v26 = vmul.f32 %v647_v13, %v18_v11  ;;  %v105_v27 = vmul.f32 %v649_v14, %v19_v12 }
   0x9   :  { %v102_v28 = vmul.f32 %v664_v20, %v16_v10  ;;  %v103_v29 = vmul.f32 %v666_v21, %v17_v17  ;;  %v106_v30 = vmul.f32 %v664_v20, %v20_v18  ;;  %v107_v31 = vmul.f32 %v666_v21, %v21_v19  ;;  %v31_v17 = vld [vmem:[%s1066_s0 + $0x88] sm:$0xff] }
   0xa   :  { %v186_v32 = vadd.f32 %v651_v15, %v100_v24  ;;  %v187_v33 = vadd.f32 %v653_v16, %v101_v25  ;;  %v190_v34 = vadd.f32 %v651_v15, %v104_v26  ;;  %v191_v35 = vadd.f32 %v653_v16, %v105_v27  ;;  %v32_v26 = vld [vmem:[%s1066_s0 + $0x90] sm:$0xff]  ;;  %v33_v27 = vld [vmem:[%s1066_s0 + $0x98] sm:$0xff] }
   0xb   :  { %v188_v36 = vadd.f32 %v668_v22, %v102_v28  ;;  %v189_v37 = vadd.f32 %v670_v23, %v103_v29  ;;  %v192_v38 = vadd.f32 %v668_v22, %v106_v30  ;;  %v193_v39 = vadd.f32 %v670_v23, %v107_v31 }
   0xc   :  { %v250_v42 = vmax.f32 %v186_v32, 0.0  ;;  %v251_v43 = vmax.f32 %v187_v33, 0.0  ;;  %v254_v44 = vmax.f32 %v190_v34, 0.0  ;;  %v255_v45 = vmax.f32 %v191_v35, 0.0  ;;  %v34_v32 = vld [vmem:[%s1066_s0 + $0xa0] sm:$0xff]  ;;  %v35_v33 = vld [vmem:[%s1066_s0 + $0xa8] sm:$0xff] }
   0xd   :  { %v252_v48 = vmax.f32 %v188_v36, 0.0  ;;  %v253_v49 = vmax.f32 %v189_v37, 0.0  ;;  %v256_v50 = vmax.f32 %v192_v38, 0.0  ;;  %v257_v51 = vmax.f32 %v193_v39, 0.0  ;;  %v36_v38 = vld [vmem:[%s1066_s0 + $0xb0] sm:$0xff] }
   0xe   :  { %v574_v54 = vpack.c.bf16 %v251_v43, %v250_v42  ;;  %v576_v55 = vpack.c.bf16 %v255_v45, %v254_v44  ;;  %v108_v56 = vmul.f32 %v647_v13, %v22_v40  ;;  %v109_v57 = vmul.f32 %v649_v14, %v23_v41  ;;  %v37_v43 = vld [vmem:[%s1066_s0 + $0xb8] sm:$0xff] }
   0xf   :  { %v575_v60 = vpack.c.bf16 %v253_v49, %v252_v48  ;;  %v577_v61 = vpack.c.bf16 %v257_v51, %v256_v50  ;;  %v110_v62 = vmul.f32 %v664_v20, %v24_v46  ;;  %v111_v63 = vmul.f32 %v666_v21, %v25_v47  ;;  %v38_v48 = vld [vmem:[%s1066_s0 + $0xc0] sm:$0xff] }
  0x10   :  { %506 = vst [vmem:[%s1067_s3] sm:$0xff] %v574_v54  ;;  %508 = vst [vmem:[%s1067_s3 + $0x10] sm:$0xff] %v576_v55  ;;  %v194_v0 = vadd.f32 %v651_v15, %v108_v56  ;;  %v195_v1 = vadd.f32 %v653_v16, %v109_v57  ;;  %v112_v2 = vmul.f32 %v647_v13, %v26_v52  ;;  %v39_v57 = vld [vmem:[%s1066_s0 + $0xc8] sm:$0xff] }
  0x11   :  { %v113_v3 = vmul.f32 %v649_v14, %v27_v53  ;;  %507 = vst [vmem:[%s1067_s3 + $0x8] sm:$0xff] %v575_v60  ;;  %509 = vst [vmem:[%s1067_s3 + $0x18] sm:$0xff] %v577_v61  ;;  %v196_v4 = vadd.f32 %v668_v22, %v110_v62  ;;  %v197_v5 = vadd.f32 %v670_v23, %v111_v63  ;;  %v40_v62 = vld [vmem:[%s1066_s0 + $0xd0] sm:$0xff]  ;;  %v41_v63 = vld [vmem:[%s1066_s0 + $0xd8] sm:$0xff] }
  0x12   :  { %v114_v6 = vmul.f32 %v664_v20, %v28_v58  ;;  %v115_v7 = vmul.f32 %v666_v21, %v29_v59  ;;  %v258_v9 = vmax.f32 %v194_v0, 0.0  ;;  %v259_v10 = vmax.f32 %v195_v1, 0.0 }
  0x13   :  { %v198_v11 = vadd.f32 %v651_v15, %v112_v2  ;;  %v199_v12 = vadd.f32 %v653_v16, %v113_v3  ;;  %v260_v18 = vmax.f32 %v196_v4, 0.0  ;;  %v261_v19 = vmax.f32 %v197_v5, 0.0  ;;  %v42_v4 = vld [vmem:[%s1066_s0 + $0xe0] sm:$0xff]  ;;  %v43_v5 = vld [vmem:[%s1066_s0 + $0xe8] sm:$0xff] }
  0x14   :  { %v200_v24 = vadd.f32 %v668_v22, %v114_v6  ;;  %v201_v25 = vadd.f32 %v670_v23, %v115_v7  ;;  %v578_v28 = vpack.c.bf16 %v259_v10, %v258_v9  ;;  %v116_v31 = vmul.f32 %v647_v13, %v30_v8  ;;  %v44_v10 = vld [vmem:[%s1066_s0 + $0xf0] sm:$0xff] }
  0x15   :  { %v262_v29 = vmax.f32 %v198_v11, 0.0  ;;  %v263_v30 = vmax.f32 %v199_v12, 0.0  ;;  %v579_v34 = vpack.c.bf16 %v261_v19, %v260_v18  ;;  %v117_v37 = vmul.f32 %v649_v14, %v31_v17  ;;  %v45_v19 = vld [vmem:[%s1066_s0 + $0xf8] sm:$0xff] }
  0x16   :  { %v264_v35 = vmax.f32 %v200_v24, 0.0  ;;  %v265_v36 = vmax.f32 %v201_v25, 0.0  ;;  %510 = vst [vmem:[%s1067_s3 + $0x20] sm:$0xff] %v578_v28  ;;  %v202_v40 = vadd.f32 %v651_v15, %v116_v31  ;;  %v118_v41 = vmul.f32 %v664_v20, %v32_v26  ;;  %v46_v28 = vld [vmem:[%s1066_s0 + $0x100] sm:$0xff] }
  0x17   :  { %v580_v39 = vpack.c.bf16 %v263_v30, %v262_v29  ;;  %v119_v42 = vmul.f32 %v666_v21, %v33_v27  ;;  %511 = vst [vmem:[%s1067_s3 + $0x28] sm:$0xff] %v579_v34  ;;  %v203_v45 = vadd.f32 %v653_v16, %v117_v37  ;;  %v120_v46 = vmul.f32 %v647_v13, %v34_v32  ;;  %v47_v37 = vld [vmem:[%s1066_s0 + $0x108] sm:$0xff] }
  0x18   :  { %v581_v44 = vpack.c.bf16 %v265_v36, %v264_v35  ;;  %v121_v47 = vmul.f32 %v649_v14, %v35_v33  ;;  %v266_v49 = vmax.f32 %v202_v40, 0.0  ;;  %v204_v50 = vadd.f32 %v668_v22, %v118_v41 }
  0x19   :  { %512 = vst [vmem:[%s1067_s3 + $0x30] sm:$0xff] %v580_v39  ;;  %v205_v51 = vadd.f32 %v670_v23, %v119_v42  ;;  %v122_v52 = vmul.f32 %v664_v20, %v36_v38  ;;  %v267_v53 = vmax.f32 %v203_v45, 0.0  ;;  %v206_v54 = vadd.f32 %v651_v15, %v120_v46  ;;  %v48_v42 = vld [vmem:[%s1066_s0 + $0x110] sm:$0xff] }
  0x1a   :  { %513 = vst [vmem:[%s1067_s3 + $0x38] sm:$0xff] %v581_v44  ;;  %v207_v55 = vadd.f32 %v653_v16, %v121_v47  ;;  %v123_v56 = vmul.f32 %v666_v21, %v37_v43  ;;  %v268_v58 = vmax.f32 %v204_v50, 0.0  ;;  %v124_v61 = vmul.f32 %v647_v13, %v38_v48  ;;  %v49_v43 = vld [vmem:[%s1066_s0 + $0x118] sm:$0xff]  ;;  %v50_v48 = vld [vmem:[%s1066_s0 + $0x120] sm:$0xff] }
  0x1b   :  { %v269_v59 = vmax.f32 %v205_v51, 0.0  ;;  %v208_v60 = vadd.f32 %v668_v22, %v122_v52  ;;  %v582_v0 = vpack.c.bf16 %v267_v53, %v266_v49  ;;  %v270_v1 = vmax.f32 %v206_v54, 0.0  ;;  %v51_v49 = vld [vmem:[%s1066_s0 + $0x128] sm:$0xff]  ;;  %v52_v54 = vld [vmem:[%s1066_s0 + $0x130] sm:$0xff] }
  0x1c   :  { %v271_v2 = vmax.f32 %v207_v55, 0.0  ;;  %v209_v3 = vadd.f32 %v670_v23, %v123_v56  ;;  %v125_v8 = vmul.f32 %v649_v14, %v39_v57  ;;  %v210_v9 = vadd.f32 %v651_v15, %v124_v61 }
  0x1d   :  { %v583_v6 = vpack.c.bf16 %v269_v59, %v268_v58  ;;  %v272_v7 = vmax.f32 %v208_v60, 0.0  ;;  %514 = vst [vmem:[%s1067_s3 + $0x40] sm:$0xff] %v582_v0  ;;  %v126_v17 = vmul.f32 %v664_v20, %v40_v62  ;;  %v127_v18 = vmul.f32 %v666_v21, %v41_v63  ;;  %v53_v59 = vld [vmem:[%s1066_s0 + $0x138] sm:$0xff]  ;;  %v54_v0 = vld [vmem:[%s1066_s0 + $0x140] sm:$0xff] }
  0x1e   :  { %v584_v11 = vpack.c.bf16 %v271_v2, %v270_v1  ;;  %v273_v12 = vmax.f32 %v209_v3, 0.0  ;;  %v211_v24 = vadd.f32 %v653_v16, %v125_v8  ;;  %v274_v25 = vmax.f32 %v210_v9, 0.0  ;;  %v55_v9 = vld [vmem:[%s1066_s0 + $0x148] sm:$0xff] }
  0x1f   :  { %515 = vst [vmem:[%s1067_s3 + $0x48] sm:$0xff] %v583_v6  ;;  %v128_v26 = vmul.f32 %v647_v13, %v42_v4  ;;  %v129_v27 = vmul.f32 %v649_v14, %v43_v5  ;;  %v212_v30 = vadd.f32 %v668_v22, %v126_v17  ;;  %v213_v31 = vadd.f32 %v670_v23, %v127_v18  ;;  %v56_v18 = vld [vmem:[%s1066_s0 + $0x150] sm:$0xff] }
  0x20   :  { %516 = vst [vmem:[%s1067_s3 + $0x50] sm:$0xff] %v584_v11  ;;  %v585_v29 = vpack.c.bf16 %v273_v12, %v272_v7  ;;  %v130_v32 = vmul.f32 %v664_v20, %v44_v10  ;;  %v275_v33 = vmax.f32 %v211_v24, 0.0  ;;  %v131_v36 = vmul.f32 %v666_v21, %v45_v19  ;;  %v57_v19 = vld [vmem:[%s1066_s0 + $0x158] sm:$0xff] }
  0x21   :  { %v214_v34 = vadd.f32 %v651_v15, %v128_v26  ;;  %v215_v35 = vadd.f32 %v653_v16, %v129_v27  ;;  %v276_v38 = vmax.f32 %v212_v30, 0.0  ;;  %v277_v39 = vmax.f32 %v213_v31, 0.0 }
  0x22   :  { %517 = vst [vmem:[%s1067_s3 + $0x58] sm:$0xff] %v585_v29  ;;  %v216_v40 = vadd.f32 %v668_v22, %v130_v32  ;;  %v132_v41 = vmul.f32 %v647_v13, %v46_v28  ;;  %v586_v44 = vpack.c.bf16 %v275_v33, %v274_v25  ;;  %v217_v47 = vadd.f32 %v670_v23, %v131_v36  ;;  %v58_v28 = vld [vmem:[%s1066_s0 + $0x160] sm:$0xff]  ;;  %v59_v29 = vld [vmem:[%s1066_s0 + $0x168] sm:$0xff] }
  0x23   :  { %v278_v45 = vmax.f32 %v214_v34, 0.0  ;;  %v279_v46 = vmax.f32 %v215_v35, 0.0  ;;  %v587_v50 = vpack.c.bf16 %v277_v39, %v276_v38  ;;  %v133_v52 = vmul.f32 %v649_v14, %v47_v37  ;;  %v60_v34 = vld [vmem:[%s1066_s0 + $0x170] sm:$0xff]  ;;  %v61_v39 = vld [vmem:[%s1066_s0 + $0x178] sm:$0xff] }
  0x24   :  { %v280_v51 = vmax.f32 %v216_v40, 0.0  ;;  %v218_v53 = vadd.f32 %v651_v15, %v132_v41  ;;  %518 = vst [vmem:[%s1067_s3 + $0x60] sm:$0xff] %v586_v44  ;;  %v281_v56 = vmax.f32 %v217_v47, 0.0  ;;  %v134_v57 = vmul.f32 %v664_v20, %v48_v42  ;;  %v62_v44 = vld [vmem:[%s1066_s0 + $0x180] sm:$0xff] }
  0x25   :  { %v588_v55 = vpack.c.bf16 %v279_v46, %v278_v45  ;;  %v135_v58 = vmul.f32 %v666_v21, %v49_v43  ;;  %519 = vst [vmem:[%s1067_s3 + $0x68] sm:$0xff] %v587_v50  ;;  %v219_v60 = vadd.f32 %v653_v16, %v133_v52  ;;  %v136_v62 = vmul.f32 %v647_v13, %v50_v48 }
  0x26   :  { %v282_v61 = vmax.f32 %v218_v53, 0.0  ;;  %v137_v63 = vmul.f32 %v649_v14, %v51_v49  ;;  %v589_v1 = vpack.c.bf16 %v281_v56, %v280_v51  ;;  %v220_v2 = vadd.f32 %v668_v22, %v134_v57  ;;  %v63_v53 = vld [vmem:[%s1066_s0 + $0x188] sm:$0xff] }
  0x27   :  { %520 = vst [vmem:[%s1067_s3 + $0x70] sm:$0xff] %v588_v55  ;;  %v221_v3 = vadd.f32 %v670_v23, %v135_v58  ;;  %v138_v4 = vmul.f32 %v664_v20, %v52_v54  ;;  %v283_v5 = vmax.f32 %v219_v60, 0.0  ;;  %v222_v6 = vadd.f32 %v651_v15, %v136_v62  ;;  %v64_v58 = vld [vmem:[%s1066_s0 + $0x190] sm:$0xff] }
  0x28   :  { %v223_v7 = vadd.f32 %v653_v16, %v137_v63  ;;  %v139_v8 = vmul.f32 %v666_v21, %v53_v59  ;;  %521 = vst [vmem:[%s1067_s3 + $0x78] sm:$0xff] %v589_v1  ;;  %v284_v10 = vmax.f32 %v220_v2, 0.0  ;;  %v140_v17 = vmul.f32 %v647_v13, %v54_v0  ;;  %v65_v59 = vld [vmem:[%s1066_s0 + $0x198] sm:$0xff]  ;;  %v66_v0 = vld [vmem:[%s1066_s0 + $0x1a0] sm:$0xff]  ;;  %v67_v1 = vld [vmem:[%s1066_s0 + $0x1a8] sm:$0xff] }
  0x29   :  { %v285_v11 = vmax.f32 %v221_v3, 0.0  ;;  %v224_v12 = vadd.f32 %v668_v22, %v138_v4  ;;  %v590_v24 = vpack.c.bf16 %v283_v5, %v282_v61  ;;  %v286_v25 = vmax.f32 %v222_v6, 0.0  ;;  %v68_v6 = vld [vmem:[%s1066_s0 + $0x1b0] sm:$0xff] }
  0x2a   :  { %v287_v26 = vmax.f32 %v223_v7, 0.0  ;;  %v225_v27 = vadd.f32 %v670_v23, %v139_v8  ;;  %v141_v32 = vmul.f32 %v649_v14, %v55_v9  ;;  %v226_v33 = vadd.f32 %v651_v15, %v140_v17 }
  0x2b   :  { %v591_v30 = vpack.c.bf16 %v285_v11, %v284_v10  ;;  %v288_v31 = vmax.f32 %v224_v12, 0.0  ;;  %522 = vst [vmem:[%s1067_s3 + $0x80] sm:$0xff] %v590_v24  ;;  %v142_v37 = vmul.f32 %v664_v20, %v56_v18  ;;  %v143_v38 = vmul.f32 %v666_v21, %v57_v19  ;;  %v69_v11 = vld [vmem:[%s1066_s0 + $0x1b8] sm:$0xff]  ;;  %v70_v24 = vld [vmem:[%s1066_s0 + $0x1c0] sm:$0xff] }
  0x2c   :  { %v592_v35 = vpack.c.bf16 %v287_v26, %v286_v25  ;;  %v289_v36 = vmax.f32 %v225_v27, 0.0  ;;  %v227_v40 = vadd.f32 %v653_v16, %v141_v32  ;;  %v290_v41 = vmax.f32 %v226_v33, 0.0  ;;  %v71_v33 = vld [vmem:[%s1066_s0 + $0x1c8] sm:$0xff] }
  0x2d   :  { %523 = vst [vmem:[%s1067_s3 + $0x88] sm:$0xff] %v591_v30  ;;  %v144_v42 = vmul.f32 %v647_v13, %v58_v28  ;;  %v145_v43 = vmul.f32 %v649_v14, %v59_v29  ;;  %v228_v46 = vadd.f32 %v668_v22, %v142_v37  ;;  %v229_v47 = vadd.f32 %v670_v23, %v143_v38  ;;  %v72_v38 = vld [vmem:[%s1066_s0 + $0x1d0] sm:$0xff] }
  0x2e   :  { %524 = vst [vmem:[%s1067_s3 + $0x90] sm:$0xff] %v592_v35  ;;  %v593_v45 = vpack.c.bf16 %v289_v36, %v288_v31  ;;  %v146_v48 = vmul.f32 %v664_v20, %v60_v34  ;;  %v291_v49 = vmax.f32 %v227_v40, 0.0  ;;  %v147_v52 = vmul.f32 %v666_v21, %v61_v39  ;;  %v73_v39 = vld [vmem:[%s1066_s0 + $0x1d8] sm:$0xff] }
  0x2f   :  { %v230_v50 = vadd.f32 %v651_v15, %v144_v42  ;;  %v231_v51 = vadd.f32 %v653_v16, %v145_v43  ;;  %v292_v54 = vmax.f32 %v228_v46, 0.0  ;;  %v293_v55 = vmax.f32 %v229_v47, 0.0 }
  0x30   :  { %525 = vst [vmem:[%s1067_s3 + $0x98] sm:$0xff] %v593_v45  ;;  %v232_v56 = vadd.f32 %v668_v22, %v146_v48  ;;  %v148_v57 = vmul.f32 %v647_v13, %v62_v44  ;;  %v594_v60 = vpack.c.bf16 %v291_v49, %v290_v41  ;;  %v233_v63 = vadd.f32 %v670_v23, %v147_v52  ;;  %v74_v44 = vld [vmem:[%s1066_s0 + $0x1e0] sm:$0xff]  ;;  %v75_v45 = vld [vmem:[%s1066_s0 + $0x1e8] sm:$0xff] }
  0x31   :  { %v294_v61 = vmax.f32 %v230_v50, 0.0  ;;  %v295_v62 = vmax.f32 %v231_v51, 0.0  ;;  %v595_v2 = vpack.c.bf16 %v293_v55, %v292_v54  ;;  %v149_v4 = vmul.f32 %v649_v14, %v63_v53  ;;  %v76_v50 = vld [vmem:[%s1066_s0 + $0x1f0] sm:$0xff]  ;;  %v77_v55 = vld [vmem:[%s1066_s0 + $0x1f8] sm:$0xff] }
  0x32   :  { %v296_v3 = vmax.f32 %v232_v56, 0.0  ;;  %v234_v5 = vadd.f32 %v651_v15, %v148_v57  ;;  %526 = vst [vmem:[%s1067_s3 + $0xa0] sm:$0xff] %v594_v60  ;;  %v297_v8 = vmax.f32 %v233_v63, 0.0  ;;  %v150_v9 = vmul.f32 %v664_v20, %v64_v58 }
  0x33   :  { %v596_v7 = vpack.c.bf16 %v295_v62, %v294_v61  ;;  %v151_v10 = vmul.f32 %v666_v21, %v65_v59  ;;  %527 = vst [vmem:[%s1067_s3 + $0xa8] sm:$0xff] %v595_v2  ;;  %v235_v12 = vadd.f32 %v653_v16, %v149_v4  ;;  %v152_v18 = vmul.f32 %v647_v13, %v66_v0 }
  0x34   :  { %v298_v17 = vmax.f32 %v234_v5, 0.0  ;;  %v153_v19 = vmul.f32 %v649_v14, %v67_v1  ;;  %v597_v25 = vpack.c.bf16 %v297_v8, %v296_v3  ;;  %v236_v26 = vadd.f32 %v668_v22, %v150_v9 }
  0x35   :  { %528 = vst [vmem:[%s1067_s3 + $0xb0] sm:$0xff] %v596_v7  ;;  %v237_v27 = vadd.f32 %v670_v23, %v151_v10  ;;  %v154_v28 = vmul.f32 %v664_v20, %v68_v6  ;;  %v299_v29 = vmax.f32 %v235_v12, 0.0  ;;  %v238_v30 = vadd.f32 %v651_v15, %v152_v18 }
  0x36   :  { %v239_v31 = vadd.f32 %v653_v16, %v153_v19  ;;  %v155_v32 = vmul.f32 %v666_v21, %v69_v11  ;;  %529 = vst [vmem:[%s1067_s3 + $0xb8] sm:$0xff] %v597_v25  ;;  %v300_v34 = vmax.f32 %v236_v26, 0.0  ;;  %v156_v37 = vmul.f32 %v647_v13, %v70_v24 }
  0x37   :  { %v301_v35 = vmax.f32 %v237_v27, 0.0  ;;  %v240_v36 = vadd.f32 %v668_v22, %v154_v28  ;;  %v598_v40 = vpack.c.bf16 %v299_v29, %v298_v17  ;;  %v302_v41 = vmax.f32 %v238_v30, 0.0 }
  0x38   :  { %v303_v42 = vmax.f32 %v239_v31, 0.0  ;;  %v241_v43 = vadd.f32 %v670_v23, %v155_v32  ;;  %v157_v48 = vmul.f32 %v649_v14, %v71_v33  ;;  %v242_v49 = vadd.f32 %v651_v15, %v156_v37 }
  0x39   :  { %v599_v46 = vpack.c.bf16 %v301_v35, %v300_v34  ;;  %v304_v47 = vmax.f32 %v240_v36, 0.0  ;;  %530 = vst [vmem:[%s1067_s3 + $0xc0] sm:$0xff] %v598_v40  ;;  %v158_v53 = vmul.f32 %v664_v20, %v72_v38  ;;  %v159_v54 = vmul.f32 %v666_v21, %v73_v39 }
  0x3a   :  { %v600_v51 = vpack.c.bf16 %v303_v42, %v302_v41  ;;  %v305_v52 = vmax.f32 %v241_v43, 0.0  ;;  %v243_v56 = vadd.f32 %v653_v16, %v157_v48  ;;  %v306_v57 = vmax.f32 %v242_v49, 0.0 }
  0x3b   :  { %531 = vst [vmem:[%s1067_s3 + $0xc8] sm:$0xff] %v599_v46  ;;  %v160_v58 = vmul.f32 %v647_v13, %v74_v44  ;;  %v161_v59 = vmul.f32 %v649_v14, %v75_v45  ;;  %v244_v61 = vadd.f32 %v668_v22, %v158_v53  ;;  %v245_v62 = vadd.f32 %v670_v23, %v159_v54 }
  0x3c   :  { %532 = vst [vmem:[%s1067_s3 + $0xd0] sm:$0xff] %v600_v51  ;;  %v601_v60 = vpack.c.bf16 %v305_v52, %v304_v47  ;;  %v162_v63 = vmul.f32 %v664_v20, %v76_v50  ;;  %v307_v0 = vmax.f32 %v243_v56, 0.0  ;;  %v163_v13 = vmul.f32 %v666_v21, %v77_v55 }
  0x3d   :  { %v246_v1 = vadd.f32 %v651_v15, %v160_v58  ;;  %v247_v2 = vadd.f32 %v653_v16, %v161_v59  ;;  %v308_v14 = vmax.f32 %v244_v61, 0.0  ;;  %v309_v3 = vmax.f32 %v245_v62, 0.0 }
  0x3e   :  { %533 = vst [vmem:[%s1067_s3 + $0xd8] sm:$0xff] %v601_v60  ;;  %v248_v4 = vadd.f32 %v668_v22, %v162_v63  ;;  %v602_v5 = vpack.c.bf16 %v307_v0, %v306_v57  ;;  %v249_v20 = vadd.f32 %v670_v23, %v163_v13 }
  0x3f   :  { %v310_v6 = vmax.f32 %v246_v1, 0.0  ;;  %v311_v7 = vmax.f32 %v247_v2, 0.0  ;;  %v603_v8 = vpack.c.bf16 %v309_v3, %v308_v14 }
  0x40   :  { %v312_v9 = vmax.f32 %v248_v4, 0.0  ;;  %534 = vst [vmem:[%s1067_s3 + $0xe0] sm:$0xff] %v602_v5  ;;  %v313_v16 = vmax.f32 %v249_v20, 0.0 }
  0x41   :  { %v604_v15 = vpack.c.bf16 %v311_v7, %v310_v6  ;;  %535 = vst [vmem:[%s1067_s3 + $0xe8] sm:$0xff] %v603_v8 }
  0x42   :  { %v605_v21 = vpack.c.bf16 %v313_v16, %v312_v9 }
  0x43   :  { %536 = vst [vmem:[%s1067_s3 + $0xf0] sm:$0xff] %v604_v15 }
  0x44   :  { %537 = vst [vmem:[%s1067_s3 + $0xf8] sm:$0xff] %v605_v21 }

// kernel: model_forward.40
= control target key start
LH: loop header
LB: loop body
LE: loop exit
PB: predicated region body
PF: predicated region fallthrough
CT: control target
= control target key end

     0   :  { %s391_s0 = inlined_call_operand.vmem [shape: f32[128,128], index: 0, kind: input, shape index: {}]   ;;  %s392_s1 = inlined_call_operand.vmem [shape: f32[1,128], index: 1, kind: input, shape index: {}]   ;;  %s393_s2 = inlined_call_operand.vmem [shape: f32[1,128], index: 2, kind: input, shape index: {}]   ;;  %s394_s3 = inlined_call_operand.vmem [shape: bf16[128,128], index: 3, kind: output, shape index: {}]  }
   0x1   :  { %v14_v0 = vld [vmem:[%s391_s0] sm:$0xff]  ;;  %v15_v1 = vld [vmem:[%s391_s0 + $0x8] sm:$0xff]  ;;  %v16_v6 = vld [vmem:[%s391_s0 + $0x10] sm:$0xff] }
   0x2   :  { %v286_v2 = vld [vmem:[%s392_s1] ss:$0 sm:$0xff]  ;;  %v17_v7 = vld [vmem:[%s391_s0 + $0x18] sm:$0xff]  ;;  %v19_v11 = vld [vmem:[%s391_s0 + $0x28] sm:$0xff] }
   0x3   :  { %v37_v3 = vmul.f32 %v286_v2, %v14_v0  ;;  %v38_v4 = vmul.f32 %v286_v2, %v15_v1  ;;  %v293_v5 = vld [vmem:[%s393_s2] ss:$0 sm:$0xff]  ;;  %v39_v8 = vmul.f32 %v286_v2, %v16_v6  ;;  %v40_v9 = vmul.f32 %v286_v2, %v17_v7  ;;  %v20_v12 = vld [vmem:[%s391_s0 + $0x30] sm:$0xff]  ;;  %v21_v17 = vld [vmem:[%s391_s0 + $0x38] sm:$0xff] }
   0x4   :  { %v18_v10 = vld [vmem:[%s391_s0 + $0x20] sm:$0xff]  ;;  %v42_v16 = vmul.f32 %v286_v2, %v19_v11  ;;  %v43_v20 = vmul.f32 %v286_v2, %v20_v12  ;;  %v44_v21 = vmul.f32 %v286_v2, %v21_v17  ;;  %v23_v27 = vld [vmem:[%s391_s0 + $0x48] sm:$0xff]  ;;  %v24_v32 = vld [vmem:[%s391_s0 + $0x50] sm:$0xff] }
   0x5   :  { %v60_v13 = vadd.f32 %v293_v5, %v37_v3  ;;  %v61_v14 = vadd.f32 %v293_v5, %v38_v4  ;;  %v41_v15 = vmul.f32 %v286_v2, %v18_v10  ;;  %v62_v18 = vadd.f32 %v293_v5, %v39_v8  ;;  %v22_v22 = vld [vmem:[%s391_s0 + $0x40] sm:$0xff]  ;;  %v25_v33 = vld [vmem:[%s391_s0 + $0x58] sm:$0xff]  ;;  %v27_v39 = vld [vmem:[%s391_s0 + $0x68] sm:$0xff] }
   0x6   :  { %v63_v19 = vadd.f32 %v293_v5, %v40_v9  ;;  %v65_v26 = vadd.f32 %v293_v5, %v42_v16  ;;  %v66_v30 = vadd.f32 %v293_v5, %v43_v20  ;;  %v67_v31 = vadd.f32 %v293_v5, %v44_v21  ;;  %v26_v38 = vld [vmem:[%s391_s0 + $0x60] sm:$0xff]  ;;  %v28_v44 = vld [vmem:[%s391_s0 + $0x70] sm:$0xff]  ;;  %v29_v49 = vld [vmem:[%s391_s0 + $0x78] sm:$0xff] }
   0x7   :  { %v76_v23 = vmax.f32 %v60_v13, 0.0  ;;  %v77_v24 = vmax.f32 %v61_v14, 0.0  ;;  %v64_v25 = vadd.f32 %v293_v5, %v41_v15  ;;  %v78_v28 = vmax.f32 %v62_v18, 0.0 }
   0x8   :  { %v79_v29 = vmax.f32 %v63_v19, 0.0  ;;  %v81_v36 = vmax.f32 %v65_v26, 0.0  ;;  %v45_v37 = vmul.f32 %v286_v2, %v22_v22  ;;  %v82_v41 = vmax.f32 %v66_v30, 0.0 }
   0x9   :  { %v213_v34 = vpack.c.bf16 %v77_v24, %v76_v23  ;;  %v80_v35 = vmax.f32 %v64_v25, 0.0  ;;  %v83_v42 = vmax.f32 %v67_v31, 0.0  ;;  %v46_v43 = vmul.f32 %v286_v2, %v23_v27 }
   0xa   :  { %v218_v40 = vpack.c.bf16 %v79_v29, %v78_v28  ;;  %v68_v46 = vadd.f32 %v293_v5, %v45_v37  ;;  %v47_v47 = vmul.f32 %v286_v2, %v24_v32  ;;  %v48_v48 = vmul.f32 %v286_v2, %v25_v33 }
   0xb   :  { %214 = vst [vmem:[%s394_s3] sm:$0xff] %v213_v34   ;;  %v223_v45 = vpack.c.bf16 %v81_v36, %v80_v35  ;;  %v228_v50 = vpack.c.bf16 %v83_v42, %v82_v41  ;;  %v69_v51 = vadd.f32 %v293_v5, %v46_v43  ;;  %v49_v52 = vmul.f32 %v286_v2, %v26_v38 }
   0xc   :  { %250 = vst [vmem:[%s394_s3 + $0x8] sm:$0xff] %v218_v40   ;;  %v50_v53 = vmul.f32 %v286_v2, %v27_v39  ;;  %v84_v54 = vmax.f32 %v68_v46, 0.0  ;;  %v70_v55 = vadd.f32 %v293_v5, %v47_v47  ;;  %v71_v56 = vadd.f32 %v293_v5, %v48_v48 }
   0xd   :  { %251 = vst [vmem:[%s394_s3 + $0x10] sm:$0xff] %v223_v45   ;;  %v51_v57 = vmul.f32 %v286_v2, %v28_v44  ;;  %252 = vst [vmem:[%s394_s3 + $0x18] sm:$0xff] %v228_v50   ;;  %v85_v58 = vmax.f32 %v69_v51, 0.0  ;;  %v72_v59 = vadd.f32 %v293_v5, %v49_v52  ;;  %v52_v61 = vmul.f32 %v286_v2, %v29_v49 }
   0xe   :  { %v73_v60 = vadd.f32 %v293_v5, %v50_v53  ;;  %v86_v62 = vmax.f32 %v70_v55, 0.0  ;;  %v87_v63 = vmax.f32 %v71_v56, 0.0 }
   0xf   :  { %v74_v0 = vadd.f32 %v293_v5, %v51_v57  ;;  %v233_v1 = vpack.c.bf16 %v85_v58, %v84_v54  ;;  %v88_v3 = vmax.f32 %v72_v59, 0.0  ;;  %v75_v6 = vadd.f32 %v293_v5, %v52_v61 }
  0x10   :  { %v89_v4 = vmax.f32 %v73_v60, 0.0  ;;  %v238_v7 = vpack.c.bf16 %v87_v63, %v86_v62 }
  0x11   :  { %v90_v8 = vmax.f32 %v74_v0, 0.0  ;;  %253 = vst [vmem:[%s394_s3 + $0x20] sm:$0xff] %v233_v1   ;;  %v91_v10 = vmax.f32 %v75_v6, 0.0 }
  0x12   :  { %v243_v9 = vpack.c.bf16 %v89_v4, %v88_v3  ;;  %254 = vst [vmem:[%s394_s3 + $0x28] sm:$0xff] %v238_v7  }
  0x13   :  { %v248_v2 = vpack.c.bf16 %v91_v10, %v90_v8 }
  0x14   :  { %255 = vst [vmem:[%s394_s3 + $0x30] sm:$0xff] %v243_v9  }
  0x15   :  { %256 = vst [vmem:[%s394_s3 + $0x38] sm:$0xff] %v248_v2  }

// kernel: model_forward.39
= control target key start
LH: loop header
LB: loop body
LE: loop exit
PB: predicated region body
PF: predicated region fallthrough
CT: control target
= control target key end

     0   :  { %s2853_s1 = inlined_call_operand.vmem [shape: bf16[1152,128], index: 1, kind: input, shape index: {}]   ;;  %s2854_s0 = inlined_call_operand.vmem [shape: bf16[128,1152], index: 0, kind: input, shape index: {}]   ;;  %s2855_s2 = inlined_call_operand.vmem [shape: f32[128,128], index: 2, kind: output, shape index: {0}]   ;;  %s2856_s3 = inlined_call_operand.vmem [shape: f32[1,128], index: 3, kind: output, shape index: {1}]   ;;  %s2857_s4 = inlined_call_operand.vmem [shape: f32[1,128], index: 4, kind: output, shape index: {2}]  }
   0x1   :  { %v2076_v0 = vld [vmem:[%s2853_s1 + $0x40] sm:$0xff]   ;;  %v2080_v4 = vld [vmem:[%s2853_s1 + $0x48] sm:$0xff]   ;;  %v2084_v8 = vld [vmem:[%s2853_s1 + $0x50] sm:$0xff]  }
   0x2   :  { %v2077_v1 = vld [vmem:[%s2853_s1 + $0xc0] sm:$0xff]   ;;  %1756 = vmatprep.subr.bf16.mxu0 %v2076_v0  ;;  %v2081_v5 = vld [vmem:[%s2853_s1 + $0xc8] sm:$0xff]   ;;  %v2085_v9 = vld [vmem:[%s2853_s1 + $0xd0] sm:$0xff]  }
   0x3   :  { %v2078_v2 = vld [vmem:[%s2853_s1] sm:$0xff]   ;;  %1820 = vmatprep.subr.bf16.mxu1 %v2077_v1  ;;  %v2082_v6 = vld [vmem:[%s2853_s1 + $0x8] sm:$0xff]   ;;  %v2086_v10 = vld [vmem:[%s2853_s1 + $0x10] sm:$0xff]  }
   0x4   :  { %v2079_v3 = vld [vmem:[%s2853_s1 + $0x80] sm:$0xff]   ;;  %1757 = vmatpush3.bf16.msra.mxu0 %v2078_v2  ;;  %v2083_v7 = vld [vmem:[%s2853_s1 + $0x88] sm:$0xff]   ;;  %v2087_v11 = vld [vmem:[%s2853_s1 + $0x90] sm:$0xff]  }
   0x5   :  { %1821 = vmatpush3.bf16.msra.mxu1 %v2079_v3  ;;  %1758 = vmatprep.subr.bf16.mxu0 %v2080_v4  ;;  %v2088_v12 = vld [vmem:[%s2853_s1 + $0x58] sm:$0xff]   ;;  %v2092_v16 = vld [vmem:[%s2853_s1 + $0x60] sm:$0xff]   ;;  %v2096_v20 = vld [vmem:[%s2853_s1 + $0x68] sm:$0xff]  }
   0x6   :  { %1822 = vmatprep.subr.bf16.mxu1 %v2081_v5  ;;  %v2089_v13 = vld [vmem:[%s2853_s1 + $0xd8] sm:$0xff]   ;;  %v2093_v17 = vld [vmem:[%s2853_s1 + $0xe0] sm:$0xff]   ;;  %v2097_v21 = vld [vmem:[%s2853_s1 + $0xe8] sm:$0xff]  }
   0x7   :  { %v2090_v14 = vld [vmem:[%s2853_s1 + $0x18] sm:$0xff]   ;;  %v2094_v18 = vld [vmem:[%s2853_s1 + $0x20] sm:$0xff]   ;;  %v2098_v22 = vld [vmem:[%s2853_s1 + $0x28] sm:$0xff]  }
   0x8   :  { %1759 = vmatpush3.bf16.msra.mxu0 %v2082_v6  ;;  %v2091_v15 = vld [vmem:[%s2853_s1 + $0x98] sm:$0xff]   ;;  %v2095_v19 = vld [vmem:[%s2853_s1 + $0xa0] sm:$0xff]   ;;  %v2099_v23 = vld [vmem:[%s2853_s1 + $0xa8] sm:$0xff]  }
   0x9   :  { %1823 = vmatpush3.bf16.msra.mxu1 %v2083_v7  ;;  %1760 = vmatprep.subr.bf16.mxu0 %v2084_v8  ;;  %v2100_v24 = vld [vmem:[%s2853_s1 + $0x70] sm:$0xff]   ;;  %v2104_v28 = vld [vmem:[%s2853_s1 + $0x78] sm:$0xff]   ;;  %v2108_v32 = vld [vmem:[%s2854_s0] ss:$36 sps:$4 sm:$0xff]  }
   0xa   :  { %1824 = vmatprep.subr.bf16.mxu1 %v2085_v9  ;;  %v2101_v25 = vld [vmem:[%s2853_s1 + $0xf0] sm:$0xff]   ;;  %v2105_v29 = vld [vmem:[%s2853_s1 + $0xf8] sm:$0xff]   ;;  %v2110_v33 = vld [vmem:[%s2854_s0 + $0x4] ss:$36 sps:$4 sm:$0xff]  }
   0xb   :  { %v2102_v26 = vld [vmem:[%s2853_s1 + $0x30] sm:$0xff]   ;;  %v2106_v30 = vld [vmem:[%s2853_s1 + $0x38] sm:$0xff]   ;;  %v2111_v34 = vld [vmem:[%s2854_s0 + $0x8] ss:$36 sps:$4 sm:$0xff]   ;;  %1071 = vmatprep.mubr.bf16.mxu0 %v2110_v33 }
   0xc   :  { %1761 = vmatpush3.bf16.msra.mxu0 %v2086_v10  ;;  %v2103_v27 = vld [vmem:[%s2853_s1 + $0xb0] sm:$0xff]   ;;  %v2107_v31 = vld [vmem:[%s2853_s1 + $0xb8] sm:$0xff]   ;;  %v2114_v36 = vld [vmem:[%s2853_s1 + $0x140] sm:$0xff]  }
   0xd   :  { %1825 = vmatpush3.bf16.msra.mxu1 %v2087_v11  ;;  %1762 = vmatprep.subr.bf16.mxu0 %v2088_v12  ;;  %v2113_v35 = vld [vmem:[%s2854_s0 + $0xc] ss:$36 sps:$4 sm:$0xff]   ;;  %v2115_v37 = vld [vmem:[%s2853_s1 + $0x100] sm:$0xff]   ;;  %v2118_v39 = vld [vmem:[%s2854_s0 + $0x54] ss:$36 sps:$4 sm:$0xff]  }
   0xe   :  { %1826 = vmatprep.subr.bf16.mxu1 %v2089_v13  ;;  %1168 = vmatprep.mubr.bf16.mxu1 %v2113_v35  ;;  %v2116_v38 = vld [vmem:[%s2854_s0 + $0x4c] ss:$36 sps:$4 sm:$0xff]   ;;  %v2124_v44 = vld [vmem:[%s2854_s0 + $0x94] ss:$36 sps:$4 sm:$0xff]   ;;  %v2126_v45 = vld [vmem:[%s2854_s0 + $0x9c] ss:$36 sps:$4 sm:$0xff]  }
   0xf   :  { %v2120_v40 = vld [vmem:[%s2854_s0 + $0x48] ss:$36 sps:$4 sm:$0xff]   ;;  %v2121_v41 = vld [vmem:[%s2854_s0 + $0x50] ss:$36 sps:$4 sm:$0xff]   ;;  %v2131_v47 = vld [vmem:[%s2853_s1 + $0x1c0] sm:$0xff]  }
  0x10   :  { %1763 = vmatpush3.bf16.msra.mxu0 %v2090_v14  ;;  %v2122_v42 = vld [vmem:[%s2853_s1 + $0x148] sm:$0xff]   ;;  %v2130_v46 = vld [vmem:[%s2853_s1 + $0x150] sm:$0xff]   ;;  %v2133_v50 = vld [vmem:[%s2853_s1 + $0x180] sm:$0xff]  }
  0x11   :  { %1827 = vmatpush3.bf16.msra.mxu1 %v2091_v15  ;;  %1764 = vmatprep.subr.bf16.mxu0 %v2092_v16  ;;  %v2123_v43 = vld [vmem:[%s2853_s1 + $0x108] sm:$0xff]   ;;  %v2128_v48 = vld [vmem:[%s2854_s0 + $0x90] ss:$36 sps:$4 sm:$0xff]   ;;  %v2129_v51 = vld [vmem:[%s2854_s0 + $0x98] ss:$36 sps:$4 sm:$0xff]  }
  0x12   :  { %1828 = vmatprep.subr.bf16.mxu1 %v2093_v17  ;;  %v2132_v49 = vld [vmem:[%s2853_s1 + $0x110] sm:$0xff]   ;;  %v2134_v52 = vld [vmem:[%s2854_s0 + $0xdc] ss:$36 sps:$4 sm:$0xff]   ;;  %v2136_v53 = vld [vmem:[%s2854_s0 + $0xe4] ss:$36 sps:$4 sm:$0xff]  }
  0x13   :  { %v2140_v54 = vld [vmem:[%s2853_s1 + $0x158] sm:$0xff]   ;;  %v2141_v55 = vld [vmem:[%s2853_s1 + $0x1c8] sm:$0xff]   ;;  %v2139_v59 = vld [vmem:[%s2854_s0 + $0xe0] ss:$36 sps:$4 sm:$0xff]  }
  0x14   :  { %1765 = vmatpush3.bf16.msra.mxu0 %v2094_v18  ;;  %v2142_v56 = vld [vmem:[%s2853_s1 + $0x118] sm:$0xff]   ;;  %v2143_v57 = vld [vmem:[%s2853_s1 + $0x188] sm:$0xff]   ;;  %v2150_v62 = vld [vmem:[%s2853_s1 + $0x160] sm:$0xff]  }
  0x15   :  { %1829 = vmatpush3.bf16.msra.mxu1 %v2095_v19  ;;  %1766 = vmatprep.subr.bf16.mxu0 %v2096_v20  ;;  %v2138_v58 = vld [vmem:[%s2854_s0 + $0xd8] ss:$36 sps:$4 sm:$0xff]   ;;  %v2144_v60 = vld [vmem:[%s2854_s0 + $0x124] ss:$36 sps:$4 sm:$0xff]   ;;  %v2146_v61 = vld [vmem:[%s2854_s0 + $0x12c] ss:$36 sps:$4 sm:$0xff]  }
  0x16   :  { %1830 = vmatprep.subr.bf16.mxu1 %v2097_v21  ;;  %v2151_v63 = vld [vmem:[%s2853_s1 + $0x1d0] sm:$0xff]   ;;  %v2152_v0 = vld [vmem:[%s2853_s1 + $0x120] sm:$0xff]   ;;  %v2149_v3 = vld [vmem:[%s2854_s0 + $0x128] ss:$36 sps:$4 sm:$0xff]  }
  0x17   :  { %v2153_v1 = vld [vmem:[%s2853_s1 + $0x190] sm:$0xff]   ;;  %v2148_v2 = vld [vmem:[%s2854_s0 + $0x120] ss:$36 sps:$4 sm:$0xff]   ;;  %v2160_v6 = vld [vmem:[%s2853_s1 + $0x168] sm:$0xff]  }
  0x18   :  { %1767 = vmatpush3.bf16.msra.mxu0 %v2098_v22  ;;  %v2154_v4 = vld [vmem:[%s2854_s0 + $0x16c] ss:$36 sps:$4 sm:$0xff]   ;;  %v2156_v5 = vld [vmem:[%s2854_s0 + $0x174] ss:$36 sps:$4 sm:$0xff]   ;;  %v2166_v14 = vld [vmem:[%s2854_s0 + $0x1bc] ss:$36 sps:$4 sm:$0xff]  }
  0x19   :  { %1831 = vmatpush3.bf16.msra.mxu1 %v2099_v23  ;;  %1768 = vmatprep.subr.bf16.mxu0 %v2100_v24  ;;  %v2161_v7 = vld [vmem:[%s2853_s1 + $0x1d8] sm:$0xff]   ;;  %v2162_v8 = vld [vmem:[%s2853_s1 + $0x128] sm:$0xff]   ;;  %v2159_v11 = vld [vmem:[%s2854_s0 + $0x170] ss:$36 sps:$4 sm:$0xff]  }
  0x1a   :  { %1832 = vmatprep.subr.bf16.mxu1 %v2101_v25  ;;  %v2163_v9 = vld [vmem:[%s2853_s1 + $0x198] sm:$0xff]   ;;  %v2158_v10 = vld [vmem:[%s2854_s0 + $0x168] ss:$36 sps:$4 sm:$0xff]   ;;  %v2170_v13 = vld [vmem:[%s2853_s1 + $0x170] sm:$0xff]  }
  0x1b   :  { %v2164_v12 = vld [vmem:[%s2854_s0 + $0x1b4] ss:$36 sps:$4 sm:$0xff]   ;;  %v2171_v15 = vld [vmem:[%s2853_s1 + $0x1e0] sm:$0xff]   ;;  %v2174_v18 = vld [vmem:[%s2853_s1 + $0x1e8] sm:$0xff]  }
  0x1c   :  { %1769 = vmatpush3.bf16.msra.mxu0 %v2102_v26  ;;  %v2172_v16 = vld [vmem:[%s2853_s1 + $0x130] sm:$0xff]   ;;  %v2173_v17 = vld [vmem:[%s2853_s1 + $0x1a0] sm:$0xff]   ;;  %v2175_v19 = vld [vmem:[%s2853_s1 + $0x1a8] sm:$0xff]  }
  0x1d   :  { %1833 = vmatpush3.bf16.msra.mxu1 %v2103_v27  ;;  %1770 = vmatprep.subr.bf16.mxu0 %v2104_v28  ;;  %v2168_v20 = vld [vmem:[%s2854_s0 + $0x1b0] ss:$36 sps:$4 sm:$0xff]   ;;  %v2169_v21 = vld [vmem:[%s2854_s0 + $0x1b8] ss:$36 sps:$4 sm:$0xff]   ;;  %v2178_v23 = vld [vmem:[%s2854_s0 + $0x204] ss:$36 sps:$4 sm:$0xff]  }
  0x1e   :  { %1834 = vmatprep.subr.bf16.mxu1 %v2105_v29  ;;  %v2176_v22 = vld [vmem:[%s2854_s0 + $0x1fc] ss:$36 sps:$4 sm:$0xff]   ;;  %v2183_v25 = vld [vmem:[%s2853_s1 + $0x1f0] sm:$0xff]  }
  0x1f   :  { %v2182_v24 = vld [vmem:[%s2853_s1 + $0x178] sm:$0xff]   ;;  %v2185_v27 = vld [vmem:[%s2853_s1 + $0x1b0] sm:$0xff]  }
  0x20   :  { %1771 = vmatpush3.bf16.msra.mxu0 %v2106_v30  ;;  %v2184_v26 = vld [vmem:[%s2853_s1 + $0x138] sm:$0xff]   ;;  %v2181_v30 = vld [vmem:[%s2854_s0 + $0x200] ss:$36 sps:$4 sm:$0xff]   ;;  %v2188_v35 = vld [vmem:[%s2854_s0 + $0x10] ss:$36 sps:$4 sm:$0xff]  }
  0x21   :  { %1835 = vmatpush3.bf16.msra.mxu1 %v2107_v31  ;;  %1884 = vmatprep.subr.bf16.mxu0 %v2114_v36  ;;  %v2186_v28 = vld [vmem:[%s2853_s1 + $0x1f8] sm:$0xff]  }
  0x22   :  { %1948 = vmatprep.subr.bf16.mxu1 %v2131_v47  ;;  %v2180_v29 = vld [vmem:[%s2854_s0 + $0x1f8] ss:$36 sps:$4 sm:$0xff]   ;;  %v2206_v47 = vld [vmem:[%s2854_s0 + $0xa0] ss:$36 sps:$4 sm:$0xff]  }
  0x23   :  { %1072 = vmatmul.mubr.bf16.vlgmr.msra.gmra.mrb[0].mxu0 %v2108_v32  ;;  %v2187_v31 = vld [vmem:[%s2853_s1 + $0x1b8] sm:$0xff]   ;;  %v2194_v32 = vld [vmem:[%s2853_s1 + $0x200] sm:$0xff]  }
  0x24   :  { %1169 = vmatmul.mubr.bf16.vlgmr.msra.gmra.mrb[0].mxu1 %v2111_v34  ;;  %1885 = vmatpush3.bf16.msra.mxu0 %v2115_v37  ;;  %v2190_v33 = vld [vmem:[%s2854_s0 + $0x14] ss:$36 sps:$4 sm:$0xff]   ;;  %v2193_v34 = vld [vmem:[%s2854_s0 + $0x1c] ss:$36 sps:$4 sm:$0xff]  }
  0x25   :  { %1079 = vmatprep.mubr.bf16.mxu0 %v2116_v38  ;;  %1176 = vmatprep.mubr.bf16.mxu1 %v2118_v39  ;;  %v2191_v36 = vld [vmem:[%s2854_s0 + $0x18] ss:$36 sps:$4 sm:$0xff]   ;;  %v2197_v38 = vld [vmem:[%s2854_s0 + $0x64] ss:$36 sps:$4 sm:$0xff]  }
  0x26   :  { %1886 = vmatprep.subr.bf16.mxu0 %v2122_v42  ;;  %1949 = vmatpush3.bf16.msra.mxu1 %v2133_v50  ;;  %v2195_v37 = vld [vmem:[%s2854_s0 + $0x5c] ss:$36 sps:$4 sm:$0xff]   ;;  %v2201_v39 = vld [vmem:[%s2853_s1 + $0x208] sm:$0xff]   ;;  %v2211_v50 = vld [vmem:[%s2854_s0 + $0xf4] ss:$36 sps:$4 sm:$0xff]  }
  0x27   :  { %1950 = vmatprep.subr.bf16.mxu1 %v2141_v55  ;;  %v2200_v42 = vld [vmem:[%s2854_s0 + $0x60] ss:$36 sps:$4 sm:$0xff]   ;;  %v2216_v55 = vld [vmem:[%s2854_s0 + $0x134] ss:$36 sps:$4 sm:$0xff]  }
  0x28   :  { %1887 = vmatpush3.bf16.msra.mxu0 %v2123_v43  ;;  %v2202_v43 = vld [vmem:[%s2854_s0 + $0xa4] ss:$36 sps:$4 sm:$0xff]  }
  0x29   :  { %1888 = vmatprep.subr.bf16.mxu0 %v2130_v46  ;;  %v2222_v46 = vld [vmem:[%s2853_s1 + $0x220] sm:$0xff]  }
  0x2a   :  { %1951 = vmatpush3.bf16.msra.mxu1 %v2143_v57  ;;  %v2243_v57 = vld [vmem:[%s2853_s1 + $0x238] sm:$0xff]  }
  0x2b   :  { %1080 = vmatmul.mubr.bf16.gmra.mrb[4].mxu0 %v2120_v40  ;;  %1952 = vmatprep.subr.bf16.mxu1 %v2151_v63  ;;  %v2208_v40 = vld [vmem:[%s2853_s1 + $0x210] sm:$0xff]   ;;  %v2228_v63 = vld [vmem:[%s2854_s0 + $0x180] ss:$36 sps:$4 sm:$0xff]  }
  0x2c   :  { %1177 = vmatmul.mubr.bf16.gmra.mrb[4].mxu1 %v2121_v41  ;;  %1087 = vmatprep.mubr.bf16.mxu0 %v2124_v44  ;;  %v2199_v41 = vld [vmem:[%s2854_s0 + $0x58] ss:$36 sps:$4 sm:$0xff]   ;;  %v2204_v44 = vld [vmem:[%s2854_s0 + $0xac] ss:$36 sps:$4 sm:$0xff]  }
  0x2d   :  { %1184 = vmatprep.mubr.bf16.mxu1 %v2126_v45  ;;  %1889 = vmatpush3.bf16.msra.mxu0 %v2132_v49  ;;  %v2215_v45 = vld [vmem:[%s2853_s1 + $0x218] sm:$0xff]   ;;  %v2209_v49 = vld [vmem:[%s2854_s0 + $0xec] ss:$36 sps:$4 sm:$0xff]  }
  0x2e   :  { %1890 = vmatprep.subr.bf16.mxu0 %v2140_v54  ;;  %1953 = vmatpush3.bf16.msra.mxu1 %v2153_v1  ;;  %v2214_v54 = vld [vmem:[%s2854_s0 + $0xf0] ss:$36 sps:$4 sm:$0xff]  }
  0x2f   :  { %1954 = vmatprep.subr.bf16.mxu1 %v2161_v7  ;;  %v2232_v1 = vld [vmem:[%s2854_s0 + $0x1cc] ss:$36 sps:$4 sm:$0xff]  }
  0x30   :  { %v2242_v7 = vld [vmem:[%s2854_s0 + $0x210] ss:$36 sps:$4 sm:$0xff]  }
  0x31   :  { %1891 = vmatpush3.bf16.msra.mxu0 %v2142_v56  ;;  %v2218_v56 = vld [vmem:[%s2854_s0 + $0x13c] ss:$36 sps:$4 sm:$0xff]  }
  0x32   :  { %1892 = vmatprep.subr.bf16.mxu0 %v2150_v62  ;;  %1955 = vmatpush3.bf16.msra.mxu1 %v2163_v9  ;;  %v2227_v62 = vld [vmem:[%s2854_s0 + $0x178] ss:$36 sps:$4 sm:$0xff]   ;;  %v2245_v9 = vld [vmem:[%s2854_s0 + $0x140] ss:$36 sps:$4 sm:$0xff]  }
  0x33   :  { %1088 = vmatmul.mubr.bf16.gmra.mrb[8].mxu0 %v2128_v48  ;;  %1956 = vmatprep.subr.bf16.mxu1 %v2171_v15  ;;  %v2207_v48 = vld [vmem:[%s2854_s0 + $0xa8] ss:$36 sps:$4 sm:$0xff]   ;;  %v2251_v15 = vld [vmem:[%s2854_s0 + $0x218] ss:$36 sps:$4 sm:$0xff]  }
  0x34   :  { %1185 = vmatmul.mubr.bf16.gmra.mrb[8].mxu1 %v2129_v51  ;;  %1095 = vmatprep.mubr.bf16.mxu0 %v2134_v52  ;;  %v2229_v51 = vld [vmem:[%s2853_s1 + $0x228] sm:$0xff]  }
  0x35   :  { %1192 = vmatprep.mubr.bf16.mxu1 %v2136_v53  ;;  %1893 = vmatpush3.bf16.msra.mxu0 %v2152_v0  ;;  %v2213_v52 = vld [vmem:[%s2854_s0 + $0xe8] ss:$36 sps:$4 sm:$0xff]   ;;  %v2236_v53 = vld [vmem:[%s2853_s1 + $0x230] sm:$0xff]  }
  0x36   :  { %1894 = vmatprep.subr.bf16.mxu0 %v2160_v6  ;;  %1957 = vmatpush3.bf16.msra.mxu1 %v2173_v17  ;;  %v2230_v0 = vld [vmem:[%s2854_s0 + $0x1c4] ss:$36 sps:$4 sm:$0xff]  }
  0x37   :  { %1958 = vmatprep.subr.bf16.mxu1 %v2174_v18  ;;  %v2241_v6 = vld [vmem:[%s2854_s0 + $0x208] ss:$36 sps:$4 sm:$0xff]  }
  0x39   :  { %1895 = vmatpush3.bf16.msra.mxu0 %v2162_v8  ;;  %v2244_v8 = vld [vmem:[%s2854_s0 + $0x20] ss:$36 sps:$4 sm:$0xff]  }
  0x3a   :  { %1896 = vmatprep.subr.bf16.mxu0 %v2170_v13  ;;  %1959 = vmatpush3.bf16.msra.mxu1 %v2175_v19  ;;  %v2249_v13 = vld [vmem:[%s2854_s0 + $0x1d0] ss:$36 sps:$4 sm:$0xff]  }
  0x3b   :  { %1096 = vmatmul.mubr.bf16.gmra.mrb[12].mxu0 %v2138_v58  ;;  %1960 = vmatprep.subr.bf16.mxu1 %v2183_v25  ;;  %v2220_v58 = vld [vmem:[%s2854_s0 + $0x130] ss:$36 sps:$4 sm:$0xff]  }
  0x3c   :  { %1193 = vmatmul.mubr.bf16.gmra.mrb[12].mxu1 %v2139_v59  ;;  %1103 = vmatprep.mubr.bf16.mxu0 %v2144_v60  ;;  %v2221_v59 = vld [vmem:[%s2854_s0 + $0x138] ss:$36 sps:$4 sm:$0xff]  }
  0x3d   :  { %1200 = vmatprep.mubr.bf16.mxu1 %v2146_v61  ;;  %1897 = vmatpush3.bf16.msra.mxu0 %v2172_v16  ;;  %v2223_v60 = vld [vmem:[%s2854_s0 + $0x17c] ss:$36 sps:$4 sm:$0xff]   ;;  %v2225_v61 = vld [vmem:[%s2854_s0 + $0x184] ss:$36 sps:$4 sm:$0xff]  }
  0x3e   :  { %1898 = vmatprep.subr.bf16.mxu0 %v2182_v24  ;;  %1961 = vmatpush3.bf16.msra.mxu1 %v2185_v27 }
  0x3f   :  { %1962 = vmatprep.subr.bf16.mxu1 %v2186_v28 }
  0x41   :  { %1899 = vmatpush3.bf16.msra.mxu0 %v2184_v26 }
  0x42   :  { %2028 = vmatprep.subr.bf16.mxu0 %v2194_v32  ;;  %1963 = vmatpush3.bf16.msra.mxu1 %v2187_v31 }
  0x43   :  { %1104 = vmatmul.mubr.bf16.gmra.mrb[16].mxu0 %v2148_v2  ;;  %2060 = vmatprep.subr.bf16.mxu1 %v2194_v32  ;;  %v2234_v2 = vld [vmem:[%s2854_s0 + $0x1c0] ss:$36 sps:$4 sm:$0xff]  }
  0x44   :  { %1201 = vmatmul.mubr.bf16.gmra.mrb[16].mxu1 %v2149_v3  ;;  %1111 = vmatprep.mubr.bf16.mxu0 %v2154_v4  ;;  %v2235_v3 = vld [vmem:[%s2854_s0 + $0x1c8] ss:$36 sps:$4 sm:$0xff]  }
  0x45   :  { %1208 = vmatprep.mubr.bf16.mxu1 %v2156_v5  ;;  %v2237_v4 = vld [vmem:[%s2854_s0 + $0x20c] ss:$36 sps:$4 sm:$0xff]   ;;  %v2239_v5 = vld [vmem:[%s2854_s0 + $0x214] ss:$36 sps:$4 sm:$0xff]  }
  0x4b   :  { %1112 = vmatmul.mubr.bf16.gmra.mrb[20].mxu0 %v2158_v10  ;;  %v2246_v10 = vld [vmem:[%s2854_s0 + $0x68] ss:$36 sps:$4 sm:$0xff]  }
  0x4c   :  { %1209 = vmatmul.mubr.bf16.gmra.mrb[20].mxu1 %v2159_v11  ;;  %1119 = vmatprep.mubr.bf16.mxu0 %v2164_v12  ;;  %v2247_v11 = vld [vmem:[%s2854_s0 + $0x188] ss:$36 sps:$4 sm:$0xff]   ;;  %v2248_v12 = vld [vmem:[%s2854_s0 + $0xb0] ss:$36 sps:$4 sm:$0xff]  }
  0x4d   :  { %1216 = vmatprep.mubr.bf16.mxu1 %v2166_v14  ;;  %v2250_v14 = vld [vmem:[%s2854_s0 + $0xf8] ss:$36 sps:$4 sm:$0xff]  }
  0x53   :  { %1120 = vmatmul.mubr.bf16.gmra.mrb[24].mxu0 %v2168_v20 }
  0x54   :  { %1217 = vmatmul.mubr.bf16.gmra.mrb[24].mxu1 %v2169_v21  ;;  %1127 = vmatprep.mubr.bf16.mxu0 %v2176_v22 }
  0x55   :  { %1224 = vmatprep.mubr.bf16.mxu1 %v2178_v23 }
  0x5b   :  { %1128 = vmatmul.mubr.bf16.gmra.mrb[28].mxu0 %v2180_v29 }
  0x5c   :  { %1225 = vmatmul.mubr.bf16.gmra.mrb[28].mxu1 %v2181_v30  ;;  %1265 = vmatprep.mubr.bf16.mxu0 %v2190_v33 }
  0x5d   :  { %1362 = vmatprep.mubr.bf16.mxu1 %v2193_v34 }
  0x63   :  { %1266 = vmatmul.mubr.bf16.vlgmr.msra.gmra.mrb[32].mxu0 %v2188_v35 }
  0x64   :  { %1363 = vmatmul.mubr.bf16.vlgmr.msra.gmra.mrb[32].mxu1 %v2191_v36  ;;  %2029 = vmatpush3.bf16.msra.mxu0 %v2194_v32 }
  0x65   :  { %1273 = vmatprep.mubr.bf16.mxu0 %v2195_v37  ;;  %1370 = vmatprep.mubr.bf16.mxu1 %v2197_v38 }
  0x66   :  { %2030 = vmatprep.subr.bf16.mxu0 %v2201_v39  ;;  %2068 = vmatpush3.bf16.msra.mxu1 %v2194_v32 }
  0x67   :  { %2061 = vmatprep.subr.bf16.mxu1 %v2201_v39 }
  0x68   :  { %2031 = vmatpush3.bf16.msra.mxu0 %v2201_v39 }
  0x69   :  { %2032 = vmatprep.subr.bf16.mxu0 %v2208_v40 }
  0x6a   :  { %2069 = vmatpush3.bf16.msra.mxu1 %v2201_v39 }
  0x6b   :  { %1274 = vmatmul.mubr.bf16.gmra.mrb[36].mxu0 %v2199_v41  ;;  %2062 = vmatprep.subr.bf16.mxu1 %v2208_v40 }
  0x6c   :  { %1371 = vmatmul.mubr.bf16.gmra.mrb[36].mxu1 %v2200_v42  ;;  %1281 = vmatprep.mubr.bf16.mxu0 %v2202_v43 }
  0x6d   :  { %1378 = vmatprep.mubr.bf16.mxu1 %v2204_v44  ;;  %2033 = vmatpush3.bf16.msra.mxu0 %v2208_v40 }
  0x6e   :  { %2034 = vmatprep.subr.bf16.mxu0 %v2215_v45  ;;  %2070 = vmatpush3.bf16.msra.mxu1 %v2208_v40 }
  0x6f   :  { %2063 = vmatprep.subr.bf16.mxu1 %v2215_v45 }
  0x71   :  { %2035 = vmatpush3.bf16.msra.mxu0 %v2215_v45 }
  0x72   :  { %2036 = vmatprep.subr.bf16.mxu0 %v2222_v46  ;;  %2071 = vmatpush3.bf16.msra.mxu1 %v2215_v45 }
  0x73   :  { %1282 = vmatmul.mubr.bf16.gmra.mrb[40].mxu0 %v2206_v47  ;;  %2064 = vmatprep.subr.bf16.mxu1 %v2222_v46 }
  0x74   :  { %1379 = vmatmul.mubr.bf16.gmra.mrb[40].mxu1 %v2207_v48  ;;  %1289 = vmatprep.mubr.bf16.mxu0 %v2209_v49 }
  0x75   :  { %1386 = vmatprep.mubr.bf16.mxu1 %v2211_v50  ;;  %2037 = vmatpush3.bf16.msra.mxu0 %v2222_v46 }
  0x76   :  { %2038 = vmatprep.subr.bf16.mxu0 %v2229_v51  ;;  %2072 = vmatpush3.bf16.msra.mxu1 %v2222_v46 }
  0x77   :  { %2065 = vmatprep.subr.bf16.mxu1 %v2229_v51 }
  0x79   :  { %2039 = vmatpush3.bf16.msra.mxu0 %v2229_v51 }
  0x7a   :  { %2040 = vmatprep.subr.bf16.mxu0 %v2236_v53  ;;  %2073 = vmatpush3.bf16.msra.mxu1 %v2229_v51 }
  0x7b   :  { %1290 = vmatmul.mubr.bf16.gmra.mrb[44].mxu0 %v2213_v52  ;;  %2066 = vmatprep.subr.bf16.mxu1 %v2236_v53 }
  0x7c   :  { %1387 = vmatmul.mubr.bf16.gmra.mrb[44].mxu1 %v2214_v54  ;;  %1297 = vmatprep.mubr.bf16.mxu0 %v2216_v55 }
  0x7d   :  { %1394 = vmatprep.mubr.bf16.mxu1 %v2218_v56  ;;  %2041 = vmatpush3.bf16.msra.mxu0 %v2236_v53 }
  0x7e   :  { %2042 = vmatprep.subr.bf16.mxu0 %v2243_v57  ;;  %2074 = vmatpush3.bf16.msra.mxu1 %v2236_v53 }
  0x7f   :  { %2067 = vmatprep.subr.bf16.mxu1 %v2243_v57 }
  0x81   :  { %2043 = vmatpush3.bf16.msra.mxu0 %v2243_v57 }
  0x82   :  { %2075 = vmatpush3.bf16.msra.mxu1 %v2243_v57 }
  0x83   :  { %1298 = vmatmul.mubr.bf16.gmra.mrb[48].mxu0 %v2220_v58 }
  0x84   :  { %1395 = vmatmul.mubr.bf16.gmra.mrb[48].mxu1 %v2221_v59  ;;  %1305 = vmatprep.mubr.bf16.mxu0 %v2223_v60 }
  0x85   :  { %1402 = vmatprep.mubr.bf16.mxu1 %v2225_v61 }
  0x8b   :  { %1306 = vmatmul.mubr.bf16.gmra.mrb[52].mxu0 %v2227_v62 }
  0x8c   :  { %1403 = vmatmul.mubr.bf16.gmra.mrb[52].mxu1 %v2228_v63  ;;  %1313 = vmatprep.mubr.bf16.mxu0 %v2230_v0 }
  0x8d   :  { %1410 = vmatprep.mubr.bf16.mxu1 %v2232_v1 }
  0x93   :  { %1314 = vmatmul.mubr.bf16.gmra.mrb[56].mxu0 %v2234_v2 }
  0x94   :  { %1411 = vmatmul.mubr.bf16.gmra.mrb[56].mxu1 %v2235_v3  ;;  %1321 = vmatprep.mubr.bf16.mxu0 %v2237_v4 }
  0x95   :  { %1418 = vmatprep.mubr.bf16.mxu1 %v2239_v5 }
  0x9b   :  { %1322 = vmatmul.mubr.bf16.gmra.mrb[60].mxu0 %v2241_v6 }
  0x9c   :  { %1419 = vmatmul.mubr.bf16.gmra.mrb[60].mxu1 %v2242_v7  ;;  %2044 = vmatprep.mubr.bf16.mxu0 %v2244_v8 }
  0x9d   :  { %2052 = vmatprep.mubr.bf16.mxu1 %v2245_v9 }
  0xa3   :  { %2045 = vmatmul.mubr.bf16.vlgmr.msra.gmra.mrb[64].mxu0 %v2246_v10 }
  0xa4   :  { %2053 = vmatmul.mubr.bf16.vlgmr.msra.gmra.mrb[64].mxu1 %v2247_v11  ;;  %2048 = vmatprep.mubr.bf16.mxu0 %v2248_v12 }
  0xa5   :  { %2056 = vmatprep.mubr.bf16.mxu1 %v2249_v13 }
  0xab   :  { %2049 = vmatmul.mubr.bf16.gmra.mrb[68].mxu0 %v2250_v14 }
  0xac   :  { %2057 = vmatmul.mubr.bf16.gmra.mrb[68].mxu1 %v2251_v15 }
  0xf6   :  { %v1772_v16 = vpop.f32.mrb[0].mxu0 }
  0xf7   :  { %v1836_v17 = vpop.f32.mrb[0].mxu1  ;;  %v1773_v18 = vpop.f32.mrb[1].mxu0 }
  0xf8   :  { %v1774_v19 = vadd.f32 %v1773_v18, %v1772_v16  ;;  %v1837_v20 = vpop.f32.mrb[1].mxu1  ;;  %v1775_v21 = vpop.f32.mrb[2].mxu0 }
  0xf9   :  { %v1838_v22 = vadd.f32 %v1837_v20, %v1836_v17  ;;  %v1839_v23 = vpop.f32.mrb[2].mxu1  ;;  %v1776_v24 = vpop.f32.mrb[3].mxu0 }
  0xfa   :  { %v1777_v25 = vadd.f32 %v1776_v24, %v1775_v21  ;;  %v1840_v26 = vpop.f32.mrb[3].mxu1 }
  0xfb   :  { %v2709_v27 = vadd.f32 %v1838_v22, %v1774_v19  ;;  %v1841_v28 = vadd.f32 %v1840_v26, %v1839_v23 }
  0xfd   :  { %v2711_v29 = vadd.f32 %v1841_v28, %v1777_v25 }
  0xfe   :  { %v1778_v30 = vpop.f32.mrb[4].mxu0 }
  0xff   :  { %v1842_v31 = vpop.f32.mrb[4].mxu1  ;;  %v1779_v32 = vpop.f32.mrb[5].mxu0 }
 0x100   :  { %v1780_v33 = vadd.f32 %v1779_v32, %v1778_v30  ;;  %v1843_v34 = vpop.f32.mrb[5].mxu1  ;;  %v1781_v35 = vpop.f32.mrb[6].mxu0 }
 0x101   :  { %v1844_v36 = vadd.f32 %v1843_v34, %v1842_v31  ;;  %v1845_v37 = vpop.f32.mrb[6].mxu1  ;;  %v1782_v38 = vpop.f32.mrb[7].mxu0 }
 0x102   :  { %v1783_v39 = vadd.f32 %v1782_v38, %v1781_v35  ;;  %v1846_v40 = vpop.f32.mrb[7].mxu1 }
 0x103   :  { %v2713_v41 = vadd.f32 %v1844_v36, %v1780_v33  ;;  %v1847_v42 = vadd.f32 %v1846_v40, %v1845_v37 }
 0x105   :  { %v2715_v43 = vadd.f32 %v1847_v42, %v1783_v39 }
 0x106   :  { %v1784_v44 = vpop.f32.mrb[8].mxu0 }
 0x107   :  { %v1848_v45 = vpop.f32.mrb[8].mxu1  ;;  %v1785_v46 = vpop.f32.mrb[9].mxu0 }
 0x108   :  { %v1786_v47 = vadd.f32 %v1785_v46, %v1784_v44  ;;  %v1849_v48 = vpop.f32.mrb[9].mxu1  ;;  %v1787_v49 = vpop.f32.mrb[10].mxu0 }
 0x109   :  { %v1850_v50 = vadd.f32 %v1849_v48, %v1848_v45  ;;  %v1851_v51 = vpop.f32.mrb[10].mxu1  ;;  %v1788_v52 = vpop.f32.mrb[11].mxu0 }
 0x10a   :  { %v1789_v53 = vadd.f32 %v1788_v52, %v1787_v49  ;;  %v1852_v54 = vpop.f32.mrb[11].mxu1 }
 0x10b   :  { %v2717_v55 = vadd.f32 %v1850_v50, %v1786_v47  ;;  %v1853_v56 = vadd.f32 %v1852_v54, %v1851_v51 }
 0x10d   :  { %v2719_v57 = vadd.f32 %v1853_v56, %v1789_v53 }
 0x10e   :  { %v1790_v58 = vpop.f32.mrb[12].mxu0 }
 0x10f   :  { %v1854_v59 = vpop.f32.mrb[12].mxu1  ;;  %v1791_v60 = vpop.f32.mrb[13].mxu0 }
 0x110   :  { %v1792_v61 = vadd.f32 %v1791_v60, %v1790_v58  ;;  %v1855_v62 = vpop.f32.mrb[13].mxu1  ;;  %v1793_v63 = vpop.f32.mrb[14].mxu0 }
 0x111   :  { %v1856_v0 = vadd.f32 %v1855_v62, %v1854_v59  ;;  %v1857_v1 = vpop.f32.mrb[14].mxu1  ;;  %v1794_v2 = vpop.f32.mrb[15].mxu0 }
 0x112   :  { %v1795_v3 = vadd.f32 %v1794_v2, %v1793_v63  ;;  %v1858_v4 = vpop.f32.mrb[15].mxu1 }
 0x113   :  { %v2721_v5 = vadd.f32 %v1856_v0, %v1792_v61  ;;  %v1859_v6 = vadd.f32 %v1858_v4, %v1857_v1 }
 0x115   :  { %v2723_v7 = vadd.f32 %v1859_v6, %v1795_v3 }
 0x116   :  { %v1796_v8 = vpop.f32.mrb[16].mxu0 }
 0x117   :  { %v1860_v9 = vpop.f32.mrb[16].mxu1  ;;  %v1797_v10 = vpop.f32.mrb[17].mxu0 }
 0x118   :  { %v1798_v11 = vadd.f32 %v1797_v10, %v1796_v8  ;;  %v1861_v12 = vpop.f32.mrb[17].mxu1  ;;  %v1799_v13 = vpop.f32.mrb[18].mxu0 }
 0x119   :  { %v1862_v14 = vadd.f32 %v1861_v12, %v1860_v9  ;;  %v1863_v15 = vpop.f32.mrb[18].mxu1  ;;  %v1800_v16 = vpop.f32.mrb[19].mxu0 }
 0x11a   :  { %v1801_v17 = vadd.f32 %v1800_v16, %v1799_v13  ;;  %v1864_v18 = vpop.f32.mrb[19].mxu1 }
 0x11b   :  { %v2725_v19 = vadd.f32 %v1862_v14, %v1798_v11  ;;  %v1865_v20 = vadd.f32 %v1864_v18, %v1863_v15 }
 0x11d   :  { %v2727_v21 = vadd.f32 %v1865_v20, %v1801_v17 }
 0x11e   :  { %v1802_v22 = vpop.f32.mrb[20].mxu0 }
 0x11f   :  { %v1866_v23 = vpop.f32.mrb[20].mxu1  ;;  %v1803_v24 = vpop.f32.mrb[21].mxu0 }
 0x120   :  { %v1804_v25 = vadd.f32 %v1803_v24, %v1802_v22  ;;  %v1867_v26 = vpop.f32.mrb[21].mxu1  ;;  %v1805_v28 = vpop.f32.mrb[22].mxu0 }
 0x121   :  { %v1868_v30 = vadd.f32 %v1867_v26, %v1866_v23  ;;  %v1869_v31 = vpop.f32.mrb[22].mxu1  ;;  %v1806_v32 = vpop.f32.mrb[23].mxu0 }
 0x122   :  { %v1807_v33 = vadd.f32 %v1806_v32, %v1805_v28  ;;  %v1870_v34 = vpop.f32.mrb[23].mxu1 }
 0x123   :  { %v2729_v35 = vadd.f32 %v1868_v30, %v1804_v25  ;;  %v1871_v36 = vadd.f32 %v1870_v34, %v1869_v31 }
 0x125   :  { %v2731_v37 = vadd.f32 %v1871_v36, %v1807_v33 }
 0x126   :  { %v1808_v38 = vpop.f32.mrb[24].mxu0 }
 0x127   :  { %v1872_v39 = vpop.f32.mrb[24].mxu1  ;;  %v1809_v40 = vpop.f32.mrb[25].mxu0 }
 0x128   :  { %v1810_v42 = vadd.f32 %v1809_v40, %v1808_v38  ;;  %v1873_v44 = vpop.f32.mrb[25].mxu1  ;;  %v1811_v45 = vpop.f32.mrb[26].mxu0 }
 0x129   :  { %v1874_v46 = vadd.f32 %v1873_v44, %v1872_v39  ;;  %v1875_v47 = vpop.f32.mrb[26].mxu1  ;;  %v1812_v48 = vpop.f32.mrb[27].mxu0 }
 0x12a   :  { %v1813_v49 = vadd.f32 %v1812_v48, %v1811_v45  ;;  %v1876_v50 = vpop.f32.mrb[27].mxu1 }
 0x12b   :  { %v2733_v51 = vadd.f32 %v1874_v46, %v1810_v42  ;;  %v1877_v52 = vadd.f32 %v1876_v50, %v1875_v47 }
 0x12d   :  { %v2735_v53 = vadd.f32 %v1877_v52, %v1813_v49 }
 0x12e   :  { %v1814_v54 = vpop.f32.mrb[28].mxu0 }
 0x12f   :  { %v1878_v56 = vpop.f32.mrb[28].mxu1  ;;  %v1815_v58 = vpop.f32.mrb[29].mxu0 }
 0x130   :  { %v1816_v59 = vadd.f32 %v1815_v58, %v1814_v54  ;;  %v1879_v60 = vpop.f32.mrb[29].mxu1  ;;  %v1817_v61 = vpop.f32.mrb[30].mxu0 }
 0x131   :  { %v1880_v62 = vadd.f32 %v1879_v60, %v1878_v56  ;;  %v1881_v63 = vpop.f32.mrb[30].mxu1  ;;  %v1818_v0 = vpop.f32.mrb[31].mxu0 }
 0x132   :  { %v1819_v1 = vadd.f32 %v1818_v0, %v1817_v61  ;;  %v1882_v2 = vpop.f32.mrb[31].mxu1 }
 0x133   :  { %v2737_v3 = vadd.f32 %v1880_v62, %v1816_v59  ;;  %v1883_v4 = vadd.f32 %v1882_v2, %v1881_v63 }
 0x135   :  { %v2739_v6 = vadd.f32 %v1883_v4, %v1819_v1 }
 0x136   :  { %v1900_v8 = vpop.f32.mrb[32].mxu0 }
 0x137   :  { %v1901_v9 = vpop.f32.mrb[33].mxu0  ;;  %v1964_v10 = vpop.f32.mrb[32].mxu1 }
 0x138   :  { %v1902_v11 = vadd.f32 %v1901_v9, %v1900_v8  ;;  %v1903_v12 = vpop.f32.mrb[34].mxu0  ;;  %v1965_v13 = vpop.f32.mrb[33].mxu1 }
 0x139   :  { %v1904_v14 = vpop.f32.mrb[35].mxu0  ;;  %v1966_v15 = vadd.f32 %v1965_v13, %v1964_v10  ;;  %v1967_v16 = vpop.f32.mrb[34].mxu1 }
 0x13a   :  { %v1268_v17 = vadd.f32 %v1902_v11, %v2709_v27  ;;  %v1905_v18 = vadd.f32 %v1904_v14, %v1903_v12  ;;  %v1968_v20 = vpop.f32.mrb[35].mxu1 }
 0x13b   :  { %v1969_v22 = vadd.f32 %v1968_v20, %v1967_v16 }
 0x13c   :  { %v1271_v23 = vadd.f32 %v1905_v18, %v2711_v29  ;;  %v2743_v24 = vadd.f32 %v1966_v15, %v1268_v17 }
 0x13e   :  { %v1906_v25 = vpop.f32.mrb[36].mxu0  ;;  %v2745_v26 = vadd.f32 %v1969_v22, %v1271_v23 }
 0x13f   :  { %v1907_v28 = vpop.f32.mrb[37].mxu0  ;;  %v1970_v30 = vpop.f32.mrb[36].mxu1 }
 0x140   :  { %v1908_v31 = vadd.f32 %v1907_v28, %v1906_v25  ;;  %v1909_v32 = vpop.f32.mrb[38].mxu0  ;;  %v1971_v33 = vpop.f32.mrb[37].mxu1 }
 0x141   :  { %v1910_v34 = vpop.f32.mrb[39].mxu0  ;;  %v1972_v36 = vadd.f32 %v1971_v33, %v1970_v30  ;;  %v1973_v38 = vpop.f32.mrb[38].mxu1 }
 0x142   :  { %v1276_v27 = vadd.f32 %v1908_v31, %v2713_v41  ;;  %v1911_v39 = vadd.f32 %v1910_v34, %v1909_v32  ;;  %v1974_v40 = vpop.f32.mrb[39].mxu1 }
 0x143   :  { %v1975_v42 = vadd.f32 %v1974_v40, %v1973_v38 }
 0x144   :  { %v1279_v29 = vadd.f32 %v1911_v39, %v2715_v43  ;;  %v2749_v44 = vadd.f32 %v1972_v36, %v1276_v27 }
 0x146   :  { %v1912_v45 = vpop.f32.mrb[40].mxu0  ;;  %v2751_v46 = vadd.f32 %v1975_v42, %v1279_v29 }
 0x147   :  { %v1913_v47 = vpop.f32.mrb[41].mxu0  ;;  %v1976_v48 = vpop.f32.mrb[40].mxu1 }
 0x148   :  { %v1914_v49 = vadd.f32 %v1913_v47, %v1912_v45  ;;  %v1915_v50 = vpop.f32.mrb[42].mxu0  ;;  %v1977_v52 = vpop.f32.mrb[41].mxu1 }
 0x149   :  { %v1916_v54 = vpop.f32.mrb[43].mxu0  ;;  %v1978_v56 = vadd.f32 %v1977_v52, %v1976_v48  ;;  %v1979_v58 = vpop.f32.mrb[42].mxu1 }
 0x14a   :  { %v1284_v41 = vadd.f32 %v1914_v49, %v2717_v55  ;;  %v1917_v59 = vadd.f32 %v1916_v54, %v1915_v50  ;;  %v1980_v60 = vpop.f32.mrb[43].mxu1 }
 0x14b   :  { %v1981_v61 = vadd.f32 %v1980_v60, %v1979_v58 }
 0x14c   :  { %v1287_v43 = vadd.f32 %v1917_v59, %v2719_v57  ;;  %v2755_v62 = vadd.f32 %v1978_v56, %v1284_v41 }
 0x14e   :  { %v1918_v63 = vpop.f32.mrb[44].mxu0  ;;  %v2757_v0 = vadd.f32 %v1981_v61, %v1287_v43 }
 0x14f   :  { %v1919_v1 = vpop.f32.mrb[45].mxu0  ;;  %v1982_v2 = vpop.f32.mrb[44].mxu1 }
 0x150   :  { %v1920_v4 = vadd.f32 %v1919_v1, %v1918_v63  ;;  %v1921_v8 = vpop.f32.mrb[46].mxu0  ;;  %v1983_v9 = vpop.f32.mrb[45].mxu1 }
 0x151   :  { %v1922_v10 = vpop.f32.mrb[47].mxu0  ;;  %v1984_v11 = vadd.f32 %v1983_v9, %v1982_v2  ;;  %v1985_v12 = vpop.f32.mrb[46].mxu1 }
 0x152   :  { %v1292_v55 = vadd.f32 %v1920_v4, %v2721_v5  ;;  %v1923_v13 = vadd.f32 %v1922_v10, %v1921_v8  ;;  %v1986_v14 = vpop.f32.mrb[47].mxu1 }
 0x153   :  { %v1987_v15 = vadd.f32 %v1986_v14, %v1985_v12 }
 0x154   :  { %v1295_v57 = vadd.f32 %v1923_v13, %v2723_v7  ;;  %v2761_v16 = vadd.f32 %v1984_v11, %v1292_v55 }
 0x156   :  { %v1924_v17 = vpop.f32.mrb[48].mxu0  ;;  %v2763_v18 = vadd.f32 %v1987_v15, %v1295_v57 }
 0x157   :  { %v1925_v20 = vpop.f32.mrb[49].mxu0  ;;  %v1988_v22 = vpop.f32.mrb[48].mxu1 }
 0x158   :  { %v1926_v23 = vadd.f32 %v1925_v20, %v1924_v17  ;;  %v1927_v25 = vpop.f32.mrb[50].mxu0  ;;  %v1989_v28 = vpop.f32.mrb[49].mxu1 }
 0x159   :  { %v1928_v30 = vpop.f32.mrb[51].mxu0  ;;  %v1990_v31 = vadd.f32 %v1989_v28, %v1988_v22  ;;  %v1991_v32 = vpop.f32.mrb[50].mxu1 }
 0x15a   :  { %v1300_v5 = vadd.f32 %v1926_v23, %v2725_v19  ;;  %v1929_v33 = vadd.f32 %v1928_v30, %v1927_v25  ;;  %v1992_v34 = vpop.f32.mrb[51].mxu1 }
 0x15b   :  { %v1993_v36 = vadd.f32 %v1992_v34, %v1991_v32 }
 0x15c   :  { %v1303_v7 = vadd.f32 %v1929_v33, %v2727_v21  ;;  %v1397_v38 = vadd.f32 %v1990_v31, %v1300_v5 }
 0x15e   :  { %v1930_v27 = vpop.f32.mrb[52].mxu0  ;;  %v2767_v39 = vadd.f32 %v1993_v36, %v1303_v7 }
 0x15f   :  { %v1931_v40 = vpop.f32.mrb[53].mxu0  ;;  %v1994_v42 = vpop.f32.mrb[52].mxu1 }
 0x160   :  { %v1932_v29 = vadd.f32 %v1931_v40, %v1930_v27  ;;  %v1933_v45 = vpop.f32.mrb[54].mxu0  ;;  %v1995_v47 = vpop.f32.mrb[53].mxu1 }
 0x161   :  { %v1934_v48 = vpop.f32.mrb[55].mxu0  ;;  %v1996_v49 = vadd.f32 %v1995_v47, %v1994_v42  ;;  %v1997_v50 = vpop.f32.mrb[54].mxu1 }
 0x162   :  { %v1308_v52 = vadd.f32 %v1932_v29, %v2729_v35  ;;  %v1935_v19 = vadd.f32 %v1934_v48, %v1933_v45  ;;  %v1998_v54 = vpop.f32.mrb[55].mxu1 }
 0x163   :  { %v1999_v56 = vadd.f32 %v1998_v54, %v1997_v50 }
 0x164   :  { %v1311_v58 = vadd.f32 %v1935_v19, %v2731_v37  ;;  %v1405_v21 = vadd.f32 %v1996_v49, %v1308_v52 }
 0x166   :  { %v1936_v41 = vpop.f32.mrb[56].mxu0  ;;  %v1408_v59 = vadd.f32 %v1999_v56, %v1311_v58 }
 0x167   :  { %v1937_v60 = vpop.f32.mrb[57].mxu0  ;;  %v2000_v61 = vpop.f32.mrb[56].mxu1 }
 0x168   :  { %v1938_v43 = vadd.f32 %v1937_v60, %v1936_v41  ;;  %v1939_v63 = vpop.f32.mrb[58].mxu0  ;;  %v2001_v1 = vpop.f32.mrb[57].mxu1 }
 0x169   :  { %v1940_v2 = vpop.f32.mrb[59].mxu0  ;;  %v2002_v4 = vadd.f32 %v2001_v1, %v2000_v61  ;;  %v2003_v8 = vpop.f32.mrb[58].mxu1 }
 0x16a   :  { %v1316_v9 = vadd.f32 %v1938_v43, %v2733_v51  ;;  %v1941_v10 = vadd.f32 %v1940_v2, %v1939_v63  ;;  %v2004_v35 = vpop.f32.mrb[59].mxu1 }
 0x16b   :  { %v2005_v11 = vadd.f32 %v2004_v35, %v2003_v8 }
 0x16c   :  { %v1319_v12 = vadd.f32 %v1941_v10, %v2735_v53  ;;  %v1413_v55 = vadd.f32 %v2002_v4, %v1316_v9 }
 0x16e   :  { %v1942_v37 = vpop.f32.mrb[60].mxu0  ;;  %v2773_v13 = vadd.f32 %v2005_v11, %v1319_v12 }
 0x16f   :  { %v1943_v14 = vpop.f32.mrb[61].mxu0  ;;  %v2006_v15 = vpop.f32.mrb[60].mxu1 }
 0x170   :  { %v1944_v57 = vadd.f32 %v1943_v14, %v1942_v37  ;;  %v1945_v17 = vpop.f32.mrb[62].mxu0  ;;  %v2007_v20 = vpop.f32.mrb[61].mxu1 }
 0x171   :  { %v1946_v22 = vpop.f32.mrb[63].mxu0  ;;  %v2008_v23 = vadd.f32 %v2007_v20, %v2006_v15  ;;  %v2009_v25 = vpop.f32.mrb[62].mxu1 }
 0x172   :  { %v1324_v28 = vadd.f32 %v1944_v57, %v2737_v3  ;;  %v1947_v51 = vadd.f32 %v1946_v22, %v1945_v17  ;;  %v2010_v30 = vpop.f32.mrb[63].mxu1 }
 0x173   :  { %v2011_v31 = vadd.f32 %v2010_v30, %v2009_v25 }
 0x174   :  { %v1327_v32 = vadd.f32 %v1947_v51, %v2739_v6  ;;  %v1421_v53 = vadd.f32 %v2008_v23, %v1324_v28 }
 0x176   :  { %v2046_v5 = vpop.f32.mrb[64].mxu0  ;;  %v1424_v33 = vadd.f32 %v2011_v31, %v1327_v32 }
 0x177   :  { %v1470_v34 = vadd.f32 %v2046_v5, %v2749_v44  ;;  %v2054_v36 = vpop.f32.mrb[64].mxu1  ;;  %v1461_v7 = vpop.f32.mrb[65].mxu0 }
 0x178   :  { %v2778_v27 = vadd.f32 %v2054_v36, %v1405_v21  ;;  %v1462_v40 = vadd.f32 %v1461_v7, %v2743_v24  ;;  %v1493_v42 = vpop.f32.mrb[65].mxu1  ;;  %v2047_v29 = vpop.f32.mrb[66].mxu0 }
 0x179   :  { %1526 = vst [vmem:[%s2855_s2 + $0x10] sm:$0xff] %v1470_v34  ;;  %v1494_v3 = vadd.f32 %v1493_v42, %v1397_v38  ;;  %v1473_v6 = vadd.f32 %v2047_v29, %v2751_v46  ;;  %v2055_v45 = vpop.f32.mrb[66].mxu1  ;;  %v1464_v47 = vpop.f32.mrb[67].mxu0  ;;  %v1564_v50 = vmul.f32 %v1470_v34, %v1470_v34 }
 0x17a   :  { %1534 = vst [vmem:[%s2855_s2 + $0x50] sm:$0xff] %v2778_v27  ;;  %1524 = vst [vmem:[%s2855_s2] sm:$0xff] %v1462_v40  ;;  %v2792_v24 = vadd.f32 %v2055_v45, %v1408_v59  ;;  %v1465_v44 = vadd.f32 %v1464_v47, %v2745_v26  ;;  %v1496_v48 = vpop.f32.mrb[67].mxu1  ;;  %v1562_v38 = vmul.f32 %v1462_v40, %v1462_v40 }
 0x17b   :  { %1532 = vst [vmem:[%s2855_s2 + $0x40] sm:$0xff] %v1494_v3  ;;  %1527 = vst [vmem:[%s2855_s2 + $0x18] sm:$0xff] %v1473_v6  ;;  %v1497_v46 = vadd.f32 %v1496_v48, %v2767_v39  ;;  %v1565_v54 = vmul.f32 %v1473_v6, %v1473_v6  ;;  %v1570_v20 = vmul.f32 %v1494_v3, %v1494_v3 }
 0x17c   :  { %1535 = vst [vmem:[%s2855_s2 + $0x58] sm:$0xff] %v2792_v24  ;;  %1525 = vst [vmem:[%s2855_s2 + $0x8] sm:$0xff] %v1465_v44  ;;  %v1540_v26 = vadd.f32 %v1465_v44, %v1462_v40  ;;  %v1563_v49 = vmul.f32 %v1465_v44, %v1465_v44  ;;  %v1572_v30 = vmul.f32 %v2778_v27, %v2778_v27 }
 0x17d   :  { %1533 = vst [vmem:[%s2855_s2 + $0x48] sm:$0xff] %v1497_v46  ;;  %v1571_v25 = vmul.f32 %v1497_v46, %v1497_v46 }
 0x17e   :  { %v1541_v52 = vadd.f32 %v1540_v26, %v1470_v34  ;;  %v1578_v19 = vadd.f32 %v1563_v49, %v1562_v38  ;;  %v2050_v39 = vpop.f32.mrb[68].mxu0 }
 0x17f   :  { %v1486_v56 = vadd.f32 %v2050_v39, %v2761_v16  ;;  %v2058_v58 = vpop.f32.mrb[68].mxu1  ;;  %v1477_v21 = vpop.f32.mrb[69].mxu0 }
 0x180   :  { %v1579_v41 = vadd.f32 %v1578_v19, %v1564_v50  ;;  %v1518_v59 = vadd.f32 %v2058_v58, %v1421_v53  ;;  %v1478_v60 = vadd.f32 %v1477_v21, %v2755_v62  ;;  %v1542_v61 = vadd.f32 %v1541_v52, %v1473_v6  ;;  %v1509_v43 = vpop.f32.mrb[69].mxu1  ;;  %v2051_v63 = vpop.f32.mrb[70].mxu0 }
 0x181   :  { %1530 = vst [vmem:[%s2855_s2 + $0x30] sm:$0xff] %v1486_v56  ;;  %v1510_v1 = vadd.f32 %v1509_v43, %v1413_v55  ;;  %v1489_v2 = vadd.f32 %v2051_v63, %v2763_v18  ;;  %v2059_v4 = vpop.f32.mrb[70].mxu1  ;;  %v1480_v8 = vpop.f32.mrb[71].mxu0  ;;  %v1568_v14 = vmul.f32 %v1486_v56, %v1486_v56  ;;  %v1573_v53 = vmul.f32 %v2792_v24, %v2792_v24 }
 0x182   :  { %1538 = vst [vmem:[%s2855_s2 + $0x70] sm:$0xff] %v1518_v59  ;;  %1528 = vst [vmem:[%s2855_s2 + $0x20] sm:$0xff] %v1478_v60  ;;  %v1543_v62 = vadd.f32 %v1542_v61, %v1478_v60  ;;  %v1566_v16 = vmul.f32 %v1478_v60, %v1478_v60  ;;  %v1580_v9 = vadd.f32 %v1579_v41, %v1565_v54  ;;  %v1512_v10 = vpop.f32.mrb[71].mxu1 }
 0x183   :  { %1536 = vst [vmem:[%s2855_s2 + $0x60] sm:$0xff] %v1510_v1  ;;  %1531 = vst [vmem:[%s2855_s2 + $0x38] sm:$0xff] %v1489_v2  ;;  %v1521_v18 = vadd.f32 %v2059_v4, %v1424_v33  ;;  %v1481_v35 = vadd.f32 %v1480_v8, %v2757_v0  ;;  %v1513_v12 = vadd.f32 %v1512_v10, %v2773_v13 }
 0x184   :  { %v1581_v11 = vadd.f32 %v1580_v9, %v1566_v16  ;;  %v1569_v57 = vmul.f32 %v1489_v2, %v1489_v2  ;;  %v1574_v34 = vmul.f32 %v1510_v1, %v1510_v1 }
 0x185   :  { %1539 = vst [vmem:[%s2855_s2 + $0x78] sm:$0xff] %v1521_v18  ;;  %1529 = vst [vmem:[%s2855_s2 + $0x28] sm:$0xff] %v1481_v35  ;;  %v1544_v55 = vadd.f32 %v1543_v62, %v1481_v35  ;;  %v1567_v37 = vmul.f32 %v1481_v35, %v1481_v35  ;;  %v1575_v42 = vmul.f32 %v1513_v12, %v1513_v12 }
 0x186   :  { %1537 = vst [vmem:[%s2855_s2 + $0x68] sm:$0xff] %v1513_v12  ;;  %v1577_v47 = vmul.f32 %v1521_v18, %v1521_v18 }
 0x187   :  { %v1545_v15 = vadd.f32 %v1544_v55, %v1486_v56  ;;  %v1582_v0 = vadd.f32 %v1581_v11, %v1567_v37 }
 0x189   :  { %v1546_v17 = vadd.f32 %v1545_v15, %v1489_v2  ;;  %v1583_v13 = vadd.f32 %v1582_v0, %v1568_v14 }
 0x18b   :  { %v1547_v22 = vadd.f32 %v1546_v17, %v1494_v3  ;;  %v1584_v23 = vadd.f32 %v1583_v13, %v1569_v57  ;;  %v1576_v3 = vmul.f32 %v1518_v59, %v1518_v59 }
 0x18d   :  { %v1585_v28 = vadd.f32 %v1584_v23, %v1570_v20  ;;  %v1548_v51 = vadd.f32 %v1547_v22, %v1497_v46 }
 0x18f   :  { %v1549_v31 = vadd.f32 %v1548_v51, %v2778_v27  ;;  %v1586_v32 = vadd.f32 %v1585_v28, %v1571_v25 }
 0x191   :  { %v1550_v5 = vadd.f32 %v1549_v31, %v2792_v24  ;;  %v1587_v33 = vadd.f32 %v1586_v32, %v1572_v30 }
 0x193   :  { %v1551_v36 = vadd.f32 %v1550_v5, %v1510_v1  ;;  %v1588_v7 = vadd.f32 %v1587_v33, %v1573_v53 }
 0x195   :  { %v1552_v40 = vadd.f32 %v1551_v36, %v1513_v12  ;;  %v1589_v29 = vadd.f32 %v1588_v7, %v1574_v34 }
 0x197   :  { %v1553_v6 = vadd.f32 %v1552_v40, %v1518_v59  ;;  %v1590_v45 = vadd.f32 %v1589_v29, %v1575_v42 }
 0x199   :  { %v1554_v44 = vadd.f32 %v1553_v6, %v1521_v18  ;;  %v1591_v48 = vadd.f32 %v1590_v45, %v1576_v3 }
 0x19b   :  { %v1555_v27 = vrot.slane %v1554_v44, 4  ;;  %v1592_v46 = vadd.f32 %v1591_v48, %v1577_v47 }
 0x19d   :  { %v1556_v38 = vadd.f32 %v1555_v27, %v1554_v44  ;;  %v1593_v26 = vrot.slane %v1592_v46, 4 }
 0x19f   :  { %v1557_v49 = vrot.slane %v1556_v38, 2  ;;  %v1594_v50 = vadd.f32 %v1593_v26, %v1592_v46 }
 0x1a1   :  { %v1558_v24 = vadd.f32 %v1557_v49, %v1556_v38  ;;  %v1595_v52 = vrot.slane %v1594_v50, 2 }
 0x1a3   :  { %v1559_v19 = vrot.slane %v1558_v24, 1  ;;  %v1596_v39 = vadd.f32 %v1595_v52, %v1594_v50 }
 0x1a5   :  { %v1560_v54 = vadd.f32 %v1559_v19, %v1558_v24  ;;  %v1597_v56 = vrot.slane %v1596_v39, 1 }
 0x1a7   :  { %1561 = vst [vmem:[%s2856_s3] sm:$0x1] %v1560_v54  ;;  %v1598_v58 = vadd.f32 %v1597_v56, %v1596_v39 }
 0x1a9   :  { %1599 = vst [vmem:[%s2857_s4] sm:$0x1] %v1598_v58 }

// kernel: model_forward.47
= control target key start
LH: loop header
LB: loop body
LE: loop exit
PB: predicated region body
PF: predicated region fallthrough
CT: control target
= control target key end

     0   :  { %v57_v0 = vlaneseq  ;;  %s906_s0 = inlined_call_operand.vmem [shape: f32[128,256], index: 0, kind: input, shape index: {}]   ;;  %s907_s1 = inlined_call_operand.vmem [shape: f32[1,256], index: 1, kind: input, shape index: {}]   ;;  %s908_s2 = inlined_call_operand.vmem [shape: f32[1,256], index: 2, kind: input, shape index: {}]   ;;  %s909_s4 = inlined_call_operand.vmem [shape: f32[1,256], index: 4, kind: input, shape index: {}]   ;;  %s910_s5 = inlined_call_operand.vmem [shape: f32[1,256], index: 5, kind: input, shape index: {}]   ;;  %s911_s3 = inlined_call_operand.vmem [shape: f32[128,256], index: 3, kind: input, shape index: {}]   ;;  %s912_s6 = inlined_call_operand.vmem [shape: bf16[128,256], index: 6, kind: output, shape index: {}]  }
   0x1   :  { %v23_v2 = vld [vmem:[%s906_s0] sm:$0xff]  ;;  %v24_v3 = vld [vmem:[%s906_s0 + $0x8] sm:$0xff]  ;;  %v25_v11 = vld [vmem:[%s906_s0 + $0x10] sm:$0xff] }
   0x2   :  { %v58_v1 = vshrl.u32 %v57_v0, 7  ;;  %v55_v4 = vld [vmem:[%s907_s1] sm:$0x3]  ;;  %v26_v12 = vld [vmem:[%s906_s0 + $0x18] sm:$0xff]  ;;  %v144_v17 = vld [vmem:[%s911_s3 + $0x8] sm:$0xff] }
   0x3   :  { %v99_v5 = vld [vmem:[%s908_s2] sm:$0x3]  ;;  %v145_v18 = vld [vmem:[%s911_s3 + $0x10] sm:$0xff]  ;;  %v146_v19 = vld [vmem:[%s911_s3 + $0x18] sm:$0xff] }
   0x4   :  { %v59_v6 = vsub.s32 0, %v58_v1  ;;  %v63_v7 = vsub.s32 1, %v58_v1  ;;  %v175_v8 = vld [vmem:[%s909_s4] sm:$0x3]  ;;  %v28_v29 = vld [vmem:[%s906_s0 + $0x28] sm:$0xff]  ;;  %v29_v40 = vld [vmem:[%s906_s0 + $0x30] sm:$0xff] }
   0x5   :  { %v251_v9 = vld [vmem:[%s910_s5] sm:$0x3]  ;;  %v148_v31 = vld [vmem:[%s911_s3 + $0x28] sm:$0xff]  ;;  %v30_v41 = vld [vmem:[%s906_s0 + $0x38] sm:$0xff] }
   0x6   :  { %v143_v10 = vld [vmem:[%s911_s3] sm:$0xff]  ;;  %v537_v13 = vrot.slane %v55_v4, %v59_v6  ;;  %v539_v14 = vrot.slane %v55_v4, %v63_v7  ;;  %v541_v15 = vrot.slane %v99_v5, %v59_v6  ;;  %v543_v16 = vrot.slane %v99_v5, %v63_v7  ;;  %v149_v58 = vld [vmem:[%s911_s3 + $0x30] sm:$0xff]  ;;  %v150_v59 = vld [vmem:[%s911_s3 + $0x38] sm:$0xff] }
   0x7   :  { %v554_v20 = vrot.slane %v175_v8, %v59_v6  ;;  %v556_v21 = vrot.slane %v175_v8, %v63_v7  ;;  %v558_v22 = vrot.slane %v251_v9, %v59_v6  ;;  %v560_v23 = vrot.slane %v251_v9, %v63_v7  ;;  %v27_v24 = vld [vmem:[%s906_s0 + $0x20] sm:$0xff]  ;;  %v32_v1 = vld [vmem:[%s906_s0 + $0x48] sm:$0xff] }
   0x8   :  { %v67_v25 = vmul.f32 %v537_v13, %v23_v2  ;;  %v68_v26 = vmul.f32 %v539_v14, %v24_v3  ;;  %v69_v27 = vmul.f32 %v537_v13, %v25_v11  ;;  %v70_v28 = vmul.f32 %v539_v14, %v26_v12  ;;  %v147_v30 = vld [vmem:[%s911_s3 + $0x20] sm:$0xff]  ;;  %v152_v11 = vld [vmem:[%s911_s3 + $0x48] sm:$0xff] }
   0x9   :  { %v187_v32 = vmul.f32 %v554_v20, %v143_v10  ;;  %v188_v33 = vmul.f32 %v556_v21, %v144_v17  ;;  %v189_v34 = vmul.f32 %v554_v20, %v145_v18  ;;  %v190_v35 = vmul.f32 %v556_v21, %v146_v19  ;;  %v31_v0 = vld [vmem:[%s906_s0 + $0x40] sm:$0xff] }
   0xa   :  { %v111_v36 = vadd.f32 %v541_v15, %v67_v25  ;;  %v112_v37 = vadd.f32 %v543_v16, %v68_v26  ;;  %v113_v38 = vadd.f32 %v541_v15, %v69_v27  ;;  %v114_v39 = vadd.f32 %v543_v16, %v70_v28  ;;  %v151_v10 = vld [vmem:[%s911_s3 + $0x40] sm:$0xff] }
   0xb   :  { %v71_v42 = vmul.f32 %v537_v13, %v27_v24  ;;  %v72_v43 = vmul.f32 %v539_v14, %v28_v29  ;;  %v191_v44 = vmul.f32 %v554_v20, %v147_v30  ;;  %v192_v45 = vmul.f32 %v556_v21, %v148_v31  ;;  %v33_v24 = vld [vmem:[%s906_s0 + $0x50] sm:$0xff]  ;;  %v34_v29 = vld [vmem:[%s906_s0 + $0x58] sm:$0xff] }
   0xc   :  { %v219_v46 = vadd.f32 %v187_v32, %v111_v36  ;;  %v220_v47 = vadd.f32 %v188_v33, %v112_v37  ;;  %v221_v48 = vadd.f32 %v189_v34, %v113_v38  ;;  %v222_v49 = vadd.f32 %v190_v35, %v114_v39  ;;  %v153_v30 = vld [vmem:[%s911_s3 + $0x50] sm:$0xff]  ;;  %v154_v35 = vld [vmem:[%s911_s3 + $0x58] sm:$0xff] }
   0xd   :  { %v115_v50 = vadd.f32 %v541_v15, %v71_v42  ;;  %v116_v51 = vadd.f32 %v543_v16, %v72_v43  ;;  %v73_v52 = vmul.f32 %v537_v13, %v29_v40  ;;  %v74_v53 = vmul.f32 %v539_v14, %v30_v41  ;;  %v35_v40 = vld [vmem:[%s906_s0 + $0x60] sm:$0xff] }
   0xe   :  { %v263_v54 = vadd.f32 %v558_v22, %v219_v46  ;;  %v264_v55 = vadd.f32 %v560_v23, %v220_v47  ;;  %v265_v56 = vadd.f32 %v558_v22, %v221_v48  ;;  %v266_v57 = vadd.f32 %v560_v23, %v222_v49  ;;  %v155_v46 = vld [vmem:[%s911_s3 + $0x60] sm:$0xff] }
   0xf   :  { %v223_v60 = vadd.f32 %v191_v44, %v115_v50  ;;  %v224_v61 = vadd.f32 %v192_v45, %v116_v51  ;;  %v117_v62 = vadd.f32 %v541_v15, %v73_v52  ;;  %v118_v63 = vadd.f32 %v543_v16, %v74_v53  ;;  %v36_v45 = vld [vmem:[%s906_s0 + $0x68] sm:$0xff] }
  0x10   :  { %v295_v2 = vmax.f32 %v263_v54, 0.0  ;;  %v296_v3 = vmax.f32 %v264_v55, 0.0  ;;  %v297_v4 = vmax.f32 %v265_v56, 0.0  ;;  %v298_v5 = vmax.f32 %v266_v57, 0.0  ;;  %v156_v55 = vld [vmem:[%s911_s3 + $0x68] sm:$0xff]  ;;  %v37_v56 = vld [vmem:[%s906_s0 + $0x70] sm:$0xff] }
  0x11   :  { %v267_v6 = vadd.f32 %v558_v22, %v223_v60  ;;  %v268_v7 = vadd.f32 %v560_v23, %v224_v61  ;;  %v193_v8 = vmul.f32 %v554_v20, %v149_v58  ;;  %v194_v9 = vmul.f32 %v556_v21, %v150_v59  ;;  %v38_v61 = vld [vmem:[%s906_s0 + $0x78] sm:$0xff] }
  0x12   :  { %v459_v12 = vpack.c.bf16 %v296_v3, %v295_v2  ;;  %v460_v17 = vpack.c.bf16 %v298_v5, %v297_v4  ;;  %v75_v18 = vmul.f32 %v537_v13, %v31_v0  ;;  %v76_v19 = vmul.f32 %v539_v14, %v32_v1  ;;  %v157_v2 = vld [vmem:[%s911_s3 + $0x70] sm:$0xff] }
  0x13   :  { %v299_v25 = vmax.f32 %v267_v6, 0.0  ;;  %v300_v26 = vmax.f32 %v268_v7, 0.0  ;;  %v225_v27 = vadd.f32 %v193_v8, %v117_v62  ;;  %v226_v28 = vadd.f32 %v194_v9, %v118_v63  ;;  %v158_v7 = vld [vmem:[%s911_s3 + $0x78] sm:$0xff] }
  0x14   :  { %423 = vst [vmem:[%s912_s6] sm:$0xff] %v459_v12  ;;  %424 = vst [vmem:[%s912_s6 + $0x8] sm:$0xff] %v460_v17  ;;  %v119_v31 = vadd.f32 %v541_v15, %v75_v18  ;;  %v120_v32 = vadd.f32 %v543_v16, %v76_v19  ;;  %v195_v33 = vmul.f32 %v554_v20, %v151_v10  ;;  %v39_v12 = vld [vmem:[%s906_s0 + $0x80] sm:$0xff]  ;;  %v40_v17 = vld [vmem:[%s906_s0 + $0x88] sm:$0xff] }
  0x15   :  { %v196_v34 = vmul.f32 %v556_v21, %v152_v11  ;;  %v461_v36 = vpack.c.bf16 %v300_v26, %v299_v25  ;;  %v269_v37 = vadd.f32 %v558_v22, %v225_v27  ;;  %v270_v38 = vadd.f32 %v560_v23, %v226_v28  ;;  %v159_v26 = vld [vmem:[%s911_s3 + $0x80] sm:$0xff] }
  0x16   :  { %v77_v39 = vmul.f32 %v537_v13, %v33_v24  ;;  %v227_v41 = vadd.f32 %v195_v33, %v119_v31  ;;  %v78_v43 = vmul.f32 %v539_v14, %v34_v29  ;;  %v197_v44 = vmul.f32 %v554_v20, %v153_v30 }
  0x17   :  { %v228_v42 = vadd.f32 %v196_v34, %v120_v32  ;;  %425 = vst [vmem:[%s912_s6 + $0x10] sm:$0xff] %v461_v36  ;;  %v301_v47 = vmax.f32 %v269_v37, 0.0  ;;  %v302_v48 = vmax.f32 %v270_v38, 0.0  ;;  %v198_v50 = vmul.f32 %v556_v21, %v154_v35  ;;  %v160_v35 = vld [vmem:[%s911_s3 + $0x88] sm:$0xff]  ;;  %v41_v36 = vld [vmem:[%s906_s0 + $0x90] sm:$0xff]  ;;  %v42_v37 = vld [vmem:[%s906_s0 + $0x98] sm:$0xff] }
  0x18   :  { %v121_v49 = vadd.f32 %v541_v15, %v77_v39  ;;  %v271_v51 = vadd.f32 %v558_v22, %v227_v41  ;;  %v122_v53 = vadd.f32 %v543_v16, %v78_v43  ;;  %v79_v54 = vmul.f32 %v537_v13, %v35_v40 }
  0x19   :  { %v272_v52 = vadd.f32 %v560_v23, %v228_v42  ;;  %v462_v57 = vpack.c.bf16 %v302_v48, %v301_v47  ;;  %v80_v59 = vmul.f32 %v539_v14, %v36_v45  ;;  %v199_v60 = vmul.f32 %v554_v20, %v155_v46  ;;  %v161_v42 = vld [vmem:[%s911_s3 + $0x90] sm:$0xff] }
  0x1a   :  { %v229_v58 = vadd.f32 %v197_v44, %v121_v49  ;;  %v303_v62 = vmax.f32 %v271_v51, 0.0  ;;  %v230_v0 = vadd.f32 %v198_v50, %v122_v53  ;;  %v123_v1 = vadd.f32 %v541_v15, %v79_v54  ;;  %v162_v51 = vld [vmem:[%s911_s3 + $0x98] sm:$0xff]  ;;  %v44_v53 = vld [vmem:[%s906_s0 + $0xa8] sm:$0xff] }
  0x1b   :  { %v304_v63 = vmax.f32 %v272_v52, 0.0  ;;  %426 = vst [vmem:[%s912_s6 + $0x18] sm:$0xff] %v462_v57  ;;  %v124_v4 = vadd.f32 %v543_v16, %v80_v59  ;;  %v200_v5 = vmul.f32 %v556_v21, %v156_v55  ;;  %v81_v6 = vmul.f32 %v537_v13, %v37_v56  ;;  %v43_v52 = vld [vmem:[%s906_s0 + $0xa0] sm:$0xff] }
  0x1c   :  { %v273_v3 = vadd.f32 %v558_v22, %v229_v58  ;;  %v274_v9 = vadd.f32 %v560_v23, %v230_v0  ;;  %v231_v10 = vadd.f32 %v199_v60, %v123_v1  ;;  %v82_v11 = vmul.f32 %v539_v14, %v38_v61  ;;  %v163_v58 = vld [vmem:[%s911_s3 + $0xa0] sm:$0xff] }
  0x1d   :  { %v463_v8 = vpack.c.bf16 %v304_v63, %v303_v62  ;;  %v232_v19 = vadd.f32 %v200_v5, %v124_v4  ;;  %v125_v24 = vadd.f32 %v541_v15, %v81_v6  ;;  %v201_v25 = vmul.f32 %v554_v20, %v157_v2  ;;  %v45_v4 = vld [vmem:[%s906_s0 + $0xb0] sm:$0xff] }
  0x1e   :  { %v305_v18 = vmax.f32 %v273_v3, 0.0  ;;  %v306_v27 = vmax.f32 %v274_v9, 0.0  ;;  %v275_v28 = vadd.f32 %v558_v22, %v231_v10  ;;  %v126_v29 = vadd.f32 %v543_v16, %v82_v11  ;;  %v164_v3 = vld [vmem:[%s911_s3 + $0xa8] sm:$0xff]  ;;  %v46_v9 = vld [vmem:[%s906_s0 + $0xb8] sm:$0xff]  ;;  %v165_v10 = vld [vmem:[%s911_s3 + $0xb0] sm:$0xff] }
  0x1f   :  { %427 = vst [vmem:[%s912_s6 + $0x20] sm:$0xff] %v463_v8  ;;  %v202_v30 = vmul.f32 %v556_v21, %v158_v7  ;;  %v276_v31 = vadd.f32 %v560_v23, %v232_v19  ;;  %v233_v32 = vadd.f32 %v201_v25, %v125_v24  ;;  %v83_v33 = vmul.f32 %v537_v13, %v39_v12 }
  0x20   :  { %v84_v34 = vmul.f32 %v539_v14, %v40_v17  ;;  %v464_v38 = vpack.c.bf16 %v306_v27, %v305_v18  ;;  %v307_v39 = vmax.f32 %v275_v28, 0.0  ;;  %v203_v41 = vmul.f32 %v554_v20, %v159_v26  ;;  %v166_v27 = vld [vmem:[%s911_s3 + $0xb8] sm:$0xff] }
  0x21   :  { %v234_v40 = vadd.f32 %v202_v30, %v126_v29  ;;  %v308_v43 = vmax.f32 %v276_v31, 0.0  ;;  %v277_v44 = vadd.f32 %v558_v22, %v233_v32  ;;  %v127_v45 = vadd.f32 %v541_v15, %v83_v33  ;;  %v47_v32 = vld [vmem:[%s906_s0 + $0xc0] sm:$0xff]  ;;  %v48_v33 = vld [vmem:[%s906_s0 + $0xc8] sm:$0xff] }
  0x22   :  { %v128_v46 = vadd.f32 %v543_v16, %v84_v34  ;;  %428 = vst [vmem:[%s912_s6 + $0x28] sm:$0xff] %v464_v38  ;;  %v204_v48 = vmul.f32 %v556_v21, %v160_v35  ;;  %v85_v49 = vmul.f32 %v537_v13, %v41_v36  ;;  %v86_v50 = vmul.f32 %v539_v14, %v42_v37  ;;  %v167_v38 = vld [vmem:[%s911_s3 + $0xc0] sm:$0xff] }
  0x23   :  { %v278_v47 = vadd.f32 %v560_v23, %v234_v40  ;;  %v465_v54 = vpack.c.bf16 %v308_v43, %v307_v39  ;;  %v309_v55 = vmax.f32 %v277_v44, 0.0  ;;  %v235_v56 = vadd.f32 %v203_v41, %v127_v45 }
  0x24   :  { %v205_v57 = vmul.f32 %v554_v20, %v161_v42  ;;  %v236_v60 = vadd.f32 %v204_v48, %v128_v46  ;;  %v129_v61 = vadd.f32 %v541_v15, %v85_v49  ;;  %v130_v62 = vadd.f32 %v543_v16, %v86_v50  ;;  %v49_v48 = vld [vmem:[%s906_s0 + $0xd0] sm:$0xff]  ;;  %v50_v49 = vld [vmem:[%s906_s0 + $0xd8] sm:$0xff] }
  0x25   :  { %v310_v59 = vmax.f32 %v278_v47, 0.0  ;;  %429 = vst [vmem:[%s912_s6 + $0x30] sm:$0xff] %v465_v54  ;;  %v279_v63 = vadd.f32 %v558_v22, %v235_v56  ;;  %v206_v0 = vmul.f32 %v556_v21, %v162_v51  ;;  %v87_v1 = vmul.f32 %v537_v13, %v43_v52  ;;  %v168_v47 = vld [vmem:[%s911_s3 + $0xc8] sm:$0xff]  ;;  %v169_v54 = vld [vmem:[%s911_s3 + $0xd0] sm:$0xff] }
  0x26   :  { %v88_v2 = vmul.f32 %v539_v14, %v44_v53  ;;  %v280_v6 = vadd.f32 %v560_v23, %v236_v60  ;;  %v237_v7 = vadd.f32 %v205_v57, %v129_v61  ;;  %v207_v8 = vmul.f32 %v554_v20, %v163_v58 }
  0x27   :  { %v466_v5 = vpack.c.bf16 %v310_v59, %v309_v55  ;;  %v311_v11 = vmax.f32 %v279_v63, 0.0  ;;  %v238_v12 = vadd.f32 %v206_v0, %v130_v62  ;;  %v131_v17 = vadd.f32 %v541_v15, %v87_v1  ;;  %v170_v63 = vld [vmem:[%s911_s3 + $0xd8] sm:$0xff]  ;;  %v51_v0 = vld [vmem:[%s906_s0 + $0xe0] sm:$0xff]  ;;  %v52_v1 = vld [vmem:[%s906_s0 + $0xe8] sm:$0xff] }
  0x28   :  { %v132_v18 = vadd.f32 %v543_v16, %v88_v2  ;;  %v312_v19 = vmax.f32 %v280_v6, 0.0  ;;  %v281_v24 = vadd.f32 %v558_v22, %v237_v7  ;;  %v208_v25 = vmul.f32 %v556_v21, %v164_v3  ;;  %v171_v6 = vld [vmem:[%s911_s3 + $0xe0] sm:$0xff] }
  0x29   :  { %430 = vst [vmem:[%s912_s6 + $0x38] sm:$0xff] %v466_v5  ;;  %v89_v26 = vmul.f32 %v537_v13, %v45_v4  ;;  %v282_v28 = vadd.f32 %v560_v23, %v238_v12  ;;  %v239_v29 = vadd.f32 %v207_v8, %v131_v17  ;;  %v90_v30 = vmul.f32 %v539_v14, %v46_v9 }
  0x2a   :  { %v209_v31 = vmul.f32 %v554_v20, %v165_v10  ;;  %v467_v34 = vpack.c.bf16 %v312_v19, %v311_v11  ;;  %v313_v35 = vmax.f32 %v281_v24, 0.0  ;;  %v240_v36 = vadd.f32 %v208_v25, %v132_v18  ;;  %v172_v19 = vld [vmem:[%s911_s3 + $0xe8] sm:$0xff]  ;;  %v53_v24 = vld [vmem:[%s906_s0 + $0xf0] sm:$0xff] }
  0x2b   :  { %v133_v37 = vadd.f32 %v541_v15, %v89_v26  ;;  %v314_v39 = vmax.f32 %v282_v28, 0.0  ;;  %v283_v40 = vadd.f32 %v558_v22, %v239_v29  ;;  %v134_v41 = vadd.f32 %v543_v16, %v90_v30  ;;  %v54_v29 = vld [vmem:[%s906_s0 + $0xf8] sm:$0xff]  ;;  %v173_v30 = vld [vmem:[%s911_s3 + $0xf0] sm:$0xff] }
  0x2c   :  { %v210_v42 = vmul.f32 %v556_v21, %v166_v27  ;;  %431 = vst [vmem:[%s912_s6 + $0x40] sm:$0xff] %v467_v34  ;;  %v284_v43 = vadd.f32 %v560_v23, %v240_v36  ;;  %v91_v45 = vmul.f32 %v537_v13, %v47_v32  ;;  %v92_v46 = vmul.f32 %v539_v14, %v48_v33 }
  0x2d   :  { %v241_v44 = vadd.f32 %v209_v31, %v133_v37  ;;  %v468_v50 = vpack.c.bf16 %v314_v39, %v313_v35  ;;  %v315_v51 = vmax.f32 %v283_v40, 0.0  ;;  %v211_v53 = vmul.f32 %v554_v20, %v167_v38  ;;  %v174_v39 = vld [vmem:[%s911_s3 + $0xf8] sm:$0xff] }
  0x2e   :  { %v242_v52 = vadd.f32 %v210_v42, %v134_v41  ;;  %v316_v55 = vmax.f32 %v284_v43, 0.0  ;;  %v135_v57 = vadd.f32 %v541_v15, %v91_v45  ;;  %v136_v58 = vadd.f32 %v543_v16, %v92_v46 }
  0x2f   :  { %v285_v56 = vadd.f32 %v558_v22, %v241_v44  ;;  %432 = vst [vmem:[%s912_s6 + $0x48] sm:$0xff] %v468_v50  ;;  %v212_v60 = vmul.f32 %v556_v21, %v168_v47  ;;  %v93_v61 = vmul.f32 %v537_v13, %v49_v48  ;;  %v94_v62 = vmul.f32 %v539_v14, %v50_v49 }
  0x30   :  { %v286_v59 = vadd.f32 %v560_v23, %v242_v52  ;;  %v469_v2 = vpack.c.bf16 %v316_v55, %v315_v51  ;;  %v243_v4 = vadd.f32 %v211_v53, %v135_v57  ;;  %v213_v5 = vmul.f32 %v554_v20, %v169_v54 }
  0x31   :  { %v317_v3 = vmax.f32 %v285_v56, 0.0  ;;  %v244_v8 = vadd.f32 %v212_v60, %v136_v58  ;;  %v137_v9 = vadd.f32 %v541_v15, %v93_v61  ;;  %v138_v10 = vadd.f32 %v543_v16, %v94_v62 }
  0x32   :  { %v318_v7 = vmax.f32 %v286_v59, 0.0  ;;  %433 = vst [vmem:[%s912_s6 + $0x50] sm:$0xff] %v469_v2  ;;  %v287_v11 = vadd.f32 %v558_v22, %v243_v4  ;;  %v214_v12 = vmul.f32 %v556_v21, %v170_v63  ;;  %v95_v17 = vmul.f32 %v537_v13, %v51_v0 }
  0x33   :  { %v96_v18 = vmul.f32 %v539_v14, %v52_v1  ;;  %v288_v26 = vadd.f32 %v560_v23, %v244_v8  ;;  %v245_v27 = vadd.f32 %v213_v5, %v137_v9  ;;  %v215_v28 = vmul.f32 %v554_v20, %v171_v6 }
  0x34   :  { %v470_v25 = vpack.c.bf16 %v318_v7, %v317_v3  ;;  %v319_v31 = vmax.f32 %v287_v11, 0.0  ;;  %v246_v32 = vadd.f32 %v214_v12, %v138_v10  ;;  %v139_v33 = vadd.f32 %v541_v15, %v95_v17 }
  0x35   :  { %v140_v34 = vadd.f32 %v543_v16, %v96_v18  ;;  %v320_v35 = vmax.f32 %v288_v26, 0.0  ;;  %v289_v36 = vadd.f32 %v558_v22, %v245_v27  ;;  %v216_v37 = vmul.f32 %v556_v21, %v172_v19 }
  0x36   :  { %434 = vst [vmem:[%s912_s6 + $0x58] sm:$0xff] %v470_v25  ;;  %v97_v38 = vmul.f32 %v537_v13, %v53_v24  ;;  %v290_v40 = vadd.f32 %v560_v23, %v246_v32  ;;  %v247_v41 = vadd.f32 %v215_v28, %v139_v33  ;;  %v98_v42 = vmul.f32 %v539_v14, %v54_v29 }
  0x37   :  { %v217_v43 = vmul.f32 %v554_v20, %v173_v30  ;;  %v471_v44 = vpack.c.bf16 %v320_v35, %v319_v31  ;;  %v321_v45 = vmax.f32 %v289_v36, 0.0  ;;  %v248_v46 = vadd.f32 %v216_v37, %v140_v34 }
  0x38   :  { %v141_v47 = vadd.f32 %v541_v15, %v97_v38  ;;  %v322_v48 = vmax.f32 %v290_v40, 0.0  ;;  %v291_v49 = vadd.f32 %v558_v22, %v247_v41  ;;  %v142_v13 = vadd.f32 %v543_v16, %v98_v42 }
  0x39   :  { %v218_v50 = vmul.f32 %v556_v21, %v174_v39  ;;  %435 = vst [vmem:[%s912_s6 + $0x60] sm:$0xff] %v471_v44  ;;  %v292_v14 = vadd.f32 %v560_v23, %v248_v46 }
  0x3a   :  { %v249_v51 = vadd.f32 %v217_v43, %v141_v47  ;;  %v472_v20 = vpack.c.bf16 %v322_v48, %v321_v45  ;;  %v323_v52 = vmax.f32 %v291_v49, 0.0 }
  0x3b   :  { %v250_v53 = vadd.f32 %v218_v50, %v142_v13  ;;  %v324_v54 = vmax.f32 %v292_v14, 0.0 }
  0x3c   :  { %v293_v15 = vadd.f32 %v558_v22, %v249_v51  ;;  %436 = vst [vmem:[%s912_s6 + $0x68] sm:$0xff] %v472_v20 }
  0x3d   :  { %v294_v16 = vadd.f32 %v560_v23, %v250_v53  ;;  %v473_v21 = vpack.c.bf16 %v324_v54, %v323_v52 }
  0x3e   :  { %v325_v55 = vmax.f32 %v293_v15, 0.0 }
  0x3f   :  { %v326_v56 = vmax.f32 %v294_v16, 0.0  ;;  %437 = vst [vmem:[%s912_s6 + $0x70] sm:$0xff] %v473_v21 }
  0x41   :  { %v474_v57 = vpack.c.bf16 %v326_v56, %v325_v55 }
  0x43   :  { %438 = vst [vmem:[%s912_s6 + $0x78] sm:$0xff] %v474_v57 }

// kernel: model_forward.45
= control target key start
LH: loop header
LB: loop body
LE: loop exit
PB: predicated region body
PF: predicated region fallthrough
CT: control target
= control target key end

     0   :  { %s1707_s1 = inlined_call_operand.vmem [shape: bf16[512,256], index: 1, kind: input, shape index: {}]   ;;  %s1708_s0 = inlined_call_operand.vmem [shape: bf16[128,512], index: 0, kind: input, shape index: {}]   ;;  %s1709_s2 = inlined_call_operand.vmem [shape: f32[128,256], index: 2, kind: output, shape index: {0}]   ;;  %s1710_s3 = inlined_call_operand.vmem [shape: f32[1,256], index: 3, kind: output, shape index: {1}]   ;;  %s1711_s4 = inlined_call_operand.vmem [shape: f32[1,256], index: 4, kind: output, shape index: {2}]  }
   0x1   :  { %v1147_v0 = vld [vmem:[%s1707_s1 + $0x4] ss:$8 sps:$4 sm:$0xff]   ;;  %v1151_v2 = vld [vmem:[%s1707_s1] ss:$8 sps:$4 sm:$0xff]   ;;  %v1153_v4 = vld [vmem:[%s1707_s1 + $0x14] ss:$8 sps:$4 sm:$0xff]  }
   0x2   :  { %v1149_v1 = vld [vmem:[%s1707_s1 + $0x104] ss:$8 sps:$4 sm:$0xff]   ;;  %590 = vmatprep.subr.bf16.mxu1 %v1147_v0  ;;  %v1152_v3 = vld [vmem:[%s1707_s1 + $0x100] ss:$8 sps:$4 sm:$0xff]   ;;  %v1155_v5 = vld [vmem:[%s1707_s1 + $0x114] ss:$8 sps:$4 sm:$0xff]  }
   0x3   :  { %703 = vmatprep.subr.bf16.mxu0 %v1149_v1  ;;  %591 = vmatpush1.bf16.msra.mxu1 %v1151_v2  ;;  %v1157_v6 = vld [vmem:[%s1707_s1 + $0x10] ss:$8 sps:$4 sm:$0xff]   ;;  %v1159_v8 = vld [vmem:[%s1707_s1 + $0x24] ss:$8 sps:$4 sm:$0xff]   ;;  %v1163_v10 = vld [vmem:[%s1707_s1 + $0x20] ss:$8 sps:$4 sm:$0xff]  }
   0x4   :  { %704 = vmatpush1.bf16.msra.mxu0 %v1152_v3  ;;  %592 = vmatprep.subr.bf16.mxu1 %v1153_v4  ;;  %v1158_v7 = vld [vmem:[%s1707_s1 + $0x110] ss:$8 sps:$4 sm:$0xff]   ;;  %v1161_v9 = vld [vmem:[%s1707_s1 + $0x124] ss:$8 sps:$4 sm:$0xff]   ;;  %v1164_v11 = vld [vmem:[%s1707_s1 + $0x120] ss:$8 sps:$4 sm:$0xff]  }
   0x5   :  { %705 = vmatprep.subr.bf16.mxu0 %v1155_v5  ;;  %v1165_v12 = vld [vmem:[%s1707_s1 + $0x34] ss:$8 sps:$4 sm:$0xff]   ;;  %v1169_v14 = vld [vmem:[%s1707_s1 + $0x30] ss:$8 sps:$4 sm:$0xff]   ;;  %v1171_v16 = vld [vmem:[%s1707_s1 + $0x44] ss:$8 sps:$4 sm:$0xff]  }
   0x6   :  { %v1167_v13 = vld [vmem:[%s1707_s1 + $0x134] ss:$8 sps:$4 sm:$0xff]   ;;  %v1170_v15 = vld [vmem:[%s1707_s1 + $0x130] ss:$8 sps:$4 sm:$0xff]   ;;  %v1173_v17 = vld [vmem:[%s1707_s1 + $0x144] ss:$8 sps:$4 sm:$0xff]  }
   0x7   :  { %593 = vmatpush1.bf16.msra.mxu1 %v1157_v6  ;;  %v1175_v18 = vld [vmem:[%s1707_s1 + $0x40] ss:$8 sps:$4 sm:$0xff]   ;;  %v1177_v20 = vld [vmem:[%s1707_s1 + $0x54] ss:$8 sps:$4 sm:$0xff]   ;;  %v1181_v22 = vld [vmem:[%s1707_s1 + $0x50] ss:$8 sps:$4 sm:$0xff]  }
   0x8   :  { %706 = vmatpush1.bf16.msra.mxu0 %v1158_v7  ;;  %594 = vmatprep.subr.bf16.mxu1 %v1159_v8  ;;  %v1176_v19 = vld [vmem:[%s1707_s1 + $0x140] ss:$8 sps:$4 sm:$0xff]   ;;  %v1179_v21 = vld [vmem:[%s1707_s1 + $0x154] ss:$8 sps:$4 sm:$0xff]   ;;  %v1182_v23 = vld [vmem:[%s1707_s1 + $0x150] ss:$8 sps:$4 sm:$0xff]  }
   0x9   :  { %707 = vmatprep.subr.bf16.mxu0 %v1161_v9  ;;  %v1183_v24 = vld [vmem:[%s1707_s1 + $0x64] ss:$8 sps:$4 sm:$0xff]   ;;  %v1187_v26 = vld [vmem:[%s1707_s1 + $0x60] ss:$8 sps:$4 sm:$0xff]   ;;  %v1189_v28 = vld [vmem:[%s1707_s1 + $0x74] ss:$8 sps:$4 sm:$0xff]  }
   0xa   :  { %v1185_v25 = vld [vmem:[%s1707_s1 + $0x164] ss:$8 sps:$4 sm:$0xff]   ;;  %v1188_v27 = vld [vmem:[%s1707_s1 + $0x160] ss:$8 sps:$4 sm:$0xff]   ;;  %v1191_v29 = vld [vmem:[%s1707_s1 + $0x174] ss:$8 sps:$4 sm:$0xff]  }
   0xb   :  { %595 = vmatpush1.bf16.msra.mxu1 %v1163_v10  ;;  %v1193_v30 = vld [vmem:[%s1707_s1 + $0x70] ss:$8 sps:$4 sm:$0xff]   ;;  %v1195_v32 = vld [vmem:[%s1707_s1 + $0x84] ss:$8 sps:$4 sm:$0xff]   ;;  %v1199_v34 = vld [vmem:[%s1707_s1 + $0x80] ss:$8 sps:$4 sm:$0xff]  }
   0xc   :  { %708 = vmatpush1.bf16.msra.mxu0 %v1164_v11  ;;  %596 = vmatprep.subr.bf16.mxu1 %v1165_v12  ;;  %v1194_v31 = vld [vmem:[%s1707_s1 + $0x170] ss:$8 sps:$4 sm:$0xff]   ;;  %v1197_v33 = vld [vmem:[%s1707_s1 + $0x184] ss:$8 sps:$4 sm:$0xff]   ;;  %v1200_v35 = vld [vmem:[%s1707_s1 + $0x180] ss:$8 sps:$4 sm:$0xff]  }
   0xd   :  { %709 = vmatprep.subr.bf16.mxu0 %v1167_v13  ;;  %v1201_v36 = vld [vmem:[%s1707_s1 + $0x94] ss:$8 sps:$4 sm:$0xff]   ;;  %v1205_v38 = vld [vmem:[%s1707_s1 + $0x90] ss:$8 sps:$4 sm:$0xff]   ;;  %v1207_v40 = vld [vmem:[%s1707_s1 + $0xa4] ss:$8 sps:$4 sm:$0xff]  }
   0xe   :  { %v1203_v37 = vld [vmem:[%s1707_s1 + $0x194] ss:$8 sps:$4 sm:$0xff]   ;;  %v1206_v39 = vld [vmem:[%s1707_s1 + $0x190] ss:$8 sps:$4 sm:$0xff]   ;;  %v1209_v41 = vld [vmem:[%s1707_s1 + $0x1a4] ss:$8 sps:$4 sm:$0xff]  }
   0xf   :  { %597 = vmatpush1.bf16.msra.mxu1 %v1169_v14  ;;  %v1211_v42 = vld [vmem:[%s1707_s1 + $0xa0] ss:$8 sps:$4 sm:$0xff]   ;;  %v1213_v44 = vld [vmem:[%s1707_s1 + $0xb4] ss:$8 sps:$4 sm:$0xff]   ;;  %v1217_v46 = vld [vmem:[%s1707_s1 + $0xb0] ss:$8 sps:$4 sm:$0xff]  }
  0x10   :  { %710 = vmatpush1.bf16.msra.mxu0 %v1170_v15  ;;  %598 = vmatprep.subr.bf16.mxu1 %v1171_v16  ;;  %v1212_v43 = vld [vmem:[%s1707_s1 + $0x1a0] ss:$8 sps:$4 sm:$0xff]   ;;  %v1215_v45 = vld [vmem:[%s1707_s1 + $0x1b4] ss:$8 sps:$4 sm:$0xff]   ;;  %v1218_v47 = vld [vmem:[%s1707_s1 + $0x1b0] ss:$8 sps:$4 sm:$0xff]  }
  0x11   :  { %711 = vmatprep.subr.bf16.mxu0 %v1173_v17  ;;  %v1219_v48 = vld [vmem:[%s1707_s1 + $0xc4] ss:$8 sps:$4 sm:$0xff]   ;;  %v1223_v52 = vld [vmem:[%s1707_s1 + $0xc0] ss:$8 sps:$4 sm:$0xff]   ;;  %v1225_v54 = vld [vmem:[%s1707_s1 + $0xd4] ss:$8 sps:$4 sm:$0xff]  }
  0x12   :  { %v1245_v49 = vld [vmem:[%s1708_s0 + $0x4] ss:$16 sps:$4 sm:$0xff]   ;;  %v1248_v51 = vld [vmem:[%s1708_s0 + $0xc] ss:$16 sps:$4 sm:$0xff]   ;;  %v1224_v53 = vld [vmem:[%s1707_s1 + $0x1c0] ss:$8 sps:$4 sm:$0xff]  }
  0x13   :  { %599 = vmatpush1.bf16.msra.mxu1 %v1175_v18  ;;  %v1221_v50 = vld [vmem:[%s1707_s1 + $0x1c4] ss:$8 sps:$4 sm:$0xff]   ;;  %622 = vmatprep.mubr.bf16.mxu1 %v1245_v49  ;;  %v1227_v55 = vld [vmem:[%s1707_s1 + $0x1d4] ss:$8 sps:$4 sm:$0xff]   ;;  %v1229_v56 = vld [vmem:[%s1707_s1 + $0xd0] ss:$8 sps:$4 sm:$0xff]  }
  0x14   :  { %712 = vmatpush1.bf16.msra.mxu0 %v1176_v19  ;;  %600 = vmatprep.subr.bf16.mxu1 %v1177_v20  ;;  %v1230_v57 = vld [vmem:[%s1707_s1 + $0x1d0] ss:$8 sps:$4 sm:$0xff]   ;;  %v1231_v58 = vld [vmem:[%s1707_s1 + $0xe4] ss:$8 sps:$4 sm:$0xff]   ;;  %v1235_v60 = vld [vmem:[%s1707_s1 + $0xe0] ss:$8 sps:$4 sm:$0xff]  }
  0x15   :  { %713 = vmatprep.subr.bf16.mxu0 %v1179_v21  ;;  %735 = vmatprep.mubr.bf16.mxu0 %v1248_v51  ;;  %v1233_v59 = vld [vmem:[%s1707_s1 + $0x1e4] ss:$8 sps:$4 sm:$0xff]   ;;  %v1236_v61 = vld [vmem:[%s1707_s1 + $0x1e0] ss:$8 sps:$4 sm:$0xff]   ;;  %v1237_v62 = vld [vmem:[%s1707_s1 + $0xf4] ss:$8 sps:$4 sm:$0xff]  }
  0x16   :  { %v1239_v63 = vld [vmem:[%s1707_s1 + $0x1f4] ss:$8 sps:$4 sm:$0xff]   ;;  %v1241_v0 = vld [vmem:[%s1707_s1 + $0xf0] ss:$8 sps:$4 sm:$0xff]  }
  0x17   :  { %601 = vmatpush1.bf16.msra.mxu1 %v1181_v22  ;;  %v1242_v1 = vld [vmem:[%s1707_s1 + $0x1f0] ss:$8 sps:$4 sm:$0xff]   ;;  %v1249_v4 = vld [vmem:[%s1708_s0 + $0x24] ss:$16 sps:$4 sm:$0xff]   ;;  %v1251_v5 = vld [vmem:[%s1708_s0 + $0x2c] ss:$16 sps:$4 sm:$0xff]  }
  0x18   :  { %714 = vmatpush1.bf16.msra.mxu0 %v1182_v23  ;;  %602 = vmatprep.subr.bf16.mxu1 %v1183_v24  ;;  %v1243_v2 = vld [vmem:[%s1708_s0] ss:$16 sps:$4 sm:$0xff]   ;;  %v1246_v3 = vld [vmem:[%s1708_s0 + $0x8] ss:$16 sps:$4 sm:$0xff]   ;;  %v1255_v8 = vld [vmem:[%s1708_s0 + $0x44] ss:$16 sps:$4 sm:$0xff]  }
  0x19   :  { %715 = vmatprep.subr.bf16.mxu0 %v1185_v25  ;;  %v1253_v6 = vld [vmem:[%s1708_s0 + $0x20] ss:$16 sps:$4 sm:$0xff]   ;;  %v1254_v7 = vld [vmem:[%s1708_s0 + $0x28] ss:$16 sps:$4 sm:$0xff]   ;;  %v1257_v9 = vld [vmem:[%s1708_s0 + $0x4c] ss:$16 sps:$4 sm:$0xff]  }
  0x1a   :  { %v1259_v10 = vld [vmem:[%s1708_s0 + $0x40] ss:$16 sps:$4 sm:$0xff]   ;;  %v1260_v11 = vld [vmem:[%s1708_s0 + $0x48] ss:$16 sps:$4 sm:$0xff]   ;;  %v1261_v12 = vld [vmem:[%s1708_s0 + $0x64] ss:$16 sps:$4 sm:$0xff]  }
  0x1b   :  { %603 = vmatpush1.bf16.msra.mxu1 %v1187_v26  ;;  %v1263_v13 = vld [vmem:[%s1708_s0 + $0x6c] ss:$16 sps:$4 sm:$0xff]   ;;  %v1265_v14 = vld [vmem:[%s1708_s0 + $0x60] ss:$16 sps:$4 sm:$0xff]   ;;  %v1266_v15 = vld [vmem:[%s1708_s0 + $0x68] ss:$16 sps:$4 sm:$0xff]  }
  0x1c   :  { %716 = vmatpush1.bf16.msra.mxu0 %v1188_v27  ;;  %604 = vmatprep.subr.bf16.mxu1 %v1189_v28  ;;  %v1267_v16 = vld [vmem:[%s1708_s0 + $0x84] ss:$16 sps:$4 sm:$0xff]   ;;  %v1269_v17 = vld [vmem:[%s1708_s0 + $0x8c] ss:$16 sps:$4 sm:$0xff]   ;;  %v1271_v18 = vld [vmem:[%s1708_s0 + $0x80] ss:$16 sps:$4 sm:$0xff]  }
  0x1d   :  { %717 = vmatprep.subr.bf16.mxu0 %v1191_v29  ;;  %v1272_v19 = vld [vmem:[%s1708_s0 + $0x88] ss:$16 sps:$4 sm:$0xff]   ;;  %v1273_v20 = vld [vmem:[%s1708_s0 + $0xa4] ss:$16 sps:$4 sm:$0xff]   ;;  %v1275_v21 = vld [vmem:[%s1708_s0 + $0xac] ss:$16 sps:$4 sm:$0xff]  }
  0x1e   :  { %v1277_v22 = vld [vmem:[%s1708_s0 + $0xa0] ss:$16 sps:$4 sm:$0xff]   ;;  %v1278_v23 = vld [vmem:[%s1708_s0 + $0xa8] ss:$16 sps:$4 sm:$0xff]   ;;  %v1279_v24 = vld [vmem:[%s1708_s0 + $0xc4] ss:$16 sps:$4 sm:$0xff]  }
  0x1f   :  { %605 = vmatpush1.bf16.msra.mxu1 %v1193_v30  ;;  %v1281_v25 = vld [vmem:[%s1708_s0 + $0xcc] ss:$16 sps:$4 sm:$0xff]   ;;  %v1283_v26 = vld [vmem:[%s1708_s0 + $0xc0] ss:$16 sps:$4 sm:$0xff]   ;;  %v1284_v27 = vld [vmem:[%s1708_s0 + $0xc8] ss:$16 sps:$4 sm:$0xff]  }
  0x20   :  { %718 = vmatpush1.bf16.msra.mxu0 %v1194_v31  ;;  %606 = vmatprep.subr.bf16.mxu1 %v1195_v32  ;;  %v1285_v28 = vld [vmem:[%s1708_s0 + $0xe4] ss:$16 sps:$4 sm:$0xff]   ;;  %v1287_v29 = vld [vmem:[%s1708_s0 + $0xec] ss:$16 sps:$4 sm:$0xff]   ;;  %v1289_v30 = vld [vmem:[%s1708_s0 + $0xe0] ss:$16 sps:$4 sm:$0xff]  }
  0x21   :  { %719 = vmatprep.subr.bf16.mxu0 %v1197_v33  ;;  %v1290_v31 = vld [vmem:[%s1708_s0 + $0xe8] ss:$16 sps:$4 sm:$0xff]  }
  0x23   :  { %607 = vmatpush1.bf16.msra.mxu1 %v1199_v34 }
  0x24   :  { %720 = vmatpush1.bf16.msra.mxu0 %v1200_v35  ;;  %608 = vmatprep.subr.bf16.mxu1 %v1201_v36 }
  0x25   :  { %721 = vmatprep.subr.bf16.mxu0 %v1203_v37 }
  0x27   :  { %609 = vmatpush1.bf16.msra.mxu1 %v1205_v38 }
  0x28   :  { %722 = vmatpush1.bf16.msra.mxu0 %v1206_v39  ;;  %610 = vmatprep.subr.bf16.mxu1 %v1207_v40 }
  0x29   :  { %723 = vmatprep.subr.bf16.mxu0 %v1209_v41 }
  0x2b   :  { %611 = vmatpush1.bf16.msra.mxu1 %v1211_v42 }
  0x2c   :  { %724 = vmatpush1.bf16.msra.mxu0 %v1212_v43  ;;  %612 = vmatprep.subr.bf16.mxu1 %v1213_v44 }
  0x2d   :  { %725 = vmatprep.subr.bf16.mxu0 %v1215_v45 }
  0x2f   :  { %613 = vmatpush1.bf16.msra.mxu1 %v1217_v46 }
  0x30   :  { %726 = vmatpush1.bf16.msra.mxu0 %v1218_v47  ;;  %614 = vmatprep.subr.bf16.mxu1 %v1219_v48 }
  0x31   :  { %727 = vmatprep.subr.bf16.mxu0 %v1221_v50 }
  0x33   :  { %615 = vmatpush1.bf16.msra.mxu1 %v1223_v52 }
  0x34   :  { %728 = vmatpush1.bf16.msra.mxu0 %v1224_v53  ;;  %616 = vmatprep.subr.bf16.mxu1 %v1225_v54 }
  0x35   :  { %729 = vmatprep.subr.bf16.mxu0 %v1227_v55 }
  0x37   :  { %617 = vmatpush1.bf16.msra.mxu1 %v1229_v56 }
  0x38   :  { %730 = vmatpush1.bf16.msra.mxu0 %v1230_v57  ;;  %618 = vmatprep.subr.bf16.mxu1 %v1231_v58 }
  0x39   :  { %731 = vmatprep.subr.bf16.mxu0 %v1233_v59 }
  0x3b   :  { %619 = vmatpush1.bf16.msra.mxu1 %v1235_v60 }
  0x3c   :  { %732 = vmatpush1.bf16.msra.mxu0 %v1236_v61  ;;  %620 = vmatprep.subr.bf16.mxu1 %v1237_v62 }
  0x3d   :  { %733 = vmatprep.subr.bf16.mxu0 %v1239_v63 }
  0x3f   :  { %621 = vmatpush1.bf16.msra.mxu1 %v1241_v0 }
  0x40   :  { %734 = vmatpush1.bf16.msra.mxu0 %v1242_v1 }
  0x42   :  { %623 = vmatmul.mubr.bf16.vlgmr.msra.gmra.mrb[0].mxu1 %v1243_v2 }
  0x43   :  { %736 = vmatmul.mubr.bf16.vlgmr.msra.gmra.mrb[0].mxu0 %v1246_v3  ;;  %632 = vmatprep.mubr.bf16.mxu1 %v1249_v4 }
  0x44   :  { %745 = vmatprep.mubr.bf16.mxu0 %v1251_v5 }
  0x4a   :  { %633 = vmatmul.mubr.bf16.gmra.mrb[4].mxu1 %v1253_v6 }
  0x4b   :  { %746 = vmatmul.mubr.bf16.gmra.mrb[4].mxu0 %v1254_v7  ;;  %642 = vmatprep.mubr.bf16.mxu1 %v1255_v8 }
  0x4c   :  { %755 = vmatprep.mubr.bf16.mxu0 %v1257_v9 }
  0x52   :  { %643 = vmatmul.mubr.bf16.gmra.mrb[8].mxu1 %v1259_v10 }
  0x53   :  { %756 = vmatmul.mubr.bf16.gmra.mrb[8].mxu0 %v1260_v11  ;;  %652 = vmatprep.mubr.bf16.mxu1 %v1261_v12 }
  0x54   :  { %765 = vmatprep.mubr.bf16.mxu0 %v1263_v13 }
  0x5a   :  { %653 = vmatmul.mubr.bf16.gmra.mrb[12].mxu1 %v1265_v14 }
  0x5b   :  { %766 = vmatmul.mubr.bf16.gmra.mrb[12].mxu0 %v1266_v15  ;;  %662 = vmatprep.mubr.bf16.mxu1 %v1267_v16 }
  0x5c   :  { %775 = vmatprep.mubr.bf16.mxu0 %v1269_v17 }
  0x62   :  { %663 = vmatmul.mubr.bf16.gmra.mrb[16].mxu1 %v1271_v18 }
  0x63   :  { %776 = vmatmul.mubr.bf16.gmra.mrb[16].mxu0 %v1272_v19  ;;  %672 = vmatprep.mubr.bf16.mxu1 %v1273_v20 }
  0x64   :  { %785 = vmatprep.mubr.bf16.mxu0 %v1275_v21 }
  0x6a   :  { %673 = vmatmul.mubr.bf16.gmra.mrb[20].mxu1 %v1277_v22 }
  0x6b   :  { %786 = vmatmul.mubr.bf16.gmra.mrb[20].mxu0 %v1278_v23  ;;  %682 = vmatprep.mubr.bf16.mxu1 %v1279_v24 }
  0x6c   :  { %795 = vmatprep.mubr.bf16.mxu0 %v1281_v25 }
  0x72   :  { %683 = vmatmul.mubr.bf16.gmra.mrb[24].mxu1 %v1283_v26 }
  0x73   :  { %796 = vmatmul.mubr.bf16.gmra.mrb[24].mxu0 %v1284_v27  ;;  %692 = vmatprep.mubr.bf16.mxu1 %v1285_v28 }
  0x74   :  { %805 = vmatprep.mubr.bf16.mxu0 %v1287_v29 }
  0x7a   :  { %693 = vmatmul.mubr.bf16.gmra.mrb[28].mxu1 %v1289_v30 }
  0x7b   :  { %806 = vmatmul.mubr.bf16.gmra.mrb[28].mxu0 %v1290_v31 }
 0x115   :  { %v624_v32 = vpop.f32.mrb[0].mxu1 }
 0x116   :  { %v737_v33 = vpop.f32.mrb[0].mxu0  ;;  %v626_v35 = vpop.f32.mrb[1].mxu1 }
 0x117   :  { %v738_v34 = vadd.f32 %v737_v33, %v624_v32  ;;  %v739_v36 = vpop.f32.mrb[1].mxu0  ;;  %v628_v38 = vpop.f32.mrb[2].mxu1 }
 0x118   :  { %v740_v37 = vadd.f32 %v739_v36, %v626_v35  ;;  %v741_v39 = vpop.f32.mrb[2].mxu0  ;;  %v630_v41 = vpop.f32.mrb[3].mxu1 }
 0x119   :  { %816 = vst [vmem:[%s1709_s2] sm:$0xff] %v738_v34  ;;  %v742_v40 = vadd.f32 %v741_v39, %v628_v38  ;;  %v743_v42 = vpop.f32.mrb[3].mxu0  ;;  %v913_v44 = vmul.f32 %v738_v34, %v738_v34 }
 0x11a   :  { %817 = vst [vmem:[%s1709_s2 + $0x8] sm:$0xff] %v740_v37  ;;  %v744_v43 = vadd.f32 %v743_v42, %v630_v41  ;;  %v914_v47 = vmul.f32 %v740_v37, %v740_v37 }
 0x11b   :  { %818 = vst [vmem:[%s1709_s2 + $0x10] sm:$0xff] %v742_v40  ;;  %v848_v45 = vadd.f32 %v742_v40, %v738_v34  ;;  %v915_v46 = vmul.f32 %v742_v40, %v742_v40 }
 0x11c   :  { %819 = vst [vmem:[%s1709_s2 + $0x18] sm:$0xff] %v744_v43  ;;  %v869_v48 = vadd.f32 %v744_v43, %v740_v37  ;;  %v916_v49 = vmul.f32 %v744_v43, %v744_v43 }
 0x11d   :  { %v945_v50 = vadd.f32 %v915_v46, %v913_v44  ;;  %v634_v52 = vpop.f32.mrb[4].mxu1 }
 0x11e   :  { %v966_v51 = vadd.f32 %v916_v49, %v914_v47  ;;  %v747_v53 = vpop.f32.mrb[4].mxu0  ;;  %v636_v55 = vpop.f32.mrb[5].mxu1 }
 0x11f   :  { %v748_v54 = vadd.f32 %v747_v53, %v634_v52  ;;  %v749_v56 = vpop.f32.mrb[5].mxu0  ;;  %v638_v58 = vpop.f32.mrb[6].mxu1 }
 0x120   :  { %v750_v57 = vadd.f32 %v749_v56, %v636_v55  ;;  %v751_v59 = vpop.f32.mrb[6].mxu0  ;;  %v640_v63 = vpop.f32.mrb[7].mxu1 }
 0x121   :  { %820 = vst [vmem:[%s1709_s2 + $0x20] sm:$0xff] %v748_v54  ;;  %v849_v60 = vadd.f32 %v848_v45, %v748_v54  ;;  %v917_v61 = vmul.f32 %v748_v54, %v748_v54  ;;  %v752_v62 = vadd.f32 %v751_v59, %v638_v58  ;;  %v753_v0 = vpop.f32.mrb[7].mxu0 }
 0x122   :  { %821 = vst [vmem:[%s1709_s2 + $0x28] sm:$0xff] %v750_v57  ;;  %v870_v1 = vadd.f32 %v869_v48, %v750_v57  ;;  %v918_v2 = vmul.f32 %v750_v57, %v750_v57  ;;  %v754_v3 = vadd.f32 %v753_v0, %v640_v63 }
 0x123   :  { %v946_v4 = vadd.f32 %v945_v50, %v917_v61  ;;  %822 = vst [vmem:[%s1709_s2 + $0x30] sm:$0xff] %v752_v62  ;;  %v850_v5 = vadd.f32 %v849_v60, %v752_v62  ;;  %v919_v6 = vmul.f32 %v752_v62, %v752_v62 }
 0x124   :  { %v967_v7 = vadd.f32 %v966_v51, %v918_v2  ;;  %823 = vst [vmem:[%s1709_s2 + $0x38] sm:$0xff] %v754_v3  ;;  %v871_v8 = vadd.f32 %v870_v1, %v754_v3  ;;  %v920_v9 = vmul.f32 %v754_v3, %v754_v3 }
 0x125   :  { %v947_v10 = vadd.f32 %v946_v4, %v919_v6  ;;  %v644_v12 = vpop.f32.mrb[8].mxu1 }
 0x126   :  { %v968_v11 = vadd.f32 %v967_v7, %v920_v9  ;;  %v757_v13 = vpop.f32.mrb[8].mxu0  ;;  %v646_v15 = vpop.f32.mrb[9].mxu1 }
 0x127   :  { %v758_v14 = vadd.f32 %v757_v13, %v644_v12  ;;  %v759_v16 = vpop.f32.mrb[9].mxu0  ;;  %v648_v18 = vpop.f32.mrb[10].mxu1 }
 0x128   :  { %v760_v17 = vadd.f32 %v759_v16, %v646_v15  ;;  %v761_v19 = vpop.f32.mrb[10].mxu0  ;;  %v650_v23 = vpop.f32.mrb[11].mxu1 }
 0x129   :  { %824 = vst [vmem:[%s1709_s2 + $0x40] sm:$0xff] %v758_v14  ;;  %v851_v20 = vadd.f32 %v850_v5, %v758_v14  ;;  %v921_v21 = vmul.f32 %v758_v14, %v758_v14  ;;  %v762_v22 = vadd.f32 %v761_v19, %v648_v18  ;;  %v763_v24 = vpop.f32.mrb[11].mxu0 }
 0x12a   :  { %825 = vst [vmem:[%s1709_s2 + $0x48] sm:$0xff] %v760_v17  ;;  %v872_v25 = vadd.f32 %v871_v8, %v760_v17  ;;  %v922_v26 = vmul.f32 %v760_v17, %v760_v17  ;;  %v764_v27 = vadd.f32 %v763_v24, %v650_v23 }
 0x12b   :  { %v948_v28 = vadd.f32 %v947_v10, %v921_v21  ;;  %826 = vst [vmem:[%s1709_s2 + $0x50] sm:$0xff] %v762_v22  ;;  %v852_v29 = vadd.f32 %v851_v20, %v762_v22  ;;  %v923_v30 = vmul.f32 %v762_v22, %v762_v22 }
 0x12c   :  { %v969_v31 = vadd.f32 %v968_v11, %v922_v26  ;;  %827 = vst [vmem:[%s1709_s2 + $0x58] sm:$0xff] %v764_v27  ;;  %v873_v32 = vadd.f32 %v872_v25, %v764_v27  ;;  %v924_v33 = vmul.f32 %v764_v27, %v764_v27 }
 0x12d   :  { %v949_v34 = vadd.f32 %v948_v28, %v923_v30  ;;  %v654_v36 = vpop.f32.mrb[12].mxu1 }
 0x12e   :  { %v970_v35 = vadd.f32 %v969_v31, %v924_v33  ;;  %v767_v37 = vpop.f32.mrb[12].mxu0  ;;  %v656_v39 = vpop.f32.mrb[13].mxu1 }
 0x12f   :  { %v768_v38 = vadd.f32 %v767_v37, %v654_v36  ;;  %v769_v40 = vpop.f32.mrb[13].mxu0  ;;  %v658_v42 = vpop.f32.mrb[14].mxu1 }
 0x130   :  { %v770_v41 = vadd.f32 %v769_v40, %v656_v39  ;;  %v771_v43 = vpop.f32.mrb[14].mxu0  ;;  %v660_v47 = vpop.f32.mrb[15].mxu1 }
 0x131   :  { %828 = vst [vmem:[%s1709_s2 + $0x60] sm:$0xff] %v768_v38  ;;  %v853_v44 = vadd.f32 %v852_v29, %v768_v38  ;;  %v925_v45 = vmul.f32 %v768_v38, %v768_v38  ;;  %v772_v46 = vadd.f32 %v771_v43, %v658_v42  ;;  %v773_v48 = vpop.f32.mrb[15].mxu0 }
 0x132   :  { %829 = vst [vmem:[%s1709_s2 + $0x68] sm:$0xff] %v770_v41  ;;  %v874_v49 = vadd.f32 %v873_v32, %v770_v41  ;;  %v926_v50 = vmul.f32 %v770_v41, %v770_v41  ;;  %v774_v51 = vadd.f32 %v773_v48, %v660_v47 }
 0x133   :  { %v950_v52 = vadd.f32 %v949_v34, %v925_v45  ;;  %830 = vst [vmem:[%s1709_s2 + $0x70] sm:$0xff] %v772_v46  ;;  %v854_v53 = vadd.f32 %v853_v44, %v772_v46  ;;  %v927_v54 = vmul.f32 %v772_v46, %v772_v46 }
 0x134   :  { %v971_v55 = vadd.f32 %v970_v35, %v926_v50  ;;  %831 = vst [vmem:[%s1709_s2 + $0x78] sm:$0xff] %v774_v51  ;;  %v875_v56 = vadd.f32 %v874_v49, %v774_v51  ;;  %v928_v57 = vmul.f32 %v774_v51, %v774_v51 }
 0x135   :  { %v951_v58 = vadd.f32 %v950_v52, %v927_v54  ;;  %v664_v60 = vpop.f32.mrb[16].mxu1 }
 0x136   :  { %v972_v59 = vadd.f32 %v971_v55, %v928_v57  ;;  %v777_v61 = vpop.f32.mrb[16].mxu0  ;;  %v666_v63 = vpop.f32.mrb[17].mxu1 }
 0x137   :  { %v778_v62 = vadd.f32 %v777_v61, %v664_v60  ;;  %v779_v0 = vpop.f32.mrb[17].mxu0  ;;  %v668_v2 = vpop.f32.mrb[18].mxu1 }
 0x138   :  { %v780_v1 = vadd.f32 %v779_v0, %v666_v63  ;;  %v781_v3 = vpop.f32.mrb[18].mxu0  ;;  %v670_v7 = vpop.f32.mrb[19].mxu1 }
 0x139   :  { %832 = vst [vmem:[%s1709_s2 + $0x80] sm:$0xff] %v778_v62  ;;  %v855_v4 = vadd.f32 %v854_v53, %v778_v62  ;;  %v929_v5 = vmul.f32 %v778_v62, %v778_v62  ;;  %v782_v6 = vadd.f32 %v781_v3, %v668_v2  ;;  %v783_v8 = vpop.f32.mrb[19].mxu0 }
 0x13a   :  { %833 = vst [vmem:[%s1709_s2 + $0x88] sm:$0xff] %v780_v1  ;;  %v876_v9 = vadd.f32 %v875_v56, %v780_v1  ;;  %v930_v10 = vmul.f32 %v780_v1, %v780_v1  ;;  %v784_v11 = vadd.f32 %v783_v8, %v670_v7 }
 0x13b   :  { %v952_v12 = vadd.f32 %v951_v58, %v929_v5  ;;  %834 = vst [vmem:[%s1709_s2 + $0x90] sm:$0xff] %v782_v6  ;;  %v856_v13 = vadd.f32 %v855_v4, %v782_v6  ;;  %v931_v14 = vmul.f32 %v782_v6, %v782_v6 }
 0x13c   :  { %v973_v15 = vadd.f32 %v972_v59, %v930_v10  ;;  %835 = vst [vmem:[%s1709_s2 + $0x98] sm:$0xff] %v784_v11  ;;  %v877_v16 = vadd.f32 %v876_v9, %v784_v11  ;;  %v932_v17 = vmul.f32 %v784_v11, %v784_v11 }
 0x13d   :  { %v953_v18 = vadd.f32 %v952_v12, %v931_v14  ;;  %v674_v20 = vpop.f32.mrb[20].mxu1 }
 0x13e   :  { %v974_v19 = vadd.f32 %v973_v15, %v932_v17  ;;  %v787_v21 = vpop.f32.mrb[20].mxu0  ;;  %v676_v23 = vpop.f32.mrb[21].mxu1 }
 0x13f   :  { %v788_v22 = vadd.f32 %v787_v21, %v674_v20  ;;  %v789_v24 = vpop.f32.mrb[21].mxu0  ;;  %v678_v26 = vpop.f32.mrb[22].mxu1 }
 0x140   :  { %v790_v25 = vadd.f32 %v789_v24, %v676_v23  ;;  %v791_v27 = vpop.f32.mrb[22].mxu0  ;;  %v680_v31 = vpop.f32.mrb[23].mxu1 }
 0x141   :  { %836 = vst [vmem:[%s1709_s2 + $0xa0] sm:$0xff] %v788_v22  ;;  %v857_v28 = vadd.f32 %v856_v13, %v788_v22  ;;  %v933_v29 = vmul.f32 %v788_v22, %v788_v22  ;;  %v792_v30 = vadd.f32 %v791_v27, %v678_v26  ;;  %v793_v32 = vpop.f32.mrb[23].mxu0 }
 0x142   :  { %837 = vst [vmem:[%s1709_s2 + $0xa8] sm:$0xff] %v790_v25  ;;  %v878_v33 = vadd.f32 %v877_v16, %v790_v25  ;;  %v934_v34 = vmul.f32 %v790_v25, %v790_v25  ;;  %v794_v35 = vadd.f32 %v793_v32, %v680_v31 }
 0x143   :  { %v954_v36 = vadd.f32 %v953_v18, %v933_v29  ;;  %838 = vst [vmem:[%s1709_s2 + $0xb0] sm:$0xff] %v792_v30  ;;  %v858_v37 = vadd.f32 %v857_v28, %v792_v30  ;;  %v935_v38 = vmul.f32 %v792_v30, %v792_v30 }
 0x144   :  { %v975_v39 = vadd.f32 %v974_v19, %v934_v34  ;;  %839 = vst [vmem:[%s1709_s2 + $0xb8] sm:$0xff] %v794_v35  ;;  %v879_v40 = vadd.f32 %v878_v33, %v794_v35  ;;  %v936_v41 = vmul.f32 %v794_v35, %v794_v35  ;;  %v1291_v33 = vmov 1966171168  }
 0x145   :  { %v955_v42 = vadd.f32 %v954_v36, %v935_v38  ;;  %v684_v44 = vpop.f32.mrb[24].mxu1  ;;  %v894_v34 = vunpack.c.l.s4 %v1291_v33  ;;  %v896_v35 = vlaneseq }
 0x146   :  { %v976_v43 = vadd.f32 %v975_v39, %v936_v41  ;;  %v797_v45 = vpop.f32.mrb[24].mxu0  ;;  %v686_v47 = vpop.f32.mrb[25].mxu1 }
 0x147   :  { %v798_v46 = vadd.f32 %v797_v45, %v684_v44  ;;  %v799_v48 = vpop.f32.mrb[25].mxu0  ;;  %v688_v50 = vpop.f32.mrb[26].mxu1  ;;  %v895_v44 = vunpack.c.0.s8 %v894_v34  ;;  %v897_v45 = vshrl.u32 %v896_v35, 7  ;;  %vm910_vm0 = vcmp.lt.s32.totalorder %v896_v35, 256 }
 0x148   :  { %v800_v49 = vadd.f32 %v799_v48, %v686_v47  ;;  %v801_v51 = vpop.f32.mrb[26].mxu0  ;;  %v690_v55 = vpop.f32.mrb[27].mxu1 }
 0x149   :  { %840 = vst [vmem:[%s1709_s2 + $0xc0] sm:$0xff] %v798_v46  ;;  %v859_v52 = vadd.f32 %v858_v37, %v798_v46  ;;  %v937_v53 = vmul.f32 %v798_v46, %v798_v46  ;;  %v802_v54 = vadd.f32 %v801_v51, %v688_v50  ;;  %v803_v56 = vpop.f32.mrb[27].mxu0 }
 0x14a   :  { %841 = vst [vmem:[%s1709_s2 + $0xc8] sm:$0xff] %v800_v49  ;;  %v880_v57 = vadd.f32 %v879_v40, %v800_v49  ;;  %v938_v58 = vmul.f32 %v800_v49, %v800_v49  ;;  %v804_v59 = vadd.f32 %v803_v56, %v690_v55 }
 0x14b   :  { %v956_v60 = vadd.f32 %v955_v42, %v937_v53  ;;  %842 = vst [vmem:[%s1709_s2 + $0xd0] sm:$0xff] %v802_v54  ;;  %v860_v61 = vadd.f32 %v859_v52, %v802_v54  ;;  %v939_v62 = vmul.f32 %v802_v54, %v802_v54  ;;  %v898_v54 = vsub.s32 %v895_v44, %v897_v45 }
 0x14c   :  { %v977_v63 = vadd.f32 %v976_v43, %v938_v58  ;;  %843 = vst [vmem:[%s1709_s2 + $0xd8] sm:$0xff] %v804_v59  ;;  %v881_v0 = vadd.f32 %v880_v57, %v804_v59  ;;  %v940_v1 = vmul.f32 %v804_v59, %v804_v59 }
 0x14d   :  { %v957_v2 = vadd.f32 %v956_v60, %v939_v62  ;;  %v694_v4 = vpop.f32.mrb[28].mxu1 }
 0x14e   :  { %v978_v3 = vadd.f32 %v977_v63, %v940_v1  ;;  %v807_v5 = vpop.f32.mrb[28].mxu0  ;;  %v696_v7 = vpop.f32.mrb[29].mxu1 }
 0x14f   :  { %v808_v6 = vadd.f32 %v807_v5, %v694_v4  ;;  %v809_v8 = vpop.f32.mrb[29].mxu0  ;;  %v698_v10 = vpop.f32.mrb[30].mxu1 }
 0x150   :  { %v810_v9 = vadd.f32 %v809_v8, %v696_v7  ;;  %v811_v11 = vpop.f32.mrb[30].mxu0  ;;  %v700_v15 = vpop.f32.mrb[31].mxu1 }
 0x151   :  { %844 = vst [vmem:[%s1709_s2 + $0xe0] sm:$0xff] %v808_v6  ;;  %v861_v12 = vadd.f32 %v860_v61, %v808_v6  ;;  %v941_v13 = vmul.f32 %v808_v6, %v808_v6  ;;  %v812_v14 = vadd.f32 %v811_v11, %v698_v10  ;;  %v813_v16 = vpop.f32.mrb[31].mxu0 }
 0x152   :  { %845 = vst [vmem:[%s1709_s2 + $0xe8] sm:$0xff] %v810_v9  ;;  %v882_v17 = vadd.f32 %v881_v0, %v810_v9  ;;  %v942_v18 = vmul.f32 %v810_v9, %v810_v9  ;;  %v814_v19 = vadd.f32 %v813_v16, %v700_v15 }
 0x153   :  { %v958_v20 = vadd.f32 %v957_v2, %v941_v13  ;;  %846 = vst [vmem:[%s1709_s2 + $0xf0] sm:$0xff] %v812_v14  ;;  %v862_v21 = vadd.f32 %v861_v12, %v812_v14  ;;  %v943_v22 = vmul.f32 %v812_v14, %v812_v14 }
 0x154   :  { %v979_v23 = vadd.f32 %v978_v3, %v942_v18  ;;  %847 = vst [vmem:[%s1709_s2 + $0xf8] sm:$0xff] %v814_v19  ;;  %v883_v24 = vadd.f32 %v882_v17, %v814_v19  ;;  %v944_v25 = vmul.f32 %v814_v19, %v814_v19 }
 0x155   :  { %v863_v26 = vrot.slane %v862_v21, 4  ;;  %v959_v27 = vadd.f32 %v958_v20, %v943_v22 }
 0x156   :  { %v884_v28 = vrot.slane %v883_v24, 4  ;;  %v980_v29 = vadd.f32 %v979_v23, %v944_v25 }
 0x157   :  { %v864_v30 = vadd.f32 %v863_v26, %v862_v21  ;;  %v960_v31 = vrot.slane %v959_v27, 4 }
 0x158   :  { %v885_v32 = vadd.f32 %v884_v28, %v883_v24  ;;  %v981_v36 = vrot.slane %v980_v29, 4 }
 0x159   :  { %v865_v37 = vrot.slane %v864_v30, 2  ;;  %v961_v38 = vadd.f32 %v960_v31, %v959_v27 }
 0x15a   :  { %v886_v39 = vrot.slane %v885_v32, 2  ;;  %v982_v40 = vadd.f32 %v981_v36, %v980_v29 }
 0x15b   :  { %v866_v41 = vadd.f32 %v865_v37, %v864_v30  ;;  %v962_v42 = vrot.slane %v961_v38, 2 }
 0x15c   :  { %v887_v43 = vadd.f32 %v886_v39, %v885_v32  ;;  %v983_v46 = vrot.slane %v982_v40, 2 }
 0x15d   :  { %v867_v47 = vrot.slane %v866_v41, 1  ;;  %v963_v48 = vadd.f32 %v962_v42, %v961_v38 }
 0x15e   :  { %v888_v49 = vrot.slane %v887_v43, 1  ;;  %v984_v50 = vadd.f32 %v983_v46, %v982_v40 }
 0x15f   :  { %v868_v51 = vadd.f32 %v867_v47, %v866_v41  ;;  %v964_v52 = vrot.slane %v963_v48, 1 }
 0x160   :  { %v889_v53 = vadd.f32 %v888_v49, %v887_v43  ;;  %v985_v55 = vrot.slane %v984_v50, 1 }
 0x161   :  { %v965_v56 = vadd.f32 %v964_v52, %v963_v48 }
 0x162   :  { %v892_v57 = vcombine.low %v868_v51, %v889_v53  ;;  %v986_v58 = vadd.f32 %v985_v55, %v984_v50 }
 0x164   :  { %v899_v59 = vrot.slane %v892_v57, %v898_v54  ;;  %v989_v60 = vcombine.low %v965_v56, %v986_v58 }
 0x166   :  { %v906_v61 = vrot.slane %v899_v59, %v898_v54  ;;  %v996_v62 = vrot.slane %v989_v60, %v898_v54 }
 0x168   :  { %912 = vst.msk [vmem:[%s1710_s3] sm:$0x3] %vm910_vm0, %v906_v61  ;;  %v1003_v63 = vrot.slane %v996_v62, %v898_v54 }
 0x16a   :  { %1005 = vst.msk [vmem:[%s1711_s4] sm:$0x3] %vm910_vm0, %v1003_v63 }

// kernel: model_forward.48
= control target key start
LH: loop header
LB: loop body
LE: loop exit
PB: predicated region body
PF: predicated region fallthrough
CT: control target
= control target key end

     0   :  { %s1767_s1 = inlined_call_operand.vmem [shape: bf16[256,512], index: 1, kind: input, shape index: {}]   ;;  %s1768_s0 = inlined_call_operand.vmem [shape: bf16[128,256], index: 0, kind: input, shape index: {}]   ;;  %s1769_s2 = inlined_call_operand.vmem [shape: f32[128,512], index: 2, kind: output, shape index: {0}]   ;;  %s1770_s3 = inlined_call_operand.vmem [shape: f32[1,512], index: 3, kind: output, shape index: {1}]   ;;  %s1771_s4 = inlined_call_operand.vmem [shape: f32[1,512], index: 4, kind: output, shape index: {2}]  }
   0x1   :  { %v1173_v0 = vld [vmem:[%s1767_s1 + $0x4] ss:$16 sps:$4 sm:$0xff]   ;;  %v1175_v1 = vld [vmem:[%s1767_s1 + $0xc] ss:$16 sps:$4 sm:$0xff]   ;;  %v1177_v2 = vld [vmem:[%s1767_s1] ss:$16 sps:$4 sm:$0xff]  }
   0x2   :  { %494 = vmatprep.subr.bf16.mxu0 %v1173_v0  ;;  %v1178_v3 = vld [vmem:[%s1767_s1 + $0x8] ss:$16 sps:$4 sm:$0xff]   ;;  %607 = vmatprep.subr.bf16.mxu1 %v1175_v1  ;;  %v1179_v4 = vld [vmem:[%s1767_s1 + $0x24] ss:$16 sps:$4 sm:$0xff]   ;;  %v1181_v5 = vld [vmem:[%s1767_s1 + $0x2c] ss:$16 sps:$4 sm:$0xff]  }
   0x3   :  { %495 = vmatpush1.bf16.msra.mxu0 %v1177_v2  ;;  %608 = vmatpush1.bf16.msra.mxu1 %v1178_v3  ;;  %v1183_v6 = vld [vmem:[%s1767_s1 + $0x20] ss:$16 sps:$4 sm:$0xff]   ;;  %v1184_v7 = vld [vmem:[%s1767_s1 + $0x28] ss:$16 sps:$4 sm:$0xff]   ;;  %v1185_v8 = vld [vmem:[%s1767_s1 + $0x44] ss:$16 sps:$4 sm:$0xff]  }
   0x4   :  { %496 = vmatprep.subr.bf16.mxu0 %v1179_v4  ;;  %609 = vmatprep.subr.bf16.mxu1 %v1181_v5  ;;  %v1187_v9 = vld [vmem:[%s1767_s1 + $0x4c] ss:$16 sps:$4 sm:$0xff]   ;;  %v1189_v10 = vld [vmem:[%s1767_s1 + $0x40] ss:$16 sps:$4 sm:$0xff]   ;;  %v1190_v11 = vld [vmem:[%s1767_s1 + $0x48] ss:$16 sps:$4 sm:$0xff]  }
   0x5   :  { %v1191_v12 = vld [vmem:[%s1767_s1 + $0x64] ss:$16 sps:$4 sm:$0xff]   ;;  %v1193_v13 = vld [vmem:[%s1767_s1 + $0x6c] ss:$16 sps:$4 sm:$0xff]   ;;  %v1195_v14 = vld [vmem:[%s1767_s1 + $0x60] ss:$16 sps:$4 sm:$0xff]  }
   0x6   :  { %v1196_v15 = vld [vmem:[%s1767_s1 + $0x68] ss:$16 sps:$4 sm:$0xff]   ;;  %v1197_v16 = vld [vmem:[%s1767_s1 + $0x84] ss:$16 sps:$4 sm:$0xff]   ;;  %v1199_v17 = vld [vmem:[%s1767_s1 + $0x8c] ss:$16 sps:$4 sm:$0xff]  }
   0x7   :  { %497 = vmatpush1.bf16.msra.mxu0 %v1183_v6  ;;  %610 = vmatpush1.bf16.msra.mxu1 %v1184_v7  ;;  %v1201_v18 = vld [vmem:[%s1767_s1 + $0x80] ss:$16 sps:$4 sm:$0xff]   ;;  %v1202_v19 = vld [vmem:[%s1767_s1 + $0x88] ss:$16 sps:$4 sm:$0xff]   ;;  %v1203_v20 = vld [vmem:[%s1767_s1 + $0xa4] ss:$16 sps:$4 sm:$0xff]  }
   0x8   :  { %498 = vmatprep.subr.bf16.mxu0 %v1185_v8  ;;  %611 = vmatprep.subr.bf16.mxu1 %v1187_v9  ;;  %v1205_v21 = vld [vmem:[%s1767_s1 + $0xac] ss:$16 sps:$4 sm:$0xff]   ;;  %v1207_v22 = vld [vmem:[%s1767_s1 + $0xa0] ss:$16 sps:$4 sm:$0xff]   ;;  %v1208_v23 = vld [vmem:[%s1767_s1 + $0xa8] ss:$16 sps:$4 sm:$0xff]  }
   0x9   :  { %v1209_v24 = vld [vmem:[%s1767_s1 + $0xc4] ss:$16 sps:$4 sm:$0xff]   ;;  %v1211_v25 = vld [vmem:[%s1767_s1 + $0xcc] ss:$16 sps:$4 sm:$0xff]   ;;  %v1213_v26 = vld [vmem:[%s1767_s1 + $0xc0] ss:$16 sps:$4 sm:$0xff]  }
   0xa   :  { %v1214_v27 = vld [vmem:[%s1767_s1 + $0xc8] ss:$16 sps:$4 sm:$0xff]   ;;  %v1215_v28 = vld [vmem:[%s1767_s1 + $0xe4] ss:$16 sps:$4 sm:$0xff]   ;;  %v1217_v29 = vld [vmem:[%s1767_s1 + $0xec] ss:$16 sps:$4 sm:$0xff]  }
   0xb   :  { %499 = vmatpush1.bf16.msra.mxu0 %v1189_v10  ;;  %612 = vmatpush1.bf16.msra.mxu1 %v1190_v11  ;;  %v1219_v30 = vld [vmem:[%s1767_s1 + $0xe0] ss:$16 sps:$4 sm:$0xff]   ;;  %v1220_v31 = vld [vmem:[%s1767_s1 + $0xe8] ss:$16 sps:$4 sm:$0xff]   ;;  %v1221_v32 = vld [vmem:[%s1767_s1 + $0x104] ss:$16 sps:$4 sm:$0xff]  }
   0xc   :  { %500 = vmatprep.subr.bf16.mxu0 %v1191_v12  ;;  %613 = vmatprep.subr.bf16.mxu1 %v1193_v13  ;;  %v1223_v33 = vld [vmem:[%s1767_s1 + $0x10c] ss:$16 sps:$4 sm:$0xff]   ;;  %v1225_v34 = vld [vmem:[%s1767_s1 + $0x100] ss:$16 sps:$4 sm:$0xff]   ;;  %v1226_v35 = vld [vmem:[%s1767_s1 + $0x108] ss:$16 sps:$4 sm:$0xff]  }
   0xd   :  { %v1227_v36 = vld [vmem:[%s1767_s1 + $0x124] ss:$16 sps:$4 sm:$0xff]   ;;  %v1229_v37 = vld [vmem:[%s1767_s1 + $0x12c] ss:$16 sps:$4 sm:$0xff]   ;;  %v1231_v38 = vld [vmem:[%s1767_s1 + $0x120] ss:$16 sps:$4 sm:$0xff]  }
   0xe   :  { %v1232_v39 = vld [vmem:[%s1767_s1 + $0x128] ss:$16 sps:$4 sm:$0xff]   ;;  %v1233_v40 = vld [vmem:[%s1767_s1 + $0x144] ss:$16 sps:$4 sm:$0xff]   ;;  %v1235_v41 = vld [vmem:[%s1767_s1 + $0x14c] ss:$16 sps:$4 sm:$0xff]  }
   0xf   :  { %501 = vmatpush1.bf16.msra.mxu0 %v1195_v14  ;;  %614 = vmatpush1.bf16.msra.mxu1 %v1196_v15  ;;  %v1237_v42 = vld [vmem:[%s1767_s1 + $0x140] ss:$16 sps:$4 sm:$0xff]   ;;  %v1238_v43 = vld [vmem:[%s1767_s1 + $0x148] ss:$16 sps:$4 sm:$0xff]   ;;  %v1239_v44 = vld [vmem:[%s1767_s1 + $0x164] ss:$16 sps:$4 sm:$0xff]  }
  0x10   :  { %502 = vmatprep.subr.bf16.mxu0 %v1197_v16  ;;  %615 = vmatprep.subr.bf16.mxu1 %v1199_v17  ;;  %v1241_v45 = vld [vmem:[%s1767_s1 + $0x16c] ss:$16 sps:$4 sm:$0xff]   ;;  %v1243_v46 = vld [vmem:[%s1767_s1 + $0x160] ss:$16 sps:$4 sm:$0xff]   ;;  %v1244_v47 = vld [vmem:[%s1767_s1 + $0x168] ss:$16 sps:$4 sm:$0xff]  }
  0x11   :  { %v1271_v48 = vld [vmem:[%s1768_s0 + $0x4] ss:$8 sps:$4 sm:$0xff]   ;;  %v1249_v51 = vld [vmem:[%s1767_s1 + $0x180] ss:$16 sps:$4 sm:$0xff]   ;;  %v1250_v52 = vld [vmem:[%s1767_s1 + $0x188] ss:$16 sps:$4 sm:$0xff]  }
  0x12   :  { %v1245_v49 = vld [vmem:[%s1767_s1 + $0x184] ss:$16 sps:$4 sm:$0xff]   ;;  %v1247_v50 = vld [vmem:[%s1767_s1 + $0x18c] ss:$16 sps:$4 sm:$0xff]   ;;  %526 = vmatprep.mubr.bf16.mxu0 %v1271_v48  ;;  %639 = vmatprep.mubr.bf16.mxu1 %v1271_v48  ;;  %v1255_v55 = vld [vmem:[%s1767_s1 + $0x1a0] ss:$16 sps:$4 sm:$0xff]  }
  0x13   :  { %503 = vmatpush1.bf16.msra.mxu0 %v1201_v18  ;;  %616 = vmatpush1.bf16.msra.mxu1 %v1202_v19  ;;  %v1251_v53 = vld [vmem:[%s1767_s1 + $0x1a4] ss:$16 sps:$4 sm:$0xff]   ;;  %v1253_v54 = vld [vmem:[%s1767_s1 + $0x1ac] ss:$16 sps:$4 sm:$0xff]   ;;  %v1256_v56 = vld [vmem:[%s1767_s1 + $0x1a8] ss:$16 sps:$4 sm:$0xff]  }
  0x14   :  { %504 = vmatprep.subr.bf16.mxu0 %v1203_v20  ;;  %617 = vmatprep.subr.bf16.mxu1 %v1205_v21  ;;  %v1257_v57 = vld [vmem:[%s1767_s1 + $0x1c4] ss:$16 sps:$4 sm:$0xff]   ;;  %v1259_v58 = vld [vmem:[%s1767_s1 + $0x1cc] ss:$16 sps:$4 sm:$0xff]   ;;  %v1261_v59 = vld [vmem:[%s1767_s1 + $0x1c0] ss:$16 sps:$4 sm:$0xff]  }
  0x15   :  { %v1262_v60 = vld [vmem:[%s1767_s1 + $0x1c8] ss:$16 sps:$4 sm:$0xff]   ;;  %v1263_v61 = vld [vmem:[%s1767_s1 + $0x1e4] ss:$16 sps:$4 sm:$0xff]   ;;  %v1265_v62 = vld [vmem:[%s1767_s1 + $0x1ec] ss:$16 sps:$4 sm:$0xff]  }
  0x16   :  { %v1267_v63 = vld [vmem:[%s1767_s1 + $0x1e0] ss:$16 sps:$4 sm:$0xff]   ;;  %v1268_v0 = vld [vmem:[%s1767_s1 + $0x1e8] ss:$16 sps:$4 sm:$0xff]   ;;  %v1272_v2 = vld [vmem:[%s1768_s0 + $0x14] ss:$8 sps:$4 sm:$0xff]  }
  0x17   :  { %505 = vmatpush1.bf16.msra.mxu0 %v1207_v22  ;;  %618 = vmatpush1.bf16.msra.mxu1 %v1208_v23  ;;  %v1269_v1 = vld [vmem:[%s1768_s0] ss:$8 sps:$4 sm:$0xff]   ;;  %v1274_v3 = vld [vmem:[%s1768_s0 + $0x10] ss:$8 sps:$4 sm:$0xff]   ;;  %v1275_v4 = vld [vmem:[%s1768_s0 + $0x24] ss:$8 sps:$4 sm:$0xff]  }
  0x18   :  { %506 = vmatprep.subr.bf16.mxu0 %v1209_v24  ;;  %619 = vmatprep.subr.bf16.mxu1 %v1211_v25  ;;  %v1277_v5 = vld [vmem:[%s1768_s0 + $0x20] ss:$8 sps:$4 sm:$0xff]   ;;  %v1278_v6 = vld [vmem:[%s1768_s0 + $0x34] ss:$8 sps:$4 sm:$0xff]   ;;  %v1280_v7 = vld [vmem:[%s1768_s0 + $0x30] ss:$8 sps:$4 sm:$0xff]  }
  0x19   :  { %v1281_v8 = vld [vmem:[%s1768_s0 + $0x44] ss:$8 sps:$4 sm:$0xff]   ;;  %v1283_v9 = vld [vmem:[%s1768_s0 + $0x40] ss:$8 sps:$4 sm:$0xff]   ;;  %v1284_v10 = vld [vmem:[%s1768_s0 + $0x54] ss:$8 sps:$4 sm:$0xff]  }
  0x1a   :  { %v1286_v11 = vld [vmem:[%s1768_s0 + $0x50] ss:$8 sps:$4 sm:$0xff]   ;;  %v1287_v12 = vld [vmem:[%s1768_s0 + $0x64] ss:$8 sps:$4 sm:$0xff]   ;;  %v1289_v13 = vld [vmem:[%s1768_s0 + $0x60] ss:$8 sps:$4 sm:$0xff]  }
  0x1b   :  { %507 = vmatpush1.bf16.msra.mxu0 %v1213_v26  ;;  %620 = vmatpush1.bf16.msra.mxu1 %v1214_v27  ;;  %v1290_v14 = vld [vmem:[%s1768_s0 + $0x74] ss:$8 sps:$4 sm:$0xff]   ;;  %v1292_v15 = vld [vmem:[%s1768_s0 + $0x70] ss:$8 sps:$4 sm:$0xff]  }
  0x1c   :  { %508 = vmatprep.subr.bf16.mxu0 %v1215_v28  ;;  %621 = vmatprep.subr.bf16.mxu1 %v1217_v29 }
  0x1f   :  { %509 = vmatpush1.bf16.msra.mxu0 %v1219_v30  ;;  %622 = vmatpush1.bf16.msra.mxu1 %v1220_v31 }
  0x20   :  { %510 = vmatprep.subr.bf16.mxu0 %v1221_v32  ;;  %623 = vmatprep.subr.bf16.mxu1 %v1223_v33 }
  0x23   :  { %511 = vmatpush1.bf16.msra.mxu0 %v1225_v34  ;;  %624 = vmatpush1.bf16.msra.mxu1 %v1226_v35 }
  0x24   :  { %512 = vmatprep.subr.bf16.mxu0 %v1227_v36  ;;  %625 = vmatprep.subr.bf16.mxu1 %v1229_v37 }
  0x27   :  { %513 = vmatpush1.bf16.msra.mxu0 %v1231_v38  ;;  %626 = vmatpush1.bf16.msra.mxu1 %v1232_v39 }
  0x28   :  { %514 = vmatprep.subr.bf16.mxu0 %v1233_v40  ;;  %627 = vmatprep.subr.bf16.mxu1 %v1235_v41 }
  0x2b   :  { %515 = vmatpush1.bf16.msra.mxu0 %v1237_v42  ;;  %628 = vmatpush1.bf16.msra.mxu1 %v1238_v43 }
  0x2c   :  { %516 = vmatprep.subr.bf16.mxu0 %v1239_v44  ;;  %629 = vmatprep.subr.bf16.mxu1 %v1241_v45 }
  0x2f   :  { %517 = vmatpush1.bf16.msra.mxu0 %v1243_v46  ;;  %630 = vmatpush1.bf16.msra.mxu1 %v1244_v47 }
  0x30   :  { %518 = vmatprep.subr.bf16.mxu0 %v1245_v49  ;;  %631 = vmatprep.subr.bf16.mxu1 %v1247_v50 }
  0x33   :  { %519 = vmatpush1.bf16.msra.mxu0 %v1249_v51  ;;  %632 = vmatpush1.bf16.msra.mxu1 %v1250_v52 }
  0x34   :  { %520 = vmatprep.subr.bf16.mxu0 %v1251_v53  ;;  %633 = vmatprep.subr.bf16.mxu1 %v1253_v54 }
  0x37   :  { %521 = vmatpush1.bf16.msra.mxu0 %v1255_v55  ;;  %634 = vmatpush1.bf16.msra.mxu1 %v1256_v56 }
  0x38   :  { %522 = vmatprep.subr.bf16.mxu0 %v1257_v57  ;;  %635 = vmatprep.subr.bf16.mxu1 %v1259_v58 }
  0x3b   :  { %523 = vmatpush1.bf16.msra.mxu0 %v1261_v59  ;;  %636 = vmatpush1.bf16.msra.mxu1 %v1262_v60 }
  0x3c   :  { %524 = vmatprep.subr.bf16.mxu0 %v1263_v61  ;;  %637 = vmatprep.subr.bf16.mxu1 %v1265_v62 }
  0x3f   :  { %525 = vmatpush1.bf16.msra.mxu0 %v1267_v63  ;;  %638 = vmatpush1.bf16.msra.mxu1 %v1268_v0 }
  0x42   :  { %527 = vmatmul.mubr.bf16.vlgmr.msra.gmra.mrb[0].mxu0 %v1269_v1  ;;  %640 = vmatmul.mubr.bf16.vlgmr.msra.gmra.mrb[0].mxu1 %v1269_v1 }
  0x43   :  { %536 = vmatprep.mubr.bf16.mxu0 %v1272_v2  ;;  %649 = vmatprep.mubr.bf16.mxu1 %v1272_v2 }
  0x4a   :  { %537 = vmatmul.mubr.bf16.gmra.mrb[4].mxu0 %v1274_v3  ;;  %650 = vmatmul.mubr.bf16.gmra.mrb[4].mxu1 %v1274_v3 }
  0x4b   :  { %546 = vmatprep.mubr.bf16.mxu0 %v1275_v4  ;;  %659 = vmatprep.mubr.bf16.mxu1 %v1275_v4 }
  0x52   :  { %547 = vmatmul.mubr.bf16.gmra.mrb[8].mxu0 %v1277_v5  ;;  %660 = vmatmul.mubr.bf16.gmra.mrb[8].mxu1 %v1277_v5 }
  0x53   :  { %556 = vmatprep.mubr.bf16.mxu0 %v1278_v6  ;;  %669 = vmatprep.mubr.bf16.mxu1 %v1278_v6 }
  0x5a   :  { %557 = vmatmul.mubr.bf16.gmra.mrb[12].mxu0 %v1280_v7  ;;  %670 = vmatmul.mubr.bf16.gmra.mrb[12].mxu1 %v1280_v7 }
  0x5b   :  { %566 = vmatprep.mubr.bf16.mxu0 %v1281_v8  ;;  %679 = vmatprep.mubr.bf16.mxu1 %v1281_v8 }
  0x62   :  { %567 = vmatmul.mubr.bf16.gmra.mrb[16].mxu0 %v1283_v9  ;;  %680 = vmatmul.mubr.bf16.gmra.mrb[16].mxu1 %v1283_v9 }
  0x63   :  { %576 = vmatprep.mubr.bf16.mxu0 %v1284_v10  ;;  %689 = vmatprep.mubr.bf16.mxu1 %v1284_v10 }
  0x6a   :  { %577 = vmatmul.mubr.bf16.gmra.mrb[20].mxu0 %v1286_v11  ;;  %690 = vmatmul.mubr.bf16.gmra.mrb[20].mxu1 %v1286_v11 }
  0x6b   :  { %586 = vmatprep.mubr.bf16.mxu0 %v1287_v12  ;;  %699 = vmatprep.mubr.bf16.mxu1 %v1287_v12 }
  0x72   :  { %587 = vmatmul.mubr.bf16.gmra.mrb[24].mxu0 %v1289_v13  ;;  %700 = vmatmul.mubr.bf16.gmra.mrb[24].mxu1 %v1289_v13 }
  0x73   :  { %596 = vmatprep.mubr.bf16.mxu0 %v1290_v14  ;;  %709 = vmatprep.mubr.bf16.mxu1 %v1290_v14 }
  0x7a   :  { %597 = vmatmul.mubr.bf16.gmra.mrb[28].mxu0 %v1292_v15  ;;  %710 = vmatmul.mubr.bf16.gmra.mrb[28].mxu1 %v1292_v15 }
 0x115   :  { %v528_v16 = vpop.f32.mrb[0].mxu0  ;;  %v641_v17 = vpop.f32.mrb[0].mxu1 }
 0x116   :  { %720 = vst [vmem:[%s1769_s2] sm:$0xff] %v528_v16  ;;  %722 = vst [vmem:[%s1769_s2 + $0x10] sm:$0xff] %v641_v17  ;;  %v530_v18 = vpop.f32.mrb[1].mxu0  ;;  %v643_v19 = vpop.f32.mrb[1].mxu1  ;;  %v902_v20 = vmul.f32 %v528_v16, %v528_v16  ;;  %v904_v21 = vmul.f32 %v641_v17, %v641_v17 }
 0x117   :  { %721 = vst [vmem:[%s1769_s2 + $0x8] sm:$0xff] %v530_v18  ;;  %v903_v22 = vmul.f32 %v530_v18, %v530_v18  ;;  %723 = vst [vmem:[%s1769_s2 + $0x18] sm:$0xff] %v643_v19  ;;  %v905_v23 = vmul.f32 %v643_v19, %v643_v19  ;;  %v532_v24 = vpop.f32.mrb[2].mxu0  ;;  %v645_v25 = vpop.f32.mrb[2].mxu1 }
 0x118   :  { %724 = vst [vmem:[%s1769_s2 + $0x20] sm:$0xff] %v532_v24  ;;  %v784_v26 = vadd.f32 %v532_v24, %v528_v16  ;;  %v906_v27 = vmul.f32 %v532_v24, %v532_v24  ;;  %726 = vst [vmem:[%s1769_s2 + $0x30] sm:$0xff] %v645_v25  ;;  %v826_v28 = vadd.f32 %v645_v25, %v641_v17  ;;  %v534_v30 = vpop.f32.mrb[3].mxu0  ;;  %v647_v31 = vpop.f32.mrb[3].mxu1 }
 0x119   :  { %v908_v29 = vmul.f32 %v645_v25, %v645_v25  ;;  %725 = vst [vmem:[%s1769_s2 + $0x28] sm:$0xff] %v534_v30  ;;  %v805_v32 = vadd.f32 %v534_v30, %v530_v18  ;;  %v907_v33 = vmul.f32 %v534_v30, %v534_v30  ;;  %727 = vst [vmem:[%s1769_s2 + $0x38] sm:$0xff] %v647_v31 }
 0x11a   :  { %v847_v34 = vadd.f32 %v647_v31, %v643_v19  ;;  %v909_v35 = vmul.f32 %v647_v31, %v647_v31  ;;  %v966_v36 = vadd.f32 %v906_v27, %v902_v20 }
 0x11b   :  { %v1008_v37 = vadd.f32 %v908_v29, %v904_v21  ;;  %v987_v38 = vadd.f32 %v907_v33, %v903_v22 }
 0x11c   :  { %v1029_v39 = vadd.f32 %v909_v35, %v905_v23 }
 0x11d   :  { %v538_v40 = vpop.f32.mrb[4].mxu0  ;;  %v651_v41 = vpop.f32.mrb[4].mxu1 }
 0x11e   :  { %728 = vst [vmem:[%s1769_s2 + $0x40] sm:$0xff] %v538_v40  ;;  %v785_v42 = vadd.f32 %v784_v26, %v538_v40  ;;  %v910_v43 = vmul.f32 %v538_v40, %v538_v40  ;;  %730 = vst [vmem:[%s1769_s2 + $0x50] sm:$0xff] %v651_v41  ;;  %v827_v44 = vadd.f32 %v826_v28, %v651_v41  ;;  %v540_v46 = vpop.f32.mrb[5].mxu0  ;;  %v653_v47 = vpop.f32.mrb[5].mxu1 }
 0x11f   :  { %v912_v45 = vmul.f32 %v651_v41, %v651_v41  ;;  %729 = vst [vmem:[%s1769_s2 + $0x48] sm:$0xff] %v540_v46  ;;  %v806_v48 = vadd.f32 %v805_v32, %v540_v46  ;;  %v911_v49 = vmul.f32 %v540_v46, %v540_v46  ;;  %731 = vst [vmem:[%s1769_s2 + $0x58] sm:$0xff] %v653_v47  ;;  %v542_v52 = vpop.f32.mrb[6].mxu0  ;;  %v655_v53 = vpop.f32.mrb[6].mxu1 }
 0x120   :  { %v848_v50 = vadd.f32 %v847_v34, %v653_v47  ;;  %v913_v51 = vmul.f32 %v653_v47, %v653_v47  ;;  %v967_v54 = vadd.f32 %v966_v36, %v910_v43  ;;  %732 = vst [vmem:[%s1769_s2 + $0x60] sm:$0xff] %v542_v52  ;;  %v786_v56 = vadd.f32 %v785_v42, %v542_v52  ;;  %v544_v58 = vpop.f32.mrb[7].mxu0  ;;  %v657_v59 = vpop.f32.mrb[7].mxu1 }
 0x121   :  { %v1009_v55 = vadd.f32 %v1008_v37, %v912_v45  ;;  %v914_v57 = vmul.f32 %v542_v52, %v542_v52  ;;  %734 = vst [vmem:[%s1769_s2 + $0x70] sm:$0xff] %v655_v53  ;;  %v988_v60 = vadd.f32 %v987_v38, %v911_v49  ;;  %v828_v62 = vadd.f32 %v827_v44, %v655_v53 }
 0x122   :  { %v1030_v61 = vadd.f32 %v1029_v39, %v913_v51  ;;  %v916_v63 = vmul.f32 %v655_v53, %v655_v53  ;;  %733 = vst [vmem:[%s1769_s2 + $0x68] sm:$0xff] %v544_v58  ;;  %735 = vst [vmem:[%s1769_s2 + $0x78] sm:$0xff] %v657_v59  ;;  %v807_v1 = vadd.f32 %v806_v48, %v544_v58 }
 0x123   :  { %v968_v0 = vadd.f32 %v967_v54, %v914_v57  ;;  %v915_v2 = vmul.f32 %v544_v58, %v544_v58  ;;  %v849_v3 = vadd.f32 %v848_v50, %v657_v59  ;;  %v917_v5 = vmul.f32 %v657_v59, %v657_v59 }
 0x124   :  { %v1010_v4 = vadd.f32 %v1009_v55, %v916_v63 }
 0x125   :  { %v989_v6 = vadd.f32 %v988_v60, %v915_v2  ;;  %v1031_v7 = vadd.f32 %v1030_v61, %v917_v5  ;;  %v548_v8 = vpop.f32.mrb[8].mxu0  ;;  %v661_v9 = vpop.f32.mrb[8].mxu1 }
 0x126   :  { %736 = vst [vmem:[%s1769_s2 + $0x80] sm:$0xff] %v548_v8  ;;  %v787_v10 = vadd.f32 %v786_v56, %v548_v8  ;;  %v918_v11 = vmul.f32 %v548_v8, %v548_v8  ;;  %738 = vst [vmem:[%s1769_s2 + $0x90] sm:$0xff] %v661_v9  ;;  %v829_v12 = vadd.f32 %v828_v62, %v661_v9  ;;  %v550_v14 = vpop.f32.mrb[9].mxu0  ;;  %v663_v15 = vpop.f32.mrb[9].mxu1 }
 0x127   :  { %v920_v13 = vmul.f32 %v661_v9, %v661_v9  ;;  %737 = vst [vmem:[%s1769_s2 + $0x88] sm:$0xff] %v550_v14  ;;  %v808_v16 = vadd.f32 %v807_v1, %v550_v14  ;;  %v919_v17 = vmul.f32 %v550_v14, %v550_v14  ;;  %739 = vst [vmem:[%s1769_s2 + $0x98] sm:$0xff] %v663_v15  ;;  %v552_v20 = vpop.f32.mrb[10].mxu0  ;;  %v665_v21 = vpop.f32.mrb[10].mxu1 }
 0x128   :  { %v850_v18 = vadd.f32 %v849_v3, %v663_v15  ;;  %v921_v19 = vmul.f32 %v663_v15, %v663_v15  ;;  %v969_v22 = vadd.f32 %v968_v0, %v918_v11  ;;  %740 = vst [vmem:[%s1769_s2 + $0xa0] sm:$0xff] %v552_v20  ;;  %v788_v24 = vadd.f32 %v787_v10, %v552_v20  ;;  %v554_v26 = vpop.f32.mrb[11].mxu0  ;;  %v667_v27 = vpop.f32.mrb[11].mxu1 }
 0x129   :  { %v1011_v23 = vadd.f32 %v1010_v4, %v920_v13  ;;  %v922_v25 = vmul.f32 %v552_v20, %v552_v20  ;;  %742 = vst [vmem:[%s1769_s2 + $0xb0] sm:$0xff] %v665_v21  ;;  %v990_v28 = vadd.f32 %v989_v6, %v919_v17  ;;  %v830_v30 = vadd.f32 %v829_v12, %v665_v21 }
 0x12a   :  { %v1032_v29 = vadd.f32 %v1031_v7, %v921_v19  ;;  %v924_v31 = vmul.f32 %v665_v21, %v665_v21  ;;  %741 = vst [vmem:[%s1769_s2 + $0xa8] sm:$0xff] %v554_v26  ;;  %743 = vst [vmem:[%s1769_s2 + $0xb8] sm:$0xff] %v667_v27  ;;  %v809_v33 = vadd.f32 %v808_v16, %v554_v26 }
 0x12b   :  { %v970_v32 = vadd.f32 %v969_v22, %v922_v25  ;;  %v923_v34 = vmul.f32 %v554_v26, %v554_v26  ;;  %v851_v35 = vadd.f32 %v850_v18, %v667_v27  ;;  %v925_v37 = vmul.f32 %v667_v27, %v667_v27 }
 0x12c   :  { %v1012_v36 = vadd.f32 %v1011_v23, %v924_v31 }
 0x12d   :  { %v991_v38 = vadd.f32 %v990_v28, %v923_v34  ;;  %v1033_v39 = vadd.f32 %v1032_v29, %v925_v37  ;;  %v558_v40 = vpop.f32.mrb[12].mxu0  ;;  %v671_v41 = vpop.f32.mrb[12].mxu1 }
 0x12e   :  { %744 = vst [vmem:[%s1769_s2 + $0xc0] sm:$0xff] %v558_v40  ;;  %v789_v42 = vadd.f32 %v788_v24, %v558_v40  ;;  %v926_v43 = vmul.f32 %v558_v40, %v558_v40  ;;  %746 = vst [vmem:[%s1769_s2 + $0xd0] sm:$0xff] %v671_v41  ;;  %v831_v44 = vadd.f32 %v830_v30, %v671_v41  ;;  %v560_v46 = vpop.f32.mrb[13].mxu0  ;;  %v673_v47 = vpop.f32.mrb[13].mxu1 }
 0x12f   :  { %v928_v45 = vmul.f32 %v671_v41, %v671_v41  ;;  %745 = vst [vmem:[%s1769_s2 + $0xc8] sm:$0xff] %v560_v46  ;;  %v810_v48 = vadd.f32 %v809_v33, %v560_v46  ;;  %v927_v49 = vmul.f32 %v560_v46, %v560_v46  ;;  %747 = vst [vmem:[%s1769_s2 + $0xd8] sm:$0xff] %v673_v47  ;;  %v562_v52 = vpop.f32.mrb[14].mxu0  ;;  %v675_v53 = vpop.f32.mrb[14].mxu1 }
 0x130   :  { %v852_v50 = vadd.f32 %v851_v35, %v673_v47  ;;  %v929_v51 = vmul.f32 %v673_v47, %v673_v47  ;;  %v971_v54 = vadd.f32 %v970_v32, %v926_v43  ;;  %748 = vst [vmem:[%s1769_s2 + $0xe0] sm:$0xff] %v562_v52  ;;  %v790_v56 = vadd.f32 %v789_v42, %v562_v52  ;;  %v564_v58 = vpop.f32.mrb[15].mxu0  ;;  %v677_v59 = vpop.f32.mrb[15].mxu1 }
 0x131   :  { %v1013_v55 = vadd.f32 %v1012_v36, %v928_v45  ;;  %v930_v57 = vmul.f32 %v562_v52, %v562_v52  ;;  %750 = vst [vmem:[%s1769_s2 + $0xf0] sm:$0xff] %v675_v53  ;;  %v992_v60 = vadd.f32 %v991_v38, %v927_v49  ;;  %v832_v62 = vadd.f32 %v831_v44, %v675_v53 }
 0x132   :  { %v1034_v61 = vadd.f32 %v1033_v39, %v929_v51  ;;  %v932_v63 = vmul.f32 %v675_v53, %v675_v53  ;;  %749 = vst [vmem:[%s1769_s2 + $0xe8] sm:$0xff] %v564_v58  ;;  %751 = vst [vmem:[%s1769_s2 + $0xf8] sm:$0xff] %v677_v59  ;;  %v811_v1 = vadd.f32 %v810_v48, %v564_v58 }
 0x133   :  { %v972_v0 = vadd.f32 %v971_v54, %v930_v57  ;;  %v931_v2 = vmul.f32 %v564_v58, %v564_v58  ;;  %v853_v3 = vadd.f32 %v852_v50, %v677_v59  ;;  %v933_v5 = vmul.f32 %v677_v59, %v677_v59 }
 0x134   :  { %v1014_v4 = vadd.f32 %v1013_v55, %v932_v63 }
 0x135   :  { %v993_v6 = vadd.f32 %v992_v60, %v931_v2  ;;  %v1035_v7 = vadd.f32 %v1034_v61, %v933_v5  ;;  %v568_v8 = vpop.f32.mrb[16].mxu0  ;;  %v681_v9 = vpop.f32.mrb[16].mxu1 }
 0x136   :  { %752 = vst [vmem:[%s1769_s2 + $0x100] sm:$0xff] %v568_v8  ;;  %v791_v10 = vadd.f32 %v790_v56, %v568_v8  ;;  %v934_v11 = vmul.f32 %v568_v8, %v568_v8  ;;  %754 = vst [vmem:[%s1769_s2 + $0x110] sm:$0xff] %v681_v9  ;;  %v833_v12 = vadd.f32 %v832_v62, %v681_v9  ;;  %v570_v14 = vpop.f32.mrb[17].mxu0  ;;  %v683_v15 = vpop.f32.mrb[17].mxu1 }
 0x137   :  { %v936_v13 = vmul.f32 %v681_v9, %v681_v9  ;;  %753 = vst [vmem:[%s1769_s2 + $0x108] sm:$0xff] %v570_v14  ;;  %v812_v16 = vadd.f32 %v811_v1, %v570_v14  ;;  %v935_v17 = vmul.f32 %v570_v14, %v570_v14  ;;  %755 = vst [vmem:[%s1769_s2 + $0x118] sm:$0xff] %v683_v15  ;;  %v572_v20 = vpop.f32.mrb[18].mxu0  ;;  %v685_v21 = vpop.f32.mrb[18].mxu1 }
 0x138   :  { %v854_v18 = vadd.f32 %v853_v3, %v683_v15  ;;  %v937_v19 = vmul.f32 %v683_v15, %v683_v15  ;;  %v973_v22 = vadd.f32 %v972_v0, %v934_v11  ;;  %756 = vst [vmem:[%s1769_s2 + $0x120] sm:$0xff] %v572_v20  ;;  %v792_v24 = vadd.f32 %v791_v10, %v572_v20  ;;  %v574_v26 = vpop.f32.mrb[19].mxu0  ;;  %v687_v27 = vpop.f32.mrb[19].mxu1 }
 0x139   :  { %v1015_v23 = vadd.f32 %v1014_v4, %v936_v13  ;;  %v938_v25 = vmul.f32 %v572_v20, %v572_v20  ;;  %758 = vst [vmem:[%s1769_s2 + $0x130] sm:$0xff] %v685_v21  ;;  %v994_v28 = vadd.f32 %v993_v6, %v935_v17  ;;  %v834_v30 = vadd.f32 %v833_v12, %v685_v21 }
 0x13a   :  { %v1036_v29 = vadd.f32 %v1035_v7, %v937_v19  ;;  %v940_v31 = vmul.f32 %v685_v21, %v685_v21  ;;  %757 = vst [vmem:[%s1769_s2 + $0x128] sm:$0xff] %v574_v26  ;;  %759 = vst [vmem:[%s1769_s2 + $0x138] sm:$0xff] %v687_v27  ;;  %v813_v33 = vadd.f32 %v812_v16, %v574_v26  ;;  %v1293_v10 = vmov 1966171168  }
 0x13b   :  { %v974_v32 = vadd.f32 %v973_v22, %v938_v25  ;;  %v939_v34 = vmul.f32 %v574_v26, %v574_v26  ;;  %v855_v35 = vadd.f32 %v854_v18, %v687_v27  ;;  %v941_v37 = vmul.f32 %v687_v27, %v687_v27 }
 0x13c   :  { %v1016_v36 = vadd.f32 %v1015_v23, %v940_v31  ;;  %v1703_v11 = vunpack.c.l.s4 %v1293_v10  ;;  %v877_v12 = vlaneseq }
 0x13d   :  { %v995_v38 = vadd.f32 %v994_v28, %v939_v34  ;;  %v1037_v39 = vadd.f32 %v1036_v29, %v941_v37  ;;  %v578_v40 = vpop.f32.mrb[20].mxu0  ;;  %v691_v41 = vpop.f32.mrb[20].mxu1 }
 0x13e   :  { %760 = vst [vmem:[%s1769_s2 + $0x140] sm:$0xff] %v578_v40  ;;  %v793_v42 = vadd.f32 %v792_v24, %v578_v40  ;;  %v942_v43 = vmul.f32 %v578_v40, %v578_v40  ;;  %762 = vst [vmem:[%s1769_s2 + $0x150] sm:$0xff] %v691_v41  ;;  %v835_v44 = vadd.f32 %v834_v30, %v691_v41  ;;  %v580_v46 = vpop.f32.mrb[21].mxu0  ;;  %v693_v47 = vpop.f32.mrb[21].mxu1  ;;  %vm899_vm0 = vcmp.lt.s32.totalorder %v877_v12, 512 }
 0x13f   :  { %v944_v45 = vmul.f32 %v691_v41, %v691_v41  ;;  %761 = vst [vmem:[%s1769_s2 + $0x148] sm:$0xff] %v580_v46  ;;  %v814_v48 = vadd.f32 %v813_v33, %v580_v46  ;;  %v943_v49 = vmul.f32 %v580_v46, %v580_v46  ;;  %763 = vst [vmem:[%s1769_s2 + $0x158] sm:$0xff] %v693_v47  ;;  %v582_v52 = vpop.f32.mrb[22].mxu0  ;;  %v695_v53 = vpop.f32.mrb[22].mxu1  ;;  %v1731_v46 = vshrl.u32 %v877_v12, 7 }
 0x140   :  { %v856_v50 = vadd.f32 %v855_v35, %v693_v47  ;;  %v945_v51 = vmul.f32 %v693_v47, %v693_v47  ;;  %v975_v54 = vadd.f32 %v974_v32, %v942_v43  ;;  %764 = vst [vmem:[%s1769_s2 + $0x160] sm:$0xff] %v582_v52  ;;  %v794_v56 = vadd.f32 %v793_v42, %v582_v52  ;;  %v584_v58 = vpop.f32.mrb[23].mxu0  ;;  %v697_v59 = vpop.f32.mrb[23].mxu1 }
 0x141   :  { %v1017_v55 = vadd.f32 %v1016_v36, %v944_v45  ;;  %v946_v57 = vmul.f32 %v582_v52, %v582_v52  ;;  %766 = vst [vmem:[%s1769_s2 + $0x170] sm:$0xff] %v695_v53  ;;  %v996_v60 = vadd.f32 %v995_v38, %v943_v49  ;;  %v836_v62 = vadd.f32 %v835_v44, %v695_v53 }
 0x142   :  { %v1038_v61 = vadd.f32 %v1037_v39, %v945_v51  ;;  %v948_v63 = vmul.f32 %v695_v53, %v695_v53  ;;  %765 = vst [vmem:[%s1769_s2 + $0x168] sm:$0xff] %v584_v58  ;;  %767 = vst [vmem:[%s1769_s2 + $0x178] sm:$0xff] %v697_v59  ;;  %v815_v1 = vadd.f32 %v814_v48, %v584_v58  ;;  %v876_v45 = vunpack.c.0.s8 %v1703_v11 }
 0x143   :  { %v976_v0 = vadd.f32 %v975_v54, %v946_v57  ;;  %v947_v2 = vmul.f32 %v584_v58, %v584_v58  ;;  %v857_v3 = vadd.f32 %v856_v50, %v697_v59  ;;  %v949_v5 = vmul.f32 %v697_v59, %v697_v59 }
 0x144   :  { %v1018_v4 = vadd.f32 %v1017_v55, %v948_v63 }
 0x145   :  { %v997_v6 = vadd.f32 %v996_v60, %v947_v2  ;;  %v1039_v7 = vadd.f32 %v1038_v61, %v949_v5  ;;  %v588_v8 = vpop.f32.mrb[24].mxu0  ;;  %v701_v9 = vpop.f32.mrb[24].mxu1 }
 0x146   :  { %768 = vst [vmem:[%s1769_s2 + $0x180] sm:$0xff] %v588_v8  ;;  %v795_v13 = vadd.f32 %v794_v56, %v588_v8  ;;  %v950_v14 = vmul.f32 %v588_v8, %v588_v8  ;;  %770 = vst [vmem:[%s1769_s2 + $0x190] sm:$0xff] %v701_v9  ;;  %v837_v15 = vadd.f32 %v836_v62, %v701_v9  ;;  %v590_v17 = vpop.f32.mrb[25].mxu0  ;;  %v703_v18 = vpop.f32.mrb[25].mxu1 }
 0x147   :  { %v952_v16 = vmul.f32 %v701_v9, %v701_v9  ;;  %769 = vst [vmem:[%s1769_s2 + $0x188] sm:$0xff] %v590_v17  ;;  %v816_v19 = vadd.f32 %v815_v1, %v590_v17  ;;  %v951_v20 = vmul.f32 %v590_v17, %v590_v17  ;;  %771 = vst [vmem:[%s1769_s2 + $0x198] sm:$0xff] %v703_v18  ;;  %v592_v23 = vpop.f32.mrb[26].mxu0  ;;  %v705_v24 = vpop.f32.mrb[26].mxu1 }
 0x148   :  { %v858_v21 = vadd.f32 %v857_v3, %v703_v18  ;;  %v953_v22 = vmul.f32 %v703_v18, %v703_v18  ;;  %v977_v25 = vadd.f32 %v976_v0, %v950_v14  ;;  %772 = vst [vmem:[%s1769_s2 + $0x1a0] sm:$0xff] %v592_v23  ;;  %v796_v27 = vadd.f32 %v795_v13, %v592_v23  ;;  %v594_v29 = vpop.f32.mrb[27].mxu0  ;;  %v707_v30 = vpop.f32.mrb[27].mxu1 }
 0x149   :  { %v1019_v26 = vadd.f32 %v1018_v4, %v952_v16  ;;  %v954_v28 = vmul.f32 %v592_v23, %v592_v23  ;;  %774 = vst [vmem:[%s1769_s2 + $0x1b0] sm:$0xff] %v705_v24  ;;  %v998_v31 = vadd.f32 %v997_v6, %v951_v20  ;;  %v838_v33 = vadd.f32 %v837_v15, %v705_v24 }
 0x14a   :  { %v1040_v32 = vadd.f32 %v1039_v7, %v953_v22  ;;  %v956_v34 = vmul.f32 %v705_v24, %v705_v24  ;;  %773 = vst [vmem:[%s1769_s2 + $0x1a8] sm:$0xff] %v594_v29  ;;  %775 = vst [vmem:[%s1769_s2 + $0x1b8] sm:$0xff] %v707_v30  ;;  %v817_v36 = vadd.f32 %v816_v19, %v594_v29 }
 0x14b   :  { %v978_v35 = vadd.f32 %v977_v25, %v954_v28  ;;  %v955_v37 = vmul.f32 %v594_v29, %v594_v29  ;;  %v859_v38 = vadd.f32 %v858_v21, %v707_v30  ;;  %v957_v40 = vmul.f32 %v707_v30, %v707_v30 }
 0x14c   :  { %v1020_v39 = vadd.f32 %v1019_v26, %v956_v34 }
 0x14d   :  { %v999_v41 = vadd.f32 %v998_v31, %v955_v37  ;;  %v1041_v42 = vadd.f32 %v1040_v32, %v957_v40  ;;  %v598_v43 = vpop.f32.mrb[28].mxu0  ;;  %v711_v44 = vpop.f32.mrb[28].mxu1 }
 0x14e   :  { %776 = vst [vmem:[%s1769_s2 + $0x1c0] sm:$0xff] %v598_v43  ;;  %v797_v47 = vadd.f32 %v796_v27, %v598_v43  ;;  %v958_v48 = vmul.f32 %v598_v43, %v598_v43  ;;  %778 = vst [vmem:[%s1769_s2 + $0x1d0] sm:$0xff] %v711_v44  ;;  %v839_v49 = vadd.f32 %v838_v33, %v711_v44  ;;  %v600_v51 = vpop.f32.mrb[29].mxu0  ;;  %v713_v52 = vpop.f32.mrb[29].mxu1 }
 0x14f   :  { %v960_v50 = vmul.f32 %v711_v44, %v711_v44  ;;  %777 = vst [vmem:[%s1769_s2 + $0x1c8] sm:$0xff] %v600_v51  ;;  %v818_v53 = vadd.f32 %v817_v36, %v600_v51  ;;  %v959_v54 = vmul.f32 %v600_v51, %v600_v51  ;;  %779 = vst [vmem:[%s1769_s2 + $0x1d8] sm:$0xff] %v713_v52  ;;  %v602_v57 = vpop.f32.mrb[30].mxu0  ;;  %v715_v58 = vpop.f32.mrb[30].mxu1 }
 0x150   :  { %v860_v55 = vadd.f32 %v859_v38, %v713_v52  ;;  %v961_v56 = vmul.f32 %v713_v52, %v713_v52  ;;  %v979_v59 = vadd.f32 %v978_v35, %v958_v48  ;;  %780 = vst [vmem:[%s1769_s2 + $0x1e0] sm:$0xff] %v602_v57  ;;  %v798_v61 = vadd.f32 %v797_v47, %v602_v57  ;;  %v604_v63 = vpop.f32.mrb[31].mxu0  ;;  %v717_v0 = vpop.f32.mrb[31].mxu1 }
 0x151   :  { %v1021_v60 = vadd.f32 %v1020_v39, %v960_v50  ;;  %v962_v62 = vmul.f32 %v602_v57, %v602_v57  ;;  %782 = vst [vmem:[%s1769_s2 + $0x1f0] sm:$0xff] %v715_v58  ;;  %v1000_v1 = vadd.f32 %v999_v41, %v959_v54  ;;  %v840_v3 = vadd.f32 %v839_v49, %v715_v58 }
 0x152   :  { %v1042_v2 = vadd.f32 %v1041_v42, %v961_v56  ;;  %v964_v4 = vmul.f32 %v715_v58, %v715_v58  ;;  %781 = vst [vmem:[%s1769_s2 + $0x1e8] sm:$0xff] %v604_v63  ;;  %783 = vst [vmem:[%s1769_s2 + $0x1f8] sm:$0xff] %v717_v0  ;;  %v799_v5 = vrot.slane %v798_v61, 4  ;;  %v819_v7 = vadd.f32 %v818_v53, %v604_v63 }
 0x153   :  { %v980_v6 = vadd.f32 %v979_v59, %v962_v62  ;;  %v963_v8 = vmul.f32 %v604_v63, %v604_v63  ;;  %v841_v9 = vrot.slane %v840_v3, 4  ;;  %v861_v13 = vadd.f32 %v860_v55, %v717_v0 }
 0x154   :  { %v1022_v10 = vadd.f32 %v1021_v60, %v964_v4  ;;  %v965_v14 = vmul.f32 %v717_v0, %v717_v0  ;;  %v800_v15 = vadd.f32 %v799_v5, %v798_v61  ;;  %v820_v17 = vrot.slane %v819_v7, 4 }
 0x155   :  { %v981_v16 = vrot.slane %v980_v6, 4  ;;  %v1001_v18 = vadd.f32 %v1000_v1, %v963_v8  ;;  %v842_v19 = vadd.f32 %v841_v9, %v840_v3  ;;  %v862_v21 = vrot.slane %v861_v13, 4 }
 0x156   :  { %v1023_v20 = vrot.slane %v1022_v10, 4  ;;  %v1043_v22 = vadd.f32 %v1042_v2, %v965_v14  ;;  %v801_v23 = vrot.slane %v800_v15, 2  ;;  %v821_v25 = vadd.f32 %v820_v17, %v819_v7 }
 0x157   :  { %v982_v24 = vadd.f32 %v981_v16, %v980_v6  ;;  %v1002_v26 = vrot.slane %v1001_v18, 4  ;;  %v843_v27 = vrot.slane %v842_v19, 2  ;;  %v863_v29 = vadd.f32 %v862_v21, %v861_v13 }
 0x158   :  { %v1024_v28 = vadd.f32 %v1023_v20, %v1022_v10  ;;  %v1044_v30 = vrot.slane %v1043_v22, 4  ;;  %v802_v31 = vadd.f32 %v801_v23, %v800_v15  ;;  %v822_v33 = vrot.slane %v821_v25, 2 }
 0x159   :  { %v983_v32 = vrot.slane %v982_v24, 2  ;;  %v1003_v34 = vadd.f32 %v1002_v26, %v1001_v18  ;;  %v844_v35 = vadd.f32 %v843_v27, %v842_v19  ;;  %v864_v37 = vrot.slane %v863_v29, 2 }
 0x15a   :  { %v1025_v36 = vrot.slane %v1024_v28, 2  ;;  %v1045_v38 = vadd.f32 %v1044_v30, %v1043_v22  ;;  %v803_v39 = vrot.slane %v802_v31, 1  ;;  %v823_v41 = vadd.f32 %v822_v33, %v821_v25 }
 0x15b   :  { %v984_v40 = vadd.f32 %v983_v32, %v982_v24  ;;  %v1004_v42 = vrot.slane %v1003_v34, 2  ;;  %v845_v43 = vrot.slane %v844_v35, 1  ;;  %v865_v47 = vadd.f32 %v864_v37, %v863_v29 }
 0x15c   :  { %v1026_v44 = vadd.f32 %v1025_v36, %v1024_v28  ;;  %v1046_v48 = vrot.slane %v1045_v38, 2  ;;  %v804_v49 = vadd.f32 %v803_v39, %v802_v31  ;;  %v824_v51 = vrot.slane %v823_v41, 1 }
 0x15d   :  { %v985_v50 = vrot.slane %v984_v40, 1  ;;  %v1005_v52 = vadd.f32 %v1004_v42, %v1003_v34  ;;  %v846_v53 = vadd.f32 %v845_v43, %v844_v35  ;;  %v866_v55 = vrot.slane %v865_v47, 1 }
 0x15e   :  { %v1027_v54 = vrot.slane %v1026_v44, 1  ;;  %v1047_v56 = vadd.f32 %v1046_v48, %v1045_v38  ;;  %v825_v58 = vadd.f32 %v824_v51, %v823_v41  ;;  %v879_v59 = vsub.s32 %v876_v45, %v1731_v46 }
 0x15f   :  { %v986_v57 = vadd.f32 %v985_v50, %v984_v40  ;;  %v1006_v60 = vrot.slane %v1005_v52, 1  ;;  %v867_v62 = vadd.f32 %v866_v55, %v865_v47 }
 0x160   :  { %v1028_v61 = vadd.f32 %v1027_v54, %v1026_v44  ;;  %v1048_v63 = vrot.slane %v1047_v56, 1  ;;  %v872_v0 = vcombine.low %v804_v49, %v825_v58 }
 0x161   :  { %v1007_v1 = vadd.f32 %v1006_v60, %v1005_v52  ;;  %v873_v2 = vcombine.low %v846_v53, %v867_v62 }
 0x162   :  { %v1049_v3 = vadd.f32 %v1048_v63, %v1047_v56  ;;  %v880_v4 = vrot.slane %v872_v0, %v879_v59 }
 0x163   :  { %v1054_v5 = vcombine.low %v986_v57, %v1007_v1  ;;  %v887_v6 = vrot.slane %v873_v2, %v879_v59 }
 0x164   :  { %v1055_v7 = vcombine.low %v1028_v61, %v1049_v3 }
 0x165   :  { %v1062_v8 = vrot.slane %v1054_v5, %v879_v59  ;;  %v888_v9 = vcombine.low %v880_v4, %v887_v6 }
 0x166   :  { %v1069_v10 = vrot.slane %v1055_v7, %v879_v59 }
 0x167   :  { %v895_v13 = vrot.slane %v888_v9, %v879_v59 }
 0x168   :  { %v1070_v11 = vcombine.low %v1062_v8, %v1069_v10 }
 0x169   :  { %901 = vst.msk [vmem:[%s1770_s3] sm:$0xf] %vm899_vm0, %v895_v13 }
 0x16a   :  { %v1077_v45 = vrot.slane %v1070_v11, %v879_v59 }
 0x16c   :  { %1079 = vst.msk [vmem:[%s1771_s4] sm:$0xf] %vm899_vm0, %v1077_v45 }

// kernel: model_forward.57
= control target key start
LH: loop header
LB: loop body
LE: loop exit
PB: predicated region body
PF: predicated region fallthrough
CT: control target
= control target key end

     0   :  { %v57_v0 = vlaneseq  ;;  %s874_s1 = inlined_call_operand.vmem [shape: f32[1,256], index: 1, kind: input, shape index: {}]   ;;  %s875_s2 = inlined_call_operand.vmem [shape: f32[1,256], index: 2, kind: input, shape index: {}]   ;;  %s876_s3 = inlined_call_operand.vmem [shape: bf16[128,256], index: 3, kind: input, shape index: {}]   ;;  %s877_s4 = inlined_call_operand.vmem [shape: f32[1,256], index: 4, kind: input, shape index: {}]   ;;  %s878_s0 = inlined_call_operand.vmem [shape: f32[128,256], index: 0, kind: input, shape index: {}]   ;;  %s879_s5 = inlined_call_operand.vmem [shape: f32[1,256], index: 5, kind: input, shape index: {}]   ;;  %s880_s6 = inlined_call_operand.vmem [shape: bf16[128,256], index: 6, kind: output, shape index: {}]  }
   0x1   :  { %v143_v2 = vld [vmem:[%s876_s3] sm:$0xff]  ;;  %v144_v10 = vld [vmem:[%s876_s3 + $0x8] sm:$0xff]  ;;  %v25_v14 = vld [vmem:[%s878_s0 + $0x10] sm:$0xff] }
   0x2   :  { %v58_v1 = vshrl.u32 %v57_v0, 7  ;;  %v55_v3 = vld [vmem:[%s874_s1] sm:$0x3]  ;;  %v24_v11 = vld [vmem:[%s878_s0 + $0x8] sm:$0xff]  ;;  %v159_v12 = vunpack.c.l.bf16 %v143_v2  ;;  %v160_v13 = vunpack.c.h.bf16 %v143_v2  ;;  %v26_v15 = vld [vmem:[%s878_s0 + $0x18] sm:$0xff]  ;;  %v161_v16 = vunpack.c.l.bf16 %v144_v10 }
   0x3   :  { %v99_v4 = vld [vmem:[%s875_s2] sm:$0x3]  ;;  %v162_v17 = vunpack.c.h.bf16 %v144_v10  ;;  %v28_v31 = vld [vmem:[%s878_s0 + $0x28] sm:$0xff]  ;;  %v145_v32 = vld [vmem:[%s876_s3 + $0x10] sm:$0xff] }
   0x4   :  { %v191_v5 = vld [vmem:[%s877_s4] sm:$0x3]  ;;  %v59_v7 = vsub.s32 0, %v58_v1  ;;  %v63_v8 = vsub.s32 1, %v58_v1  ;;  %v163_v43 = vunpack.c.l.bf16 %v145_v32  ;;  %v164_v44 = vunpack.c.h.bf16 %v145_v32  ;;  %v29_v49 = vld [vmem:[%s878_s0 + $0x30] sm:$0xff]  ;;  %v30_v50 = vld [vmem:[%s878_s0 + $0x38] sm:$0xff] }
   0x5   :  { %v23_v6 = vld [vmem:[%s878_s0] sm:$0xff]  ;;  %v146_v63 = vld [vmem:[%s876_s3 + $0x18] sm:$0xff] }
   0x6   :  { %v267_v9 = vld [vmem:[%s879_s5] sm:$0x3]  ;;  %v556_v18 = vrot.slane %v55_v3, %v59_v7  ;;  %v558_v19 = vrot.slane %v55_v3, %v63_v8  ;;  %v560_v20 = vrot.slane %v99_v4, %v59_v7  ;;  %v562_v21 = vrot.slane %v99_v4, %v63_v8  ;;  %v34_v32 = vld [vmem:[%s878_s0 + $0x58] sm:$0xff] }
   0x7   :  { %v564_v22 = vrot.slane %v191_v5, %v59_v7  ;;  %v566_v23 = vrot.slane %v191_v5, %v63_v8  ;;  %v568_v24 = vrot.slane %v267_v9, %v59_v7  ;;  %v570_v25 = vrot.slane %v267_v9, %v63_v8  ;;  %v27_v30 = vld [vmem:[%s878_s0 + $0x20] sm:$0xff]  ;;  %v32_v5 = vld [vmem:[%s878_s0 + $0x48] sm:$0xff] }
   0x8   :  { %v67_v26 = vmul.f32 %v556_v18, %v23_v6  ;;  %v68_v27 = vmul.f32 %v558_v19, %v24_v11  ;;  %v69_v28 = vmul.f32 %v556_v18, %v25_v14  ;;  %v70_v29 = vmul.f32 %v558_v19, %v26_v15  ;;  %v31_v4 = vld [vmem:[%s878_s0 + $0x40] sm:$0xff]  ;;  %v33_v15 = vld [vmem:[%s878_s0 + $0x50] sm:$0xff] }
   0x9   :  { %v203_v33 = vmul.f32 %v564_v22, %v159_v12  ;;  %v204_v34 = vmul.f32 %v566_v23, %v160_v13  ;;  %v205_v35 = vmul.f32 %v564_v22, %v161_v16  ;;  %v206_v36 = vmul.f32 %v566_v23, %v162_v17  ;;  %v147_v10 = vld [vmem:[%s876_s3 + $0x20] sm:$0xff] }
   0xa   :  { %v111_v37 = vadd.f32 %v560_v20, %v67_v26  ;;  %v112_v38 = vadd.f32 %v562_v21, %v68_v27  ;;  %v113_v39 = vadd.f32 %v560_v20, %v69_v28  ;;  %v114_v40 = vadd.f32 %v562_v21, %v70_v29 }
   0xb   :  { %v71_v41 = vmul.f32 %v556_v18, %v27_v30  ;;  %v72_v42 = vmul.f32 %v558_v19, %v28_v31  ;;  %v207_v53 = vmul.f32 %v564_v22, %v163_v43  ;;  %v208_v54 = vmul.f32 %v566_v23, %v164_v44 }
   0xc   :  { %v235_v45 = vadd.f32 %v203_v33, %v111_v37  ;;  %v236_v46 = vadd.f32 %v204_v34, %v112_v38  ;;  %v237_v47 = vadd.f32 %v205_v35, %v113_v39  ;;  %v238_v48 = vadd.f32 %v206_v36, %v114_v40  ;;  %v148_v33 = vld [vmem:[%s876_s3 + $0x28] sm:$0xff] }
   0xd   :  { %v115_v51 = vadd.f32 %v560_v20, %v71_v41  ;;  %v116_v52 = vadd.f32 %v562_v21, %v72_v42  ;;  %v73_v61 = vmul.f32 %v556_v18, %v29_v49  ;;  %v74_v62 = vmul.f32 %v558_v19, %v30_v50  ;;  %v35_v42 = vld [vmem:[%s878_s0 + $0x60] sm:$0xff] }
   0xe   :  { %v279_v55 = vadd.f32 %v568_v24, %v235_v45  ;;  %v280_v56 = vadd.f32 %v570_v25, %v236_v46  ;;  %v281_v57 = vadd.f32 %v568_v24, %v237_v47  ;;  %v282_v58 = vadd.f32 %v570_v25, %v238_v48 }
   0xf   :  { %v239_v59 = vadd.f32 %v207_v53, %v115_v51  ;;  %v240_v60 = vadd.f32 %v208_v54, %v116_v52  ;;  %v117_v8 = vadd.f32 %v560_v20, %v73_v61  ;;  %v118_v9 = vadd.f32 %v562_v21, %v74_v62  ;;  %v36_v51 = vld [vmem:[%s878_s0 + $0x68] sm:$0xff] }
  0x10   :  { %v311_v0 = vmax.f32 %v279_v55, 0.0  ;;  %v312_v1 = vmax.f32 %v280_v56, 0.0  ;;  %v313_v2 = vmax.f32 %v281_v57, 0.0  ;;  %v314_v3 = vmax.f32 %v282_v58, 0.0  ;;  %v149_v56 = vld [vmem:[%s876_s3 + $0x30] sm:$0xff] }
  0x11   :  { %v283_v6 = vadd.f32 %v568_v24, %v239_v59  ;;  %v284_v7 = vadd.f32 %v570_v25, %v240_v60  ;;  %v165_v13 = vunpack.c.l.bf16 %v146_v63  ;;  %v166_v14 = vunpack.c.h.bf16 %v146_v63 }
  0x12   :  { %v475_v11 = vpack.c.bf16 %v312_v1, %v311_v0  ;;  %v476_v12 = vpack.c.bf16 %v314_v3, %v313_v2  ;;  %v75_v26 = vmul.f32 %v556_v18, %v31_v4  ;;  %v76_v27 = vmul.f32 %v558_v19, %v32_v5  ;;  %v37_v1 = vld [vmem:[%s878_s0 + $0x70] sm:$0xff]  ;;  %v38_v2 = vld [vmem:[%s878_s0 + $0x78] sm:$0xff] }
  0x13   :  { %v315_v16 = vmax.f32 %v283_v6, 0.0  ;;  %v316_v17 = vmax.f32 %v284_v7, 0.0  ;;  %v209_v28 = vmul.f32 %v564_v22, %v165_v13  ;;  %v210_v29 = vmul.f32 %v566_v23, %v166_v14  ;;  %v150_v7 = vld [vmem:[%s876_s3 + $0x38] sm:$0xff] }
  0x14   :  { %439 = vst [vmem:[%s880_s6] sm:$0xff] %v475_v11  ;;  %440 = vst [vmem:[%s880_s6 + $0x8] sm:$0xff] %v476_v12  ;;  %v167_v30 = vunpack.c.l.bf16 %v147_v10  ;;  %v168_v31 = vunpack.c.h.bf16 %v147_v10  ;;  %v119_v35 = vadd.f32 %v560_v20, %v75_v26  ;;  %v120_v36 = vadd.f32 %v562_v21, %v76_v27 }
  0x15   :  { %v477_v34 = vpack.c.bf16 %v316_v17, %v315_v16  ;;  %v77_v37 = vmul.f32 %v556_v18, %v33_v15  ;;  %v241_v38 = vadd.f32 %v209_v28, %v117_v8  ;;  %v242_v39 = vadd.f32 %v210_v29, %v118_v9  ;;  %v39_v16 = vld [vmem:[%s878_s0 + $0x80] sm:$0xff]  ;;  %v40_v29 = vld [vmem:[%s878_s0 + $0x88] sm:$0xff] }
  0x16   :  { %v211_v40 = vmul.f32 %v564_v22, %v167_v30  ;;  %v212_v41 = vmul.f32 %v566_v23, %v168_v31  ;;  %v78_v43 = vmul.f32 %v558_v19, %v34_v32  ;;  %v169_v45 = vunpack.c.l.bf16 %v148_v33  ;;  %v151_v30 = vld [vmem:[%s876_s3 + $0x40] sm:$0xff] }
  0x17   :  { %441 = vst [vmem:[%s880_s6 + $0x10] sm:$0xff] %v477_v34  ;;  %v121_v44 = vadd.f32 %v560_v20, %v77_v37  ;;  %v170_v46 = vunpack.c.h.bf16 %v148_v33  ;;  %v285_v47 = vadd.f32 %v568_v24, %v241_v38  ;;  %v286_v48 = vadd.f32 %v570_v25, %v242_v39 }
  0x18   :  { %v243_v49 = vadd.f32 %v211_v40, %v119_v35  ;;  %v244_v50 = vadd.f32 %v212_v41, %v120_v36  ;;  %v122_v52 = vadd.f32 %v562_v21, %v78_v43  ;;  %v213_v53 = vmul.f32 %v564_v22, %v169_v45  ;;  %v41_v43 = vld [vmem:[%s878_s0 + $0x90] sm:$0xff] }
  0x19   :  { %v214_v54 = vmul.f32 %v566_v23, %v170_v46  ;;  %v79_v55 = vmul.f32 %v556_v18, %v35_v42  ;;  %v317_v57 = vmax.f32 %v285_v47, 0.0  ;;  %v318_v58 = vmax.f32 %v286_v48, 0.0  ;;  %v42_v48 = vld [vmem:[%s878_s0 + $0x98] sm:$0xff] }
  0x1a   :  { %v287_v59 = vadd.f32 %v568_v24, %v243_v49  ;;  %v288_v60 = vadd.f32 %v570_v25, %v244_v50  ;;  %v245_v61 = vadd.f32 %v213_v53, %v121_v44  ;;  %v80_v63 = vmul.f32 %v558_v19, %v36_v51  ;;  %v152_v49 = vld [vmem:[%s876_s3 + $0x48] sm:$0xff] }
  0x1b   :  { %v246_v62 = vadd.f32 %v214_v54, %v122_v52  ;;  %v123_v0 = vadd.f32 %v560_v20, %v79_v55  ;;  %v478_v3 = vpack.c.bf16 %v318_v58, %v317_v57  ;;  %v171_v6 = vunpack.c.l.bf16 %v149_v56 }
  0x1c   :  { %v319_v4 = vmax.f32 %v287_v59, 0.0  ;;  %v320_v5 = vmax.f32 %v288_v60, 0.0  ;;  %v289_v8 = vadd.f32 %v568_v24, %v245_v61  ;;  %v124_v10 = vadd.f32 %v562_v21, %v80_v63  ;;  %v44_v63 = vld [vmem:[%s878_s0 + $0xa8] sm:$0xff] }
  0x1d   :  { %v290_v9 = vadd.f32 %v570_v25, %v246_v62  ;;  %v172_v11 = vunpack.c.h.bf16 %v149_v56  ;;  %442 = vst [vmem:[%s880_s6 + $0x18] sm:$0xff] %v478_v3  ;;  %v215_v13 = vmul.f32 %v564_v22, %v171_v6  ;;  %v81_v14 = vmul.f32 %v556_v18, %v37_v1  ;;  %v43_v62 = vld [vmem:[%s878_s0 + $0xa0] sm:$0xff] }
  0x1e   :  { %v479_v12 = vpack.c.bf16 %v320_v5, %v319_v4  ;;  %v82_v15 = vmul.f32 %v558_v19, %v38_v2  ;;  %v321_v17 = vmax.f32 %v289_v8, 0.0  ;;  %v173_v28 = vunpack.c.l.bf16 %v150_v7  ;;  %v153_v4 = vld [vmem:[%s876_s3 + $0x50] sm:$0xff] }
  0x1f   :  { %v322_v26 = vmax.f32 %v290_v9, 0.0  ;;  %v216_v27 = vmul.f32 %v566_v23, %v172_v11  ;;  %v247_v31 = vadd.f32 %v215_v13, %v123_v0  ;;  %v125_v32 = vadd.f32 %v560_v20, %v81_v14  ;;  %v45_v13 = vld [vmem:[%s878_s0 + $0xb0] sm:$0xff] }
  0x20   :  { %443 = vst [vmem:[%s880_s6 + $0x20] sm:$0xff] %v479_v12  ;;  %v126_v33 = vadd.f32 %v562_v21, %v82_v15  ;;  %v174_v34 = vunpack.c.h.bf16 %v150_v7  ;;  %v217_v37 = vmul.f32 %v564_v22, %v173_v28  ;;  %v83_v38 = vmul.f32 %v556_v18, %v39_v16 }
  0x21   :  { %v480_v35 = vpack.c.bf16 %v322_v26, %v321_v17  ;;  %v248_v36 = vadd.f32 %v216_v27, %v124_v10  ;;  %v291_v39 = vadd.f32 %v568_v24, %v247_v31  ;;  %v84_v41 = vmul.f32 %v558_v19, %v40_v29  ;;  %v46_v26 = vld [vmem:[%s878_s0 + $0xb8] sm:$0xff] }
  0x22   :  { %v218_v40 = vmul.f32 %v566_v23, %v174_v34  ;;  %v175_v42 = vunpack.c.l.bf16 %v151_v30  ;;  %v249_v45 = vadd.f32 %v217_v37, %v125_v32  ;;  %v127_v46 = vadd.f32 %v560_v20, %v83_v38  ;;  %v154_v27 = vld [vmem:[%s876_s3 + $0x58] sm:$0xff] }
  0x23   :  { %444 = vst [vmem:[%s880_s6 + $0x28] sm:$0xff] %v480_v35  ;;  %v292_v44 = vadd.f32 %v570_v25, %v248_v36  ;;  %v176_v47 = vunpack.c.h.bf16 %v151_v30  ;;  %v323_v50 = vmax.f32 %v291_v39, 0.0  ;;  %v128_v52 = vadd.f32 %v562_v21, %v84_v41 }
  0x24   :  { %v250_v51 = vadd.f32 %v218_v40, %v126_v33  ;;  %v219_v53 = vmul.f32 %v564_v22, %v175_v42  ;;  %v293_v55 = vadd.f32 %v568_v24, %v249_v45  ;;  %v85_v57 = vmul.f32 %v556_v18, %v41_v43  ;;  %v47_v40 = vld [vmem:[%s878_s0 + $0xc0] sm:$0xff]  ;;  %v48_v45 = vld [vmem:[%s878_s0 + $0xc8] sm:$0xff] }
  0x25   :  { %v324_v54 = vmax.f32 %v292_v44, 0.0  ;;  %v220_v56 = vmul.f32 %v566_v23, %v176_v47  ;;  %v86_v60 = vmul.f32 %v558_v19, %v42_v48  ;;  %v177_v61 = vunpack.c.l.bf16 %v152_v49 }
  0x26   :  { %v294_v58 = vadd.f32 %v570_v25, %v250_v51  ;;  %v251_v59 = vadd.f32 %v219_v53, %v127_v46  ;;  %v325_v1 = vmax.f32 %v293_v55, 0.0  ;;  %v129_v3 = vadd.f32 %v560_v20, %v85_v57  ;;  %v155_v46 = vld [vmem:[%s876_s3 + $0x60] sm:$0xff] }
  0x27   :  { %v481_v0 = vpack.c.bf16 %v324_v54, %v323_v50  ;;  %v252_v2 = vadd.f32 %v220_v56, %v128_v52  ;;  %v130_v7 = vadd.f32 %v562_v21, %v86_v60  ;;  %v178_v8 = vunpack.c.h.bf16 %v152_v49  ;;  %v50_v60 = vld [vmem:[%s878_s0 + $0xd8] sm:$0xff] }
  0x28   :  { %v326_v5 = vmax.f32 %v294_v58, 0.0  ;;  %v295_v6 = vadd.f32 %v568_v24, %v251_v59  ;;  %v221_v10 = vmul.f32 %v564_v22, %v177_v61  ;;  %v87_v11 = vmul.f32 %v556_v18, %v43_v62  ;;  %v49_v59 = vld [vmem:[%s878_s0 + $0xd0] sm:$0xff] }
  0x29   :  { %445 = vst [vmem:[%s880_s6 + $0x30] sm:$0xff] %v481_v0  ;;  %v296_v9 = vadd.f32 %v570_v25, %v252_v2  ;;  %v88_v12 = vmul.f32 %v558_v19, %v44_v63  ;;  %v222_v16 = vmul.f32 %v566_v23, %v178_v8  ;;  %v179_v17 = vunpack.c.l.bf16 %v153_v4 }
  0x2a   :  { %v482_v14 = vpack.c.bf16 %v326_v5, %v325_v1  ;;  %v327_v15 = vmax.f32 %v295_v6, 0.0  ;;  %v253_v29 = vadd.f32 %v221_v10, %v129_v3  ;;  %v131_v30 = vadd.f32 %v560_v20, %v87_v11  ;;  %v156_v1 = vld [vmem:[%s876_s3 + $0x68] sm:$0xff] }
  0x2b   :  { %v328_v28 = vmax.f32 %v296_v9, 0.0  ;;  %v132_v31 = vadd.f32 %v562_v21, %v88_v12  ;;  %v254_v32 = vadd.f32 %v222_v16, %v130_v7  ;;  %v180_v33 = vunpack.c.h.bf16 %v153_v4  ;;  %v157_v16 = vld [vmem:[%s876_s3 + $0x70] sm:$0xff] }
  0x2c   :  { %446 = vst [vmem:[%s880_s6 + $0x38] sm:$0xff] %v482_v14  ;;  %v223_v34 = vmul.f32 %v564_v22, %v179_v17  ;;  %v89_v35 = vmul.f32 %v556_v18, %v45_v13  ;;  %v297_v37 = vadd.f32 %v568_v24, %v253_v29  ;;  %v90_v38 = vmul.f32 %v558_v19, %v46_v26  ;;  %v51_v14 = vld [vmem:[%s878_s0 + $0xe0] sm:$0xff] }
  0x2d   :  { %v483_v36 = vpack.c.bf16 %v328_v28, %v327_v15  ;;  %v181_v39 = vunpack.c.l.bf16 %v154_v27  ;;  %v298_v41 = vadd.f32 %v570_v25, %v254_v32  ;;  %v224_v42 = vmul.f32 %v566_v23, %v180_v33  ;;  %v52_v15 = vld [vmem:[%s878_s0 + $0xe8] sm:$0xff] }
  0x2e   :  { %v255_v43 = vadd.f32 %v223_v34, %v131_v30  ;;  %v133_v44 = vadd.f32 %v560_v20, %v89_v35  ;;  %v329_v47 = vmax.f32 %v297_v37, 0.0  ;;  %v134_v48 = vadd.f32 %v562_v21, %v90_v38 }
  0x2f   :  { %447 = vst [vmem:[%s880_s6 + $0x40] sm:$0xff] %v483_v36  ;;  %v182_v49 = vunpack.c.h.bf16 %v154_v27  ;;  %v225_v50 = vmul.f32 %v564_v22, %v181_v39  ;;  %v330_v51 = vmax.f32 %v298_v41, 0.0  ;;  %v256_v52 = vadd.f32 %v224_v42, %v132_v31  ;;  %v53_v41 = vld [vmem:[%s878_s0 + $0xf0] sm:$0xff]  ;;  %v54_v42 = vld [vmem:[%s878_s0 + $0xf8] sm:$0xff] }
  0x30   :  { %v299_v53 = vadd.f32 %v568_v24, %v255_v43  ;;  %v91_v54 = vmul.f32 %v556_v18, %v47_v40  ;;  %v92_v57 = vmul.f32 %v558_v19, %v48_v45  ;;  %v183_v58 = vunpack.c.l.bf16 %v155_v46  ;;  %v158_v43 = vld [vmem:[%s876_s3 + $0x78] sm:$0xff] }
  0x31   :  { %v226_v55 = vmul.f32 %v566_v23, %v182_v49  ;;  %v257_v56 = vadd.f32 %v225_v50, %v133_v44  ;;  %v484_v61 = vpack.c.bf16 %v330_v51, %v329_v47  ;;  %v300_v62 = vadd.f32 %v570_v25, %v256_v52 }
  0x32   :  { %v331_v63 = vmax.f32 %v299_v53, 0.0  ;;  %v135_v0 = vadd.f32 %v560_v20, %v91_v54  ;;  %v136_v4 = vadd.f32 %v562_v21, %v92_v57  ;;  %v184_v5 = vunpack.c.h.bf16 %v155_v46 }
  0x33   :  { %v258_v2 = vadd.f32 %v226_v55, %v134_v48  ;;  %v301_v3 = vadd.f32 %v568_v24, %v257_v56  ;;  %448 = vst [vmem:[%s880_s6 + $0x48] sm:$0xff] %v484_v61  ;;  %v332_v6 = vmax.f32 %v300_v62, 0.0  ;;  %v227_v7 = vmul.f32 %v564_v22, %v183_v58 }
  0x34   :  { %v93_v8 = vmul.f32 %v556_v18, %v49_v59  ;;  %v94_v9 = vmul.f32 %v558_v19, %v50_v60  ;;  %v228_v12 = vmul.f32 %v566_v23, %v184_v5  ;;  %v185_v13 = vunpack.c.l.bf16 %v156_v1 }
  0x35   :  { %v302_v10 = vadd.f32 %v570_v25, %v258_v2  ;;  %v333_v11 = vmax.f32 %v301_v3, 0.0  ;;  %v485_v17 = vpack.c.bf16 %v332_v6, %v331_v63  ;;  %v259_v26 = vadd.f32 %v227_v7, %v135_v0 }
  0x36   :  { %v137_v27 = vadd.f32 %v560_v20, %v93_v8  ;;  %v138_v28 = vadd.f32 %v562_v21, %v94_v9  ;;  %v260_v30 = vadd.f32 %v228_v12, %v136_v4  ;;  %v186_v31 = vunpack.c.h.bf16 %v156_v1 }
  0x37   :  { %v334_v29 = vmax.f32 %v302_v10, 0.0  ;;  %v229_v32 = vmul.f32 %v564_v22, %v185_v13  ;;  %449 = vst [vmem:[%s880_s6 + $0x50] sm:$0xff] %v485_v17  ;;  %v303_v33 = vadd.f32 %v568_v24, %v259_v26  ;;  %v95_v34 = vmul.f32 %v556_v18, %v51_v14 }
  0x38   :  { %v96_v35 = vmul.f32 %v558_v19, %v52_v15  ;;  %v187_v36 = vunpack.c.l.bf16 %v157_v16  ;;  %v304_v38 = vadd.f32 %v570_v25, %v260_v30  ;;  %v230_v39 = vmul.f32 %v566_v23, %v186_v31 }
  0x39   :  { %v486_v37 = vpack.c.bf16 %v334_v29, %v333_v11  ;;  %v261_v40 = vadd.f32 %v229_v32, %v137_v27  ;;  %v335_v44 = vmax.f32 %v303_v33, 0.0  ;;  %v139_v45 = vadd.f32 %v560_v20, %v95_v34 }
  0x3a   :  { %v140_v46 = vadd.f32 %v562_v21, %v96_v35  ;;  %v188_v47 = vunpack.c.h.bf16 %v157_v16  ;;  %v336_v48 = vmax.f32 %v304_v38, 0.0  ;;  %v262_v49 = vadd.f32 %v230_v39, %v138_v28 }
  0x3b   :  { %450 = vst [vmem:[%s880_s6 + $0x58] sm:$0xff] %v486_v37  ;;  %v305_v50 = vadd.f32 %v568_v24, %v261_v40  ;;  %v231_v51 = vmul.f32 %v564_v22, %v187_v36  ;;  %v97_v53 = vmul.f32 %v556_v18, %v53_v41  ;;  %v98_v54 = vmul.f32 %v558_v19, %v54_v42 }
  0x3c   :  { %v232_v52 = vmul.f32 %v566_v23, %v188_v47  ;;  %v189_v55 = vunpack.c.l.bf16 %v158_v43  ;;  %v487_v56 = vpack.c.bf16 %v336_v48, %v335_v44  ;;  %v306_v57 = vadd.f32 %v570_v25, %v262_v49 }
  0x3d   :  { %v337_v58 = vmax.f32 %v305_v50, 0.0  ;;  %v263_v59 = vadd.f32 %v231_v51, %v139_v45  ;;  %v141_v61 = vadd.f32 %v560_v20, %v97_v53  ;;  %v142_v62 = vadd.f32 %v562_v21, %v98_v54 }
  0x3e   :  { %v264_v60 = vadd.f32 %v232_v52, %v140_v46  ;;  %v190_v63 = vunpack.c.h.bf16 %v158_v43  ;;  %451 = vst [vmem:[%s880_s6 + $0x60] sm:$0xff] %v487_v56  ;;  %v338_v0 = vmax.f32 %v306_v57, 0.0  ;;  %v233_v19 = vmul.f32 %v564_v22, %v189_v55 }
  0x3f   :  { %v307_v18 = vadd.f32 %v568_v24, %v263_v59 }
  0x40   :  { %v308_v1 = vadd.f32 %v570_v25, %v264_v60  ;;  %v234_v2 = vmul.f32 %v566_v23, %v190_v63  ;;  %v488_v3 = vpack.c.bf16 %v338_v0, %v337_v58  ;;  %v265_v5 = vadd.f32 %v233_v19, %v141_v61 }
  0x41   :  { %v339_v4 = vmax.f32 %v307_v18, 0.0 }
  0x42   :  { %v340_v20 = vmax.f32 %v308_v1, 0.0  ;;  %v266_v6 = vadd.f32 %v234_v2, %v142_v62  ;;  %452 = vst [vmem:[%s880_s6 + $0x68] sm:$0xff] %v488_v3  ;;  %v309_v21 = vadd.f32 %v568_v24, %v265_v5 }
  0x44   :  { %v489_v7 = vpack.c.bf16 %v340_v20, %v339_v4  ;;  %v310_v8 = vadd.f32 %v570_v25, %v266_v6  ;;  %v341_v9 = vmax.f32 %v309_v21, 0.0 }
  0x46   :  { %453 = vst [vmem:[%s880_s6 + $0x70] sm:$0xff] %v489_v7  ;;  %v342_v22 = vmax.f32 %v310_v8, 0.0 }
  0x48   :  { %v490_v23 = vpack.c.bf16 %v342_v22, %v341_v9 }
  0x4a   :  { %454 = vst [vmem:[%s880_s6 + $0x78] sm:$0xff] %v490_v23 }

</bundles_post_ra>
